<compile_context>
chip_gen: v7x
topology: tpu7x:2x2x1
jax: 0.10.0
libtpu: 0.0.40
codegen_flags: <defaults>
</compile_context>

<pallas_src>
import jax
import jax.numpy as jnp
from jax import lax
from jax.experimental import pallas as pl
from jax.experimental.pallas import tpu as pltpu

EPS = 1e-5
VMEM_LIMIT = 32 * 1024 * 1024  # explicit scoped-VMEM budget, safe on v5e/v6e/v7x


def _compiler_params():
    return pltpu.CompilerParams(dimension_semantics=("parallel",),
                                vmem_limit_bytes=VMEM_LIMIT)


# ----------------------------- in-kernel helpers ----------------------------

def _bn_relu_pad_im2col(x, scale, bias, pad_ref):
    """BN(scale,bias)+ReLU of x, zero-padded into a VMEM scratch, im2col'd.

    x: (H, W, Cin) f32; scale/bias: (1, Cin) f32; pad_ref: (H+2, W+2, Cin)
    f32 VMEM scratch.  Returns (H*W, 9*Cin) bf16 patches for one stacked MXU
    matmul.  Padding is applied AFTER BN+ReLU (it belongs to the conv), so the
    border must be exactly zero -> the scratch is cleared each step (required
    when the batch grid axis is split across TensorCores).
    """
    H, W, Cin = x.shape
    y = jnp.maximum(x * scale + bias, 0.0)
    pad_ref[...] = jnp.zeros(pad_ref.shape, jnp.float32)
    pad_ref[pl.ds(1, H), pl.ds(1, W), :] = y
    cols = []
    for dy in range(3):                      # static python loops (trace time)
        for dx in range(3):
            tap = pad_ref[pl.ds(dy, H), pl.ds(dx, W), :]   # static-offset load
            cols.append(tap.reshape(H * W, Cin))
    # tap-major / channel-minor order matches HWIO weight flattening.
    return jnp.concatenate(cols, axis=-1).astype(jnp.bfloat16)


def _stats(acc):
    """Per-channel (sum, sum-of-squares) of an (H*W, C) f32 accumulator."""
    return jnp.concatenate([jnp.sum(acc, axis=0, keepdims=True),
                            jnp.sum(acc * acc, axis=0, keepdims=True)], axis=0)


# ----------------------------- Pallas kernels ------------------------------

def _head_kernel(x_ref, s1_ref, b1_ref, w1_ref, sd_ref, bd_ref, wd_ref,
                 out1_ref, res_ref, st1_ref, pad_ref):
    """Fused: BN1+ReLU+conv1(3x3) AND BN_d+ReLU+downsample(1x1) from one x read."""
    H, W, Cin = x_ref.shape[1], x_ref.shape[2], x_ref.shape[3]
    C1 = out1_ref.shape[3]
    x = x_ref[0]

    # conv1 branch: stacked im2col matmul, + (sum, sumsq) side output.
    patches = _bn_relu_pad_im2col(x, s1_ref[...], b1_ref[...], pad_ref)
    acc1 = jnp.dot(patches, w1_ref[...], preferred_element_type=jnp.float32)
    out1_ref[0] = acc1.reshape(H, W, C1).astype(out1_ref.dtype)
    st1_ref[0] = _stats(acc1)

    # residual (1x1 downsample) branch, reuses the same x tile (no 2nd HBM read).
    yd = jnp.maximum(x * sd_ref[...] + bd_ref[...], 0.0).astype(jnp.bfloat16)
    r = jnp.dot(yd.reshape(H * W, Cin), wd_ref[...],
                preferred_element_type=jnp.float32)
    res_ref[0] = r.reshape(H, W, res_ref.shape[3]).astype(res_ref.dtype)


def _conv3x3_kernel(x_ref, s_ref, b_ref, w_ref, o_ref, st_ref, pad_ref):
    """BN+ReLU+3x3 conv as one stacked matmul, + (sum, sumsq) side output."""
    H, W = x_ref.shape[1], x_ref.shape[2]
    Cout = o_ref.shape[3]
    patches = _bn_relu_pad_im2col(x_ref[0], s_ref[...], b_ref[...], pad_ref)
    acc = jnp.dot(patches, w_ref[...], preferred_element_type=jnp.float32)
    o_ref[0] = acc.reshape(H, W, Cout).astype(o_ref.dtype)
    st_ref[0] = _stats(acc)


def _tail_kernel(x2_ref, s3_ref, b3_ref, w3_ref, out1_ref, res_ref, o_ref,
                 pad_ref):
    """BN3+ReLU+conv3(3x3), then fused concat(out1,out2,out3)+residual: one
    out_planes-wide store (no separate concat / residual-add HBM passes)."""
    H, W = x2_ref.shape[1], x2_ref.shape[2]
    C3 = w3_ref.shape[1]
    patches = _bn_relu_pad_im2col(x2_ref[0], s3_ref[...], b3_ref[...], pad_ref)
    acc = jnp.dot(patches, w3_ref[...], preferred_element_type=jnp.float32)
    out3 = acc.reshape(H, W, C3)
    cat = jnp.concatenate([out1_ref[0], x2_ref[0], out3], axis=-1)
    o_ref[0] = (cat + res_ref[0]).astype(o_ref.dtype)


# ------------------------------ kernel wrappers -----------------------------

def head_call(x, s1, b1, w1f, sd, bd, wdf):
    N, H, W, Cin = x.shape
    C1 = w1f.shape[1]
    Cout = wdf.shape[1]
    scal = pl.BlockSpec((1, Cin), lambda n: (0, 0))
    return pl.pallas_call(
        _head_kernel,
        out_shape=(jax.ShapeDtypeStruct((N, H, W, C1), jnp.float32),
                   jax.ShapeDtypeStruct((N, H, W, Cout), jnp.float32),
                   jax.ShapeDtypeStruct((N, 2, C1), jnp.float32)),
        grid=(N,),
        in_specs=[
            pl.BlockSpec((1, H, W, Cin), lambda n: (n, 0, 0, 0)),
            scal, scal,
            pl.BlockSpec((9 * Cin, C1), lambda n: (0, 0)),
            scal, scal,
            pl.BlockSpec((Cin, Cout), lambda n: (0, 0)),
        ],
        out_specs=(pl.BlockSpec((1, H, W, C1), lambda n: (n, 0, 0, 0)),
                   pl.BlockSpec((1, H, W, Cout), lambda n: (n, 0, 0, 0)),
                   pl.BlockSpec((1, 2, C1), lambda n: (n, 0, 0))),
        scratch_shapes=[pltpu.VMEM((H + 2, W + 2, Cin), jnp.float32)],
        compiler_params=_compiler_params(),
    )(x, s1, b1, w1f, sd, bd, wdf)


def conv3x3_call(x, s, b, wf):
    N, H, W, Cin = x.shape
    Cout = wf.shape[1]
    scal = pl.BlockSpec((1, Cin), lambda n: (0, 0))
    return pl.pallas_call(
        _conv3x3_kernel,
        out_shape=(jax.ShapeDtypeStruct((N, H, W, Cout), jnp.float32),
                   jax.ShapeDtypeStruct((N, 2, Cout), jnp.float32)),
        grid=(N,),
        in_specs=[pl.BlockSpec((1, H, W, Cin), lambda n: (n, 0, 0, 0)),
                  scal, scal,
                  pl.BlockSpec((9 * Cin, Cout), lambda n: (0, 0))],
        out_specs=(pl.BlockSpec((1, H, W, Cout), lambda n: (n, 0, 0, 0)),
                   pl.BlockSpec((1, 2, Cout), lambda n: (n, 0, 0))),
        scratch_shapes=[pltpu.VMEM((H + 2, W + 2, Cin), jnp.float32)],
        compiler_params=_compiler_params(),
    )(x, s, b, wf)


def tail_call(out2, s3, b3, w3f, out1, residual):
    N, H, W, C2 = out2.shape
    C1 = out1.shape[3]
    C3 = w3f.shape[1]
    Cout = residual.shape[3]
    assert Cout == C1 + C2 + C3, (Cout, C1, C2, C3)
    scal = pl.BlockSpec((1, C2), lambda n: (0, 0))
    return pl.pallas_call(
        _tail_kernel,
        out_shape=jax.ShapeDtypeStruct((N, H, W, Cout), jnp.float32),
        grid=(N,),
        in_specs=[pl.BlockSpec((1, H, W, C2), lambda n: (n, 0, 0, 0)),
                  scal, scal,
                  pl.BlockSpec((9 * C2, C3), lambda n: (0, 0)),
                  pl.BlockSpec((1, H, W, C1), lambda n: (n, 0, 0, 0)),
                  pl.BlockSpec((1, H, W, Cout), lambda n: (n, 0, 0, 0))],
        out_specs=pl.BlockSpec((1, H, W, Cout), lambda n: (n, 0, 0, 0)),
        scratch_shapes=[pltpu.VMEM((H + 2, W + 2, C2), jnp.float32)],
        compiler_params=_compiler_params(),
    )(out2, s3, b3, w3f, out1, residual)


# ------------------------------ ConvBlock glue ------------------------------

def bn_fold_input(x, gamma, beta, eps=EPS):
    # Training-mode BatchNorm on the block input (biased batch variance),
    # folded to per-channel scale/bias.  This is the only pass over x outside
    # the head kernel (inherent: BN needs full-batch stats before normalizing).
    mean = jnp.mean(x, axis=(0, 1, 2))
    var = jnp.var(x, axis=(0, 1, 2))
    scale = gamma / jnp.sqrt(var + eps)
    bias = beta - mean * scale
    C = gamma.shape[0]
    return (scale.reshape(1, C).astype(jnp.float32),
            bias.reshape(1, C).astype(jnp.float32))


def bn_fold_from_stats(stats, count, gamma, beta, eps=EPS):
    # stats: (N, 2, C) per-batch-element (sum, sum-of-squares) emitted by the
    # producing kernel; finishes mean / biased-variance without re-reading the
    # activation from HBM.
    s = jnp.sum(stats[:, 0, :], axis=0)
    ss = jnp.sum(stats[:, 1, :], axis=0)
    mean = s / count
    var = jnp.maximum(ss / count - mean * mean, 0.0)
    scale = gamma / jnp.sqrt(var + eps)
    bias = beta - mean * scale
    C = gamma.shape[0]
    return (scale.reshape(1, C).astype(jnp.float32),
            bias.reshape(1, C).astype(jnp.float32))


def _flatten_w3x3(w_hwio):
    kh, kw, cin, cout = w_hwio.shape
    # (kh, kw, cin, cout) -> (kh*kw*cin, cout); row order matches the in-kernel
    # im2col tap order (dy, dx, cin).  bf16 halves weight DMA bytes and feeds
    # the MXU bf16 path (f32 accumulation).
    return w_hwio.reshape(kh * kw * cin, cout).astype(jnp.bfloat16)


def conv_block_forward(x_nchw, p):
    x = jnp.transpose(x_nchw, (0, 2, 3, 1)).astype(jnp.float32)  # NCHW -> NHWC
    N, H, W, _ = x.shape
    count = N * H * W

    w1f = _flatten_w3x3(p["w1"])
    w2f = _flatten_w3x3(p["w2"])
    w3f = _flatten_w3x3(p["w3"])

    s1, b1 = bn_fold_input(x, p["g1"], p["b1"])
    if p["wd"] is not None:
        sd, bd = bn_fold_input(x, p["gd"], p["bd"])
        wdf = p["wd"].astype(jnp.bfloat16)
        out1, residual, st1 = head_call(x, s1, b1, w1f, sd, bd, wdf)
    else:
        out1, st1 = conv3x3_call(x, s1, b1, w1f)
        residual = x   # in_planes == out_planes (tail_call asserts the widths)

    s2, b2 = bn_fold_from_stats(st1, count, p["g2"], p["b2"])
    out2, st2 = conv3x3_call(out1, s2, b2, w2f)

    s3, b3 = bn_fold_from_stats(st2, count, p["g3"], p["b3"])
    out = tail_call(out2, s3, b3, w3f, out1, residual)

    return jnp.transpose(out, (0, 3, 1, 2))   # NHWC -> NCHW


# ------------------------- deterministic parameters -------------------------

def make_params(key, in_planes, out_planes):
    c1 = out_planes // 2
    c2 = out_planes // 4
    c3 = out_planes // 4
    ks = jax.random.split(key, 12)

    def conv_w(k, cin, cout, kh, kw):
        # PyTorch OIHW weight -> HWIO (kept f32; wrappers flatten/cast to bf16).
        fan_in = cin * kh * kw
        w = jax.random.normal(k, (cout, cin, kh, kw), jnp.float32) / jnp.sqrt(fan_in)
        return jnp.transpose(w, (2, 3, 1, 0))

    p = {
        "g1": 1.0 + 0.1 * jax.random.normal(ks[0], (in_planes,), jnp.float32),
        "b1": 0.1 * jax.random.normal(ks[1], (in_planes,), jnp.float32),
        "w1": conv_w(ks[2], in_planes, c1, 3, 3),
        "g2": 1.0 + 0.1 * jax.random.normal(ks[3], (c1,), jnp.float32),
        "b2": 0.1 * jax.random.normal(ks[4], (c1,), jnp.float32),
        "w2": conv_w(ks[5], c1, c2, 3, 3),
        "g3": 1.0 + 0.1 * jax.random.normal(ks[6], (c2,), jnp.float32),
        "b3": 0.1 * jax.random.normal(ks[7], (c2,), jnp.float32),
        "w3": conv_w(ks[8], c2, c3, 3, 3),
        "gd": None, "bd": None, "wd": None,
    }
    if in_planes != out_planes:
        p["gd"] = 1.0 + 0.1 * jax.random.normal(ks[9], (in_planes,), jnp.float32)
        p["bd"] = 0.1 * jax.random.normal(ks[10], (in_planes,), jnp.float32)
        wd = jax.random.normal(ks[11], (out_planes, in_planes, 1, 1),
                               jnp.float32) / jnp.sqrt(in_planes)
        p["wd"] = jnp.transpose(wd[:, :, 0, 0], (1, 0))   # (Cin, Cout)
    return p


# ------------------------------ JAX reference -------------------------------

def reference_forward(x_nchw, p):
    x = jnp.transpose(x_nchw, (0, 2, 3, 1))

    def bn_relu(z, g, b):
        m = jnp.mean(z, axis=(0, 1, 2), keepdims=True)
        v = jnp.var(z, axis=(0, 1, 2), keepdims=True)
        return jnp.maximum((z - m) / jnp.sqrt(v + EPS) * g + b, 0.0)

    def conv(z, w):
        return lax.conv_general_dilated(
            z, w, (1, 1), "SAME", dimension_numbers=("NHWC", "HWIO", "NHWC"))

    out1 = conv(bn_relu(x, p["g1"], p["b1"]), p["w1"])
    out2 = conv(bn_relu(out1, p["g2"], p["b2"]), p["w2"])
    out3 = conv(bn_relu(out2, p["g3"], p["b3"]), p["w3"])
    cat = jnp.concatenate([out1, out2, out3], axis=-1)
    if p["wd"] is not None:
        res = conv(bn_relu(x, p["gd"], p["bd"]), p["wd"][None, None])
    else:
        res = x
    return jnp.transpose(cat + res, (0, 3, 1, 2))


# ----------------------------------- main -----------------------------------

if __name__ == "__main__":
    key = jax.random.PRNGKey(0)
    kx, kp = jax.random.split(key)

    in_planes, out_planes = 16, 32   # in != out -> downsample branch is active
    x = jax.random.normal(kx, (2, in_planes, 16, 16), jnp.float32)   # NCHW

    params = make_params(kp, in_planes, out_planes)

    fwd = jax.jit(conv_block_forward)
    out = jax.block_until_ready(fwd(x, params))
    ref = jax.block_until_ready(reference_forward(x, params))

    assert out.shape == (2, out_planes, 16, 16), out.shape
    err = float(jnp.max(jnp.abs(out - ref)))
    scale = float(jnp.max(jnp.abs(ref))) + 1e-6
    # bf16 MXU operands (f32 accumulation) over 3 chained convs vs. full-f32
    # reference -> relative tolerance.
    assert err / scale < 2e-2, f"rel err {err / scale:.3e} (abs {err:.3e})"
    print("KERNEL_OK")
</pallas_src>

<mosaic_0001>
module attributes {stable_mosaic.version = 11 : i64} {
  func.func @_head_kernel(%arg0: i32, %arg1: memref<1x16x16x16xf32, #tpu.memory_space<vmem>>, %arg2: memref<1x16xf32, #tpu.memory_space<vmem>>, %arg3: memref<1x16xf32, #tpu.memory_space<vmem>>, %arg4: memref<144x16xbf16, #tpu.memory_space<vmem>>, %arg5: memref<1x16xf32, #tpu.memory_space<vmem>>, %arg6: memref<1x16xf32, #tpu.memory_space<vmem>>, %arg7: memref<16x32xbf16, #tpu.memory_space<vmem>>, %arg8: memref<1x16x16x16xf32, #tpu.memory_space<vmem>>, %arg9: memref<1x16x16x32xf32, #tpu.memory_space<vmem>>, %arg10: memref<1x2x16xf32, #tpu.memory_space<vmem>>, %arg11: memref<18x18x16xf32, #tpu.memory_space<vmem>>) attributes {dimension_semantics = [#tpu.dimension_semantics<parallel>], iteration_bounds = array<i64: 2>, scalar_prefetch = 0 : i64, scratch_operands = 1 : i64, tpu.core_type = #tpu.core_type<tc>, window_params = [{transform_indices = @transform_0, window_bounds = array<i64: 1, 16, 16, 16>}, {pipeline_mode = #tpu.pipeline_mode<synchronous>, transform_indices = @transform_1, window_bounds = array<i64: 1, 16>}, {pipeline_mode = #tpu.pipeline_mode<synchronous>, transform_indices = @transform_2, window_bounds = array<i64: 1, 16>}, {pipeline_mode = #tpu.pipeline_mode<synchronous>, transform_indices = @transform_3, window_bounds = array<i64: 144, 16>}, {pipeline_mode = #tpu.pipeline_mode<synchronous>, transform_indices = @transform_4, window_bounds = array<i64: 1, 16>}, {pipeline_mode = #tpu.pipeline_mode<synchronous>, transform_indices = @transform_5, window_bounds = array<i64: 1, 16>}, {pipeline_mode = #tpu.pipeline_mode<synchronous>, transform_indices = @transform_6, window_bounds = array<i64: 16, 32>}, {transform_indices = @transform_7, window_bounds = array<i64: 1, 16, 16, 16>}, {transform_indices = @transform_8, window_bounds = array<i64: 1, 16, 16, 32>}, {transform_indices = @transform_9, window_bounds = array<i64: 1, 2, 16>}]} {
    %c0 = arith.constant 0 : index
    %c0_0 = arith.constant 0 : index
    %c0_1 = arith.constant 0 : index
    %c0_2 = arith.constant 0 : index
    %0 = vector.load %arg1[%c0, %c0_0, %c0_1, %c0_2] : memref<1x16x16x16xf32, #tpu.memory_space<vmem>>, vector<1x16x16x16xf32>
    %1 = vector.shape_cast %0 : vector<1x16x16x16xf32> to vector<16x16x16xf32>
    %c0_3 = arith.constant 0 : index
    %c0_4 = arith.constant 0 : index
    %2 = vector.load %arg2[%c0_3, %c0_4] : memref<1x16xf32, #tpu.memory_space<vmem>>, vector<1x16xf32>
    %c0_5 = arith.constant 0 : index
    %c0_6 = arith.constant 0 : index
    %3 = vector.load %arg3[%c0_5, %c0_6] : memref<1x16xf32, #tpu.memory_space<vmem>>, vector<1x16xf32>
    %4 = vector.shape_cast %2 : vector<1x16xf32> to vector<1x1x16xf32>
    %5 = vector.broadcast %4 : vector<1x1x16xf32> to vector<16x16x16xf32>
    %6 = arith.mulf %1, %5 : vector<16x16x16xf32>
    %7 = vector.shape_cast %3 : vector<1x16xf32> to vector<1x1x16xf32>
    %8 = vector.broadcast %7 : vector<1x1x16xf32> to vector<16x16x16xf32>
    %9 = arith.addf %6, %8 : vector<16x16x16xf32>
    %cst = arith.constant 0.000000e+00 : f32
    %10 = vector.broadcast %cst : f32 to vector<16x16x16xf32>
    %11 = arith.maximumf %9, %10 : vector<16x16x16xf32>
    %cst_7 = arith.constant 0.000000e+00 : f32
    %12 = vector.broadcast %cst_7 : f32 to vector<18x18x16xf32>
    %c0_8 = arith.constant 0 : index
    %c0_9 = arith.constant 0 : index
    %c0_10 = arith.constant 0 : index
    %13 = vector.load %arg11[%c0_8, %c0_9, %c0_10] : memref<18x18x16xf32, #tpu.memory_space<vmem>>, vector<18x18x16xf32>
    tpu.vector_store %arg11[%c0_8, %c0_9, %c0_10], %12 {strides = array<i32>} : memref<18x18x16xf32, #tpu.memory_space<vmem>>, vector<18x18x16xf32>,
    %c1 = arith.constant 1 : index
    %c1_11 = arith.constant 1 : index
    %c0_12 = arith.constant 0 : index
    %14 = vector.load %arg11[%c1, %c1_11, %c0_12] : memref<18x18x16xf32, #tpu.memory_space<vmem>>, vector<16x16x16xf32>
    tpu.vector_store %arg11[%c1, %c1_11, %c0_12], %11 {strides = array<i32>} : memref<18x18x16xf32, #tpu.memory_space<vmem>>, vector<16x16x16xf32>,
    %c0_13 = arith.constant 0 : index
    %c0_14 = arith.constant 0 : index
    %c0_15 = arith.constant 0 : index
    %15 = vector.load %arg11[%c0_13, %c0_14, %c0_15] : memref<18x18x16xf32, #tpu.memory_space<vmem>>, vector<16x16x16xf32>
    %16 = vector.shape_cast %15 : vector<16x16x16xf32> to vector<256x16xf32>
    %c0_16 = arith.constant 0 : index
    %c1_17 = arith.constant 1 : index
    %c0_18 = arith.constant 0 : index
    %17 = vector.load %arg11[%c0_16, %c1_17, %c0_18] : memref<18x18x16xf32, #tpu.memory_space<vmem>>, vector<16x16x16xf32>
    %18 = vector.shape_cast %17 : vector<16x16x16xf32> to vector<256x16xf32>
    %c0_19 = arith.constant 0 : index
    %c2 = arith.constant 2 : index
    %c0_20 = arith.constant 0 : index
    %19 = vector.load %arg11[%c0_19, %c2, %c0_20] : memref<18x18x16xf32, #tpu.memory_space<vmem>>, vector<16x16x16xf32>
    %20 = vector.shape_cast %19 : vector<16x16x16xf32> to vector<256x16xf32>
    %c1_21 = arith.constant 1 : index
    %c0_22 = arith.constant 0 : index
    %c0_23 = arith.constant 0 : index
    %21 = vector.load %arg11[%c1_21, %c0_22, %c0_23] : memref<18x18x16xf32, #tpu.memory_space<vmem>>, vector<16x16x16xf32>
    %22 = vector.shape_cast %21 : vector<16x16x16xf32> to vector<256x16xf32>
    %c1_24 = arith.constant 1 : index
    %c1_25 = arith.constant 1 : index
    %c0_26 = arith.constant 0 : index
    %23 = vector.load %arg11[%c1_24, %c1_25, %c0_26] : memref<18x18x16xf32, #tpu.memory_space<vmem>>, vector<16x16x16xf32>
    %24 = vector.shape_cast %23 : vector<16x16x16xf32> to vector<256x16xf32>
    %c1_27 = arith.constant 1 : index
    %c2_28 = arith.constant 2 : index
    %c0_29 = arith.constant 0 : index
    %25 = vector.load %arg11[%c1_27, %c2_28, %c0_29] : memref<18x18x16xf32, #tpu.memory_space<vmem>>, vector<16x16x16xf32>
    %26 = vector.shape_cast %25 : vector<16x16x16xf32> to vector<256x16xf32>
    %c2_30 = arith.constant 2 : index
    %c0_31 = arith.constant 0 : index
    %c0_32 = arith.constant 0 : index
    %27 = vector.load %arg11[%c2_30, %c0_31, %c0_32] : memref<18x18x16xf32, #tpu.memory_space<vmem>>, vector<16x16x16xf32>
    %28 = vector.shape_cast %27 : vector<16x16x16xf32> to vector<256x16xf32>
    %c2_33 = arith.constant 2 : index
    %c1_34 = arith.constant 1 : index
    %c0_35 = arith.constant 0 : index
    %29 = vector.load %arg11[%c2_33, %c1_34, %c0_35] : memref<18x18x16xf32, #tpu.memory_space<vmem>>, vector<16x16x16xf32>
    %30 = vector.shape_cast %29 : vector<16x16x16xf32> to vector<256x16xf32>
    %c2_36 = arith.constant 2 : index
    %c2_37 = arith.constant 2 : index
    %c0_38 = arith.constant 0 : index
    %31 = vector.load %arg11[%c2_36, %c2_37, %c0_38] : memref<18x18x16xf32, #tpu.memory_space<vmem>>, vector<16x16x16xf32>
    %32 = vector.shape_cast %31 : vector<16x16x16xf32> to vector<256x16xf32>
    %33 = tpu.concatenate %16, %18, %20, %22, %24, %26, %28, %30, %32 in 1 : vector<256x16xf32>, vector<256x16xf32>, vector<256x16xf32>, vector<256x16xf32>, vector<256x16xf32>, vector<256x16xf32>, vector<256x16xf32>, vector<256x16xf32>, vector<256x16xf32> -> vector<256x144xf32>
    %34 = arith.truncf %33 : vector<256x144xf32> to vector<256x144xbf16>
    %c0_39 = arith.constant 0 : index
    %c0_40 = arith.constant 0 : index
    %35 = vector.load %arg4[%c0_39, %c0_40] : memref<144x16xbf16, #tpu.memory_space<vmem>>, vector<144x16xbf16>
    %cst_41 = arith.constant dense<0.000000e+00> : vector<256x16xf32>
    %36 = tpu.matmul %34, %35, %cst_41 {dimension_numbers = #tpu.dot_dimension_numbers<[1], [0], [0], [1], [0, 0, 1, 1], [], []>} : vector<256x144xbf16>, vector<144x16xbf16>, vector<256x16xf32> -> vector<256x16xf32>
    %37 = vector.shape_cast %36 : vector<256x16xf32> to vector<16x16x16xf32>
    %c0_42 = arith.constant 0 : index
    %c0_43 = arith.constant 0 : index
    %c0_44 = arith.constant 0 : index
    %c0_45 = arith.constant 0 : index
    %38 = vector.load %arg8[%c0_42, %c0_43, %c0_44, %c0_45] : memref<1x16x16x16xf32, #tpu.memory_space<vmem>>, vector<1x16x16x16xf32>
    %39 = vector.shape_cast %38 : vector<1x16x16x16xf32> to vector<16x16x16xf32>
    %40 = vector.shape_cast %37 : vector<16x16x16xf32> to vector<1x16x16x16xf32>
    tpu.vector_store %arg8[%c0_42, %c0_43, %c0_44, %c0_45], %40 {strides = array<i32>} : memref<1x16x16x16xf32, #tpu.memory_space<vmem>>, vector<1x16x16x16xf32>,
    %cst_46 = arith.constant dense<0.000000e+00> : vector<16xf32>
    %41 = vector.multi_reduction <add>, %36, %cst_46 [0] : vector<256x16xf32> to vector<16xf32>
    %42 = vector.shape_cast %41 : vector<16xf32> to vector<1x16xf32>
    %43 = arith.mulf %36, %36 : vector<256x16xf32>
    %cst_47 = arith.constant dense<0.000000e+00> : vector<16xf32>
    %44 = vector.multi_reduction <add>, %43, %cst_47 [0] : vector<256x16xf32> to vector<16xf32>
    %45 = vector.shape_cast %44 : vector<16xf32> to vector<1x16xf32>
    %46 = tpu.concatenate %42, %45 in 0 : vector<1x16xf32>, vector<1x16xf32> -> vector<2x16xf32>
    %c0_48 = arith.constant 0 : index
    %c0_49 = arith.constant 0 : index
    %c0_50 = arith.constant 0 : index
    %47 = vector.load %arg10[%c0_48, %c0_49, %c0_50] : memref<1x2x16xf32, #tpu.memory_space<vmem>>, vector<1x2x16xf32>
    %48 = vector.shape_cast %47 : vector<1x2x16xf32> to vector<2x16xf32>
    %49 = vector.shape_cast %46 : vector<2x16xf32> to vector<1x2x16xf32>
    tpu.vector_store %arg10[%c0_48, %c0_49, %c0_50], %49 {strides = array<i32>} : memref<1x2x16xf32, #tpu.memory_space<vmem>>, vector<1x2x16xf32>,
    %c0_51 = arith.constant 0 : index
    %c0_52 = arith.constant 0 : index
    %50 = vector.load %arg5[%c0_51, %c0_52] : memref<1x16xf32, #tpu.memory_space<vmem>>, vector<1x16xf32>
    %51 = vector.shape_cast %50 : vector<1x16xf32> to vector<1x1x16xf32>
    %52 = vector.broadcast %51 : vector<1x1x16xf32> to vector<16x16x16xf32>
    %53 = arith.mulf %1, %52 : vector<16x16x16xf32>
    %c0_53 = arith.constant 0 : index
    %c0_54 = arith.constant 0 : index
    %54 = vector.load %arg6[%c0_53, %c0_54] : memref<1x16xf32, #tpu.memory_space<vmem>>, vector<1x16xf32>
    %55 = vector.shape_cast %54 : vector<1x16xf32> to vector<1x1x16xf32>
    %56 = vector.broadcast %55 : vector<1x1x16xf32> to vector<16x16x16xf32>
    %57 = arith.addf %53, %56 : vector<16x16x16xf32>
    %cst_55 = arith.constant 0.000000e+00 : f32
    %58 = vector.broadcast %cst_55 : f32 to vector<16x16x16xf32>
    %59 = arith.maximumf %57, %58 : vector<16x16x16xf32>
    %60 = arith.truncf %59 : vector<16x16x16xf32> to vector<16x16x16xbf16>
    %61 = vector.shape_cast %60 : vector<16x16x16xbf16> to vector<256x16xbf16>
    %c0_56 = arith.constant 0 : index
    %c0_57 = arith.constant 0 : index
    %62 = vector.load %arg7[%c0_56, %c0_57] : memref<16x32xbf16, #tpu.memory_space<vmem>>, vector<16x32xbf16>
    %cst_58 = arith.constant dense<0.000000e+00> : vector<256x32xf32>
    %63 = tpu.matmul %61, %62, %cst_58 {dimension_numbers = #tpu.dot_dimension_numbers<[1], [0], [0], [1], [0, 0, 1, 1], [], []>} : vector<256x16xbf16>, vector<16x32xbf16>, vector<256x32xf32> -> vector<256x32xf32>
    %64 = vector.shape_cast %63 : vector<256x32xf32> to vector<16x16x32xf32>
    %c0_59 = arith.constant 0 : index
    %c0_60 = arith.constant 0 : index
    %c0_61 = arith.constant 0 : index
    %c0_62 = arith.constant 0 : index
    %65 = vector.load %arg9[%c0_59, %c0_60, %c0_61, %c0_62] : memref<1x16x16x32xf32, #tpu.memory_space<vmem>>, vector<1x16x16x32xf32>
    %66 = vector.shape_cast %65 : vector<1x16x16x32xf32> to vector<16x16x32xf32>
    %67 = vector.shape_cast %64 : vector<16x16x32xf32> to vector<1x16x16x32xf32>
    tpu.vector_store %arg9[%c0_59, %c0_60, %c0_61, %c0_62], %67 {strides = array<i32>} : memref<1x16x16x32xf32, #tpu.memory_space<vmem>>, vector<1x16x16x32xf32>,
    return
  }
  func.func @transform_0(%arg0: i32) -> (i32, i32, i32, i32) {
    %c0_i32 = arith.constant 0 : i32
    %c0_i32_0 = arith.constant 0 : i32
    %c0_i32_1 = arith.constant 0 : i32
    %c0_i32_2 = arith.constant 0 : i32
    return %arg0, %c0_i32, %c0_i32_0, %c0_i32_1 : i32, i32, i32, i32
  }
  func.func @transform_1(%arg0: i32) -> (i32, i32) {
    %c0_i32 = arith.constant 0 : i32
    %c0_i32_0 = arith.constant 0 : i32
    %c0_i32_1 = arith.constant 0 : i32
    return %c0_i32, %c0_i32_0 : i32, i32
  }
  func.func @transform_2(%arg0: i32) -> (i32, i32) {
    %c0_i32 = arith.constant 0 : i32
    %c0_i32_0 = arith.constant 0 : i32
    %c0_i32_1 = arith.constant 0 : i32
    return %c0_i32, %c0_i32_0 : i32, i32
  }
  func.func @transform_3(%arg0: i32) -> (i32, i32) {
    %c0_i32 = arith.constant 0 : i32
    %c0_i32_0 = arith.constant 0 : i32
    %c0_i32_1 = arith.constant 0 : i32
    return %c0_i32, %c0_i32_0 : i32, i32
  }
  func.func @transform_4(%arg0: i32) -> (i32, i32) {
    %c0_i32 = arith.constant 0 : i32
    %c0_i32_0 = arith.constant 0 : i32
    %c0_i32_1 = arith.constant 0 : i32
    return %c0_i32, %c0_i32_0 : i32, i32
  }
  func.func @transform_5(%arg0: i32) -> (i32, i32) {
    %c0_i32 = arith.constant 0 : i32
    %c0_i32_0 = arith.constant 0 : i32
    %c0_i32_1 = arith.constant 0 : i32
    return %c0_i32, %c0_i32_0 : i32, i32
  }
  func.func @transform_6(%arg0: i32) -> (i32, i32) {
    %c0_i32 = arith.constant 0 : i32
    %c0_i32_0 = arith.constant 0 : i32
    %c0_i32_1 = arith.constant 0 : i32
    return %c0_i32, %c0_i32_0 : i32, i32
  }
  func.func @transform_7(%arg0: i32) -> (i32, i32, i32, i32) {
    %c0_i32 = arith.constant 0 : i32
    %c0_i32_0 = arith.constant 0 : i32
    %c0_i32_1 = arith.constant 0 : i32
    %c0_i32_2 = arith.constant 0 : i32
    return %arg0, %c0_i32, %c0_i32_0, %c0_i32_1 : i32, i32, i32, i32
  }
  func.func @transform_8(%arg0: i32) -> (i32, i32, i32, i32) {
    %c0_i32 = arith.constant 0 : i32
    %c0_i32_0 = arith.constant 0 : i32
    %c0_i32_1 = arith.constant 0 : i32
    %c0_i32_2 = arith.constant 0 : i32
    return %arg0, %c0_i32, %c0_i32_0, %c0_i32_1 : i32, i32, i32, i32
  }
  func.func @transform_9(%arg0: i32) -> (i32, i32, i32) {
    %c0_i32 = arith.constant 0 : i32
    %c0_i32_0 = arith.constant 0 : i32
    %c0_i32_1 = arith.constant 0 : i32
    return %arg0, %c0_i32, %c0_i32_0 : i32, i32, i32
  }
}

module attributes {stable_mosaic.version = 11 : i64} {
  func.func @_conv3x3_kernel(%arg0: i32, %arg1: memref<1x16x16x16xf32, #tpu.memory_space<vmem>>, %arg2: memref<1x16xf32, #tpu.memory_space<vmem>>, %arg3: memref<1x16xf32, #tpu.memory_space<vmem>>, %arg4: memref<144x8xbf16, #tpu.memory_space<vmem>>, %arg5: memref<1x16x16x8xf32, #tpu.memory_space<vmem>>, %arg6: memref<1x2x8xf32, #tpu.memory_space<vmem>>, %arg7: memref<18x18x16xf32, #tpu.memory_space<vmem>>) attributes {dimension_semantics = [#tpu.dimension_semantics<parallel>], iteration_bounds = array<i64: 2>, scalar_prefetch = 0 : i64, scratch_operands = 1 : i64, tpu.core_type = #tpu.core_type<tc>, window_params = [{transform_indices = @transform_0, window_bounds = array<i64: 1, 16, 16, 16>}, {pipeline_mode = #tpu.pipeline_mode<synchronous>, transform_indices = @transform_1, window_bounds = array<i64: 1, 16>}, {pipeline_mode = #tpu.pipeline_mode<synchronous>, transform_indices = @transform_2, window_bounds = array<i64: 1, 16>}, {pipeline_mode = #tpu.pipeline_mode<synchronous>, transform_indices = @transform_3, window_bounds = array<i64: 144, 8>}, {transform_indices = @transform_4, window_bounds = array<i64: 1, 16, 16, 8>}, {transform_indices = @transform_5, window_bounds = array<i64: 1, 2, 8>}]} {
    %c0 = arith.constant 0 : index
    %c0_0 = arith.constant 0 : index
    %c0_1 = arith.constant 0 : index
    %c0_2 = arith.constant 0 : index
    %0 = vector.load %arg1[%c0, %c0_0, %c0_1, %c0_2] : memref<1x16x16x16xf32, #tpu.memory_space<vmem>>, vector<1x16x16x16xf32>
    %1 = vector.shape_cast %0 : vector<1x16x16x16xf32> to vector<16x16x16xf32>
    %c0_3 = arith.constant 0 : index
    %c0_4 = arith.constant 0 : index
    %2 = vector.load %arg2[%c0_3, %c0_4] : memref<1x16xf32, #tpu.memory_space<vmem>>, vector<1x16xf32>
    %c0_5 = arith.constant 0 : index
    %c0_6 = arith.constant 0 : index
    %3 = vector.load %arg3[%c0_5, %c0_6] : memref<1x16xf32, #tpu.memory_space<vmem>>, vector<1x16xf32>
    %4 = vector.shape_cast %2 : vector<1x16xf32> to vector<1x1x16xf32>
    %5 = vector.broadcast %4 : vector<1x1x16xf32> to vector<16x16x16xf32>
    %6 = arith.mulf %1, %5 : vector<16x16x16xf32>
    %7 = vector.shape_cast %3 : vector<1x16xf32> to vector<1x1x16xf32>
    %8 = vector.broadcast %7 : vector<1x1x16xf32> to vector<16x16x16xf32>
    %9 = arith.addf %6, %8 : vector<16x16x16xf32>
    %cst = arith.constant 0.000000e+00 : f32
    %10 = vector.broadcast %cst : f32 to vector<16x16x16xf32>
    %11 = arith.maximumf %9, %10 : vector<16x16x16xf32>
    %cst_7 = arith.constant 0.000000e+00 : f32
    %12 = vector.broadcast %cst_7 : f32 to vector<18x18x16xf32>
    %c0_8 = arith.constant 0 : index
    %c0_9 = arith.constant 0 : index
    %c0_10 = arith.constant 0 : index
    %13 = vector.load %arg7[%c0_8, %c0_9, %c0_10] : memref<18x18x16xf32, #tpu.memory_space<vmem>>, vector<18x18x16xf32>
    tpu.vector_store %arg7[%c0_8, %c0_9, %c0_10], %12 {strides = array<i32>} : memref<18x18x16xf32, #tpu.memory_space<vmem>>, vector<18x18x16xf32>,
    %c1 = arith.constant 1 : index
    %c1_11 = arith.constant 1 : index
    %c0_12 = arith.constant 0 : index
    %14 = vector.load %arg7[%c1, %c1_11, %c0_12] : memref<18x18x16xf32, #tpu.memory_space<vmem>>, vector<16x16x16xf32>
    tpu.vector_store %arg7[%c1, %c1_11, %c0_12], %11 {strides = array<i32>} : memref<18x18x16xf32, #tpu.memory_space<vmem>>, vector<16x16x16xf32>,
    %c0_13 = arith.constant 0 : index
    %c0_14 = arith.constant 0 : index
    %c0_15 = arith.constant 0 : index
    %15 = vector.load %arg7[%c0_13, %c0_14, %c0_15] : memref<18x18x16xf32, #tpu.memory_space<vmem>>, vector<16x16x16xf32>
    %16 = vector.shape_cast %15 : vector<16x16x16xf32> to vector<256x16xf32>
    %c0_16 = arith.constant 0 : index
    %c1_17 = arith.constant 1 : index
    %c0_18 = arith.constant 0 : index
    %17 = vector.load %arg7[%c0_16, %c1_17, %c0_18] : memref<18x18x16xf32, #tpu.memory_space<vmem>>, vector<16x16x16xf32>
    %18 = vector.shape_cast %17 : vector<16x16x16xf32> to vector<256x16xf32>
    %c0_19 = arith.constant 0 : index
    %c2 = arith.constant 2 : index
    %c0_20 = arith.constant 0 : index
    %19 = vector.load %arg7[%c0_19, %c2, %c0_20] : memref<18x18x16xf32, #tpu.memory_space<vmem>>, vector<16x16x16xf32>
    %20 = vector.shape_cast %19 : vector<16x16x16xf32> to vector<256x16xf32>
    %c1_21 = arith.constant 1 : index
    %c0_22 = arith.constant 0 : index
    %c0_23 = arith.constant 0 : index
    %21 = vector.load %arg7[%c1_21, %c0_22, %c0_23] : memref<18x18x16xf32, #tpu.memory_space<vmem>>, vector<16x16x16xf32>
    %22 = vector.shape_cast %21 : vector<16x16x16xf32> to vector<256x16xf32>
    %c1_24 = arith.constant 1 : index
    %c1_25 = arith.constant 1 : index
    %c0_26 = arith.constant 0 : index
    %23 = vector.load %arg7[%c1_24, %c1_25, %c0_26] : memref<18x18x16xf32, #tpu.memory_space<vmem>>, vector<16x16x16xf32>
    %24 = vector.shape_cast %23 : vector<16x16x16xf32> to vector<256x16xf32>
    %c1_27 = arith.constant 1 : index
    %c2_28 = arith.constant 2 : index
    %c0_29 = arith.constant 0 : index
    %25 = vector.load %arg7[%c1_27, %c2_28, %c0_29] : memref<18x18x16xf32, #tpu.memory_space<vmem>>, vector<16x16x16xf32>
    %26 = vector.shape_cast %25 : vector<16x16x16xf32> to vector<256x16xf32>
    %c2_30 = arith.constant 2 : index
    %c0_31 = arith.constant 0 : index
    %c0_32 = arith.constant 0 : index
    %27 = vector.load %arg7[%c2_30, %c0_31, %c0_32] : memref<18x18x16xf32, #tpu.memory_space<vmem>>, vector<16x16x16xf32>
    %28 = vector.shape_cast %27 : vector<16x16x16xf32> to vector<256x16xf32>
    %c2_33 = arith.constant 2 : index
    %c1_34 = arith.constant 1 : index
    %c0_35 = arith.constant 0 : index
    %29 = vector.load %arg7[%c2_33, %c1_34, %c0_35] : memref<18x18x16xf32, #tpu.memory_space<vmem>>, vector<16x16x16xf32>
    %30 = vector.shape_cast %29 : vector<16x16x16xf32> to vector<256x16xf32>
    %c2_36 = arith.constant 2 : index
    %c2_37 = arith.constant 2 : index
    %c0_38 = arith.constant 0 : index
    %31 = vector.load %arg7[%c2_36, %c2_37, %c0_38] : memref<18x18x16xf32, #tpu.memory_space<vmem>>, vector<16x16x16xf32>
    %32 = vector.shape_cast %31 : vector<16x16x16xf32> to vector<256x16xf32>
    %33 = tpu.concatenate %16, %18, %20, %22, %24, %26, %28, %30, %32 in 1 : vector<256x16xf32>, vector<256x16xf32>, vector<256x16xf32>, vector<256x16xf32>, vector<256x16xf32>, vector<256x16xf32>, vector<256x16xf32>, vector<256x16xf32>, vector<256x16xf32> -> vector<256x144xf32>
    %34 = arith.truncf %33 : vector<256x144xf32> to vector<256x144xbf16>
    %c0_39 = arith.constant 0 : index
    %c0_40 = arith.constant 0 : index
    %35 = vector.load %arg4[%c0_39, %c0_40] : memref<144x8xbf16, #tpu.memory_space<vmem>>, vector<144x8xbf16>
    %cst_41 = arith.constant dense<0.000000e+00> : vector<256x8xf32>
    %36 = tpu.matmul %34, %35, %cst_41 {dimension_numbers = #tpu.dot_dimension_numbers<[1], [0], [0], [1], [0, 0, 1, 1], [], []>} : vector<256x144xbf16>, vector<144x8xbf16>, vector<256x8xf32> -> vector<256x8xf32>
    %37 = vector.shape_cast %36 : vector<256x8xf32> to vector<16x16x8xf32>
    %c0_42 = arith.constant 0 : index
    %c0_43 = arith.constant 0 : index
    %c0_44 = arith.constant 0 : index
    %c0_45 = arith.constant 0 : index
    %38 = vector.load %arg5[%c0_42, %c0_43, %c0_44, %c0_45] : memref<1x16x16x8xf32, #tpu.memory_space<vmem>>, vector<1x16x16x8xf32>
    %39 = vector.shape_cast %38 : vector<1x16x16x8xf32> to vector<16x16x8xf32>
    %40 = vector.shape_cast %37 : vector<16x16x8xf32> to vector<1x16x16x8xf32>
    tpu.vector_store %arg5[%c0_42, %c0_43, %c0_44, %c0_45], %40 {strides = array<i32>} : memref<1x16x16x8xf32, #tpu.memory_space<vmem>>, vector<1x16x16x8xf32>,
    %cst_46 = arith.constant dense<0.000000e+00> : vector<8xf32>
    %41 = vector.multi_reduction <add>, %36, %cst_46 [0] : vector<256x8xf32> to vector<8xf32>
    %42 = vector.shape_cast %41 : vector<8xf32> to vector<1x8xf32>
    %43 = arith.mulf %36, %36 : vector<256x8xf32>
    %cst_47 = arith.constant dense<0.000000e+00> : vector<8xf32>
    %44 = vector.multi_reduction <add>, %43, %cst_47 [0] : vector<256x8xf32> to vector<8xf32>
    %45 = vector.shape_cast %44 : vector<8xf32> to vector<1x8xf32>
    %46 = tpu.concatenate %42, %45 in 0 : vector<1x8xf32>, vector<1x8xf32> -> vector<2x8xf32>
    %c0_48 = arith.constant 0 : index
    %c0_49 = arith.constant 0 : index
    %c0_50 = arith.constant 0 : index
    %47 = vector.load %arg6[%c0_48, %c0_49, %c0_50] : memref<1x2x8xf32, #tpu.memory_space<vmem>>, vector<1x2x8xf32>
    %48 = vector.shape_cast %47 : vector<1x2x8xf32> to vector<2x8xf32>
    %49 = vector.shape_cast %46 : vector<2x8xf32> to vector<1x2x8xf32>
    tpu.vector_store %arg6[%c0_48, %c0_49, %c0_50], %49 {strides = array<i32>} : memref<1x2x8xf32, #tpu.memory_space<vmem>>, vector<1x2x8xf32>,
    return
  }
  func.func @transform_0(%arg0: i32) -> (i32, i32, i32, i32) {
    %c0_i32 = arith.constant 0 : i32
    %c0_i32_0 = arith.constant 0 : i32
    %c0_i32_1 = arith.constant 0 : i32
    %c0_i32_2 = arith.constant 0 : i32
    return %arg0, %c0_i32, %c0_i32_0, %c0_i32_1 : i32, i32, i32, i32
  }
  func.func @transform_1(%arg0: i32) -> (i32, i32) {
    %c0_i32 = arith.constant 0 : i32
    %c0_i32_0 = arith.constant 0 : i32
    %c0_i32_1 = arith.constant 0 : i32
    return %c0_i32, %c0_i32_0 : i32, i32
  }
  func.func @transform_2(%arg0: i32) -> (i32, i32) {
    %c0_i32 = arith.constant 0 : i32
    %c0_i32_0 = arith.constant 0 : i32
    %c0_i32_1 = arith.constant 0 : i32
    return %c0_i32, %c0_i32_0 : i32, i32
  }
  func.func @transform_3(%arg0: i32) -> (i32, i32) {
    %c0_i32 = arith.constant 0 : i32
    %c0_i32_0 = arith.constant 0 : i32
    %c0_i32_1 = arith.constant 0 : i32
    return %c0_i32, %c0_i32_0 : i32, i32
  }
  func.func @transform_4(%arg0: i32) -> (i32, i32, i32, i32) {
    %c0_i32 = arith.constant 0 : i32
    %c0_i32_0 = arith.constant 0 : i32
    %c0_i32_1 = arith.constant 0 : i32
    %c0_i32_2 = arith.constant 0 : i32
    return %arg0, %c0_i32, %c0_i32_0, %c0_i32_1 : i32, i32, i32, i32
  }
  func.func @transform_5(%arg0: i32) -> (i32, i32, i32) {
    %c0_i32 = arith.constant 0 : i32
    %c0_i32_0 = arith.constant 0 : i32
    %c0_i32_1 = arith.constant 0 : i32
    return %arg0, %c0_i32, %c0_i32_0 : i32, i32, i32
  }
}

module attributes {stable_mosaic.version = 11 : i64} {
  func.func @_tail_kernel(%arg0: i32, %arg1: memref<1x16x16x8xf32, #tpu.memory_space<vmem>>, %arg2: memref<1x8xf32, #tpu.memory_space<vmem>>, %arg3: memref<1x8xf32, #tpu.memory_space<vmem>>, %arg4: memref<72x8xbf16, #tpu.memory_space<vmem>>, %arg5: memref<1x16x16x16xf32, #tpu.memory_space<vmem>>, %arg6: memref<1x16x16x32xf32, #tpu.memory_space<vmem>>, %arg7: memref<1x16x16x32xf32, #tpu.memory_space<vmem>>, %arg8: memref<18x18x8xf32, #tpu.memory_space<vmem>>) attributes {dimension_semantics = [#tpu.dimension_semantics<parallel>], iteration_bounds = array<i64: 2>, scalar_prefetch = 0 : i64, scratch_operands = 1 : i64, tpu.core_type = #tpu.core_type<tc>, window_params = [{transform_indices = @transform_0, window_bounds = array<i64: 1, 16, 16, 8>}, {pipeline_mode = #tpu.pipeline_mode<synchronous>, transform_indices = @transform_1, window_bounds = array<i64: 1, 8>}, {pipeline_mode = #tpu.pipeline_mode<synchronous>, transform_indices = @transform_2, window_bounds = array<i64: 1, 8>}, {pipeline_mode = #tpu.pipeline_mode<synchronous>, transform_indices = @transform_3, window_bounds = array<i64: 72, 8>}, {transform_indices = @transform_4, window_bounds = array<i64: 1, 16, 16, 16>}, {transform_indices = @transform_5, window_bounds = array<i64: 1, 16, 16, 32>}, {transform_indices = @transform_6, window_bounds = array<i64: 1, 16, 16, 32>}]} {
    %c0 = arith.constant 0 : index
    %c0_0 = arith.constant 0 : index
    %c0_1 = arith.constant 0 : index
    %c0_2 = arith.constant 0 : index
    %0 = vector.load %arg1[%c0, %c0_0, %c0_1, %c0_2] : memref<1x16x16x8xf32, #tpu.memory_space<vmem>>, vector<1x16x16x8xf32>
    %1 = vector.shape_cast %0 : vector<1x16x16x8xf32> to vector<16x16x8xf32>
    %c0_3 = arith.constant 0 : index
    %c0_4 = arith.constant 0 : index
    %2 = vector.load %arg2[%c0_3, %c0_4] : memref<1x8xf32, #tpu.memory_space<vmem>>, vector<1x8xf32>
    %c0_5 = arith.constant 0 : index
    %c0_6 = arith.constant 0 : index
    %3 = vector.load %arg3[%c0_5, %c0_6] : memref<1x8xf32, #tpu.memory_space<vmem>>, vector<1x8xf32>
    %4 = vector.shape_cast %2 : vector<1x8xf32> to vector<1x1x8xf32>
    %5 = vector.broadcast %4 : vector<1x1x8xf32> to vector<16x16x8xf32>
    %6 = arith.mulf %1, %5 : vector<16x16x8xf32>
    %7 = vector.shape_cast %3 : vector<1x8xf32> to vector<1x1x8xf32>
    %8 = vector.broadcast %7 : vector<1x1x8xf32> to vector<16x16x8xf32>
    %9 = arith.addf %6, %8 : vector<16x16x8xf32>
    %cst = arith.constant 0.000000e+00 : f32
    %10 = vector.broadcast %cst : f32 to vector<16x16x8xf32>
    %11 = arith.maximumf %9, %10 : vector<16x16x8xf32>
    %cst_7 = arith.constant 0.000000e+00 : f32
    %12 = vector.broadcast %cst_7 : f32 to vector<18x18x8xf32>
    %c0_8 = arith.constant 0 : index
    %c0_9 = arith.constant 0 : index
    %c0_10 = arith.constant 0 : index
    %13 = vector.load %arg8[%c0_8, %c0_9, %c0_10] : memref<18x18x8xf32, #tpu.memory_space<vmem>>, vector<18x18x8xf32>
    tpu.vector_store %arg8[%c0_8, %c0_9, %c0_10], %12 {strides = array<i32>} : memref<18x18x8xf32, #tpu.memory_space<vmem>>, vector<18x18x8xf32>,
    %c1 = arith.constant 1 : index
    %c1_11 = arith.constant 1 : index
    %c0_12 = arith.constant 0 : index
    %14 = vector.load %arg8[%c1, %c1_11, %c0_12] : memref<18x18x8xf32, #tpu.memory_space<vmem>>, vector<16x16x8xf32>
    tpu.vector_store %arg8[%c1, %c1_11, %c0_12], %11 {strides = array<i32>} : memref<18x18x8xf32, #tpu.memory_space<vmem>>, vector<16x16x8xf32>,
    %c0_13 = arith.constant 0 : index
    %c0_14 = arith.constant 0 : index
    %c0_15 = arith.constant 0 : index
    %15 = vector.load %arg8[%c0_13, %c0_14, %c0_15] : memref<18x18x8xf32, #tpu.memory_space<vmem>>, vector<16x16x8xf32>
    %16 = vector.shape_cast %15 : vector<16x16x8xf32> to vector<256x8xf32>
    %c0_16 = arith.constant 0 : index
    %c1_17 = arith.constant 1 : index
    %c0_18 = arith.constant 0 : index
    %17 = vector.load %arg8[%c0_16, %c1_17, %c0_18] : memref<18x18x8xf32, #tpu.memory_space<vmem>>, vector<16x16x8xf32>
    %18 = vector.shape_cast %17 : vector<16x16x8xf32> to vector<256x8xf32>
    %c0_19 = arith.constant 0 : index
    %c2 = arith.constant 2 : index
    %c0_20 = arith.constant 0 : index
    %19 = vector.load %arg8[%c0_19, %c2, %c0_20] : memref<18x18x8xf32, #tpu.memory_space<vmem>>, vector<16x16x8xf32>
    %20 = vector.shape_cast %19 : vector<16x16x8xf32> to vector<256x8xf32>
    %c1_21 = arith.constant 1 : index
    %c0_22 = arith.constant 0 : index
    %c0_23 = arith.constant 0 : index
    %21 = vector.load %arg8[%c1_21, %c0_22, %c0_23] : memref<18x18x8xf32, #tpu.memory_space<vmem>>, vector<16x16x8xf32>
    %22 = vector.shape_cast %21 : vector<16x16x8xf32> to vector<256x8xf32>
    %c1_24 = arith.constant 1 : index
    %c1_25 = arith.constant 1 : index
    %c0_26 = arith.constant 0 : index
    %23 = vector.load %arg8[%c1_24, %c1_25, %c0_26] : memref<18x18x8xf32, #tpu.memory_space<vmem>>, vector<16x16x8xf32>
    %24 = vector.shape_cast %23 : vector<16x16x8xf32> to vector<256x8xf32>
    %c1_27 = arith.constant 1 : index
    %c2_28 = arith.constant 2 : index
    %c0_29 = arith.constant 0 : index
    %25 = vector.load %arg8[%c1_27, %c2_28, %c0_29] : memref<18x18x8xf32, #tpu.memory_space<vmem>>, vector<16x16x8xf32>
    %26 = vector.shape_cast %25 : vector<16x16x8xf32> to vector<256x8xf32>
    %c2_30 = arith.constant 2 : index
    %c0_31 = arith.constant 0 : index
    %c0_32 = arith.constant 0 : index
    %27 = vector.load %arg8[%c2_30, %c0_31, %c0_32] : memref<18x18x8xf32, #tpu.memory_space<vmem>>, vector<16x16x8xf32>
    %28 = vector.shape_cast %27 : vector<16x16x8xf32> to vector<256x8xf32>
    %c2_33 = arith.constant 2 : index
    %c1_34 = arith.constant 1 : index
    %c0_35 = arith.constant 0 : index
    %29 = vector.load %arg8[%c2_33, %c1_34, %c0_35] : memref<18x18x8xf32, #tpu.memory_space<vmem>>, vector<16x16x8xf32>
    %30 = vector.shape_cast %29 : vector<16x16x8xf32> to vector<256x8xf32>
    %c2_36 = arith.constant 2 : index
    %c2_37 = arith.constant 2 : index
    %c0_38 = arith.constant 0 : index
    %31 = vector.load %arg8[%c2_36, %c2_37, %c0_38] : memref<18x18x8xf32, #tpu.memory_space<vmem>>, vector<16x16x8xf32>
    %32 = vector.shape_cast %31 : vector<16x16x8xf32> to vector<256x8xf32>
    %33 = tpu.concatenate %16, %18, %20, %22, %24, %26, %28, %30, %32 in 1 : vector<256x8xf32>, vector<256x8xf32>, vector<256x8xf32>, vector<256x8xf32>, vector<256x8xf32>, vector<256x8xf32>, vector<256x8xf32>, vector<256x8xf32>, vector<256x8xf32> -> vector<256x72xf32>
    %34 = arith.truncf %33 : vector<256x72xf32> to vector<256x72xbf16>
    %c0_39 = arith.constant 0 : index
    %c0_40 = arith.constant 0 : index
    %35 = vector.load %arg4[%c0_39, %c0_40] : memref<72x8xbf16, #tpu.memory_space<vmem>>, vector<72x8xbf16>
    %cst_41 = arith.constant dense<0.000000e+00> : vector<256x8xf32>
    %36 = tpu.matmul %34, %35, %cst_41 {dimension_numbers = #tpu.dot_dimension_numbers<[1], [0], [0], [1], [0, 0, 1, 1], [], []>} : vector<256x72xbf16>, vector<72x8xbf16>, vector<256x8xf32> -> vector<256x8xf32>
    %37 = vector.shape_cast %36 : vector<256x8xf32> to vector<16x16x8xf32>
    %c0_42 = arith.constant 0 : index
    %c0_43 = arith.constant 0 : index
    %c0_44 = arith.constant 0 : index
    %c0_45 = arith.constant 0 : index
    %38 = vector.load %arg5[%c0_42, %c0_43, %c0_44, %c0_45] : memref<1x16x16x16xf32, #tpu.memory_space<vmem>>, vector<1x16x16x16xf32>
    %39 = vector.shape_cast %38 : vector<1x16x16x16xf32> to vector<16x16x16xf32>
    %c0_46 = arith.constant 0 : index
    %c0_47 = arith.constant 0 : index
    %c0_48 = arith.constant 0 : index
    %c0_49 = arith.constant 0 : index
    %40 = vector.load %arg1[%c0_46, %c0_47, %c0_48, %c0_49] : memref<1x16x16x8xf32, #tpu.memory_space<vmem>>, vector<1x16x16x8xf32>
    %41 = vector.shape_cast %40 : vector<1x16x16x8xf32> to vector<16x16x8xf32>
    %42 = tpu.concatenate %39, %41, %37 in 2 : vector<16x16x16xf32>, vector<16x16x8xf32>, vector<16x16x8xf32> -> vector<16x16x32xf32>
    %c0_50 = arith.constant 0 : index
    %c0_51 = arith.constant 0 : index
    %c0_52 = arith.constant 0 : index
    %c0_53 = arith.constant 0 : index
    %43 = vector.load %arg6[%c0_50, %c0_51, %c0_52, %c0_53] : memref<1x16x16x32xf32, #tpu.memory_space<vmem>>, vector<1x16x16x32xf32>
    %44 = vector.shape_cast %43 : vector<1x16x16x32xf32> to vector<16x16x32xf32>
    %45 = arith.addf %42, %44 : vector<16x16x32xf32>
    %c0_54 = arith.constant 0 : index
    %c0_55 = arith.constant 0 : index
    %c0_56 = arith.constant 0 : index
    %c0_57 = arith.constant 0 : index
    %46 = vector.load %arg7[%c0_54, %c0_55, %c0_56, %c0_57] : memref<1x16x16x32xf32, #tpu.memory_space<vmem>>, vector<1x16x16x32xf32>
    %47 = vector.shape_cast %46 : vector<1x16x16x32xf32> to vector<16x16x32xf32>
    %48 = vector.shape_cast %45 : vector<16x16x32xf32> to vector<1x16x16x32xf32>
    tpu.vector_store %arg7[%c0_54, %c0_55, %c0_56, %c0_57], %48 {strides = array<i32>} : memref<1x16x16x32xf32, #tpu.memory_space<vmem>>, vector<1x16x16x32xf32>,
    return
  }
  func.func @transform_0(%arg0: i32) -> (i32, i32, i32, i32) {
    %c0_i32 = arith.constant 0 : i32
    %c0_i32_0 = arith.constant 0 : i32
    %c0_i32_1 = arith.constant 0 : i32
    %c0_i32_2 = arith.constant 0 : i32
    return %arg0, %c0_i32, %c0_i32_0, %c0_i32_1 : i32, i32, i32, i32
  }
  func.func @transform_1(%arg0: i32) -> (i32, i32) {
    %c0_i32 = arith.constant 0 : i32
    %c0_i32_0 = arith.constant 0 : i32
    %c0_i32_1 = arith.constant 0 : i32
    return %c0_i32, %c0_i32_0 : i32, i32
  }
  func.func @transform_2(%arg0: i32) -> (i32, i32) {
    %c0_i32 = arith.constant 0 : i32
    %c0_i32_0 = arith.constant 0 : i32
    %c0_i32_1 = arith.constant 0 : i32
    return %c0_i32, %c0_i32_0 : i32, i32
  }
  func.func @transform_3(%arg0: i32) -> (i32, i32) {
    %c0_i32 = arith.constant 0 : i32
    %c0_i32_0 = arith.constant 0 : i32
    %c0_i32_1 = arith.constant 0 : i32
    return %c0_i32, %c0_i32_0 : i32, i32
  }
  func.func @transform_4(%arg0: i32) -> (i32, i32, i32, i32) {
    %c0_i32 = arith.constant 0 : i32
    %c0_i32_0 = arith.constant 0 : i32
    %c0_i32_1 = arith.constant 0 : i32
    %c0_i32_2 = arith.constant 0 : i32
    return %arg0, %c0_i32, %c0_i32_0, %c0_i32_1 : i32, i32, i32, i32
  }
  func.func @transform_5(%arg0: i32) -> (i32, i32, i32, i32) {
    %c0_i32 = arith.constant 0 : i32
    %c0_i32_0 = arith.constant 0 : i32
    %c0_i32_1 = arith.constant 0 : i32
    %c0_i32_2 = arith.constant 0 : i32
    return %arg0, %c0_i32, %c0_i32_0, %c0_i32_1 : i32, i32, i32, i32
  }
  func.func @transform_6(%arg0: i32) -> (i32, i32, i32, i32) {
    %c0_i32 = arith.constant 0 : i32
    %c0_i32_0 = arith.constant 0 : i32
    %c0_i32_1 = arith.constant 0 : i32
    %c0_i32_2 = arith.constant 0 : i32
    return %arg0, %c0_i32, %c0_i32_0, %c0_i32_1 : i32, i32, i32, i32
  }
}

</mosaic_0001>

<bundles_post_ra>
// kernel: conv_block_forward.4
= control target key start
LH: loop header
LB: loop body
LE: loop exit
PB: predicated region body
PF: predicated region fallthrough
CT: control target
= control target key end

     0   :  { %s3190_s18 = smov 0   ;;  %s4288_s0 = inlined_call_operand.vmem [shape: f32[2,16,16,16], index: 0, kind: input, shape index: {}]   ;;  %s4289_s1 = inlined_call_operand.vmem [shape: f32[1,16], index: 1, kind: input, shape index: {}]   ;;  %s4290_s2 = inlined_call_operand.vmem [shape: f32[1,16], index: 2, kind: input, shape index: {}]   ;;  %s4291_s3 = inlined_call_operand.vmem [shape: bf16[144,8], index: 3, kind: input, shape index: {}]   ;;  %s4292_s4 = inlined_call_operand.vmem [shape: f32[2,16,16,8], index: 4, kind: output, shape index: {0}]   ;;  %s4293_s5 = inlined_call_operand.vmem [shape: f32[2,2,8], index: 5, kind: output, shape index: {1}]  }
   0x1 LB: > { %s2489_s19 = sadd.s32 4294967295, %s3149_s18   ;;  %p2493_p0 = scmp.ge.s32.totalorder %s3149_s18, 1  ;;  %s3149_s18 = sphi %s3190_s18, %s16_s18  }
   0x2   : > { %p190_p1 = scmp.lt.s32.totalorder %s3149_s18, 3 }
   0x4   : > { %p191_p2 = pnand %p2493_p0, %p190_p1 }
   0x6   : > { %194 = sbr.rel (%p191_p2) target bundleno = 624 (0x270), region = 36 }
   0xd   : > { %vm379_vm0 = vcmask 130048   ;;  %vm382_vm1 = vcmask 123904   ;;  %p3200_p3 = scmp.lt.s32.totalorder %s2489_s19, 1  ;;  %v3151_v0 = vmov 0.0   ;;  %v3267_v1 = vld [vmem:[%s4289_s1] ss:$0 sm:$0xff] }
   0xe   : > { %380 = vst.msk [vmem:[#allocation2] sm:$0xff] %vm379_vm0, %v3151_v0  ;;  %381 = vst.msk [vmem:[#allocation2 + $0x8] sm:$0xff] %vm379_vm0, %v3151_v0  ;;  %v3280_v2 = vld [vmem:[%s4290_s2] ss:$0 sm:$0xff]  ;;  %s3152_s29 = smov 16   ;;  %s3154_s13 = smov 32  }
   0xf   : > { %383 = vst.msk [vmem:[#allocation2 + $0x10] sm:$0x3] %vm382_vm1, %v3151_v0  ;;  %386 = vst.msk [vmem:[#allocation2 + $0x28] sm:$0x3] %vm382_vm1, %v3151_v0  ;;  %s4308_s19 = smov (!%p3200_p3, %s2489_s19), 1  ;;  %s3155_s16 = smov 48  }
  0x10   : > { %384 = vst.msk [vmem:[#allocation2 + $0x18] sm:$0xff] %vm379_vm0, %v3151_v0  ;;  %385 = vst.msk [vmem:[#allocation2 + $0x20] sm:$0xff] %vm379_vm0, %v3151_v0  ;;  %s2528_s23 = sshll.u32 %s4308_s19, 8  ;;  %s3156_s17 = smov 64   ;;  %vm1685_vm2 = vcmask 261120   ;;  %vm1718_vm3 = vcmask 392192  }
  0x11   : > { %387 = vst.msk [vmem:[#allocation2 + $0x30] sm:$0xff] %vm379_vm0, %v3151_v0  ;;  %388 = vst.msk [vmem:[#allocation2 + $0x38] sm:$0xff] %vm379_vm0, %v3151_v0  ;;  %s3275_s26 = scalar_lea.vmem %s4288_s0, %s2528_s23  ;;  %s3157_s22 = smov 80   ;;  %vm1751_vm4 = vcmask 523264   ;;  %vm1784_vm5 = vcmask 654336   ;;  %vm1817_vm6 = vcmask 785408  }
  0x12   : > { %389 = vst.msk [vmem:[#allocation2 + $0x40] sm:$0x3] %vm382_vm1, %v3151_v0  ;;  %392 = vst.msk [vmem:[#allocation2 + $0x58] sm:$0x3] %vm382_vm1, %v3151_v0  ;;  %v239_v3 = vld [vmem:[%s3275_s26 + $0x10] sm:$0xff]  ;;  %v240_v4 = vld [vmem:[%s3275_s26 + $0x18] sm:$0xff]  ;;  %s4127_s9 = scalar_lea.vmem %s4292_s4, %s2528_s23 }
  0x13   : > { %390 = vst.msk [vmem:[#allocation2 + $0x48] sm:$0xff] %vm379_vm0, %v3151_v0  ;;  %391 = vst.msk [vmem:[#allocation2 + $0x50] sm:$0xff] %vm379_vm0, %v3151_v0  ;;  %v237_v5 = vld [vmem:[%s3275_s26] sm:$0xff]  ;;  %v279_v6 = vmul.f32 %v3267_v1, %v239_v3  ;;  %v280_v7 = vmul.f32 %v3267_v1, %v240_v4  ;;  %v238_v8 = vld [vmem:[%s3275_s26 + $0x8] sm:$0xff]  ;;  %s3158_s24 = smov 96   ;;  %s3159_s28 = smov 112  }
  0x14   : > { %393 = vst.msk [vmem:[#allocation2 + $0x60] sm:$0xff] %vm379_vm0, %v3151_v0  ;;  %394 = vst.msk [vmem:[#allocation2 + $0x68] sm:$0xff] %vm379_vm0, %v3151_v0  ;;  %v277_v9 = vmul.f32 %v3267_v1, %v237_v5  ;;  %v241_v10 = vld [vmem:[%s3275_s26 + $0x20] sm:$0xff]  ;;  %v242_v11 = vld [vmem:[%s3275_s26 + $0x28] sm:$0xff]  ;;  %v278_v14 = vmul.f32 %v3267_v1, %v238_v8  ;;  %vm1850_vm7 = vcmask 916480   ;;  %vm2196_vm8 = vcmask 64512  }
  0x15   : > { %395 = vst.msk [vmem:[#allocation2 + $0x70] sm:$0x3] %vm382_vm1, %v3151_v0  ;;  %398 = vst.msk [vmem:[#allocation2 + $0x88] sm:$0x3] %vm382_vm1, %v3151_v0  ;;  %v500_v12 = vld [vmem:[#allocation2 + $0x1] sm:$0xff]  ;;  %v281_v15 = vmul.f32 %v3267_v1, %v241_v10  ;;  %v282_v16 = vmul.f32 %v3267_v1, %v242_v11  ;;  %v243_v17 = vld [vmem:[%s3275_s26 + $0x30] sm:$0xff]  ;;  %v317_v19 = vadd.f32 %v3280_v2, %v279_v6 }
  0x16   : > { %396 = vst.msk [vmem:[#allocation2 + $0x78] sm:$0xff] %vm379_vm0, %v3151_v0  ;;  %397 = vst.msk [vmem:[#allocation2 + $0x80] sm:$0xff] %vm379_vm0, %v3151_v0  ;;  %v501_v13 = vld [vmem:[#allocation2 + $0x9] sm:$0xff]  ;;  %v318_v20 = vadd.f32 %v3280_v2, %v280_v7  ;;  %v315_v21 = vadd.f32 %v3280_v2, %v277_v9  ;;  %v244_v22 = vld [vmem:[%s3275_s26 + $0x38] sm:$0xff]  ;;  %v316_v23 = vadd.f32 %v3280_v2, %v278_v14  ;;  %s2498_s23 = sshll.u32 %s4308_s19, 1  ;;  %vm2399_vm9 = vcmask 1040384  }
  0x17   : > { %399 = vst.msk [vmem:[#allocation2 + $0x90] sm:$0xff] %vm379_vm0, %v3151_v0  ;;  %400 = vst.msk [vmem:[#allocation2 + $0x98] sm:$0xff] %vm379_vm0, %v3151_v0  ;;  %v2565_v18 = vpack.i.bf16 %v501_v13, %v500_v12  ;;  %v319_v24 = vadd.f32 %v3280_v2, %v281_v15  ;;  %v320_v25 = vadd.f32 %v3280_v2, %v282_v16  ;;  %v245_v27 = vld [vmem:[%s3275_s26 + $0x40] sm:$0xff]  ;;  %v246_v28 = vld [vmem:[%s3275_s26 + $0x48] sm:$0xff]  ;;  %v349_v30 = vmax.f32 %v317_v19, 0.0  ;;  %s235_s12 = scalar_lea.vmem %s4293_s5, %s2498_s23 }
  0x18   : > { %401 = vst.msk [vmem:[#allocation2 + $0xa0] sm:$0x3] %vm382_vm1, %v3151_v0  ;;  %404 = vst.msk [vmem:[#allocation2 + $0xb8] sm:$0x3] %vm382_vm1, %v3151_v0  ;;  %v283_v26 = vmul.f32 %v3267_v1, %v243_v17  ;;  %v247_v29 = vld [vmem:[%s3275_s26 + $0x50] sm:$0xff]  ;;  %v350_v31 = vmax.f32 %v318_v20, 0.0  ;;  %v284_v33 = vmul.f32 %v3267_v1, %v244_v22  ;;  %v285_v42 = vmul.f32 %v3267_v1, %v245_v27 }
  0x19   : > { %402 = vst.msk [vmem:[#allocation2 + $0xa8] sm:$0xff] %vm379_vm0, %v3151_v0  ;;  %403 = vst.msk [vmem:[#allocation2 + $0xb0] sm:$0xff] %vm379_vm0, %v3151_v0  ;;  %2566 = vrot.lane.b32.xlu0 %v2565_v18, %s3152_s29  ;;  %v347_v32 = vmax.f32 %v315_v21, 0.0  ;;  %v248_v34 = vld [vmem:[%s3275_s26 + $0x58] sm:$0xff]  ;;  %v249_v35 = vld [vmem:[%s3275_s26 + $0x60] sm:$0xff]  ;;  %v348_v37 = vmax.f32 %v316_v23, 0.0  ;;  %v286_v43 = vmul.f32 %v3267_v1, %v246_v28  ;;  %v287_v44 = vmul.f32 %v3267_v1, %v247_v29 }
  0x1a   : > { %405 = vst.msk [vmem:[#allocation2 + $0xc0] sm:$0xff] %vm379_vm0, %v3151_v0  ;;  %406 = vst.msk [vmem:[#allocation2 + $0xc8] sm:$0xff] %vm379_vm0, %v3151_v0  ;;  %v250_v36 = vld [vmem:[%s3275_s26 + $0x68] sm:$0xff]  ;;  %v351_v38 = vmax.f32 %v319_v24, 0.0  ;;  %v352_v39 = vmax.f32 %v320_v25, 0.0  ;;  %v321_v40 = vadd.f32 %v3280_v2, %v283_v26  ;;  %v322_v41 = vadd.f32 %v3280_v2, %v284_v33  ;;  %v251_v45 = vld [vmem:[%s3275_s26 + $0x70] sm:$0xff] }
  0x1b   : > { %407 = vst.msk [vmem:[#allocation2 + $0xd0] sm:$0x3] %vm382_vm1, %v3151_v0  ;;  %410 = vst.msk [vmem:[#allocation2 + $0xe8] sm:$0x3] %vm382_vm1, %v3151_v0  ;;  %v288_v47 = vmul.f32 %v3267_v1, %v248_v34  ;;  %v289_v48 = vmul.f32 %v3267_v1, %v249_v35  ;;  %v290_v49 = vmul.f32 %v3267_v1, %v250_v36  ;;  %v252_v50 = vld [vmem:[%s3275_s26 + $0x78] sm:$0xff]  ;;  %v253_v59 = vld [vmem:[%s3275_s26 + $0x80] sm:$0xff] }
  0x1c   : > { %408 = vst.msk [vmem:[#allocation2 + $0xd8] sm:$0xff] %vm379_vm0, %v3151_v0  ;;  %409 = vst.msk [vmem:[#allocation2 + $0xe0] sm:$0xff] %vm379_vm0, %v3151_v0  ;;  %v353_v46 = vmax.f32 %v321_v40, 0.0  ;;  %v354_v51 = vmax.f32 %v322_v41, 0.0  ;;  %v323_v52 = vadd.f32 %v3280_v2, %v285_v42  ;;  %v324_v53 = vadd.f32 %v3280_v2, %v286_v43  ;;  %v254_v60 = vld [vmem:[%s3275_s26 + $0x88] sm:$0xff]  ;;  %v255_v61 = vld [vmem:[%s3275_s26 + $0x90] sm:$0xff] }
  0x1d   : > { %411 = vst.msk [vmem:[#allocation2 + $0xf0] sm:$0xff] %vm379_vm0, %v3151_v0  ;;  %412 = vst.msk [vmem:[#allocation2 + $0xf8] sm:$0xff] %vm379_vm0, %v3151_v0  ;;  %v325_v54 = vadd.f32 %v3280_v2, %v287_v44  ;;  %v326_v55 = vadd.f32 %v3280_v2, %v288_v47  ;;  %v327_v56 = vadd.f32 %v3280_v2, %v289_v48  ;;  %v256_v4 = vld [vmem:[%s3275_s26 + $0x98] sm:$0xff]  ;;  %v257_v5 = vld [vmem:[%s3275_s26 + $0xa0] sm:$0xff]  ;;  %vm2401_vm10 = vcmask 58368  }
  0x1e   : > { %413 = vst.msk [vmem:[#allocation2 + $0x100] sm:$0x3] %vm382_vm1, %v3151_v0  ;;  %416 = vst.msk [vmem:[#allocation2 + $0x118] sm:$0x3] %vm382_vm1, %v3151_v0  ;;  %v328_v57 = vadd.f32 %v3280_v2, %v290_v49  ;;  %v291_v58 = vmul.f32 %v3267_v1, %v251_v45  ;;  %v355_v62 = vmax.f32 %v323_v52, 0.0  ;;  %v356_v63 = vmax.f32 %v324_v53, 0.0 }
  0x1f   : > { %414 = vst.msk [vmem:[#allocation2 + $0x108] sm:$0xff] %vm379_vm0, %v3151_v0  ;;  %415 = vst.msk [vmem:[#allocation2 + $0x110] sm:$0xff] %vm379_vm0, %v3151_v0  ;;  %v292_v3 = vmul.f32 %v3267_v1, %v252_v50  ;;  %v258_v6 = vld [vmem:[%s3275_s26 + $0xa8] sm:$0xff]  ;;  %v358_v7 = vmax.f32 %v326_v55, 0.0  ;;  %v359_v8 = vmax.f32 %v327_v56, 0.0  ;;  %v293_v12 = vmul.f32 %v3267_v1, %v253_v59  ;;  %v259_v15 = vld [vmem:[%s3275_s26 + $0xb0] sm:$0xff] }
  0x20   : > { %417 = vst.msk [vmem:[#allocation2 + $0x120] sm:$0xff] %vm379_vm0, %v3151_v0  ;;  %418 = vst.msk [vmem:[#allocation2 + $0x128] sm:$0xff] %vm379_vm0, %v3151_v0  ;;  %v360_v9 = vmax.f32 %v328_v57, 0.0  ;;  %v329_v10 = vadd.f32 %v3280_v2, %v291_v58  ;;  %v294_v13 = vmul.f32 %v3267_v1, %v254_v60  ;;  %v295_v14 = vmul.f32 %v3267_v1, %v255_v61  ;;  %v260_v16 = vld [vmem:[%s3275_s26 + $0xb8] sm:$0xff]  ;;  %v261_v35 = vld [vmem:[%s3275_s26 + $0xc0] sm:$0xff] }
  0x21   : > { %419 = vst.msk [vmem:[#allocation2 + $0x130] sm:$0x3] %vm382_vm1, %v3151_v0  ;;  %422 = vst.msk [vmem:[#allocation2 + $0x148] sm:$0x3] %vm382_vm1, %v3151_v0  ;;  %v330_v11 = vadd.f32 %v3280_v2, %v292_v3  ;;  %v296_v21 = vmul.f32 %v3267_v1, %v256_v4  ;;  %v297_v22 = vmul.f32 %v3267_v1, %v257_v5  ;;  %v262_v41 = vld [vmem:[%s3275_s26 + $0xc8] sm:$0xff]  ;;  %v263_v42 = vld [vmem:[%s3275_s26 + $0xd0] sm:$0xff] }
  0x22   : > { %420 = vst.msk [vmem:[#allocation2 + $0x138] sm:$0xff] %vm379_vm0, %v3151_v0  ;;  %421 = vst.msk [vmem:[#allocation2 + $0x140] sm:$0xff] %vm379_vm0, %v3151_v0  ;;  %v361_v20 = vmax.f32 %v329_v10, 0.0  ;;  %v298_v23 = vmul.f32 %v3267_v1, %v258_v6  ;;  %v331_v29 = vadd.f32 %v3280_v2, %v293_v12  ;;  %v333_v33 = vadd.f32 %v3280_v2, %v295_v14  ;;  %v264_v48 = vld [vmem:[%s3275_s26 + $0xd8] sm:$0xff]  ;;  %v265_v49 = vld [vmem:[%s3275_s26 + $0xe0] sm:$0xff] }
  0x23   : > { %423 = vst.msk [vmem:[#allocation2 + $0x150] sm:$0xff] %vm379_vm0, %v3151_v0  ;;  %424 = vst.msk [vmem:[#allocation2 + $0x158] sm:$0xff] %vm379_vm0, %v3151_v0  ;;  %v362_v28 = vmax.f32 %v330_v11, 0.0  ;;  %v334_v34 = vadd.f32 %v3280_v2, %v296_v21  ;;  %v300_v47 = vmul.f32 %v3267_v1, %v260_v16  ;;  %v301_v53 = vmul.f32 %v3267_v1, %v261_v35  ;;  %v266_v3 = vld [vmem:[%s3275_s26 + $0xe8] sm:$0xff] }
  0x24   : > { %425 = vst.msk [vmem:[#allocation2 + $0x160] sm:$0x3] %vm382_vm1, %v3151_v0  ;;  %428 = vst.msk [vmem:[#allocation2 + $0x178] sm:$0x3] %vm382_vm1, %v3151_v0  ;;  %v336_v40 = vadd.f32 %v3280_v2, %v298_v23  ;;  %v365_v44 = vmax.f32 %v333_v33, 0.0  ;;  %v302_v59 = vmul.f32 %v3267_v1, %v262_v41  ;;  %v303_v60 = vmul.f32 %v3267_v1, %v263_v42  ;;  %v3125_v33 = vld [vmem:[%s4291_s3] sm:$0xff]  }
  0x25   : > { %426 = vst.msk [vmem:[#allocation2 + $0x168] sm:$0xff] %vm379_vm0, %v3151_v0  ;;  %427 = vst.msk [vmem:[#allocation2 + $0x170] sm:$0xff] %vm379_vm0, %v3151_v0  ;;  %v366_v45 = vmax.f32 %v334_v34, 0.0  ;;  %v338_v58 = vadd.f32 %v3280_v2, %v300_v47  ;;  %v305_v4 = vmul.f32 %v3267_v1, %v265_v49  ;;  %v306_v16 = vmul.f32 %v3267_v1, %v266_v3 }
  0x26   : > { %429 = vst.msk [vmem:[#allocation2 + $0x180] sm:$0xff] %vm379_vm0, %v3151_v0  ;;  %430 = vst.msk [vmem:[#allocation2 + $0x188] sm:$0xff] %vm379_vm0, %v3151_v0  ;;  %v368_v52 = vmax.f32 %v336_v40, 0.0  ;;  %v340_v11 = vadd.f32 %v3280_v2, %v302_v59  ;;  %v3153_v40 = vmov 0  }
  0x27   : > { %431 = vst.msk [vmem:[#allocation2 + $0x190] sm:$0x3] %vm382_vm1, %v3151_v0  ;;  %434 = vst.msk [vmem:[#allocation2 + $0x1a8] sm:$0x3] %vm382_vm1, %v3151_v0  ;;  %2035 = vmatprep.subr.bf16.mxu0 %v3153_v40  ;;  %2530 = vmatprep.subr.bf16.mxu1 %v3153_v40 }
  0x28   : > { %432 = vst.msk [vmem:[#allocation2 + $0x198] sm:$0xff] %vm379_vm0, %v3151_v0  ;;  %433 = vst.msk [vmem:[#allocation2 + $0x1a0] sm:$0xff] %vm379_vm0, %v3151_v0  ;;  %v357_v0 = vmax.f32 %v325_v54, 0.0  ;;  %2036 = vmatpush1.bf16.msra.mxu0 %v3125_v33  ;;  %2539 = vmatpush1.bf16.msra.mxu1 %v3125_v33  ;;  %v267_v33 = vld [vmem:[%s3275_s26 + $0xf0] sm:$0xff] }
  0x29   : > { %438 = vst.msk [vmem:[#allocation2 + $0x31] sm:$0xff] %vm379_vm0, %v349_v30  ;;  %439 = vst.msk [vmem:[#allocation2 + $0x39] sm:$0xff] %vm379_vm0, %v350_v31  ;;  %v332_v30 = vadd.f32 %v3280_v2, %v294_v13  ;;  %v341_v13 = vadd.f32 %v3280_v2, %v303_v60  ;;  %2037 = vmatprep.subr.bf16.mxu0 %v3153_v40  ;;  %2531 = vmatprep.subr.bf16.mxu1 %v3153_v40  ;;  %v3128_v60 = vld [vmem:[%s4291_s3 + $0x18] sm:$0xff]  }
  0x2a   : > { %436 = vst.msk [vmem:[#allocation2 + $0x19] sm:$0xff] %vm379_vm0, %v347_v32  ;;  %437 = vst.msk [vmem:[#allocation2 + $0x21] sm:$0xff] %vm379_vm0, %v348_v37  ;;  %v363_v37 = vmax.f32 %v331_v29, 0.0 }
  0x2b   : > { %440 = vst.msk [vmem:[#allocation2 + $0x49] sm:$0xff] %vm379_vm0, %v351_v38  ;;  %441 = vst.msk [vmem:[#allocation2 + $0x51] sm:$0xff] %vm379_vm0, %v352_v39  ;;  %v364_v38 = vmax.f32 %v332_v30, 0.0  ;;  %v335_v39 = vadd.f32 %v3280_v2, %v297_v22 }
  0x2c   : > { %442 = vst.msk [vmem:[#allocation2 + $0x61] sm:$0xff] %vm379_vm0, %v353_v46  ;;  %443 = vst.msk [vmem:[#allocation2 + $0x69] sm:$0xff] %vm379_vm0, %v354_v51  ;;  %v299_v46 = vmul.f32 %v3267_v1, %v259_v15 }
  0x2d   : > { %444 = vst.msk [vmem:[#allocation2 + $0x79] sm:$0xff] %vm379_vm0, %v355_v62  ;;  %445 = vst.msk [vmem:[#allocation2 + $0x81] sm:$0xff] %vm379_vm0, %v356_v63  ;;  %v367_v51 = vmax.f32 %v335_v39, 0.0  ;;  %v339_v63 = vadd.f32 %v3280_v2, %v301_v53  ;;  %v532_v53 = vld [vmem:[#allocation2 + $0x2] sm:$0xff] }
  0x2e   : > { %446 = vst.msk [vmem:[#allocation2 + $0x91] sm:$0xff] %vm379_vm0, %v357_v0  ;;  %447 = vst.msk [vmem:[#allocation2 + $0x99] sm:$0xff] %vm379_vm0, %v358_v7  ;;  %v337_v57 = vadd.f32 %v3280_v2, %v299_v46  ;;  %v304_v0 = vmul.f32 %v3267_v1, %v264_v48  ;;  %v3126_v48 = vld [vmem:[%s4291_s3 + $0x8] sm:$0xff]  }
  0x2f   : > { %448 = vst.msk [vmem:[#allocation2 + $0xa9] sm:$0xff] %vm379_vm0, %v359_v8  ;;  %449 = vst.msk [vmem:[#allocation2 + $0xb1] sm:$0xff] %vm379_vm0, %v360_v9  ;;  %v370_v9 = vmax.f32 %v338_v58, 0.0  ;;  %v371_v12 = vmax.f32 %v339_v63, 0.0  ;;  %2038 = vmatpush1.bf16.msra.mxu0 %v3126_v48  ;;  %2540 = vmatpush1.bf16.msra.mxu1 %v3126_v48 }
  0x30   : > { %v504_v17 = vld [vmem:[#allocation2 + $0x31] sm:$0xff]  ;;  %v505_v18 = vld [vmem:[#allocation2 + $0x39] sm:$0xff]  ;;  %450 = vst.msk [vmem:[#allocation2 + $0xc1] sm:$0xff] %vm379_vm0, %v361_v20  ;;  %451 = vst.msk [vmem:[#allocation2 + $0xc9] sm:$0xff] %vm379_vm0, %v362_v28  ;;  %v369_v8 = vmax.f32 %v337_v57, 0.0  ;;  %v342_v14 = vadd.f32 %v3280_v2, %v304_v0  ;;  %v373_v20 = vmax.f32 %v341_v13, 0.0  ;;  %2039 = vmatprep.subr.bf16.mxu0 %v3153_v40  ;;  %2532 = vmatprep.subr.bf16.mxu1 %v3153_v40 }
  0x31   : > { %v502_v19 = vld [vmem:[#allocation2 + $0x19] sm:$0xff]  ;;  %v3359_v24 = vpack.i.bf16 %v505_v18, %v504_v17  ;;  %v503_v25 = vld [vmem:[#allocation2 + $0x21] sm:$0xff]  ;;  %452 = vst.msk [vmem:[#allocation2 + $0xd9] sm:$0xff] %vm379_vm0, %v363_v37  ;;  %453 = vst.msk [vmem:[#allocation2 + $0xe1] sm:$0xff] %vm379_vm0, %v364_v38  ;;  %v343_v17 = vadd.f32 %v3280_v2, %v305_v4 }
  0x32   : > { %v506_v26 = vld [vmem:[#allocation2 + $0x49] sm:$0xff]  ;;  %v507_v27 = vld [vmem:[#allocation2 + $0x51] sm:$0xff]  ;;  %v3363_v31 = vpack.i.bf16 %v503_v25, %v502_v19  ;;  %454 = vst.msk [vmem:[#allocation2 + $0xf1] sm:$0xff] %vm379_vm0, %v365_v44  ;;  %455 = vst.msk [vmem:[#allocation2 + $0xf9] sm:$0xff] %vm379_vm0, %v366_v45  ;;  %v372_v19 = vmax.f32 %v340_v11, 0.0  ;;  %v374_v21 = vmax.f32 %v342_v14, 0.0 }
  0x33   : > { %v3365_v32 = vpack.i.bf16 %v507_v27, %v506_v26  ;;  %2576 = vrot.lane.b32.xlu1 %v3359_v24, %s3152_s29  ;;  %v508_v36 = vld [vmem:[#allocation2 + $0x61] sm:$0xff]  ;;  %v509_v43 = vld [vmem:[#allocation2 + $0x69] sm:$0xff]  ;;  %456 = vst.msk [vmem:[#allocation2 + $0x109] sm:$0xff] %vm379_vm0, %v367_v51  ;;  %457 = vst.msk [vmem:[#allocation2 + $0x111] sm:$0xff] %vm379_vm0, %v368_v52  ;;  %v344_v26 = vadd.f32 %v3280_v2, %v306_v16  ;;  %v375_v27 = vmax.f32 %v343_v17, 0.0 }
  0x34   : > { %2571 = vrot.lane.b32.xlu0 %v3363_v31, %s3152_s29  ;;  %v3384_v50 = vpack.i.bf16 %v509_v43, %v508_v36  ;;  %v510_v54 = vld [vmem:[#allocation2 + $0x79] sm:$0xff]  ;;  %v511_v55 = vld [vmem:[#allocation2 + $0x81] sm:$0xff]  ;;  %458 = vst.msk [vmem:[#allocation2 + $0x121] sm:$0xff] %vm379_vm0, %v369_v8  ;;  %459 = vst.msk [vmem:[#allocation2 + $0x129] sm:$0xff] %vm379_vm0, %v370_v9 }
  0x35   : > { %v512_v56 = vld [vmem:[#allocation2 + $0x91] sm:$0xff]  ;;  %v3397_v61 = vpack.i.bf16 %v511_v55, %v510_v54  ;;  %v513_v62 = vld [vmem:[#allocation2 + $0x99] sm:$0xff]  ;;  %460 = vst.msk [vmem:[#allocation2 + $0x139] sm:$0xff] %vm379_vm0, %v371_v12  ;;  %461 = vst.msk [vmem:[#allocation2 + $0x141] sm:$0xff] %vm379_vm0, %v372_v19  ;;  %v376_v30 = vmax.f32 %v344_v26, 0.0 }
  0x36   : > { %v3407_v5 = vpack.i.bf16 %v513_v62, %v512_v56  ;;  %v514_v6 = vld [vmem:[#allocation2 + $0xa9] sm:$0xff]  ;;  %v515_v7 = vld [vmem:[#allocation2 + $0xb1] sm:$0xff]  ;;  %462 = vst.msk [vmem:[#allocation2 + $0x151] sm:$0xff] %vm379_vm0, %v373_v20  ;;  %463 = vst.msk [vmem:[#allocation2 + $0x159] sm:$0xff] %vm379_vm0, %v374_v21 }
  0x37   : > { %2581 = vrot.lane.b32.xlu1 %v3365_v32, %s3152_s29  ;;  %v516_v10 = vld [vmem:[#allocation2 + $0xc1] sm:$0xff]  ;;  %v517_v15 = vld [vmem:[#allocation2 + $0xc9] sm:$0xff]  ;;  %v3418_v18 = vpack.i.bf16 %v515_v7, %v514_v6  ;;  %464 = vst.msk [vmem:[#allocation2 + $0x169] sm:$0xff] %vm379_vm0, %v375_v27  ;;  %465 = vst.msk [vmem:[#allocation2 + $0x171] sm:$0xff] %vm379_vm0, %v376_v30 }
  0x38   : > { %2586 = vrot.lane.b32.xlu0 %v3384_v50, %s3152_s29  ;;  %v3423_v22 = vpack.i.bf16 %v517_v15, %v516_v10  ;;  %v518_v23 = vld [vmem:[#allocation2 + $0xd9] sm:$0xff]  ;;  %v519_v25 = vld [vmem:[#allocation2 + $0xe1] sm:$0xff]  ;;  %v533_v54 = vld [vmem:[#allocation2 + $0xa] sm:$0xff] }
  0x39   : > { %v520_v28 = vld [vmem:[#allocation2 + $0xf1] sm:$0xff]  ;;  %v521_v29 = vld [vmem:[#allocation2 + $0xf9] sm:$0xff]  ;;  %v3435_v34 = vpack.i.bf16 %v519_v25, %v518_v23  ;;  %v2645_v57 = vpack.i.bf16 %v533_v54, %v532_v53  ;;  %v629_v0 = vld [vmem:[#allocation2 + $0x22] sm:$0xff] }
  0x3a   : > { %v3439_v35 = vpack.i.bf16 %v521_v29, %v520_v28  ;;  %v522_v36 = vld [vmem:[#allocation2 + $0x109] sm:$0xff]  ;;  %v523_v37 = vld [vmem:[#allocation2 + $0x111] sm:$0xff]  ;;  %v3470_v59 = vld [vmem:[#allocation2 + $0x20] sm:$0xff] }
  0x3b   : > { %2591 = vrot.lane.b32.xlu1 %v3397_v61, %s3152_s29  ;;  %v524_v38 = vld [vmem:[#allocation2 + $0x121] sm:$0xff]  ;;  %v525_v39 = vld [vmem:[#allocation2 + $0x129] sm:$0xff]  ;;  %v3446_v41 = vpack.i.bf16 %v523_v37, %v522_v36  ;;  %v3468_v58 = vld [vmem:[#allocation2 + $0x18] sm:$0xff]  ;;  %v307_v37 = vmul.f32 %v3267_v1, %v267_v33 }
  0x3c   : > { %2596 = vrot.lane.b32.xlu0 %v3407_v5, %s3152_s29  ;;  %v3451_v42 = vpack.i.bf16 %v525_v39, %v524_v38  ;;  %v526_v43 = vld [vmem:[#allocation2 + $0x139] sm:$0xff]  ;;  %v527_v44 = vld [vmem:[#allocation2 + $0x141] sm:$0xff]  ;;  %v3127_v55 = vld [vmem:[%s4291_s3 + $0x10] sm:$0xff]   ;;  %v2650_v62 = vpack.i.bf16 %v3470_v59, %v3468_v58 }
  0x3d   : > { %v528_v45 = vld [vmem:[#allocation2 + $0x151] sm:$0xff]  ;;  %v529_v46 = vld [vmem:[#allocation2 + $0x159] sm:$0xff]  ;;  %v2630_v47 = vpack.i.bf16 %v527_v44, %v526_v43  ;;  %2040 = vmatpush1.bf16.msra.mxu0 %v3127_v55  ;;  %2541 = vmatpush1.bf16.msra.mxu1 %v3127_v55  ;;  %v3130_v12 = vld [vmem:[%s4291_s3 + $0x28] sm:$0xff]   ;;  %v345_v39 = vadd.f32 %v3280_v2, %v307_v37 }
  0x3e   : > { %v2635_v49 = vpack.i.bf16 %v529_v46, %v528_v45  ;;  %v530_v51 = vld [vmem:[#allocation2 + $0x169] sm:$0xff]  ;;  %v531_v52 = vld [vmem:[#allocation2 + $0x171] sm:$0xff]  ;;  %2041 = vmatprep.subr.bf16.mxu0 %v3153_v40  ;;  %2533 = vmatprep.subr.bf16.mxu1 %v3153_v40  ;;  %v628_v63 = vld [vmem:[#allocation2 + $0x1a] sm:$0xff] }
  0x3f   : > { %2601 = vrot.lane.b32.xlu1 %v3418_v18, %s3152_s29  ;;  %v2640_v56 = vpack.i.bf16 %v531_v52, %v530_v51  ;;  %v630_v3 = vld [vmem:[#allocation2 + $0x32] sm:$0xff]  ;;  %v631_v4 = vld [vmem:[#allocation2 + $0x3a] sm:$0xff]  ;;  %v2660_v10 = vpack.i.bf16 %v629_v0, %v628_v63  ;;  %v3511_v13 = vld [vmem:[#allocation2 + $0x4a] sm:$0xff] }
  0x40   : > { %2606 = vrot.lane.b32.xlu0 %v3423_v22, %s3152_s29  ;;  %v3481_v6 = vld [vmem:[#allocation2 + $0x30] sm:$0xff]  ;;  %v3483_v7 = vld [vmem:[#allocation2 + $0x38] sm:$0xff]  ;;  %v3129_v8 = vld [vmem:[%s4291_s3 + $0x20] sm:$0xff]   ;;  %v1884_v9 = vpack.c.bf16 %v631_v4, %v630_v3  ;;  %v2690_v20 = vpack.i.bf16 %v631_v4, %v630_v3 }
  0x41   : > { %2042 = vmatpush1.bf16.msra.mxu0 %v3128_v60  ;;  %2542 = vmatpush1.bf16.msra.mxu1 %v3128_v60  ;;  %v2665_v11 = vpack.i.bf16 %v3483_v7, %v3481_v6  ;;  %v3513_v14 = vld [vmem:[#allocation2 + $0x52] sm:$0xff]  ;;  %v3515_v15 = vld [vmem:[#allocation2 + $0x48] sm:$0xff]  ;;  %v3133_v23 = vld [vmem:[%s4291_s3 + $0x40] sm:$0xff]  }
  0x42   : > { %2043 = vmatprep.subr.bf16.mxu0 %v3153_v40  ;;  %2534 = vmatprep.subr.bf16.mxu1 %v3153_v40  ;;  %v3517_v16 = vld [vmem:[#allocation2 + $0x50] sm:$0xff]  ;;  %v3132_v17 = vld [vmem:[%s4291_s3 + $0x38] sm:$0xff]   ;;  %v1886_v19 = vpack.c.bf16 %v3513_v14, %v3511_v13  ;;  %v3545_v26 = vld [vmem:[#allocation2 + $0x60] sm:$0xff]  ;;  %v2720_v29 = vpack.i.bf16 %v3513_v14, %v3511_v13 }
  0x43   : > { %2611 = vrot.lane.b32.xlu1 %v3435_v34, %s3152_s29  ;;  %2510 = vmatprep.mubr.msk.bf16.mxu0 %vm379_vm0, %v1884_v9  ;;  %v2695_v21 = vpack.i.bf16 %v3517_v16, %v3515_v15  ;;  %v3543_v25 = vld [vmem:[#allocation2 + $0x6a] sm:$0xff]  ;;  %v268_v36 = vld [vmem:[%s3275_s26 + $0xf8] sm:$0xff]  ;;  %v3571_v45 = vld [vmem:[#allocation2 + $0x80] sm:$0xff] }
  0x44   : > { %2616 = vrot.lane.b32.xlu0 %v3439_v35, %s3152_s29  ;;  %v3547_v27 = vld [vmem:[#allocation2 + $0x68] sm:$0xff]  ;;  %v308_v38 = vmul.f32 %v3267_v1, %v268_v36  ;;  %v3569_v44 = vld [vmem:[#allocation2 + $0x78] sm:$0xff]  ;;  %v3591_v51 = vld [vmem:[#allocation2 + $0xe0] sm:$0xff] }
  0x45   : > { %2044 = vmatpush1.bf16.msra.mxu0 %v3129_v8  ;;  %2543 = vmatpush1.bf16.msra.mxu1 %v3129_v8  ;;  %v2725_v30 = vpack.i.bf16 %v3547_v27, %v3545_v26  ;;  %v548_v46 = vld [vmem:[#allocation2 + $0xc2] sm:$0xff]  ;;  %v636_v52 = vld [vmem:[#allocation2 + $0x7a] sm:$0xff]  ;;  %v3608_v63 = vld [vmem:[#allocation2 + $0xf0] sm:$0xff] }
  0x46   : > { %2045 = vmatprep.subr.bf16.mxu0 %v3153_v40  ;;  %2535 = vmatprep.subr.bf16.mxu1 %v3153_v40  ;;  %v637_v53 = vld [vmem:[#allocation2 + $0x82] sm:$0xff]  ;;  %v644_v55 = vld [vmem:[#allocation2 + $0xda] sm:$0xff]  ;;  %v741_v4 = vld [vmem:[#allocation2 + $0xf2] sm:$0xff] }
  0x47   : > { %2621 = vrot.lane.b32.xlu1 %v3446_v41, %s3152_s29  ;;  %v2795_v54 = vpack.i.bf16 %v637_v53, %v636_v52  ;;  %v3604_v60 = vld [vmem:[#allocation2 + $0x98] sm:$0xff]  ;;  %v680_v33 = vld [vmem:[#allocation2 + $0x110] sm:$0xff] }
  0x48   : > { %2626 = vrot.lane.b32.xlu0 %v3451_v42, %s3152_s29  ;;  %v3612_v3 = vld [vmem:[#allocation2 + $0xf8] sm:$0xff]  ;;  %v648_v53 = vld [vmem:[#allocation2 + $0x10a] sm:$0xff] }
  0x49   : > { %2046 = vmatpush1.bf16.msra.mxu0 %v3130_v12  ;;  %2544 = vmatpush1.bf16.msra.mxu1 %v3130_v12  ;;  %v2810_v9 = vpack.i.bf16 %v3612_v3, %v3608_v63 }
  0x4a   : > { %2047 = vmatprep.subr.bf16.mxu0 %v3153_v40  ;;  %2536 = vmatprep.subr.bf16.mxu1 %v3153_v40 }
  0x4b   : > { %2631 = vrot.lane.b32.xlu1 %v2630_v47, %s3152_s29  ;;  %v549_v47 = vld [vmem:[#allocation2 + $0xca] sm:$0xff] }
  0x4c   : > { %2636 = vrot.lane.b32.xlu0 %v2635_v49, %s3152_s29  ;;  %v3586_v48 = vpack.i.bf16 %v549_v47, %v548_v46  ;;  %v3589_v49 = vld [vmem:[#allocation2 + $0xd8] sm:$0xff] }
  0x4d   : > { %v641_v46 = vld [vmem:[#allocation2 + $0xb2] sm:$0xff] }
  0x4f   : > { %2641 = vrot.lane.b32.xlu1 %v2640_v56, %s3152_s29  ;;  %v645_v56 = vld [vmem:[#allocation2 + $0xe2] sm:$0xff] }
  0x50   : > { %2646 = vrot.lane.b32.xlu0 %v2645_v57, %s3154_s13  ;;  %v669_v57 = vld [vmem:[#allocation2 + $0x90] sm:$0xff] }
  0x51   : > { %v2805_v0 = vpack.i.bf16 %v3604_v60, %v669_v57  ;;  %v3672_v57 = vld [vmem:[#allocation2 + $0xc0] sm:$0xff] }
  0x53   : > { %2651 = vrot.lane.b32.xlu1 %v2650_v62, %s3155_s16  ;;  %v2800_v62 = vpack.i.bf16 %v645_v56, %v644_v55 }
  0x54   : > { %2656 = vrot.lane.b32.xlu0 %v3363_v31, %s3156_s17  ;;  %v3131_v31 = vld [vmem:[%s4291_s3 + $0x30] sm:$0xff]  }
  0x55   : > { %2048 = vmatpush1.bf16.msra.mxu0 %v3131_v31  ;;  %2545 = vmatpush1.bf16.msra.mxu1 %v3131_v31  ;;  %v646_v31 = vld [vmem:[#allocation2 + $0xf2] sm:$0xff] }
  0x56   : > { %2049 = vmatprep.subr.bf16.mxu0 %v3153_v40  ;;  %2537 = vmatprep.subr.bf16.mxu1 %v3153_v40 }
  0x57   : > { %2661 = vrot.lane.b32.xlu1 %v2660_v10, %s3157_s22 }
  0x58   : > { %2666 = vrot.lane.b32.xlu0 %v2665_v11, %s3158_s24 }
  0x59   : > { %2050 = vmatpush1.bf16.msra.mxu0 %v3132_v17  ;;  %2546 = vmatpush1.bf16.msra.mxu1 %v3132_v17  ;;  %v647_v17 = vld [vmem:[#allocation2 + $0xfa] sm:$0xff] }
  0x5a   : > { %2051 = vmatprep.subr.bf16.mxu0 %v3153_v40  ;;  %2538 = vmatprep.subr.bf16.mxu1 %v3153_v40  ;;  %v346_v40 = vadd.f32 %v3280_v2, %v308_v38  ;;  %v2755_v2 = vpack.i.bf16 %v3571_v45, %v3569_v44 }
  0x5b   : > { %2671 = vrot.lane.b32.xlu1 %v3359_v24, %s3159_s28 }
  0x5c   : > { %2676 = vrot.lane.b32.xlu0 %v2660_v10, %s3154_s13  ;;  %v378_v43 = vmax.f32 %v346_v40, 0.0  ;;  %v639_v10 = vld [vmem:[#allocation2 + $0x9a] sm:$0xff] }
  0x5d   : > { %2052 = vmatpush1.bf16.msra.mxu0 %v3133_v23  ;;  %2547 = vmatpush1.bf16.msra.mxu1 %v3133_v23  ;;  %v2860_v23 = vpack.i.bf16 %v647_v17, %v646_v31  ;;  %v469_v17 = vld [vmem:[#allocation2 + $0x8] sm:$0xff] }
  0x5e   : > { %467 = vst.msk [vmem:[#allocation2 + $0x189] sm:$0xff] %vm379_vm0, %v378_v43 }
  0x5f   : > { %2681 = vrot.lane.b32.xlu1 %v2665_v11, %s3155_s16 }
  0x60   : > { %2686 = vrot.lane.b32.xlu0 %v3359_v24, %s3156_s17  ;;  %v3541_v24 = vld [vmem:[#allocation2 + $0x62] sm:$0xff] }
  0x61   : > { %v1888_v28 = vpack.c.bf16 %v3543_v25, %v3541_v24  ;;  %v2750_v1 = vpack.i.bf16 %v3543_v25, %v3541_v24 }
  0x63   : > { %2691 = vrot.lane.b32.xlu1 %v2690_v20, %s3157_s22 }
  0x64   : > { %2696 = vrot.lane.b32.xlu0 %v2695_v21, %s3158_s24 }
  0x67   : > { %2701 = vrot.lane.b32.xlu1 %v3365_v32, %s3159_s28 }
  0x68   : > { %2706 = vrot.lane.b32.xlu0 %v2690_v20, %s3154_s13  ;;  %v671_v20 = vld [vmem:[#allocation2 + $0xa8] sm:$0xff] }
  0x6b   : > { %2711 = vrot.lane.b32.xlu1 %v2695_v21, %s3155_s16  ;;  %v672_v21 = vld [vmem:[#allocation2 + $0xb0] sm:$0xff] }
  0x6c   : > { %2716 = vrot.lane.b32.xlu0 %v3365_v32, %s3156_s17  ;;  %v377_v32 = vmax.f32 %v345_v39, 0.0 }
  0x6e   : > { %466 = vst.msk [vmem:[#allocation2 + $0x181] sm:$0xff] %vm379_vm0, %v377_v32 }
  0x6f   : > { %2721 = vrot.lane.b32.xlu1 %v2720_v29, %s3157_s22 }
  0x70   : > { %2726 = vrot.lane.b32.xlu0 %v2725_v30, %s3158_s24 }
  0x73   : > { %2731 = vrot.lane.b32.xlu1 %v3384_v50, %s3159_s28 }
  0x74   : > { %2736 = vrot.lane.b32.xlu0 %v2720_v29, %s3154_s13  ;;  %v2865_v29 = vpack.i.bf16 %v672_v21, %v671_v20  ;;  %v468_v20 = vld [vmem:[#allocation2] sm:$0xff] }
  0x77   : > { %2741 = vrot.lane.b32.xlu1 %v2725_v30, %s3155_s16  ;;  %v679_v30 = vld [vmem:[#allocation2 + $0x108] sm:$0xff] }
  0x78   : > { %2746 = vrot.lane.b32.xlu0 %v3384_v50, %s3156_s17  ;;  %v3597_v50 = vpack.i.bf16 %v3591_v51, %v3589_v49 }
  0x7b   : > { %2751 = vrot.lane.b32.xlu1 %v2750_v1, %s3157_s22 }
  0x7c   : > { %2756 = vrot.lane.b32.xlu0 %v2755_v2, %s3158_s24 }
  0x7f   : > { %2761 = vrot.lane.b32.xlu1 %v3397_v61, %s3159_s28 }
  0x80   : > { %2766 = vrot.lane.b32.xlu0 %v2750_v1, %s3154_s13 }
  0x83   : > { %2771 = vrot.lane.b32.xlu1 %v3586_v48, %s3154_s13 }
  0x84   : > { %2776 = vrot.lane.b32.xlu0 %v2755_v2, %s3155_s16  ;;  %v640_v2 = vld [vmem:[#allocation2 + $0xaa] sm:$0xff] }
  0x85   : > { %v2915_v52 = vpack.i.bf16 %v641_v46, %v640_v2 }
  0x87   : > { %2781 = vrot.lane.b32.xlu1 %v3597_v50, %s3155_s16 }
  0x88   : > { %2786 = vrot.lane.b32.xlu0 %v3397_v61, %s3156_s17  ;;  %v742_v61 = vld [vmem:[#allocation2 + $0xfa] sm:$0xff] }
  0x89   : > { %v1900_v8 = vpack.c.bf16 %v742_v61, %v741_v4  ;;  %v492_v61 = vld [vmem:[#allocation2 + $0x120] sm:$0xff] }
  0x8b   : > { %2791 = vrot.lane.b32.xlu1 %v3435_v34, %s3156_s17  ;;  %2518 = vmatprep.mubr.msk.bf16.mxu1 %vm379_vm0, %v1900_v8  ;;  %v638_v34 = vld [vmem:[#allocation2 + $0x92] sm:$0xff]  ;;  %v3630_v11 = vpop.permute.xlu0 %2566  ;;  %v493_v8 = vld [vmem:[#allocation2 + $0x128] sm:$0xff] }
  0x8c   : > { %2796 = vrot.lane.b32.xlu0 %v2795_v54, %s3157_s22  ;;  %v2855_v12 = vpack.i.bf16 %v639_v10, %v638_v34  ;;  %v2930_v34 = vpack.i.bf16 %v493_v8, %v492_v61 }
  0x8f   : > { %2801 = vrot.lane.b32.xlu1 %v2800_v62, %s3157_s22 }
  0x90   : > { %2806 = vrot.lane.b32.xlu0 %v2805_v0, %s3158_s24 }
  0x93   : > { %2811 = vrot.lane.b32.xlu1 %v2810_v9, %s3158_s24 }
  0x94   : > { %2816 = vrot.lane.b32.xlu0 %v3407_v5, %s3159_s28 }
  0x97   : > { %2821 = vrot.lane.b32.xlu1 %v3439_v35, %s3159_s28 }
  0x98   : > { %2826 = vrot.lane.b32.xlu0 %v2795_v54, %s3154_s13  ;;  %v649_v54 = vld [vmem:[#allocation2 + $0x112] sm:$0xff] }
  0x9b   : > { %2831 = vrot.lane.b32.xlu1 %v2800_v62, %s3154_s13  ;;  %v3674_v62 = vld [vmem:[#allocation2 + $0xc8] sm:$0xff] }
  0x9c   : > { %2836 = vrot.lane.b32.xlu0 %v2805_v0, %s3155_s16  ;;  %v2920_v0 = vpack.i.bf16 %v649_v54, %v648_v53 }
  0x9f   : > { %2841 = vrot.lane.b32.xlu1 %v2810_v9, %s3155_s16 }
  0xa0   : > { %2846 = vrot.lane.b32.xlu0 %v3407_v5, %s3156_s17  ;;  %v2870_v5 = vpack.i.bf16 %v680_v33, %v679_v30 }
  0xa3   : > { %2851 = vrot.lane.b32.xlu1 %v3439_v35, %s3156_s17 }
  0xa4   : > { %2856 = vrot.lane.b32.xlu0 %v2855_v12, %s3157_s22 }
  0xa5   : > { %v3635_v36 = vpop.permute.xlu1 %2576 }
  0xa6   : > { %v3637_v37 = vpop.permute.xlu0 %2571 }
  0xa7   : > { %2861 = vrot.lane.b32.xlu1 %v2860_v23, %s3157_s22 }
  0xa8   : > { %2866 = vrot.lane.b32.xlu0 %v2865_v29, %s3158_s24 }
  0xa9   : > { %v3641_v38 = vpop.permute.xlu1 %2581 }
  0xaa   : > { %v3643_v39 = vpop.permute.xlu0 %2586 }
  0xab   : > { %2871 = vrot.lane.b32.xlu1 %v2870_v5, %s3158_s24 }
  0xac   : > { %2876 = vrot.lane.b32.xlu0 %v3418_v18, %s3159_s28 }
  0xad   : > { %v3648_v35 = vpop.permute.xlu1 %2591 }
  0xae   : > { %v3650_v40 = vpop.permute.xlu0 %2596 }
  0xaf   : > { %2881 = vrot.lane.b32.xlu1 %v3446_v41, %s3159_s28 }
  0xb0   : > { %2886 = vrot.lane.b32.xlu0 %v2855_v12, %s3154_s13  ;;  %v2568_v12 = vunpack.i.l.bf16 %v3630_v11 }
  0xb1   : > { %v3655_v32 = vpop.permute.xlu1 %2601 }
  0xb2   : > { %v3657_v43 = vpop.permute.xlu0 %2606  ;;  %v1653_v33 = vsel %vm379_vm0, %v468_v20, %v2568_v12  ;;  %v610_v12 = vld [vmem:[#allocation2 + $0xc1] sm:$0xff] }
  0xb3   : > { %2891 = vrot.lane.b32.xlu1 %v2860_v23, %s3154_s13 }
  0xb4   : > { %2896 = vrot.lane.b32.xlu0 %v2865_v29, %s3155_s16 }
  0xb5   : > { %v3661_v1 = vpop.permute.xlu1 %2611 }
  0xb6   : > { %v3663_v47 = vpop.permute.xlu0 %2616 }
  0xb7   : > { %2901 = vrot.lane.b32.xlu1 %v2870_v5, %s3155_s16 }
  0xb8   : > { %2906 = vrot.lane.b32.xlu0 %v3418_v18, %s3156_s17  ;;  %v2925_v18 = vpack.i.bf16 %v3674_v62, %v3672_v57 }
  0xb9   : > { %v3668_v55 = vpop.permute.xlu1 %2621 }
  0xba   : > { %v3670_v56 = vpop.permute.xlu0 %2626 }
  0xbb   : > { %2911 = vrot.lane.b32.xlu1 %v3446_v41, %s3156_s17  ;;  %v2569_v41 = vunpack.i.h.bf16 %v3630_v11 }
  0xbc   : > { %2916 = vrot.lane.b32.xlu0 %v2915_v52, %s3157_s22 }
  0xbd   : > { %v3681_v4 = vpop.permute.xlu1 %2631  ;;  %v1654_v30 = vsel %vm379_vm0, %v469_v17, %v2569_v41 }
  0xbe   : > { %v3683_v9 = vpop.permute.xlu0 %2636 }
  0xbf   : > { %2921 = vrot.lane.b32.xlu1 %v2920_v0, %s3157_s22 }
  0xc0   : > { %2926 = vrot.lane.b32.xlu0 %v2925_v18, %s3158_s24 }
  0xc1   : > { %v3687_v10 = vpop.permute.xlu1 %2641 }
  0xc2   : > { %4298 = vst [vmem:[#allocation3_spill] sm:$0xff] %v3687_v10  ;;  %v2647_v31 = vpop.permute.xlu0 %2646 }
  0xc3   : > { %v2649_v21 = vunpack.i.h.bf16 %v2647_v31  ;;  %v2648_v23 = vunpack.i.l.bf16 %v2647_v31  ;;  %2931 = vrot.lane.b32.xlu1 %v2930_v34, %s3158_s24  ;;  %v611_v31 = vld [vmem:[#allocation2 + $0xc9] sm:$0xff] }
  0xc4   : > { %2936 = vrot.lane.b32.xlu0 %v3423_v22, %s3159_s28 }
  0xc5   : > { %v2652_v29 = vpop.permute.xlu1 %2651  ;;  %v1687_v46 = vsel %vm1685_vm2, %v1654_v30, %v2649_v21  ;;  %v1686_v53 = vsel %vm1685_vm2, %v1653_v33, %v2648_v23  ;;  %v618_v23 = vld [vmem:[#allocation2 + $0x121] sm:$0xff] }
  0xc6   : > { %v2654_v5 = vunpack.i.h.bf16 %v2652_v29  ;;  %v2653_v2 = vunpack.i.l.bf16 %v2652_v29  ;;  %v2657_v11 = vpop.permute.xlu0 %2656  ;;  %v619_v29 = vld [vmem:[#allocation2 + $0x129] sm:$0xff] }
  0xc7   : > { %v2659_v54 = vunpack.i.h.bf16 %v2657_v11  ;;  %v2658_v61 = vunpack.i.l.bf16 %v2657_v11  ;;  %2941 = vrot.lane.b32.xlu1 %v3451_v42, %s3159_s28  ;;  %v2965_v11 = vpack.i.bf16 %v611_v31, %v610_v12 }
  0xc8   : > { %v1719_v22 = vsel %vm1718_vm3, %v1686_v53, %v2653_v2  ;;  %v1720_v8 = vsel %vm1718_vm3, %v1687_v46, %v2654_v5  ;;  %2946 = vrot.lane.b32.xlu0 %v2915_v52, %s3154_s13  ;;  %v2970_v53 = vpack.i.bf16 %v619_v29, %v618_v23 }
  0xc9   : > { %v2662_v41 = vpop.permute.xlu1 %2661  ;;  %v1752_v30 = vsel %vm1751_vm4, %v1719_v22, %v2658_v61  ;;  %v1753_v42 = vsel %vm1751_vm4, %v1720_v8, %v2659_v54  ;;  %v2573_v61 = vunpack.i.l.bf16 %v3637_v37 }
  0xca   : > { %v2664_v17 = vunpack.i.h.bf16 %v2662_v41  ;;  %v2663_v20 = vunpack.i.l.bf16 %v2662_v41  ;;  %v2667_v21 = vpop.permute.xlu0 %2666  ;;  %v2574_v41 = vunpack.i.h.bf16 %v3637_v37 }
  0xcb   : > { %v2669_v33 = vunpack.i.h.bf16 %v2667_v21  ;;  %v2668_v2 = vunpack.i.l.bf16 %v2667_v21  ;;  %2951 = vrot.lane.b32.xlu1 %v2920_v0, %s3154_s13  ;;  %v3711_v21 = vld [vmem:[#allocation2 + $0x122] sm:$0xff]  ;;  %v3713_v0 = vld [vmem:[#allocation2 + $0x12a] sm:$0xff] }
  0xcc   : > { %v1785_v5 = vsel %vm1784_vm5, %v1752_v30, %v2663_v20  ;;  %v1786_v52 = vsel %vm1784_vm5, %v1753_v42, %v2664_v17  ;;  %2956 = vrot.lane.b32.xlu0 %v2925_v18, %s3155_s16  ;;  %v3723_v30 = vpack.i.bf16 %v3713_v0, %v3711_v21  ;;  %v1655_v42 = vsel %vm379_vm0, %v3468_v58, %v2573_v61  ;;  %v707_v61 = vld [vmem:[#allocation2 + $0xd9] sm:$0xff] }
  0xcd   : > { %v2672_v46 = vpop.permute.xlu1 %2671  ;;  %v1818_v17 = vsel %vm1817_vm6, %v1785_v5, %v2668_v2  ;;  %v1819_v20 = vsel %vm1817_vm6, %v1786_v52, %v2669_v33  ;;  %v1656_v33 = vsel %vm379_vm0, %v3470_v59, %v2574_v41  ;;  %v495_v59 = vld [vmem:[#allocation2 + $0x140] sm:$0xff] }
  0xce   : > { %v2674_v54 = vunpack.i.h.bf16 %v2672_v46  ;;  %v2673_v22 = vunpack.i.l.bf16 %v2672_v46  ;;  %v2677_v8 = vpop.permute.xlu0 %2676 }
  0xcf   : > { %v2679_v18 = vunpack.i.h.bf16 %v2677_v8  ;;  %v2678_v12 = vunpack.i.l.bf16 %v2677_v8  ;;  %2961 = vrot.lane.b32.xlu1 %v2930_v34, %s3155_s16 }
  0xd0   : > { %2966 = vrot.lane.b32.xlu0 %v2965_v11, %s3156_s17  ;;  %v1851_v31 = vsel %vm1850_vm7, %v1818_v17, %v2673_v22  ;;  %v1852_v37 = vsel %vm1850_vm7, %v1819_v20, %v2674_v54  ;;  %v494_v22 = vld [vmem:[#allocation2 + $0x138] sm:$0xff]  ;;  %v708_v17 = vld [vmem:[#allocation2 + $0xe1] sm:$0xff] }
  0xd1   : > { %v2682_v23 = vpop.permute.xlu1 %2681  ;;  %v1883_v29 = vpack.c.bf16 %v1852_v37, %v1851_v31  ;;  %v1688_v52 = vsel %vm1685_vm2, %v1655_v42, %v2678_v12  ;;  %v1689_v11 = vsel %vm1685_vm2, %v1656_v33, %v2679_v18  ;;  %v2990_v12 = vpack.i.bf16 %v495_v59, %v494_v22  ;;  %v715_v31 = vld [vmem:[#allocation2 + $0x139] sm:$0xff]  ;;  %v716_v37 = vld [vmem:[#allocation2 + $0x141] sm:$0xff] }
  0xd2   : > { %v2684_v2 = vunpack.i.h.bf16 %v2682_v23  ;;  %v2683_v34 = vunpack.i.l.bf16 %v2682_v23  ;;  %v2687_v5 = vpop.permute.xlu0 %2686 }
  0xd3   : > { %v2689_v46 = vunpack.i.h.bf16 %v2687_v5  ;;  %v2688_v54 = vunpack.i.l.bf16 %v2687_v5  ;;  %2971 = vrot.lane.b32.xlu1 %v2970_v53, %s3156_s17  ;;  %2068 = vmatmul.mubr.bf16.vlgmr.msra.gmra.mrb[0].mxu0 %v1883_v29  ;;  %v2578_v5 = vunpack.i.l.bf16 %v3635_v36 }
  0xd4   : > { %v1721_v8 = vsel %vm1718_vm3, %v1688_v52, %v2683_v34  ;;  %v1722_v58 = vsel %vm1718_vm3, %v1689_v11, %v2684_v2  ;;  %2976 = vrot.lane.b32.xlu0 %v3586_v48, %s3157_s22  ;;  %2511 = vmatprep.mubr.msk.bf16.mxu0 %vm379_vm0, %v1886_v19  ;;  %v2995_v19 = vpack.i.bf16 %v708_v17, %v707_v61  ;;  %v2579_v34 = vunpack.i.h.bf16 %v3635_v36 }
  0xd5   : > { %v2692_v41 = vpop.permute.xlu1 %2691  ;;  %v1754_v23 = vsel %vm1751_vm4, %v1721_v8, %v2688_v54  ;;  %v1755_v29 = vsel %vm1751_vm4, %v1722_v58, %v2689_v46  ;;  %v3000_v2 = vpack.i.bf16 %v716_v37, %v715_v31  ;;  %v1657_v36 = vsel %vm379_vm0, %v3481_v6, %v2578_v5  ;;  %v717_v5 = vld [vmem:[#allocation2 + $0x151] sm:$0xff] }
  0xd6   : > { %v2694_v20 = vunpack.i.h.bf16 %v2692_v41  ;;  %v2693_v53 = vunpack.i.l.bf16 %v2692_v41  ;;  %v2697_v18 = vpop.permute.xlu0 %2696  ;;  %v1658_v17 = vsel %vm379_vm0, %v3483_v7, %v2579_v34 }
  0xd7   : > { %v2699_v48 = vunpack.i.h.bf16 %v2697_v18  ;;  %v2698_v42 = vunpack.i.l.bf16 %v2697_v18  ;;  %2981 = vrot.lane.b32.xlu1 %v3723_v30, %s3157_s22 }
  0xd8   : > { %v1787_v13 = vsel %vm1784_vm5, %v1754_v23, %v2693_v53  ;;  %v1788_v14 = vsel %vm1784_vm5, %v1755_v29, %v2694_v20  ;;  %2986 = vrot.lane.b32.xlu0 %v3597_v50, %s3158_s24 }
  0xd9   : > { %v2702_v33 = vpop.permute.xlu1 %2701  ;;  %v1820_v54 = vsel %vm1817_vm6, %v1787_v13, %v2698_v42  ;;  %v1821_v22 = vsel %vm1817_vm6, %v1788_v14, %v2699_v48  ;;  %v3763_v48 = vld [vmem:[#allocation2 + $0x13a] sm:$0xff]  ;;  %v3765_v42 = vld [vmem:[#allocation2 + $0x142] sm:$0xff] }
  0xda   : > { %v2704_v52 = vunpack.i.h.bf16 %v2702_v33  ;;  %v2703_v11 = vunpack.i.l.bf16 %v2702_v33  ;;  %v2707_v46 = vpop.permute.xlu0 %2706  ;;  %v3020_v34 = vpack.i.bf16 %v3765_v42, %v3763_v48 }
  0xdb   : > { %v2709_v8 = vunpack.i.h.bf16 %v2707_v46  ;;  %v2708_v58 = vunpack.i.l.bf16 %v2707_v46  ;;  %2991 = vrot.lane.b32.xlu1 %v2990_v12, %s3158_s24  ;;  %v3779_v46 = vld [vmem:[#allocation2 + $0x158] sm:$0xff] }
  0xdc   : > { %2996 = vrot.lane.b32.xlu0 %v2995_v19, %s3159_s28  ;;  %v1853_v50 = vsel %vm1850_vm7, %v1820_v54, %v2703_v11  ;;  %v1854_v59 = vsel %vm1850_vm7, %v1821_v22, %v2704_v52  ;;  %v718_v52 = vld [vmem:[#allocation2 + $0x159] sm:$0xff]  ;;  %v3777_v11 = vld [vmem:[#allocation2 + $0x150] sm:$0xff] }
  0xdd   : > { %v2712_v41 = vpop.permute.xlu1 %2711  ;;  %v1885_v61 = vpack.c.bf16 %v1854_v59, %v1853_v50  ;;  %v1691_v31 = vsel %vm1685_vm2, %v1658_v17, %v2709_v8  ;;  %v1690_v37 = vsel %vm1685_vm2, %v1657_v36, %v2708_v58  ;;  %v3025_v8 = vpack.i.bf16 %v3779_v46, %v3777_v11  ;;  %v731_v59 = vld [vmem:[#allocation2 + $0x7a] sm:$0xff] }
  0xde   : > { %v2714_v20 = vunpack.i.h.bf16 %v2712_v41  ;;  %v2713_v53 = vunpack.i.l.bf16 %v2712_v41  ;;  %v2717_v18 = vpop.permute.xlu0 %2716  ;;  %v3030_v50 = vpack.i.bf16 %v718_v52, %v717_v5  ;;  %v732_v41 = vld [vmem:[#allocation2 + $0x82] sm:$0xff]  ;;  %v2583_v36 = vunpack.i.l.bf16 %v3641_v38 }
  0xdf   : > { %v2719_v23 = vunpack.i.h.bf16 %v2717_v18  ;;  %v2718_v29 = vunpack.i.l.bf16 %v2717_v18  ;;  %3001 = vrot.lane.b32.xlu1 %v3000_v2, %s3159_s28  ;;  %2076 = vmatmul.mubr.bf16.gmra.mrb[4].mxu0 %v1885_v61  ;;  %v2584_v61 = vunpack.i.h.bf16 %v3641_v38 }
  0xe0   : > { %v1723_v6 = vsel %vm1718_vm3, %v1690_v37, %v2713_v53  ;;  %v1724_v7 = vsel %vm1718_vm3, %v1691_v31, %v2714_v20  ;;  %3006 = vrot.lane.b32.xlu0 %v3723_v30, %s3154_s13  ;;  %2512 = vmatprep.mubr.msk.bf16.mxu0 %vm379_vm0, %v1888_v28 }
  0xe1   : > { %v2722_v13 = vpop.permute.xlu1 %2721  ;;  %v1756_v30 = vsel %vm1751_vm4, %v1723_v6, %v2718_v29  ;;  %v1757_v54 = vsel %vm1751_vm4, %v1724_v7, %v2719_v23  ;;  %v1890_v29 = vpack.c.bf16 %v732_v41, %v731_v59  ;;  %v1660_v7 = vsel %vm379_vm0, %v3517_v16, %v2584_v61  ;;  %v3814_v61 = vld [vmem:[#allocation2 + $0x168] sm:$0xff] }
  0xe2   : > { %v2724_v14 = vunpack.i.h.bf16 %v2722_v13  ;;  %v2723_v19 = vunpack.i.l.bf16 %v2722_v13  ;;  %v2727_v33 = vpop.permute.xlu0 %2726  ;;  %v1659_v13 = vsel %vm379_vm0, %v3515_v15, %v2583_v36  ;;  %4299 = vst [vmem:[#allocation4_spill] sm:$0xff] %v3814_v61  ;;  %v3816_v36 = vld [vmem:[#allocation2 + $0x170] sm:$0xff] }
  0xe3   : > { %v2729_v24 = vunpack.i.h.bf16 %v2727_v33  ;;  %v2728_v25 = vunpack.i.l.bf16 %v2727_v33  ;;  %3011 = vrot.lane.b32.xlu1 %v2990_v12, %s3155_s16  ;;  %4300 = vst [vmem:[#allocation5_spill] sm:$0xff] %v3816_v36 }
  0xe4   : > { %v1789_v28 = vsel %vm1784_vm5, %v1756_v30, %v2723_v19  ;;  %v1790_v22 = vsel %vm1784_vm5, %v1757_v54, %v2724_v14  ;;  %3016 = vrot.lane.b32.xlu0 %v3000_v2, %s3156_s17 }
  0xe5   : > { %v2732_v58 = vpop.permute.xlu1 %2731  ;;  %v1822_v53 = vsel %vm1817_vm6, %v1789_v28, %v2728_v25  ;;  %v1823_v18 = vsel %vm1817_vm6, %v1790_v22, %v2729_v24  ;;  %v3804_v24 = vld [vmem:[#allocation2 + $0x152] sm:$0xff]  ;;  %v3806_v25 = vld [vmem:[#allocation2 + $0x15a] sm:$0xff] }
  0xe6   : > { %v2734_v17 = vunpack.i.h.bf16 %v2732_v58  ;;  %v2733_v20 = vunpack.i.l.bf16 %v2732_v58  ;;  %v2737_v12 = vpop.permute.xlu0 %2736  ;;  %v3050_v41 = vpack.i.bf16 %v3806_v25, %v3804_v24 }
  0xe7   : > { %v2739_v31 = vunpack.i.h.bf16 %v2737_v12  ;;  %v2738_v2 = vunpack.i.l.bf16 %v2737_v12  ;;  %3021 = vrot.lane.b32.xlu1 %v3020_v34, %s3157_s22 }
  0xe8   : > { %3026 = vrot.lane.b32.xlu0 %v3025_v8, %s3158_s24  ;;  %v1855_v37 = vsel %vm1850_vm7, %v1822_v53, %v2733_v20  ;;  %v1856_v23 = vsel %vm1850_vm7, %v1823_v18, %v2734_v17 }
  0xe9   : > { %v2742_v6 = vpop.permute.xlu1 %2741  ;;  %v1887_v38 = vpack.c.bf16 %v1856_v23, %v1855_v37  ;;  %v1693_v5 = vsel %vm1685_vm2, %v1660_v7, %v2739_v31  ;;  %v1692_v52 = vsel %vm1685_vm2, %v1659_v13, %v2738_v2  ;;  %v3055_v31 = vpack.i.bf16 %v3816_v36, %v3814_v61  ;;  %v719_v2 = vld [vmem:[#allocation2 + $0x169] sm:$0xff]  ;;  %v720_v37 = vld [vmem:[#allocation2 + $0x171] sm:$0xff] }
  0xea   : > { %v2744_v14 = vunpack.i.h.bf16 %v2742_v6  ;;  %v2743_v19 = vunpack.i.l.bf16 %v2742_v6  ;;  %v2747_v33 = vpop.permute.xlu0 %2746  ;;  %v734_v6 = vld [vmem:[#allocation2 + $0x9a] sm:$0xff] }
  0xeb   : > { %v2749_v30 = vunpack.i.h.bf16 %v2747_v33  ;;  %v2748_v54 = vunpack.i.l.bf16 %v2747_v33  ;;  %3031 = vrot.lane.b32.xlu1 %v3030_v50, %s3159_s28  ;;  %2084 = vmatmul.mubr.bf16.gmra.mrb[8].mxu0 %v1887_v38 }
  0xec   : > { %v1725_v16 = vsel %vm1718_vm3, %v1692_v52, %v2743_v19  ;;  %v1726_v15 = vsel %vm1718_vm3, %v1693_v5, %v2744_v14  ;;  %3036 = vrot.lane.b32.xlu0 %v3020_v34, %s3154_s13  ;;  %2513 = vmatprep.mubr.msk.bf16.mxu0 %vm379_vm0, %v1890_v29  ;;  %v733_v29 = vld [vmem:[#allocation2 + $0x92] sm:$0xff]  ;;  %v3060_v19 = vpack.i.bf16 %v720_v37, %v719_v2  ;;  %v2589_v2 = vunpack.i.h.bf16 %v3643_v39 }
  0xed   : > { %v2752_v28 = vpop.permute.xlu1 %2751  ;;  %v1758_v17 = vsel %vm1751_vm4, %v1725_v16, %v2748_v54  ;;  %v1759_v20 = vsel %vm1751_vm4, %v1726_v15, %v2749_v30  ;;  %v1892_v5 = vpack.c.bf16 %v734_v6, %v733_v29  ;;  %v3834_v16 = vld [vmem:[#allocation2 + $0x16a] sm:$0xff]  ;;  %v3836_v15 = vld [vmem:[#allocation2 + $0x172] sm:$0xff]  ;;  %v2588_v37 = vunpack.i.l.bf16 %v3643_v39 }
  0xee   : > { %v2754_v22 = vunpack.i.h.bf16 %v2752_v28  ;;  %v2753_v58 = vunpack.i.l.bf16 %v2752_v28  ;;  %v2757_v59 = vpop.permute.xlu0 %2756 }
  0xef   : > { %v2759_v12 = vunpack.i.h.bf16 %v2757_v59  ;;  %v2758_v53 = vunpack.i.l.bf16 %v2757_v59  ;;  %3041 = vrot.lane.b32.xlu1 %v3025_v8, %s3155_s16 }
  0xf0   : > { %v1791_v34 = vsel %vm1784_vm5, %v1758_v17, %v2753_v58  ;;  %v1792_v18 = vsel %vm1784_vm5, %v1759_v20, %v2754_v22  ;;  %3046 = vrot.lane.b32.xlu0 %v3030_v50, %s3156_s17  ;;  %v689_v22 = vld [vmem:[#allocation2 + $0x180] sm:$0xff]  ;;  %v690_v58 = vld [vmem:[#allocation2 + $0x188] sm:$0xff] }
  0xf1   : > { %v2762_v23 = vpop.permute.xlu1 %2761  ;;  %v1824_v14 = vsel %vm1817_vm6, %v1791_v34, %v2758_v53  ;;  %v1825_v8 = vsel %vm1817_vm6, %v1792_v18, %v2759_v12  ;;  %v721_v17 = vld [vmem:[#allocation2 + $0x181] sm:$0xff]  ;;  %v722_v20 = vld [vmem:[#allocation2 + $0x189] sm:$0xff]  ;;  %v3848_v34 = vld [vmem:[#allocation2 + $0x198] sm:$0xff]  ;;  %v3085_v29 = vpack.i.bf16 %v690_v58, %v689_v22 }
  0xf2   : > { %v2764_v38 = vunpack.i.h.bf16 %v2762_v23  ;;  %v2763_v7 = vunpack.i.l.bf16 %v2762_v23  ;;  %v2767_v13 = vpop.permute.xlu0 %2766  ;;  %v3841_v12 = vld [vmem:[#allocation2 + $0x182] sm:$0xff]  ;;  %v3846_v53 = vld [vmem:[#allocation2 + $0x18a] sm:$0xff]  ;;  %v2609_v23 = vunpack.i.h.bf16 %v3657_v43 }
  0xf3   : > { %3051 = vrot.lane.b32.xlu1 %v3050_v41, %s3157_s22  ;;  %v3850_v18 = vld [vmem:[#allocation2 + $0x1a0] sm:$0xff]  ;;  %v2768_v6 = vunpack.i.l.bf16 %v2767_v13 }
  0xf4   : > { %3056 = vrot.lane.b32.xlu0 %v3055_v31, %s3158_s24  ;;  %v1857_v50 = vsel %vm1850_vm7, %v1824_v14, %v2763_v7  ;;  %v1858_v33 = vsel %vm1850_vm7, %v1825_v8, %v2764_v38  ;;  %v3857_v7 = vld [vmem:[#allocation2 + $0xaa] sm:$0xff]  ;;  %v3859_v14 = vld [vmem:[#allocation2 + $0xb2] sm:$0xff]  ;;  %v2769_v8 = vunpack.i.h.bf16 %v2767_v13  ;;  %v1661_v13 = vsel %vm379_vm0, %v3545_v26, %v2588_v37 }
  0xf5   : > { %v2772_v52 = vpop.permute.xlu1 %2771  ;;  %v1889_v30 = vpack.c.bf16 %v1858_v33, %v1857_v50  ;;  %v3090_v33 = vpack.i.bf16 %v722_v20, %v721_v17  ;;  %v1670_v17 = vsel %vm379_vm0, %v3674_v62, %v2609_v23 }
  0xf6   : > { %v2777_v54 = vpop.permute.xlu0 %2776 }
  0xf7   : > { %3061 = vrot.lane.b32.xlu1 %v3060_v19, %s3159_s28  ;;  %2092 = vmatmul.mubr.bf16.gmra.mrb[12].mxu0 %v1889_v30  ;;  %v2774_v30 = vunpack.i.h.bf16 %v2772_v52  ;;  %v2779_v22 = vunpack.i.h.bf16 %v2777_v54  ;;  %v2778_v58 = vunpack.i.l.bf16 %v2777_v54  ;;  %v1694_v54 = vsel %vm1685_vm2, %v1661_v13, %v2768_v6 }
  0xf8   : > { %3066 = vrot.lane.b32.xlu0 %v3050_v41, %s3154_s13  ;;  %2514 = vmatprep.mubr.msk.bf16.mxu0 %vm379_vm0, %v1892_v5  ;;  %v3080_v41 = vpack.i.bf16 %v3836_v15, %v3834_v16 }
  0xf9   : > { %v3839_v28 = vpop.permute.xlu1 %2781  ;;  %v1703_v36 = vsel %vm1685_vm2, %v1670_v17, %v2774_v30  ;;  %v1727_v20 = vsel %vm1718_vm3, %v1694_v54, %v2778_v58 }
  0xfa   : > { %v2787_v59 = vpop.permute.xlu0 %2786  ;;  %v2783_v26 = vunpack.i.l.bf16 %v3839_v28 }
  0xfb   : > { %3071 = vrot.lane.b32.xlu1 %v3055_v31, %s3155_s16  ;;  %v2608_v31 = vunpack.i.l.bf16 %v3657_v43  ;;  %v1662_v43 = vsel %vm379_vm0, %v3547_v27, %v2589_v2  ;;  %v2789_v39 = vunpack.i.h.bf16 %v2787_v59  ;;  %v2788_v5 = vunpack.i.l.bf16 %v2787_v59 }
  0xfc   : > { %3076 = vrot.lane.b32.xlu0 %v3060_v19, %s3156_s17  ;;  %v2773_v19 = vunpack.i.l.bf16 %v2772_v52  ;;  %v1695_v27 = vsel %vm1685_vm2, %v1662_v43, %v2769_v8  ;;  %v2784_v59 = vunpack.i.h.bf16 %v3839_v28 }
  0xfd   : > { %v2792_v38 = vpop.permute.xlu1 %2791  ;;  %v1669_v52 = vsel %vm379_vm0, %v3672_v57, %v2608_v31  ;;  %v1728_v57 = vsel %vm1718_vm3, %v1695_v27, %v2779_v22 }
  0xfe   : > { %v2797_v50 = vpop.permute.xlu0 %2796  ;;  %v1702_v23 = vsel %vm1685_vm2, %v1669_v52, %v2773_v19  ;;  %v2793_v31 = vunpack.i.l.bf16 %v2792_v38  ;;  %v1761_v43 = vsel %vm1751_vm4, %v1728_v57, %v2789_v39  ;;  %v2794_v19 = vunpack.i.h.bf16 %v2792_v38  ;;  %v744_v57 = vld [vmem:[#allocation2 + $0x112] sm:$0xff] }
  0xff   : > { %3081 = vrot.lane.b32.xlu1 %v3080_v41, %s3157_s22  ;;  %v2799_v2 = vunpack.i.h.bf16 %v2797_v50  ;;  %v2798_v37 = vunpack.i.l.bf16 %v2797_v50  ;;  %v1760_v50 = vsel %vm1751_vm4, %v1727_v20, %v2788_v5  ;;  %v1735_v58 = vsel %vm1718_vm3, %v1702_v23, %v2783_v26  ;;  %v723_v20 = vld [vmem:[#allocation2 + $0x199] sm:$0xff]  ;;  %v724_v26 = vld [vmem:[#allocation2 + $0x1a1] sm:$0xff] }
 0x100   : > { %3086 = vrot.lane.b32.xlu0 %v3085_v29, %s3158_s24  ;;  %v1768_v38 = vsel %vm1751_vm4, %v1735_v58, %v2793_v31 }
 0x101   : > { %v2802_v61 = vpop.permute.xlu1 %2801  ;;  %v1793_v22 = vsel %vm1784_vm5, %v1760_v50, %v2798_v37  ;;  %v1794_v17 = vsel %vm1784_vm5, %v1761_v43, %v2799_v2 }
 0x102   : > { %v2807_v62 = vpop.permute.xlu0 %2806  ;;  %v2803_v13 = vunpack.i.l.bf16 %v2802_v61  ;;  %v2804_v52 = vunpack.i.h.bf16 %v2802_v61 }
 0x103   : > { %3091 = vrot.lane.b32.xlu1 %v3090_v33, %s3159_s28  ;;  %v2809_v6 = vunpack.i.h.bf16 %v2807_v62  ;;  %v2808_v8 = vunpack.i.l.bf16 %v2807_v62 }
 0x104   : > { %3096 = vrot.lane.b32.xlu0 %v3080_v41, %s3154_s13  ;;  %v1736_v41 = vsel %vm1718_vm3, %v1703_v36, %v2784_v59  ;;  %v1801_v2 = vsel %vm1784_vm5, %v1768_v38, %v2803_v13  ;;  %v743_v36 = vld [vmem:[#allocation2 + $0x10a] sm:$0xff]  ;;  %v4302_v13 = vpack.i.bf16 %v3850_v18, %v3848_v34  ;;  %v2613_v38 = vunpack.i.l.bf16 %v3661_v1 }
 0x105   : > { %v2812_v30 = vpop.permute.xlu1 %2811  ;;  %v1826_v5 = vsel %vm1817_vm6, %v1793_v22, %v2808_v8  ;;  %v1827_v39 = vsel %vm1817_vm6, %v1794_v17, %v2809_v6  ;;  %v1769_v61 = vsel %vm1751_vm4, %v1736_v41, %v2794_v19  ;;  %v4301_v19 = vpack.i.bf16 %v3846_v53, %v3841_v12 }
 0x106   : > { %v2817_v28 = vpop.permute.xlu0 %2816  ;;  %v2814_v54 = vunpack.i.h.bf16 %v2812_v30  ;;  %v2813_v27 = vunpack.i.l.bf16 %v2812_v30  ;;  %v1802_v59 = vsel %vm1784_vm5, %v1769_v61, %v2804_v52  ;;  %v1902_v22 = vpack.c.bf16 %v744_v57, %v743_v36 }
 0x107   : > { %v2819_v62 = vunpack.i.h.bf16 %v2817_v28  ;;  %v2818_v10 = vunpack.i.l.bf16 %v2817_v28  ;;  %3101 = vrot.lane.b32.xlu1 %v3085_v29, %s3155_s16  ;;  %v4303_v28 = vpack.c.bf16 %v3859_v14, %v3857_v7  ;;  %v2614_v41 = vunpack.i.h.bf16 %v3661_v1 }
 0x108   : > { %3106 = vrot.lane.b32.xlu0 %v3090_v33, %s3156_s17  ;;  %v1834_v33 = vsel %vm1817_vm6, %v1801_v2, %v2813_v27  ;;  %v1835_v43 = vsel %vm1817_vm6, %v1802_v59, %v2814_v54  ;;  %v2594_v27 = vunpack.i.h.bf16 %v3648_v35  ;;  %v1671_v36 = vsel %vm379_vm0, %v3589_v49, %v2613_v38 }
 0x109   : > { %v2822_v37 = vpop.permute.xlu1 %2821  ;;  %v1859_v23 = vsel %vm1850_vm7, %v1826_v5, %v2818_v10  ;;  %v1860_v29 = vsel %vm1850_vm7, %v1827_v39, %v2819_v62  ;;  %v3120_v10 = vpack.i.bf16 %v724_v26, %v723_v20  ;;  %v2593_v62 = vunpack.i.l.bf16 %v3648_v35  ;;  %v3925_v20 = vld [vmem:[#allocation2 + $0xc2] sm:$0xff]  ;;  %v3927_v26 = vld [vmem:[#allocation2 + $0xca] sm:$0xff] }
 0x10a   : > { %v2824_v31 = vunpack.i.h.bf16 %v2822_v37  ;;  %v2823_v8 = vunpack.i.l.bf16 %v2822_v37  ;;  %v2827_v6 = vpop.permute.xlu0 %2826  ;;  %v1891_v50 = vpack.c.bf16 %v1860_v29, %v1859_v23  ;;  %v1664_v29 = vsel %vm379_vm0, %v3571_v45, %v2594_v27 }
 0x10b   : > { %3111 = vrot.lane.b32.xlu1 %v4301_v19, %s3157_s22  ;;  %v2829_v5 = vunpack.i.h.bf16 %v2827_v6  ;;  %v2828_v14 = vunpack.i.l.bf16 %v2827_v6  ;;  %v1663_v35 = vsel %vm379_vm0, %v3569_v44, %v2593_v62  ;;  %v1672_v1 = vsel %vm379_vm0, %v3591_v51, %v2614_v41 }
 0x10c   : > { %2100 = vmatmul.mubr.bf16.gmra.mrb[16].mxu0 %v1891_v50  ;;  %3116 = vrot.lane.b32.xlu0 %v4302_v13, %s3158_s24  ;;  %v1867_v30 = vsel %vm1850_vm7, %v1834_v33, %v2823_v8  ;;  %v1868_v58 = vsel %vm1850_vm7, %v1835_v43, %v2824_v31  ;;  %v1896_v6 = vpack.c.bf16 %v3927_v26, %v3925_v20 }
 0x10d   : > { %v2832_v17 = vpop.permute.xlu1 %2831  ;;  %v1899_v52 = vpack.c.bf16 %v1868_v58, %v1867_v30  ;;  %2515 = vmatprep.mubr.msk.bf16.mxu0 %vm379_vm0, %v4303_v28  ;;  %v1697_v57 = vsel %vm1685_vm2, %v1664_v29, %v2829_v5  ;;  %v1696_v50 = vsel %vm1685_vm2, %v1663_v35, %v2828_v14 }
 0x10e   : > { %v2837_v54 = vpop.permute.xlu0 %2836  ;;  %v2834_v61 = vunpack.i.h.bf16 %v2832_v17  ;;  %v2833_v2 = vunpack.i.l.bf16 %v2832_v17 }
 0x10f   : > { %3121 = vrot.lane.b32.xlu1 %v3120_v10, %s3159_s28  ;;  %2132 = vmatmul.mubr.bf16.vlgmr.msra.gmra.mrb[0].mxu1 %v1899_v52  ;;  %v2839_v37 = vunpack.i.h.bf16 %v2837_v54  ;;  %v2838_v23 = vunpack.i.l.bf16 %v2837_v54 }
 0x110   : > { %2519 = vmatprep.mubr.msk.bf16.mxu1 %vm379_vm0, %v1902_v22  ;;  %v1705_v19 = vsel %vm1685_vm2, %v1672_v1, %v2834_v61  ;;  %v1704_v51 = vsel %vm1685_vm2, %v1671_v36, %v2833_v2 }
 0x111   : > { %v2842_v34 = vpop.permute.xlu1 %2841  ;;  %v1729_v49 = vsel %vm1718_vm3, %v1696_v50, %v2838_v23  ;;  %v1730_v10 = vsel %vm1718_vm3, %v1697_v57, %v2839_v37 }
 0x112   : > { %v2847_v18 = vpop.permute.xlu0 %2846  ;;  %v2843_v45 = vunpack.i.l.bf16 %v2842_v34  ;;  %v2844_v13 = vunpack.i.h.bf16 %v2842_v34 }
 0x113   : > { %v2849_v59 = vunpack.i.h.bf16 %v2847_v18  ;;  %v2848_v31 = vunpack.i.l.bf16 %v2847_v18 }
 0x114   : > { %v1737_v27 = vsel %vm1718_vm3, %v1704_v51, %v2843_v45  ;;  %v1738_v26 = vsel %vm1718_vm3, %v1705_v19, %v2844_v13 }
 0x115   : > { %v2852_v7 = vpop.permute.xlu1 %2851  ;;  %v1762_v17 = vsel %vm1751_vm4, %v1729_v49, %v2848_v31  ;;  %v1763_v52 = vsel %vm1751_vm4, %v1730_v10, %v2849_v59 }
 0x116   : > { %v2857_v39 = vpop.permute.xlu0 %2856  ;;  %v2853_v30 = vunpack.i.l.bf16 %v2852_v7  ;;  %v2854_v28 = vunpack.i.h.bf16 %v2852_v7 }
 0x117   : > { %v2859_v33 = vunpack.i.h.bf16 %v2857_v39  ;;  %v2858_v43 = vunpack.i.l.bf16 %v2857_v39 }
 0x118   : > { %v1770_v61 = vsel %vm1751_vm4, %v1737_v27, %v2853_v30  ;;  %v1771_v37 = vsel %vm1751_vm4, %v1738_v26, %v2854_v28  ;;  %v2599_v30 = vunpack.i.h.bf16 %v3650_v40 }
 0x119   : > { %v2862_v8 = vpop.permute.xlu1 %2861  ;;  %v1795_v62 = vsel %vm1784_vm5, %v1762_v17, %v2858_v43  ;;  %v1796_v41 = vsel %vm1784_vm5, %v1763_v52, %v2859_v33  ;;  %v2618_v17 = vunpack.i.l.bf16 %v3663_v47 }
 0x11a   : > { %v2867_v44 = vpop.permute.xlu0 %2866  ;;  %v2863_v54 = vunpack.i.l.bf16 %v2862_v8  ;;  %v2864_v38 = vunpack.i.h.bf16 %v2862_v8 }
 0x11b   : > { %v2869_v58 = vunpack.i.h.bf16 %v2867_v44  ;;  %v2868_v22 = vunpack.i.l.bf16 %v2867_v44  ;;  %v1904_v44 = vpack.c.bf16 %v3713_v0, %v3711_v21 }
 0x11c   : > { %v1803_v23 = vsel %vm1784_vm5, %v1770_v61, %v2863_v54  ;;  %v1804_v36 = vsel %vm1784_vm5, %v1771_v37, %v2864_v38  ;;  %v3971_v54 = vld [vmem:[#allocation2 + $0xda] sm:$0xff]  ;;  %v1666_v38 = vsel %vm379_vm0, %v3604_v60, %v2599_v30 }
 0x11d   : > { %v2872_v18 = vpop.permute.xlu1 %2871  ;;  %v1828_v7 = vsel %vm1817_vm6, %v1795_v62, %v2868_v22  ;;  %v1829_v2 = vsel %vm1817_vm6, %v1796_v41, %v2869_v58  ;;  %v2598_v58 = vunpack.i.l.bf16 %v3650_v40  ;;  %v2619_v22 = vunpack.i.h.bf16 %v3663_v47  ;;  %v3134_v40 = vld [vmem:[#allocation2 + $0x90] sm:$0xff] }
 0x11e   : > { %v2877_v5 = vpop.permute.xlu0 %2876  ;;  %v2874_v14 = vunpack.i.h.bf16 %v2872_v18  ;;  %v2873_v34 = vunpack.i.l.bf16 %v2872_v18 }
 0x11f   : > { %v2879_v39 = vunpack.i.h.bf16 %v2877_v5  ;;  %v2878_v20 = vunpack.i.l.bf16 %v2877_v5  ;;  %v1665_v5 = vsel %vm379_vm0, %v3134_v40, %v2598_v58  ;;  %v1674_v47 = vsel %vm379_vm0, %v3612_v3, %v2619_v22 }
 0x120   : > { %v1836_v50 = vsel %vm1817_vm6, %v1803_v23, %v2873_v34  ;;  %v1837_v45 = vsel %vm1817_vm6, %v1804_v36, %v2874_v14  ;;  %v1673_v14 = vsel %vm379_vm0, %v3608_v63, %v2618_v17 }
 0x121   : > { %v2882_v29 = vpop.permute.xlu1 %2881  ;;  %v1861_v35 = vsel %vm1850_vm7, %v1828_v7, %v2878_v20  ;;  %v1862_v1 = vsel %vm1850_vm7, %v1829_v2, %v2879_v39 }
 0x122   : > { %v2884_v57 = vunpack.i.h.bf16 %v2882_v29  ;;  %v2883_v59 = vunpack.i.l.bf16 %v2882_v29  ;;  %v2887_v31 = vpop.permute.xlu0 %2886  ;;  %v1893_v8 = vpack.c.bf16 %v1862_v1, %v1861_v35 }
 0x123   : > { %v2888_v52 = vunpack.i.l.bf16 %v2887_v31  ;;  %v2889_v0 = vunpack.i.h.bf16 %v2887_v31 }
 0x124   : > { %2108 = vmatmul.mubr.bf16.gmra.mrb[20].mxu0 %v1893_v8  ;;  %v1869_v33 = vsel %vm1850_vm7, %v1836_v50, %v2883_v59  ;;  %v1870_v43 = vsel %vm1850_vm7, %v1837_v45, %v2884_v57 }
 0x125   : > { %v2892_v19 = vpop.permute.xlu1 %2891  ;;  %v1901_v51 = vpack.c.bf16 %v1870_v43, %v1869_v33  ;;  %2516 = vmatprep.mubr.msk.bf16.mxu0 %vm379_vm0, %v1896_v6  ;;  %v3973_v6 = vld [vmem:[#allocation2 + $0xe2] sm:$0xff]  ;;  %v1698_v34 = vsel %vm1685_vm2, %v1665_v5, %v2888_v52  ;;  %v1699_v7 = vsel %vm1685_vm2, %v1666_v38, %v2889_v0 }
 0x126   : > { %v2897_v49 = vpop.permute.xlu0 %2896  ;;  %v2894_v18 = vunpack.i.h.bf16 %v2892_v19  ;;  %v2893_v27 = vunpack.i.l.bf16 %v2892_v19  ;;  %v1898_v61 = vpack.c.bf16 %v3973_v6, %v3971_v54 }
 0x127   : > { %2140 = vmatmul.mubr.bf16.gmra.mrb[4].mxu1 %v1901_v51  ;;  %v2899_v62 = vunpack.i.h.bf16 %v2897_v49  ;;  %v2898_v41 = vunpack.i.l.bf16 %v2897_v49 }
 0x128   : > { %2520 = vmatprep.mubr.msk.bf16.mxu1 %vm379_vm0, %v1904_v44  ;;  %v1706_v29 = vsel %vm1685_vm2, %v1673_v14, %v2893_v27  ;;  %v1707_v3 = vsel %vm1685_vm2, %v1674_v47, %v2894_v18 }
 0x129   : > { %v2902_v10 = vpop.permute.xlu1 %2901  ;;  %v1731_v63 = vsel %vm1718_vm3, %v1698_v34, %v2898_v41  ;;  %v1732_v35 = vsel %vm1718_vm3, %v1699_v7, %v2899_v62 }
 0x12a   : > { %v2907_v13 = vpop.permute.xlu0 %2906  ;;  %v2903_v60 = vunpack.i.l.bf16 %v2902_v10  ;;  %v2904_v1 = vunpack.i.h.bf16 %v2902_v10 }
 0x12b   : > { %v2909_v39 = vunpack.i.h.bf16 %v2907_v13  ;;  %v2908_v20 = vunpack.i.l.bf16 %v2907_v13 }
 0x12c   : > { %v1739_v43 = vsel %vm1718_vm3, %v1706_v29, %v2903_v60  ;;  %v1740_v22 = vsel %vm1718_vm3, %v1707_v3, %v2904_v1  ;;  %v2624_v29 = vunpack.i.h.bf16 %v3668_v55  ;;  %v2623_v3 = vunpack.i.l.bf16 %v3668_v55 }
 0x12d   : > { %v2912_v21 = vpop.permute.xlu1 %2911  ;;  %v1764_v31 = vsel %vm1751_vm4, %v1731_v63, %v2908_v20  ;;  %v1765_v8 = vsel %vm1751_vm4, %v1732_v35, %v2909_v39  ;;  %v1906_v39 = vpack.c.bf16 %v3765_v42, %v3763_v48  ;;  %v3135_v42 = vld [vmem:[#allocation2 + $0xb0] sm:$0xff]  ;;  %v2628_v55 = vunpack.i.l.bf16 %v3670_v56 }
 0x12e   : > { %v2917_v28 = vpop.permute.xlu0 %2916  ;;  %v2913_v36 = vunpack.i.l.bf16 %v2912_v21  ;;  %v2914_v50 = vunpack.i.h.bf16 %v2912_v21 }
 0x12f   : > { %v2919_v2 = vunpack.i.h.bf16 %v2917_v28  ;;  %v2918_v37 = vunpack.i.l.bf16 %v2917_v28 }
 0x130   : > { %v1772_v17 = vsel %vm1751_vm4, %v1739_v43, %v2913_v36  ;;  %v1773_v0 = vsel %vm1751_vm4, %v1740_v22, %v2914_v50  ;;  %v3138_v43 = vld [vmem:[#allocation2 + $0x108] sm:$0xff] }
 0x131   : > { %v2922_v26 = vpop.permute.xlu1 %2921  ;;  %v1797_v44 = vsel %vm1784_vm5, %v1764_v31, %v2918_v37  ;;  %v1798_v19 = vsel %vm1784_vm5, %v1765_v8, %v2919_v2  ;;  %v2604_v2 = vunpack.i.h.bf16 %v3655_v32  ;;  %v3136_v8 = vld [vmem:[#allocation2 + $0xa8] sm:$0xff] }
 0x132   : > { %v2927_v23 = vpop.permute.xlu0 %2926  ;;  %v2923_v45 = vunpack.i.l.bf16 %v2922_v26  ;;  %v2924_v51 = vunpack.i.h.bf16 %v2922_v26 }
 0x133   : > { %v2929_v57 = vunpack.i.h.bf16 %v2927_v23  ;;  %v2928_v59 = vunpack.i.l.bf16 %v2927_v23  ;;  %v2603_v23 = vunpack.i.l.bf16 %v3655_v32  ;;  %v1668_v35 = vsel %vm379_vm0, %v3135_v42, %v2604_v2 }
 0x134   : > { %v1805_v28 = vsel %vm1784_vm5, %v1772_v17, %v2923_v45  ;;  %v1806_v27 = vsel %vm1784_vm5, %v1773_v0, %v2924_v51  ;;  %v3137_v45 = vld [vmem:[#allocation2 + $0x110] sm:$0xff] }
 0x135   : > { %v2932_v33 = vpop.permute.xlu1 %2931  ;;  %v1830_v52 = vsel %vm1817_vm6, %v1797_v44, %v2928_v59  ;;  %v1831_v21 = vsel %vm1817_vm6, %v1798_v19, %v2929_v57  ;;  %v1667_v50 = vsel %vm379_vm0, %v3136_v8, %v2603_v23  ;;  %v1676_v32 = vsel %vm379_vm0, %v3137_v45, %v2624_v29 }
 0x136   : > { %v2937_v49 = vpop.permute.xlu0 %2936  ;;  %v2934_v13 = vunpack.i.h.bf16 %v2932_v33  ;;  %v2933_v10 = vunpack.i.l.bf16 %v2932_v33  ;;  %v2629_v33 = vunpack.i.h.bf16 %v3670_v56  ;;  %v1675_v44 = vsel %vm379_vm0, %v3138_v43, %v2623_v3 }
 0x137   : > { %v2939_v30 = vunpack.i.h.bf16 %v2937_v49  ;;  %v2938_v58 = vunpack.i.l.bf16 %v2937_v49 }
 0x138   : > { %v1838_v5 = vsel %vm1817_vm6, %v1805_v28, %v2933_v10  ;;  %v1839_v47 = vsel %vm1817_vm6, %v1806_v27, %v2934_v13 }
 0x139   : > { %v2942_v54 = vpop.permute.xlu1 %2941  ;;  %v1863_v6 = vsel %vm1850_vm7, %v1830_v52, %v2938_v58  ;;  %v1864_v18 = vsel %vm1850_vm7, %v1831_v21, %v2939_v30 }
 0x13a   : > { %v2944_v62 = vunpack.i.h.bf16 %v2942_v54  ;;  %v2943_v41 = vunpack.i.l.bf16 %v2942_v54  ;;  %v2947_v38 = vpop.permute.xlu0 %2946  ;;  %v1895_v40 = vpack.c.bf16 %v1864_v18, %v1863_v6 }
 0x13b   : > { %v2949_v63 = vunpack.i.h.bf16 %v2947_v38 }
 0x13c   : > { %2116 = vmatmul.mubr.bf16.gmra.mrb[24].mxu0 %v1895_v40  ;;  %v1871_v14 = vsel %vm1850_vm7, %v1838_v5, %v2943_v41  ;;  %v1872_v34 = vsel %vm1850_vm7, %v1839_v47, %v2944_v62 }
 0x13d   : > { %v2952_v20 = vpop.permute.xlu1 %2951  ;;  %v1903_v26 = vpack.c.bf16 %v1872_v34, %v1871_v14  ;;  %2517 = vmatprep.mubr.msk.bf16.mxu0 %vm379_vm0, %v1898_v61  ;;  %v2948_v61 = vunpack.i.l.bf16 %v2947_v38  ;;  %v1701_v19 = vsel %vm1685_vm2, %v1668_v35, %v2949_v63 }
 0x13e   : > { %v2957_v7 = vpop.permute.xlu0 %2956  ;;  %v2954_v36 = vunpack.i.h.bf16 %v2952_v20  ;;  %v2953_v57 = vunpack.i.l.bf16 %v2952_v20 }
 0x13f   : > { %2148 = vmatmul.mubr.bf16.gmra.mrb[8].mxu1 %v1903_v26  ;;  %v2959_v59 = vunpack.i.h.bf16 %v2957_v7  ;;  %v2958_v31 = vunpack.i.l.bf16 %v2957_v7  ;;  %v1700_v10 = vsel %vm1685_vm2, %v1667_v50, %v2948_v61 }
 0x140   : > { %2521 = vmatprep.mubr.msk.bf16.mxu1 %vm379_vm0, %v1906_v39  ;;  %v1709_v52 = vsel %vm1685_vm2, %v1676_v32, %v2954_v36  ;;  %v1708_v21 = vsel %vm1685_vm2, %v1675_v44, %v2953_v57  ;;  %v1908_v44 = vpack.c.bf16 %v3806_v25, %v3804_v24 }
 0x141   : > { %v2962_v60 = vpop.permute.xlu1 %2961  ;;  %v1733_v56 = vsel %vm1718_vm3, %v1700_v10, %v2958_v31  ;;  %v1734_v0 = vsel %vm1718_vm3, %v1701_v19, %v2959_v59  ;;  %v3140_v10 = vld [vmem:[#allocation2 + $0x120] sm:$0xff] }
 0x142   : > { %v2967_v37 = vpop.permute.xlu0 %2966  ;;  %v2963_v30 = vunpack.i.l.bf16 %v2962_v60  ;;  %v2964_v28 = vunpack.i.h.bf16 %v2962_v60 }
 0x143   : > { %v2969_v51 = vunpack.i.h.bf16 %v2967_v37  ;;  %v2968_v49 = vunpack.i.l.bf16 %v2967_v37 }
 0x144   : > { %v1741_v5 = vsel %vm1718_vm3, %v1708_v21, %v2963_v30  ;;  %v1742_v2 = vsel %vm1718_vm3, %v1709_v52, %v2964_v28  ;;  %v1677_v30 = vsel %vm379_vm0, %v3140_v10, %v2628_v55 }
 0x145   : > { %v2972_v48 = vpop.permute.xlu1 %2971  ;;  %v1766_v27 = vsel %vm1751_vm4, %v1733_v56, %v2968_v49  ;;  %v1767_v62 = vsel %vm1751_vm4, %v1734_v0, %v2969_v51  ;;  %v3139_v49 = vld [vmem:[#allocation2 + $0x128] sm:$0xff] }
 0x146   : > { %v2977_v1 = vpop.permute.xlu0 %2976  ;;  %v2973_v54 = vunpack.i.l.bf16 %v2972_v48  ;;  %v2974_v41 = vunpack.i.h.bf16 %v2972_v48 }
 0x147   : > { %v2979_v58 = vunpack.i.h.bf16 %v2977_v1  ;;  %v2978_v22 = vunpack.i.l.bf16 %v2977_v1 }
 0x148   : > { %v1774_v37 = vsel %vm1751_vm4, %v1741_v5, %v2973_v54  ;;  %v1775_v3 = vsel %vm1751_vm4, %v1742_v2, %v2974_v41  ;;  %v2634_v5 = vunpack.i.h.bf16 %v3681_v4 }
 0x149   : > { %v2982_v13 = vpop.permute.xlu1 %2981  ;;  %v1799_v47 = vsel %vm1784_vm5, %v1766_v27, %v2978_v22  ;;  %v1800_v14 = vsel %vm1784_vm5, %v1767_v62, %v2979_v58 }
 0x14a   : > { %v2987_v17 = vpop.permute.xlu0 %2986  ;;  %v2983_v38 = vunpack.i.l.bf16 %v2982_v13  ;;  %v2984_v34 = vunpack.i.h.bf16 %v2982_v13  ;;  %v1678_v13 = vsel %vm379_vm0, %v3139_v49, %v2629_v33 }
 0x14b   : > { %v2989_v6 = vunpack.i.h.bf16 %v2987_v17  ;;  %v2988_v18 = vunpack.i.l.bf16 %v2987_v17 }
 0x14c   : > { %v1807_v63 = vsel %vm1784_vm5, %v1774_v37, %v2983_v38  ;;  %v1808_v61 = vsel %vm1784_vm5, %v1775_v3, %v2984_v34 }
 0x14d   : > { %v2992_v40 = vpop.permute.xlu1 %2991  ;;  %v1832_v23 = vsel %vm1817_vm6, %v1799_v47, %v2988_v18  ;;  %v1833_v29 = vsel %vm1817_vm6, %v1800_v14, %v2989_v6  ;;  %v2633_v47 = vunpack.i.l.bf16 %v3681_v4 }
 0x14e   : > { %v2997_v39 = vpop.permute.xlu0 %2996  ;;  %v2994_v20 = vunpack.i.h.bf16 %v2992_v40  ;;  %v2993_v26 = vunpack.i.l.bf16 %v2992_v40 }
 0x14f   : > { %v2999_v7 = vunpack.i.h.bf16 %v2997_v39  ;;  %v2998_v60 = vunpack.i.l.bf16 %v2997_v39 }
 0x150   : > { %v1840_v31 = vsel %vm1817_vm6, %v1807_v63, %v2993_v26  ;;  %v1841_v8 = vsel %vm1817_vm6, %v1808_v61, %v2994_v20  ;;  %v3141_v63 = vld [vmem:[#allocation2 + $0x140] sm:$0xff] }
 0x151   : > { %v3002_v48 = vpop.permute.xlu1 %3001  ;;  %v1865_v42 = vsel %vm1850_vm7, %v1832_v23, %v2998_v60  ;;  %v1866_v35 = vsel %vm1850_vm7, %v1833_v29, %v2999_v7  ;;  %v1910_v23 = vpack.c.bf16 %v3836_v15, %v3834_v16  ;;  %v1680_v4 = vsel %vm379_vm0, %v3141_v63, %v2634_v5 }
 0x152   : > { %v3004_v1 = vunpack.i.h.bf16 %v3002_v48  ;;  %v3003_v36 = vunpack.i.l.bf16 %v3002_v48  ;;  %v3007_v57 = vpop.permute.xlu0 %3006  ;;  %v1897_v59 = vpack.c.bf16 %v1866_v35, %v1865_v42  ;;  %v3142_v48 = vld [vmem:[#allocation2 + $0x138] sm:$0xff] }
 0x153   : > { %v3009_v50 = vunpack.i.h.bf16 %v3007_v57  ;;  %v3008_v45 = vunpack.i.l.bf16 %v3007_v57  ;;  %v1679_v42 = vsel %vm379_vm0, %v3142_v48, %v2633_v47 }
 0x154   : > { %2124 = vmatmul.mubr.bf16.gmra.mrb[28].mxu0 %v1897_v59  ;;  %v1873_v32 = vsel %vm1850_vm7, %v1840_v31, %v3003_v36  ;;  %v1874_v43 = vsel %vm1850_vm7, %v1841_v8, %v3004_v1 }
 0x155   : > { %v3012_v19 = vpop.permute.xlu1 %3011  ;;  %v1905_v51 = vpack.c.bf16 %v1874_v43, %v1873_v32  ;;  %v1710_v52 = vsel %vm1685_vm2, %v1677_v30, %v3008_v45  ;;  %v1711_v21 = vsel %vm1685_vm2, %v1678_v13, %v3009_v50  ;;  %v2639_v30 = vunpack.i.h.bf16 %v3683_v9 }
 0x156   : > { %v3014_v58 = vunpack.i.h.bf16 %v3012_v19  ;;  %v3013_v22 = vunpack.i.l.bf16 %v3012_v19  ;;  %v3017_v17 = vpop.permute.xlu0 %3016 }
 0x157   : > { %v3019_v56 = vunpack.i.h.bf16 %v3017_v17  ;;  %v3018_v0 = vunpack.i.l.bf16 %v3017_v17  ;;  %2156 = vmatmul.mubr.bf16.gmra.mrb[12].mxu1 %v1905_v51 }
 0x158   : > { %v1743_v24 = vsel %vm1718_vm3, %v1710_v52, %v3013_v22  ;;  %v1744_v25 = vsel %vm1718_vm3, %v1711_v21, %v3014_v58  ;;  %2522 = vmatprep.mubr.msk.bf16.mxu1 %vm379_vm0, %v1908_v44  ;;  %v2638_v58 = vunpack.i.l.bf16 %v3683_v9  ;;  %v1682_v9 = vsel %vm379_vm0, %v3779_v46, %v2639_v30 }
 0x159   : > { %v3022_v33 = vpop.permute.xlu1 %3021  ;;  %v1776_v6 = vsel %vm1751_vm4, %v1743_v24, %v3018_v0  ;;  %v1777_v18 = vsel %vm1751_vm4, %v1744_v25, %v3019_v56 }
 0x15a   : > { %v3024_v28 = vunpack.i.h.bf16 %v3022_v33  ;;  %v3023_v54 = vunpack.i.l.bf16 %v3022_v33  ;;  %v3027_v55 = vpop.permute.xlu0 %3026 }
 0x15b   : > { %v3029_v27 = vunpack.i.h.bf16 %v3027_v55  ;;  %v3028_v62 = vunpack.i.l.bf16 %v3027_v55 }
 0x15c   : > { %v1809_v41 = vsel %vm1784_vm5, %v1776_v6, %v3023_v54  ;;  %v1810_v38 = vsel %vm1784_vm5, %v1777_v18, %v3024_v28  ;;  %v1912_v28 = vpack.c.bf16 %v3846_v53, %v3841_v12  ;;  %v1681_v6 = vsel %vm379_vm0, %v3777_v11, %v2638_v58 }
 0x15d   : > { %v3032_v40 = vpop.permute.xlu1 %3031  ;;  %v1842_v20 = vsel %vm1817_vm6, %v1809_v41, %v3028_v62  ;;  %v1843_v26 = vsel %vm1817_vm6, %v1810_v38, %v3029_v27 }
 0x15e   : > { %v3034_v14 = vunpack.i.h.bf16 %v3032_v40  ;;  %v3033_v34 = vunpack.i.l.bf16 %v3032_v40  ;;  %v3037_v39 = vpop.permute.xlu0 %3036 }
 0x15f   : > { %v3039_v7 = vunpack.i.h.bf16 %v3037_v39  ;;  %v3038_v60 = vunpack.i.l.bf16 %v3037_v39 }
 0x160   : > { %v1875_v2 = vsel %vm1850_vm7, %v1842_v20, %v3033_v34  ;;  %v1876_v37 = vsel %vm1850_vm7, %v1843_v26, %v3034_v14 }
 0x161   : > { %v3042_v29 = vpop.permute.xlu1 %3041  ;;  %v1907_v3 = vpack.c.bf16 %v1876_v37, %v1875_v2  ;;  %v1713_v36 = vsel %vm1685_vm2, %v1680_v4, %v3039_v7  ;;  %v1712_v57 = vsel %vm1685_vm2, %v1679_v42, %v3038_v60  ;;  %v755_v37 = vld [vmem:[#allocation2 + $0x19a] sm:$0xff] }
 0x162   : > { %v3044_v35 = vunpack.i.h.bf16 %v3042_v29  ;;  %v3043_v61 = vunpack.i.l.bf16 %v3042_v29  ;;  %v3047_v1 = vpop.permute.xlu0 %3046  ;;  %v4304_v29 = vld [vmem:[#allocation3_spill] sm:$0xff] }
 0x163   : > { %v3049_v59 = vunpack.i.h.bf16 %v3047_v1  ;;  %v3048_v31 = vunpack.i.l.bf16 %v3047_v1  ;;  %2164 = vmatmul.mubr.bf16.gmra.mrb[16].mxu1 %v1907_v3  ;;  %v2644_v3 = vunpack.i.h.bf16 %v4304_v29  ;;  %v2643_v63 = vunpack.i.l.bf16 %v4304_v29 }
 0x164   : > { %v1745_v16 = vsel %vm1718_vm3, %v1712_v57, %v3043_v61  ;;  %v1746_v15 = vsel %vm1718_vm3, %v1713_v36, %v3044_v35  ;;  %2523 = vmatprep.mubr.msk.bf16.mxu1 %vm379_vm0, %v1910_v23  ;;  %v756_v23 = vld [vmem:[#allocation2 + $0x1a2] sm:$0xff] }
 0x165   : > { %v3052_v8 = vpop.permute.xlu1 %3051  ;;  %v1778_v43 = vsel %vm1751_vm4, %v1745_v16, %v3048_v31  ;;  %v1779_v44 = vsel %vm1751_vm4, %v1746_v15, %v3049_v59  ;;  %v1914_v31 = vpack.c.bf16 %v756_v23, %v755_v37 }
 0x166   : > { %v3054_v50 = vunpack.i.h.bf16 %v3052_v8  ;;  %v3053_v45 = vunpack.i.l.bf16 %v3052_v8  ;;  %v3057_v32 = vpop.permute.xlu0 %3056  ;;  %v4305_v8 = vld [vmem:[#allocation5_spill] sm:$0xff] }
 0x167   : > { %v3059_v19 = vunpack.i.h.bf16 %v3057_v32  ;;  %v3058_v51 = vunpack.i.l.bf16 %v3057_v32 }
 0x168   : > { %v1811_v49 = vsel %vm1784_vm5, %v1778_v43, %v3053_v45  ;;  %v1812_v13 = vsel %vm1784_vm5, %v1779_v44, %v3054_v50  ;;  %v1684_v50 = vsel %vm379_vm0, %v4305_v8, %v2644_v3  ;;  %v4306_v45 = vld [vmem:[#allocation4_spill] sm:$0xff] }
 0x169   : > { %v3062_v10 = vpop.permute.xlu1 %3061  ;;  %v1844_v21 = vsel %vm1817_vm6, %v1811_v49, %v3058_v51  ;;  %v1845_v56 = vsel %vm1817_vm6, %v1812_v13, %v3059_v19  ;;  %v1683_v32 = vsel %vm379_vm0, %v4306_v45, %v2643_v63 }
 0x16a   : > { %v3064_v22 = vunpack.i.h.bf16 %v3062_v10  ;;  %v3063_v17 = vunpack.i.l.bf16 %v3062_v10  ;;  %v3067_v52 = vpop.permute.xlu0 %3066 }
 0x16b   : > { %v3069_v0 = vunpack.i.h.bf16 %v3067_v52  ;;  %v3068_v24 = vunpack.i.l.bf16 %v3067_v52 }
 0x16c   : > { %v1877_v25 = vsel %vm1850_vm7, %v1844_v21, %v3063_v17  ;;  %v1878_v33 = vsel %vm1850_vm7, %v1845_v56, %v3064_v22 }
 0x16d   : > { %v3072_v54 = vpop.permute.xlu1 %3071  ;;  %v1909_v55 = vpack.c.bf16 %v1878_v33, %v1877_v25  ;;  %v1714_v41 = vsel %vm1685_vm2, %v1681_v6, %v3068_v24  ;;  %v1715_v38 = vsel %vm1685_vm2, %v1682_v9, %v3069_v0 }
 0x16e   : > { %v3074_v18 = vunpack.i.h.bf16 %v3072_v54  ;;  %v3073_v27 = vunpack.i.l.bf16 %v3072_v54  ;;  %v3077_v62 = vpop.permute.xlu0 %3076 }
 0x16f   : > { %v3079_v40 = vunpack.i.h.bf16 %v3077_v62  ;;  %v3078_v5 = vunpack.i.l.bf16 %v3077_v62  ;;  %2172 = vmatmul.mubr.bf16.gmra.mrb[20].mxu1 %v1909_v55 }
 0x170   : > { %v1747_v12 = vsel %vm1718_vm3, %v1714_v41, %v3073_v27  ;;  %v1748_v53 = vsel %vm1718_vm3, %v1715_v38, %v3074_v18  ;;  %2524 = vmatprep.mubr.msk.bf16.mxu1 %vm379_vm0, %v1912_v28 }
 0x171   : > { %v3082_v46 = vpop.permute.xlu1 %3081  ;;  %v1780_v34 = vsel %vm1751_vm4, %v1747_v12, %v3078_v5  ;;  %v1781_v39 = vsel %vm1751_vm4, %v1748_v53, %v3079_v40 }
 0x172   : > { %v3084_v47 = vunpack.i.h.bf16 %v3082_v46  ;;  %v3083_v14 = vunpack.i.l.bf16 %v3082_v46  ;;  %v3087_v11 = vpop.permute.xlu0 %3086 }
 0x173   : > { %v3089_v20 = vunpack.i.h.bf16 %v3087_v11  ;;  %v3088_v26 = vunpack.i.l.bf16 %v3087_v11 }
 0x174   : > { %v1813_v7 = vsel %vm1784_vm5, %v1780_v34, %v3083_v14  ;;  %v1814_v60 = vsel %vm1784_vm5, %v1781_v39, %v3084_v47 }
 0x175   : > { %v3092_v2 = vpop.permute.xlu1 %3091  ;;  %v1846_v35 = vsel %vm1817_vm6, %v1813_v7, %v3088_v26  ;;  %v1847_v61 = vsel %vm1817_vm6, %v1814_v60, %v3089_v20 }
 0x176   : > { %v3094_v4 = vunpack.i.h.bf16 %v3092_v2  ;;  %v3093_v48 = vunpack.i.l.bf16 %v3092_v2  ;;  %v3097_v42 = vpop.permute.xlu0 %3096 }
 0x177   : > { %v3099_v1 = vunpack.i.h.bf16 %v3097_v42  ;;  %v3098_v36 = vunpack.i.l.bf16 %v3097_v42 }
 0x178   : > { %v1879_v57 = vsel %vm1850_vm7, %v1846_v35, %v3093_v48  ;;  %v1880_v59 = vsel %vm1850_vm7, %v1847_v61, %v3094_v4 }
 0x179   : > { %v3102_v16 = vpop.permute.xlu1 %3101  ;;  %v1911_v15 = vpack.c.bf16 %v1880_v59, %v1879_v57  ;;  %v1717_v51 = vsel %vm1685_vm2, %v1684_v50, %v3099_v1  ;;  %v1716_v49 = vsel %vm1685_vm2, %v1683_v32, %v3098_v36 }
 0x17a   : > { %v3104_v43 = vunpack.i.h.bf16 %v3102_v16  ;;  %v3103_v44 = vunpack.i.l.bf16 %v3102_v16  ;;  %v3107_v19 = vpop.permute.xlu0 %3106 }
 0x17b   : > { %v3109_v13 = vunpack.i.h.bf16 %v3107_v19  ;;  %v3108_v10 = vunpack.i.l.bf16 %v3107_v19  ;;  %2180 = vmatmul.mubr.bf16.gmra.mrb[24].mxu1 %v1911_v15 }
 0x17c   : > { %v1749_v30 = vsel %vm1718_vm3, %v1716_v49, %v3103_v44  ;;  %v1750_v58 = vsel %vm1718_vm3, %v1717_v51, %v3104_v43  ;;  %2525 = vmatprep.mubr.msk.bf16.mxu1 %vm379_vm0, %v1914_v31 }
 0x17d   : > { %v3112_v22 = vpop.permute.xlu1 %3111  ;;  %v1782_v56 = vsel %vm1751_vm4, %v1749_v30, %v3108_v10  ;;  %v1783_v0 = vsel %vm1751_vm4, %v1750_v58, %v3109_v13 }
 0x17e   : > { %v3114_v17 = vunpack.i.h.bf16 %v3112_v22  ;;  %v3113_v52 = vunpack.i.l.bf16 %v3112_v22  ;;  %v3117_v21 = vpop.permute.xlu0 %3116 }
 0x17f   : > { %v3119_v24 = vunpack.i.h.bf16 %v3117_v21  ;;  %v3118_v25 = vunpack.i.l.bf16 %v3117_v21 }
 0x180   : > { %v1815_v33 = vsel %vm1784_vm5, %v1782_v56, %v3113_v52  ;;  %v1816_v28 = vsel %vm1784_vm5, %v1783_v0, %v3114_v17 }
 0x181   : > { %v3122_v54 = vpop.permute.xlu1 %3121  ;;  %v1848_v6 = vsel %vm1817_vm6, %v1815_v33, %v3118_v25  ;;  %v1849_v18 = vsel %vm1817_vm6, %v1816_v28, %v3119_v24 }
 0x182   : > { %v3124_v55 = vunpack.i.h.bf16 %v3122_v54  ;;  %v3123_v9 = vunpack.i.l.bf16 %v3122_v54 }
 0x184   : > { %v1881_v27 = vsel %vm1850_vm7, %v1848_v6, %v3123_v9  ;;  %v1882_v62 = vsel %vm1850_vm7, %v1849_v18, %v3124_v55 }
 0x185   : > { %v1913_v41 = vpack.c.bf16 %v1882_v62, %v1881_v27 }
 0x187   : > { %2188 = vmatmul.mubr.bf16.gmra.mrb[28].mxu1 %v1913_v41 }
 0x1a6   : > { %v2069_v38 = vpop.f32.mrb[0].mxu0 }
 0x1a7   : > { %2197 = vst.msk [vmem:[%s4127_s9] sm:$0xff] %vm2196_vm8, %v2069_v38  ;;  %v2298_v40 = vmul.f32 %v2069_v38, %v2069_v38  ;;  %v2071_v5 = vpop.f32.mrb[1].mxu0  ;;  %v2229_v53 = vsel %vm2196_vm8, %v2069_v38, 0.0 }
 0x1a8   : > { %v2072_v12 = vpop.f32.mrb[2].mxu0 }
 0x1a9   : > { %2198 = vst.msk [vmem:[%s4127_s9 + $0x8] sm:$0xff] %vm2196_vm8, %v2072_v12  ;;  %v2230_v46 = vsel %vm2196_vm8, %v2072_v12, 0.0  ;;  %v2299_v47 = vmul.f32 %v2072_v12, %v2072_v12  ;;  %v2074_v14 = vpop.f32.mrb[3].mxu0  ;;  %v2330_v34 = vsel %vm2196_vm8, %v2298_v40, 0.0 }
 0x1aa   : > { %v2231_v11 = vadd.f32 %v2230_v46, %v2229_v53 }
 0x1ab   : > { %v2331_v39 = vsel %vm2196_vm8, %v2299_v47, 0.0 }
 0x1ac   : > { %v2332_v20 = vadd.f32 %v2331_v39, %v2330_v34 }
 0x1b2   : > { %v2077_v26 = vpop.f32.mrb[4].mxu0 }
 0x1b3   : > { %2199 = vst.msk [vmem:[%s4127_s9 + $0x10] sm:$0xff] %vm2196_vm8, %v2077_v26  ;;  %v2232_v7 = vsel %vm2196_vm8, %v2077_v26, 0.0  ;;  %v2300_v60 = vmul.f32 %v2077_v26, %v2077_v26  ;;  %v2079_v2 = vpop.f32.mrb[5].mxu0 }
 0x1b4   : > { %v2233_v37 = vadd.f32 %v2232_v7, %v2231_v11  ;;  %v2080_v23 = vpop.f32.mrb[6].mxu0 }
 0x1b5   : > { %v2333_v29 = vsel %vm2196_vm8, %v2300_v60, 0.0  ;;  %2200 = vst.msk [vmem:[%s4127_s9 + $0x18] sm:$0xff] %vm2196_vm8, %v2080_v23  ;;  %v2234_v3 = vsel %vm2196_vm8, %v2080_v23, 0.0  ;;  %v2301_v63 = vmul.f32 %v2080_v23, %v2080_v23  ;;  %v2082_v4 = vpop.f32.mrb[7].mxu0 }
 0x1b6   : > { %v2334_v48 = vadd.f32 %v2333_v29, %v2332_v20  ;;  %v2235_v42 = vadd.f32 %v2234_v3, %v2233_v37 }
 0x1b7   : > { %v2335_v35 = vsel %vm2196_vm8, %v2301_v63, 0.0 }
 0x1b8   : > { %v2336_v61 = vadd.f32 %v2335_v35, %v2334_v48 }
 0x1be   : > { %v2085_v1 = vpop.f32.mrb[8].mxu0 }
 0x1bf   : > { %2201 = vst.msk [vmem:[%s4127_s9 + $0x20] sm:$0xff] %vm2196_vm8, %v2085_v1  ;;  %v2236_v36 = vsel %vm2196_vm8, %v2085_v1, 0.0  ;;  %v2302_v57 = vmul.f32 %v2085_v1, %v2085_v1  ;;  %v2087_v59 = vpop.f32.mrb[9].mxu0 }
 0x1c0   : > { %v2237_v31 = vadd.f32 %v2236_v36, %v2235_v42  ;;  %v2088_v16 = vpop.f32.mrb[10].mxu0 }
 0x1c1   : > { %v2337_v15 = vsel %vm2196_vm8, %v2302_v57, 0.0  ;;  %2202 = vst.msk [vmem:[%s4127_s9 + $0x28] sm:$0xff] %vm2196_vm8, %v2088_v16  ;;  %v2238_v8 = vsel %vm2196_vm8, %v2088_v16, 0.0  ;;  %v2303_v50 = vmul.f32 %v2088_v16, %v2088_v16  ;;  %v2090_v45 = vpop.f32.mrb[11].mxu0 }
 0x1c2   : > { %v2338_v32 = vadd.f32 %v2337_v15, %v2336_v61  ;;  %v2239_v43 = vadd.f32 %v2238_v8, %v2237_v31 }
 0x1c3   : > { %v2339_v44 = vsel %vm2196_vm8, %v2303_v50, 0.0 }
 0x1c4   : > { %v2340_v19 = vadd.f32 %v2339_v44, %v2338_v32 }
 0x1ca   : > { %v2093_v51 = vpop.f32.mrb[12].mxu0 }
 0x1cb   : > { %2203 = vst.msk [vmem:[%s4127_s9 + $0x30] sm:$0xff] %vm2196_vm8, %v2093_v51  ;;  %v2240_v49 = vsel %vm2196_vm8, %v2093_v51, 0.0  ;;  %v2304_v13 = vmul.f32 %v2093_v51, %v2093_v51  ;;  %v2095_v10 = vpop.f32.mrb[13].mxu0 }
 0x1cc   : > { %v2241_v30 = vadd.f32 %v2240_v49, %v2239_v43  ;;  %v2096_v58 = vpop.f32.mrb[14].mxu0 }
 0x1cd   : > { %v2341_v22 = vsel %vm2196_vm8, %v2304_v13, 0.0  ;;  %2204 = vst.msk [vmem:[%s4127_s9 + $0x38] sm:$0xff] %vm2196_vm8, %v2096_v58  ;;  %v2242_v17 = vsel %vm2196_vm8, %v2096_v58, 0.0  ;;  %v2305_v52 = vmul.f32 %v2096_v58, %v2096_v58  ;;  %v2098_v21 = vpop.f32.mrb[15].mxu0 }
 0x1ce   : > { %v2342_v56 = vadd.f32 %v2341_v22, %v2340_v19  ;;  %v2243_v0 = vadd.f32 %v2242_v17, %v2241_v30 }
 0x1cf   : > { %v2343_v24 = vsel %vm2196_vm8, %v2305_v52, 0.0 }
 0x1d0   : > { %v2344_v25 = vadd.f32 %v2343_v24, %v2342_v56 }
 0x1df   : > { %v2101_v33 = vpop.f32.mrb[16].mxu0 }
 0x1e0   : > { %2205 = vst.msk [vmem:[%s4127_s9 + $0x40] sm:$0xff] %vm2196_vm8, %v2101_v33  ;;  %v2244_v28 = vsel %vm2196_vm8, %v2101_v33, 0.0  ;;  %v2306_v54 = vmul.f32 %v2101_v33, %v2101_v33  ;;  %v2103_v55 = vpop.f32.mrb[17].mxu0 }
 0x1e1   : > { %v2245_v9 = vadd.f32 %v2244_v28, %v2243_v0  ;;  %v2104_v6 = vpop.f32.mrb[18].mxu0 }
 0x1e2   : > { %v2345_v18 = vsel %vm2196_vm8, %v2306_v54, 0.0  ;;  %2206 = vst.msk [vmem:[%s4127_s9 + $0x48] sm:$0xff] %vm2196_vm8, %v2104_v6  ;;  %v2246_v27 = vsel %vm2196_vm8, %v2104_v6, 0.0  ;;  %v2307_v62 = vmul.f32 %v2104_v6, %v2104_v6  ;;  %v2106_v41 = vpop.f32.mrb[19].mxu0  ;;  %v4168_v38 = vpop.f32.mrb[0].mxu1 }
 0x1e3   : > { %v2346_v40 = vadd.f32 %v2345_v18, %v2344_v25  ;;  %v2247_v5 = vadd.f32 %v2246_v27, %v2245_v9  ;;  %2213 = vst.msk [vmem:[%s4127_s9 + $0x80] sm:$0xff] %vm2196_vm8, %v4168_v38  ;;  %v2135_v12 = vpop.f32.mrb[1].mxu1  ;;  %v2314_v56 = vmul.f32 %v4168_v38, %v4168_v38  ;;  %v2260_v6 = vsel %vm2196_vm8, %v4168_v38, 0.0 }
 0x1e4   : > { %v2347_v53 = vsel %vm2196_vm8, %v2307_v62, 0.0  ;;  %v4174_v46 = vpop.f32.mrb[2].mxu1 }
 0x1e5   : > { %v2348_v47 = vadd.f32 %v2347_v53, %v2346_v40  ;;  %2214 = vst.msk [vmem:[%s4127_s9 + $0x88] sm:$0xff] %vm2196_vm8, %v4174_v46  ;;  %v2138_v14 = vpop.f32.mrb[3].mxu1  ;;  %v2315_v18 = vmul.f32 %v4174_v46, %v4174_v46  ;;  %v2361_v12 = vsel %vm2196_vm8, %v2314_v56, 0.0  ;;  %v2262_v53 = vsel %vm2196_vm8, %v4174_v46, 0.0 }
 0x1f7   : > { %v2109_v11 = vpop.f32.mrb[20].mxu0 }
 0x1f8   : > { %2207 = vst.msk [vmem:[%s4127_s9 + $0x50] sm:$0xff] %vm2196_vm8, %v2109_v11  ;;  %v2248_v34 = vsel %vm2196_vm8, %v2109_v11, 0.0  ;;  %v2308_v39 = vmul.f32 %v2109_v11, %v2109_v11  ;;  %v2111_v20 = vpop.f32.mrb[21].mxu0  ;;  %v2363_v11 = vsel %vm2196_vm8, %v2315_v18, 0.0 }
 0x1f9   : > { %v2249_v26 = vadd.f32 %v2248_v34, %v2247_v5  ;;  %v2112_v7 = vpop.f32.mrb[22].mxu0 }
 0x1fa   : > { %v2349_v60 = vsel %vm2196_vm8, %v2308_v39, 0.0  ;;  %2208 = vst.msk [vmem:[%s4127_s9 + $0x58] sm:$0xff] %vm2196_vm8, %v2112_v7  ;;  %v2250_v2 = vsel %vm2196_vm8, %v2112_v7, 0.0  ;;  %v2309_v37 = vmul.f32 %v2112_v7, %v2112_v7  ;;  %v2114_v23 = vpop.f32.mrb[23].mxu0  ;;  %v4186_v29 = vpop.f32.mrb[4].mxu1 }
 0x1fb   : > { %v2350_v3 = vadd.f32 %v2349_v60, %v2348_v47  ;;  %v2251_v63 = vadd.f32 %v2250_v2, %v2249_v26  ;;  %2215 = vst.msk [vmem:[%s4127_s9 + $0x90] sm:$0xff] %vm2196_vm8, %v4186_v29  ;;  %v2143_v4 = vpop.f32.mrb[5].mxu1  ;;  %v2316_v47 = vmul.f32 %v4186_v29, %v4186_v29  ;;  %v2264_v34 = vsel %vm2196_vm8, %v4186_v29, 0.0 }
 0x1fc   : > { %v2351_v48 = vsel %vm2196_vm8, %v2309_v37, 0.0  ;;  %v4192_v42 = vpop.f32.mrb[6].mxu1 }
 0x1fd   : > { %v2352_v35 = vadd.f32 %v2351_v48, %v2350_v3  ;;  %2216 = vst.msk [vmem:[%s4127_s9 + $0x98] sm:$0xff] %vm2196_vm8, %v4192_v42  ;;  %v2146_v61 = vpop.f32.mrb[7].mxu1  ;;  %v2317_v39 = vmul.f32 %v4192_v42, %v4192_v42  ;;  %v2365_v7 = vsel %vm2196_vm8, %v2316_v47, 0.0  ;;  %v2266_v46 = vsel %vm2196_vm8, %v4192_v42, 0.0 }
 0x1ff   : > { %v2367_v23 = vsel %vm2196_vm8, %v2317_v39, 0.0 }
 0x20f   : > { %v2117_v1 = vpop.f32.mrb[24].mxu0 }
 0x210   : > { %2209 = vst.msk [vmem:[%s4127_s9 + $0x60] sm:$0xff] %vm2196_vm8, %v2117_v1  ;;  %v2252_v36 = vsel %vm2196_vm8, %v2117_v1, 0.0  ;;  %v2310_v57 = vmul.f32 %v2117_v1, %v2117_v1  ;;  %v2119_v59 = vpop.f32.mrb[25].mxu0 }
 0x211   : > { %v2253_v31 = vadd.f32 %v2252_v36, %v2251_v63  ;;  %v2120_v16 = vpop.f32.mrb[26].mxu0 }
 0x212   : > { %v2353_v15 = vsel %vm2196_vm8, %v2310_v57, 0.0  ;;  %2210 = vst.msk [vmem:[%s4127_s9 + $0x68] sm:$0xff] %vm2196_vm8, %v2120_v16  ;;  %v2254_v8 = vsel %vm2196_vm8, %v2120_v16, 0.0  ;;  %v2311_v50 = vmul.f32 %v2120_v16, %v2120_v16  ;;  %v2122_v45 = vpop.f32.mrb[27].mxu0  ;;  %v2149_v32 = vpop.f32.mrb[8].mxu1 }
 0x213   : > { %v2354_v43 = vadd.f32 %v2353_v15, %v2352_v35  ;;  %v2255_v44 = vadd.f32 %v2254_v8, %v2253_v31  ;;  %2217 = vst.msk [vmem:[%s4127_s9 + $0xa0] sm:$0xff] %vm2196_vm8, %v2149_v32  ;;  %v2151_v19 = vpop.f32.mrb[9].mxu1  ;;  %v2318_v60 = vmul.f32 %v2149_v32, %v2149_v32  ;;  %v2268_v3 = vsel %vm2196_vm8, %v2149_v32, 0.0 }
 0x214   : > { %v2355_v51 = vsel %vm2196_vm8, %v2311_v50, 0.0  ;;  %v2152_v49 = vpop.f32.mrb[10].mxu1 }
 0x215   : > { %v2356_v13 = vadd.f32 %v2355_v51, %v2354_v43  ;;  %2218 = vst.msk [vmem:[%s4127_s9 + $0xa8] sm:$0xff] %vm2196_vm8, %v2152_v49  ;;  %v2154_v10 = vpop.f32.mrb[11].mxu1  ;;  %v2319_v63 = vmul.f32 %v2152_v49, %v2152_v49  ;;  %v2369_v48 = vsel %vm2196_vm8, %v2318_v60, 0.0  ;;  %v2270_v35 = vsel %vm2196_vm8, %v2152_v49, 0.0 }
 0x217   : > { %v2371_v59 = vsel %vm2196_vm8, %v2319_v63, 0.0 }
 0x227   : > { %v2125_v30 = vpop.f32.mrb[28].mxu0 }
 0x228   : > { %2211 = vst.msk [vmem:[%s4127_s9 + $0x70] sm:$0xff] %vm2196_vm8, %v2125_v30  ;;  %v2256_v58 = vsel %vm2196_vm8, %v2125_v30, 0.0  ;;  %v2312_v22 = vmul.f32 %v2125_v30, %v2125_v30  ;;  %v2127_v17 = vpop.f32.mrb[29].mxu0 }
 0x229   : > { %v2257_v52 = vadd.f32 %v2256_v58, %v2255_v44  ;;  %v2128_v21 = vpop.f32.mrb[30].mxu0 }
 0x22a   : > { %v2357_v0 = vsel %vm2196_vm8, %v2312_v22, 0.0  ;;  %2212 = vst.msk [vmem:[%s4127_s9 + $0x78] sm:$0xff] %vm2196_vm8, %v2128_v21  ;;  %v2258_v24 = vsel %vm2196_vm8, %v2128_v21, 0.0  ;;  %v2313_v25 = vmul.f32 %v2128_v21, %v2128_v21  ;;  %v2130_v33 = vpop.f32.mrb[31].mxu0  ;;  %v2157_v28 = vpop.f32.mrb[12].mxu1 }
 0x22b   : > { %v2358_v54 = vadd.f32 %v2357_v0, %v2356_v13  ;;  %v2259_v55 = vadd.f32 %v2258_v24, %v2257_v52  ;;  %2219 = vst.msk [vmem:[%s4127_s9 + $0xb0] sm:$0xff] %vm2196_vm8, %v2157_v28  ;;  %v2159_v9 = vpop.f32.mrb[13].mxu1  ;;  %v2320_v61 = vmul.f32 %v2157_v28, %v2157_v28  ;;  %v2272_v31 = vsel %vm2196_vm8, %v2157_v28, 0.0 }
 0x22c   : > { %v2359_v27 = vsel %vm2196_vm8, %v2313_v25, 0.0  ;;  %v2160_v62 = vpop.f32.mrb[14].mxu1 }
 0x22d   : > { %v2261_v41 = vadd.f32 %v2260_v6, %v2259_v55  ;;  %v2360_v40 = vadd.f32 %v2359_v27, %v2358_v54  ;;  %2220 = vst.msk [vmem:[%s4127_s9 + $0xb8] sm:$0xff] %vm2196_vm8, %v2160_v62  ;;  %v2162_v5 = vpop.f32.mrb[15].mxu1  ;;  %v2321_v16 = vmul.f32 %v2160_v62, %v2160_v62  ;;  %v2373_v32 = vsel %vm2196_vm8, %v2320_v61, 0.0 }
 0x22e   : > { %v2274_v43 = vsel %vm2196_vm8, %v2160_v62, 0.0 }
 0x22f   : > { %v2263_v38 = vadd.f32 %v2262_v53, %v2261_v41  ;;  %v2362_v14 = vadd.f32 %v2361_v12, %v2360_v40  ;;  %v2375_v49 = vsel %vm2196_vm8, %v2321_v16, 0.0 }
 0x231   : > { %v2265_v20 = vadd.f32 %v2264_v34, %v2263_v38  ;;  %v2364_v26 = vadd.f32 %v2363_v11, %v2362_v14 }
 0x233   : > { %v2366_v2 = vadd.f32 %v2365_v7, %v2364_v26  ;;  %v2267_v37 = vadd.f32 %v2266_v46, %v2265_v20 }
 0x235   : > { %v2269_v29 = vadd.f32 %v2268_v3, %v2267_v37  ;;  %v2368_v4 = vadd.f32 %v2367_v23, %v2366_v2 }
 0x236   : > { %v2165_v1 = vpop.f32.mrb[16].mxu1 }
 0x237   : > { %v2271_v36 = vadd.f32 %v2270_v35, %v2269_v29  ;;  %v2370_v57 = vadd.f32 %v2369_v48, %v2368_v4  ;;  %2221 = vst.msk [vmem:[%s4127_s9 + $0xc0] sm:$0xff] %vm2196_vm8, %v2165_v1  ;;  %v2167_v42 = vpop.f32.mrb[17].mxu1  ;;  %v2322_v44 = vmul.f32 %v2165_v1, %v2165_v1  ;;  %v2276_v13 = vsel %vm2196_vm8, %v2165_v1, 0.0 }
 0x238   : > { %v2168_v15 = vpop.f32.mrb[18].mxu1 }
 0x239   : > { %v2273_v8 = vadd.f32 %v2272_v31, %v2271_v36  ;;  %v2372_v50 = vadd.f32 %v2371_v59, %v2370_v57  ;;  %2222 = vst.msk [vmem:[%s4127_s9 + $0xc8] sm:$0xff] %vm2196_vm8, %v2168_v15  ;;  %v2170_v45 = vpop.f32.mrb[19].mxu1  ;;  %v2323_v10 = vmul.f32 %v2168_v15, %v2168_v15  ;;  %v2377_v22 = vsel %vm2196_vm8, %v2322_v44, 0.0 }
 0x23a   : > { %v2278_v17 = vsel %vm2196_vm8, %v2168_v15, 0.0 }
 0x23b   : > { %v2374_v19 = vadd.f32 %v2373_v32, %v2372_v50  ;;  %v2275_v51 = vadd.f32 %v2274_v43, %v2273_v8  ;;  %v2379_v56 = vsel %vm2196_vm8, %v2323_v10, 0.0 }
 0x23d   : > { %v2376_v30 = vadd.f32 %v2375_v49, %v2374_v19  ;;  %v2277_v58 = vadd.f32 %v2276_v13, %v2275_v51 }
 0x23f   : > { %v2378_v52 = vadd.f32 %v2377_v22, %v2376_v30  ;;  %v2279_v21 = vadd.f32 %v2278_v17, %v2277_v58 }
 0x241   : > { %v2380_v0 = vadd.f32 %v2379_v56, %v2378_v52 }
 0x242   : > { %v2173_v24 = vpop.f32.mrb[20].mxu1 }
 0x243   : > { %2223 = vst.msk [vmem:[%s4127_s9 + $0xd0] sm:$0xff] %vm2196_vm8, %v2173_v24  ;;  %v2280_v25 = vsel %vm2196_vm8, %v2173_v24, 0.0  ;;  %v2324_v33 = vmul.f32 %v2173_v24, %v2173_v24  ;;  %v2175_v28 = vpop.f32.mrb[21].mxu1 }
 0x244   : > { %v2281_v54 = vadd.f32 %v2280_v25, %v2279_v21  ;;  %v2176_v55 = vpop.f32.mrb[22].mxu1 }
 0x245   : > { %v2381_v9 = vsel %vm2196_vm8, %v2324_v33, 0.0  ;;  %2224 = vst.msk [vmem:[%s4127_s9 + $0xd8] sm:$0xff] %vm2196_vm8, %v2176_v55  ;;  %v2282_v6 = vsel %vm2196_vm8, %v2176_v55, 0.0  ;;  %v2325_v18 = vmul.f32 %v2176_v55, %v2176_v55  ;;  %v2178_v27 = vpop.f32.mrb[23].mxu1 }
 0x246   : > { %v2382_v62 = vadd.f32 %v2381_v9, %v2380_v0  ;;  %v2283_v41 = vadd.f32 %v2282_v6, %v2281_v54 }
 0x247   : > { %v2383_v40 = vsel %vm2196_vm8, %v2325_v18, 0.0 }
 0x248   : > { %v2384_v5 = vadd.f32 %v2383_v40, %v2382_v62 }
 0x24e   : > { %v2181_v12 = vpop.f32.mrb[24].mxu1 }
 0x24f   : > { %2225 = vst.msk [vmem:[%s4127_s9 + $0xe0] sm:$0xff] %vm2196_vm8, %v2181_v12  ;;  %v2284_v53 = vsel %vm2196_vm8, %v2181_v12, 0.0  ;;  %v2326_v47 = vmul.f32 %v2181_v12, %v2181_v12  ;;  %v2183_v38 = vpop.f32.mrb[25].mxu1 }
 0x250   : > { %v2285_v14 = vadd.f32 %v2284_v53, %v2283_v41  ;;  %v2184_v11 = vpop.f32.mrb[26].mxu1 }
 0x251   : > { %v2385_v34 = vsel %vm2196_vm8, %v2326_v47, 0.0  ;;  %2226 = vst.msk [vmem:[%s4127_s9 + $0xe8] sm:$0xff] %vm2196_vm8, %v2184_v11  ;;  %v2286_v39 = vsel %vm2196_vm8, %v2184_v11, 0.0  ;;  %v2327_v20 = vmul.f32 %v2184_v11, %v2184_v11  ;;  %v2186_v26 = vpop.f32.mrb[27].mxu1 }
 0x252   : > { %v2386_v7 = vadd.f32 %v2385_v34, %v2384_v5  ;;  %v2287_v46 = vadd.f32 %v2286_v39, %v2285_v14 }
 0x253   : > { %v2387_v60 = vsel %vm2196_vm8, %v2327_v20, 0.0 }
 0x254   : > { %v2388_v2 = vadd.f32 %v2387_v60, %v2386_v7 }
 0x25a   : > { %v2189_v37 = vpop.f32.mrb[28].mxu1 }
 0x25b   : > { %2227 = vst.msk [vmem:[%s4127_s9 + $0xf0] sm:$0xff] %vm2196_vm8, %v2189_v37  ;;  %v2288_v23 = vsel %vm2196_vm8, %v2189_v37, 0.0  ;;  %v2328_v3 = vmul.f32 %v2189_v37, %v2189_v37  ;;  %v2191_v63 = vpop.f32.mrb[29].mxu1 }
 0x25c   : > { %v2289_v29 = vadd.f32 %v2288_v23, %v2287_v46  ;;  %v2192_v4 = vpop.f32.mrb[30].mxu1 }
 0x25d   : > { %v2389_v48 = vsel %vm2196_vm8, %v2328_v3, 0.0  ;;  %2228 = vst.msk [vmem:[%s4127_s9 + $0xf8] sm:$0xff] %vm2196_vm8, %v2192_v4  ;;  %v2290_v35 = vsel %vm2196_vm8, %v2192_v4, 0.0  ;;  %v2329_v61 = vmul.f32 %v2192_v4, %v2192_v4  ;;  %v2194_v1 = vpop.f32.mrb[31].mxu1 }
 0x25e   : > { %v2390_v36 = vadd.f32 %v2389_v48, %v2388_v2  ;;  %v2291_v57 = vadd.f32 %v2290_v35, %v2289_v29 }
 0x25f   : > { %v2391_v42 = vsel %vm2196_vm8, %v2329_v61, 0.0 }
 0x260   : > { %v2292_v59 = vrot.slane %v2291_v57, 4  ;;  %v2392_v31 = vadd.f32 %v2391_v42, %v2390_v36 }
 0x262   : > { %v2293_v16 = vadd.f32 %v2292_v59, %v2291_v57  ;;  %v2393_v15 = vrot.slane %v2392_v31, 4 }
 0x264   : > { %v2294_v8 = vrot.slane %v2293_v16, 2  ;;  %v2394_v50 = vadd.f32 %v2393_v15, %v2392_v31 }
 0x266   : > { %v2295_v45 = vadd.f32 %v2294_v8, %v2293_v16  ;;  %v2395_v32 = vrot.slane %v2394_v50, 2 }
 0x268   : > { %v2296_v43 = vrot.slane %v2295_v45, 1  ;;  %v2396_v44 = vadd.f32 %v2395_v32, %v2394_v50 }
 0x26a   : > { %v2397_v19 = vrot.slane %v2396_v44, 1  ;;  %v2297_v51 = vadd.f32 %v2296_v43, %v2295_v45 }
 0x26c   : > { %v2398_v49 = vadd.f32 %v2397_v19, %v2396_v44 }
 0x26e   : > { %v2400_v13 = vsel %vm2399_vm9, %v2297_v51, %v2398_v49 }
 0x26f   : > { %2402 = vst.msk [vmem:[%s235_s12] sm:$0x3] %vm2401_vm10, %v2400_v13 }
 0x270 PF: > { %s16_s18 = sadd.s32 1, %s3149_s18  }
 0x271   : > { %p13_p4 = scmp.ge.s32.totalorder %s16_s18, 4  }
 0x273   :  { %15 = sbr.rel (!%p13_p4) target bundleno = 1 (0x1), region = 80 }

// kernel: conv_block_forward.3
= control target key start
LH: loop header
LB: loop body
LE: loop exit
PB: predicated region body
PF: predicated region fallthrough
CT: control target
= control target key end

     0   :  { %s3838_s30 = smov 0   ;;  %s5167_s0 = inlined_call_operand.vmem [shape: f32[2,16,16,16], index: 0, kind: input, shape index: {}]   ;;  %s5168_s1 = inlined_call_operand.vmem [shape: f32[1,16], index: 1, kind: input, shape index: {}]   ;;  %s5169_s2 = inlined_call_operand.vmem [shape: f32[1,16], index: 2, kind: input, shape index: {}]   ;;  %s5170_s3 = inlined_call_operand.vmem [shape: bf16[144,16], index: 3, kind: input, shape index: {}]   ;;  %s5171_s4 = inlined_call_operand.vmem [shape: f32[1,16], index: 4, kind: input, shape index: {}]   ;;  %s5172_s5 = inlined_call_operand.vmem [shape: f32[1,16], index: 5, kind: input, shape index: {}]   ;;  %s5173_s6 = inlined_call_operand.vmem [shape: bf16[16,32], index: 6, kind: input, shape index: {}]   ;;  %s5174_s7 = inlined_call_operand.vmem [shape: f32[2,16,16,16], index: 7, kind: output, shape index: {0}]   ;;  %s5175_s8 = inlined_call_operand.vmem [shape: f32[2,16,16,32], index: 8, kind: output, shape index: {1}]   ;;  %s5176_s9 = inlined_call_operand.vmem [shape: f32[2,2,16], index: 9, kind: output, shape index: {2}]  }
   0x1 LB: > { %s3015_s10 = sadd.s32 4294967295, %s3777_s30   ;;  %p3019_p0 = scmp.ge.s32.totalorder %s3777_s30, 1  ;;  %s3777_s30 = sphi %s3838_s30, %s20_s30  }
   0x2   : > { %p292_p1 = scmp.lt.s32.totalorder %s3777_s30, 3 }
   0x4   : > { %p293_p2 = pnand %p3019_p0, %p292_p1 }
   0x5   : > { %vm499_vm0 = vcmask (!%p293_p2), 130048   ;;  %vm502_vm1 = vcmask (!%p293_p2), 123904   ;;  %p3848_p3 = scmp.lt.s32.totalorder (!%p293_p2), %s3015_s10, 1  ;;  %v3779_v0 = vmov (!%p293_p2), 0.0   ;;  %v3915_v1 = vld [vmem:[%s5168_s1] ss:$0 sm:$0xff] (!%p293_p2) }
   0x6   : > { %296 = sbr.rel (%p293_p2) target bundleno = 633 (0x279), region = 48  ;;  %500 = vst.msk [vmem:[#allocation2] sm:$0xff] (!%p293_p2), %vm499_vm0, %v3779_v0  ;;  %501 = vst.msk [vmem:[#allocation2 + $0x8] sm:$0xff] (!%p293_p2), %vm499_vm0, %v3779_v0  ;;  %v3929_v2 = vld [vmem:[%s5169_s2] ss:$0 sm:$0xff] (!%p293_p2)  ;;  %s3780_s20 = smov (!%p293_p2), 16  }
   0x7   : > { %503 = vst.msk [vmem:[#allocation2 + $0x10] sm:$0x3] (!%p293_p2), %vm502_vm1, %v3779_v0  ;;  %506 = vst.msk [vmem:[#allocation2 + $0x28] sm:$0x3] (!%p293_p2), %vm502_vm1, %v3779_v0  ;;  %s3782_s29 = smov (!%p293_p2), 32   ;;  %s3783_s13 = smov (!%p293_p2), 48  }
   0x8   : > { %504 = vst.msk [vmem:[#allocation2 + $0x18] sm:$0xff] (!%p293_p2), %vm499_vm0, %v3779_v0  ;;  %505 = vst.msk [vmem:[#allocation2 + $0x20] sm:$0xff] (!%p293_p2), %vm499_vm0, %v3779_v0  ;;  %s3784_s18 = smov (!%p293_p2), 64   ;;  %s3785_s19 = smov (!%p293_p2), 80   ;;  %vm1805_vm2 = vcmask (!%p293_p2), 261120   ;;  %vm1838_vm3 = vcmask (!%p293_p2), 392192  }
   0x9   : > { %507 = vst.msk [vmem:[#allocation2 + $0x30] sm:$0xff] (!%p293_p2), %vm499_vm0, %v3779_v0  ;;  %508 = vst.msk [vmem:[#allocation2 + $0x38] sm:$0xff] (!%p293_p2), %vm499_vm0, %v3779_v0  ;;  %s3786_s21 = smov (!%p293_p2), 96   ;;  %s3787_s24 = smov (!%p293_p2), 112   ;;  %vm1871_vm4 = vcmask (!%p293_p2), 523264   ;;  %vm1904_vm5 = vcmask (!%p293_p2), 654336  }
   0xa   : > { %509 = vst.msk [vmem:[#allocation2 + $0x40] sm:$0x3] (!%p293_p2), %vm502_vm1, %v3779_v0  ;;  %512 = vst.msk [vmem:[#allocation2 + $0x58] sm:$0x3] (!%p293_p2), %vm502_vm1, %v3779_v0  ;;  %vm1937_vm6 = vcmask (!%p293_p2), 785408   ;;  %vm1970_vm7 = vcmask (!%p293_p2), 916480  }
   0xb   : > { %510 = vst.msk [vmem:[#allocation2 + $0x48] sm:$0xff] (!%p293_p2), %vm499_vm0, %v3779_v0  ;;  %511 = vst.msk [vmem:[#allocation2 + $0x50] sm:$0xff] (!%p293_p2), %vm499_vm0, %v3779_v0  ;;  %vm2518_vm8 = vcmask (!%p293_p2), 1040384  }
   0xc   : > { %513 = vst.msk [vmem:[#allocation2 + $0x60] sm:$0xff] (!%p293_p2), %vm499_vm0, %v3779_v0  ;;  %514 = vst.msk [vmem:[#allocation2 + $0x68] sm:$0xff] (!%p293_p2), %vm499_vm0, %v3779_v0 }
   0xd   : > { %515 = vst.msk [vmem:[#allocation2 + $0x70] sm:$0x3] %vm502_vm1, %v3779_v0  ;;  %518 = vst.msk [vmem:[#allocation2 + $0x88] sm:$0x3] %vm502_vm1, %v3779_v0  ;;  %s5179_s10 = smov (!%p3848_p3, %s3015_s10), 1  ;;  %v620_v12 = vld [vmem:[#allocation2 + $0x1] sm:$0xff] }
   0xe   : > { %516 = vst.msk [vmem:[#allocation2 + $0x78] sm:$0xff] %vm499_vm0, %v3779_v0  ;;  %517 = vst.msk [vmem:[#allocation2 + $0x80] sm:$0xff] %vm499_vm0, %v3779_v0  ;;  %s3918_s14 = sshll.u32 %s5179_s10, 8  ;;  %v621_v13 = vld [vmem:[#allocation2 + $0x9] sm:$0xff] }
   0xf   : > { %519 = vst.msk [vmem:[#allocation2 + $0x90] sm:$0xff] %vm499_vm0, %v3779_v0  ;;  %520 = vst.msk [vmem:[#allocation2 + $0x98] sm:$0xff] %vm499_vm0, %v3779_v0  ;;  %s3924_s17 = scalar_lea.vmem %s5167_s0, %s3918_s14  ;;  %v3164_v18 = vpack.i.bf16 %v621_v13, %v620_v12  ;;  %s5021_s22 = scalar_lea.vmem %s5175_s8, %s3918_s14 }
  0x10   : > { %521 = vst.msk [vmem:[#allocation2 + $0xa0] sm:$0x3] %vm502_vm1, %v3779_v0  ;;  %524 = vst.msk [vmem:[#allocation2 + $0xb8] sm:$0x3] %vm502_vm1, %v3779_v0  ;;  %v359_v3 = vld [vmem:[%s3924_s17 + $0x10] sm:$0xff]  ;;  %v360_v4 = vld [vmem:[%s3924_s17 + $0x18] sm:$0xff] }
  0x11   : > { %522 = vst.msk [vmem:[#allocation2 + $0xa8] sm:$0xff] %vm499_vm0, %v3779_v0  ;;  %523 = vst.msk [vmem:[#allocation2 + $0xb0] sm:$0xff] %vm499_vm0, %v3779_v0  ;;  %v357_v5 = vld [vmem:[%s3924_s17] sm:$0xff]  ;;  %v399_v6 = vmul.f32 %v3915_v1, %v359_v3  ;;  %v400_v7 = vmul.f32 %v3915_v1, %v360_v4  ;;  %v358_v8 = vld [vmem:[%s3924_s17 + $0x8] sm:$0xff]  ;;  %3165 = vrot.lane.b32.xlu0 %v3164_v18, %s3780_s20 }
  0x12   : > { %525 = vst.msk [vmem:[#allocation2 + $0xc0] sm:$0xff] %vm499_vm0, %v3779_v0  ;;  %526 = vst.msk [vmem:[#allocation2 + $0xc8] sm:$0xff] %vm499_vm0, %v3779_v0  ;;  %v397_v9 = vmul.f32 %v3915_v1, %v357_v5  ;;  %v361_v10 = vld [vmem:[%s3924_s17 + $0x20] sm:$0xff]  ;;  %v362_v11 = vld [vmem:[%s3924_s17 + $0x28] sm:$0xff]  ;;  %v398_v14 = vmul.f32 %v3915_v1, %v358_v8 }
  0x13   : > { %527 = vst.msk [vmem:[#allocation2 + $0xd0] sm:$0x3] %vm502_vm1, %v3779_v0  ;;  %530 = vst.msk [vmem:[#allocation2 + $0xe8] sm:$0x3] %vm502_vm1, %v3779_v0  ;;  %v401_v15 = vmul.f32 %v3915_v1, %v361_v10  ;;  %v402_v16 = vmul.f32 %v3915_v1, %v362_v11  ;;  %v363_v17 = vld [vmem:[%s3924_s17 + $0x30] sm:$0xff]  ;;  %v437_v19 = vadd.f32 %v3929_v2, %v399_v6  ;;  %v364_v22 = vld [vmem:[%s3924_s17 + $0x38] sm:$0xff] }
  0x14   : > { %528 = vst.msk [vmem:[#allocation2 + $0xd8] sm:$0xff] %vm499_vm0, %v3779_v0  ;;  %529 = vst.msk [vmem:[#allocation2 + $0xe0] sm:$0xff] %vm499_vm0, %v3779_v0  ;;  %v438_v20 = vadd.f32 %v3929_v2, %v400_v7  ;;  %v435_v21 = vadd.f32 %v3929_v2, %v397_v9  ;;  %v436_v23 = vadd.f32 %v3929_v2, %v398_v14  ;;  %v365_v27 = vld [vmem:[%s3924_s17 + $0x40] sm:$0xff]  ;;  %v366_v28 = vld [vmem:[%s3924_s17 + $0x48] sm:$0xff] }
  0x15   : > { %531 = vst.msk [vmem:[#allocation2 + $0xf0] sm:$0xff] %vm499_vm0, %v3779_v0  ;;  %532 = vst.msk [vmem:[#allocation2 + $0xf8] sm:$0xff] %vm499_vm0, %v3779_v0  ;;  %v439_v24 = vadd.f32 %v3929_v2, %v401_v15  ;;  %v440_v25 = vadd.f32 %v3929_v2, %v402_v16  ;;  %v403_v26 = vmul.f32 %v3915_v1, %v363_v17  ;;  %v367_v29 = vld [vmem:[%s3924_s17 + $0x50] sm:$0xff]  ;;  %v469_v30 = vmax.f32 %v437_v19, 0.0  ;;  %v368_v34 = vld [vmem:[%s3924_s17 + $0x58] sm:$0xff] }
  0x16   : > { %533 = vst.msk [vmem:[#allocation2 + $0x100] sm:$0x3] %vm502_vm1, %v3779_v0  ;;  %536 = vst.msk [vmem:[#allocation2 + $0x118] sm:$0x3] %vm502_vm1, %v3779_v0  ;;  %v470_v31 = vmax.f32 %v438_v20, 0.0  ;;  %v467_v32 = vmax.f32 %v435_v21, 0.0  ;;  %v404_v33 = vmul.f32 %v3915_v1, %v364_v22  ;;  %v405_v42 = vmul.f32 %v3915_v1, %v365_v27 }
  0x17   : > { %534 = vst.msk [vmem:[#allocation2 + $0x108] sm:$0xff] %vm499_vm0, %v3779_v0  ;;  %535 = vst.msk [vmem:[#allocation2 + $0x110] sm:$0xff] %vm499_vm0, %v3779_v0  ;;  %v369_v35 = vld [vmem:[%s3924_s17 + $0x60] sm:$0xff]  ;;  %v370_v36 = vld [vmem:[%s3924_s17 + $0x68] sm:$0xff]  ;;  %v468_v37 = vmax.f32 %v436_v23, 0.0  ;;  %v471_v38 = vmax.f32 %v439_v24, 0.0  ;;  %v441_v40 = vadd.f32 %v3929_v2, %v403_v26  ;;  %v406_v43 = vmul.f32 %v3915_v1, %v366_v28 }
  0x18   : > { %537 = vst.msk [vmem:[#allocation2 + $0x120] sm:$0xff] %vm499_vm0, %v3779_v0  ;;  %538 = vst.msk [vmem:[#allocation2 + $0x128] sm:$0xff] %vm499_vm0, %v3779_v0  ;;  %v472_v39 = vmax.f32 %v440_v25, 0.0  ;;  %v442_v41 = vadd.f32 %v3929_v2, %v404_v33  ;;  %v407_v44 = vmul.f32 %v3915_v1, %v367_v29  ;;  %v371_v45 = vld [vmem:[%s3924_s17 + $0x70] sm:$0xff]  ;;  %v408_v47 = vmul.f32 %v3915_v1, %v368_v34  ;;  %v372_v50 = vld [vmem:[%s3924_s17 + $0x78] sm:$0xff] }
  0x19   : > { %539 = vst.msk [vmem:[#allocation2 + $0x130] sm:$0x3] %vm502_vm1, %v3779_v0  ;;  %542 = vst.msk [vmem:[#allocation2 + $0x148] sm:$0x3] %vm502_vm1, %v3779_v0  ;;  %v473_v46 = vmax.f32 %v441_v40, 0.0  ;;  %v409_v48 = vmul.f32 %v3915_v1, %v369_v35  ;;  %v410_v49 = vmul.f32 %v3915_v1, %v370_v36  ;;  %v443_v52 = vadd.f32 %v3929_v2, %v405_v42  ;;  %v373_v59 = vld [vmem:[%s3924_s17 + $0x80] sm:$0xff] }
  0x1a   : > { %540 = vst.msk [vmem:[#allocation2 + $0x138] sm:$0xff] %vm499_vm0, %v3779_v0  ;;  %541 = vst.msk [vmem:[#allocation2 + $0x140] sm:$0xff] %vm499_vm0, %v3779_v0  ;;  %v474_v51 = vmax.f32 %v442_v41, 0.0  ;;  %v444_v53 = vadd.f32 %v3929_v2, %v406_v43  ;;  %v445_v54 = vadd.f32 %v3929_v2, %v407_v44  ;;  %v446_v55 = vadd.f32 %v3929_v2, %v408_v47  ;;  %v374_v60 = vld [vmem:[%s3924_s17 + $0x88] sm:$0xff]  ;;  %v375_v61 = vld [vmem:[%s3924_s17 + $0x90] sm:$0xff] }
  0x1b   : > { %543 = vst.msk [vmem:[#allocation2 + $0x150] sm:$0xff] %vm499_vm0, %v3779_v0  ;;  %544 = vst.msk [vmem:[#allocation2 + $0x158] sm:$0xff] %vm499_vm0, %v3779_v0  ;;  %v447_v56 = vadd.f32 %v3929_v2, %v409_v48  ;;  %v448_v57 = vadd.f32 %v3929_v2, %v410_v49  ;;  %v411_v58 = vmul.f32 %v3915_v1, %v371_v45  ;;  %v475_v62 = vmax.f32 %v443_v52, 0.0  ;;  %v376_v4 = vld [vmem:[%s3924_s17 + $0x98] sm:$0xff]  ;;  %v377_v5 = vld [vmem:[%s3924_s17 + $0xa0] sm:$0xff] }
  0x1c   : > { %545 = vst.msk [vmem:[#allocation2 + $0x160] sm:$0x3] %vm502_vm1, %v3779_v0  ;;  %548 = vst.msk [vmem:[#allocation2 + $0x178] sm:$0x3] %vm502_vm1, %v3779_v0  ;;  %v476_v63 = vmax.f32 %v444_v53, 0.0  ;;  %v412_v3 = vmul.f32 %v3915_v1, %v372_v50  ;;  %v379_v6 = vld [vmem:[%s3924_s17 + $0xb0] sm:$0xff]  ;;  %v413_v12 = vmul.f32 %v3915_v1, %v373_v59  ;;  %v414_v13 = vmul.f32 %v3915_v1, %v374_v60 }
  0x1d   : > { %546 = vst.msk [vmem:[#allocation2 + $0x168] sm:$0xff] %vm499_vm0, %v3779_v0  ;;  %547 = vst.msk [vmem:[#allocation2 + $0x170] sm:$0xff] %vm499_vm0, %v3779_v0  ;;  %v478_v7 = vmax.f32 %v446_v55, 0.0  ;;  %v479_v8 = vmax.f32 %v447_v56, 0.0  ;;  %v480_v9 = vmax.f32 %v448_v57, 0.0  ;;  %v449_v10 = vadd.f32 %v3929_v2, %v411_v58  ;;  %v382_v43 = vld [vmem:[%s3924_s17 + $0xc8] sm:$0xff] }
  0x1e   : > { %549 = vst.msk [vmem:[#allocation2 + $0x180] sm:$0xff] %vm499_vm0, %v3779_v0  ;;  %550 = vst.msk [vmem:[#allocation2 + $0x188] sm:$0xff] %vm499_vm0, %v3779_v0  ;;  %v450_v11 = vadd.f32 %v3929_v2, %v412_v3  ;;  %v415_v14 = vmul.f32 %v3915_v1, %v375_v61  ;;  %v416_v19 = vmul.f32 %v3915_v1, %v376_v4  ;;  %v383_v44 = vld [vmem:[%s3924_s17 + $0xd0] sm:$0xff]  ;;  %v384_v48 = vld [vmem:[%s3924_s17 + $0xd8] sm:$0xff] }
  0x1f   : > { %551 = vst.msk [vmem:[#allocation2 + $0x190] sm:$0x3] %vm502_vm1, %v3779_v0  ;;  %554 = vst.msk [vmem:[#allocation2 + $0x1a8] sm:$0x3] %vm502_vm1, %v3779_v0  ;;  %v481_v18 = vmax.f32 %v449_v10, 0.0  ;;  %v417_v20 = vmul.f32 %v3915_v1, %v377_v5  ;;  %v419_v21 = vmul.f32 %v3915_v1, %v379_v6  ;;  %v451_v27 = vadd.f32 %v3929_v2, %v413_v12  ;;  %v386_v10 = vld [vmem:[%s3924_s17 + $0xe8] sm:$0xff] }
  0x20   : > { %552 = vst.msk [vmem:[#allocation2 + $0x198] sm:$0xff] %vm499_vm0, %v3779_v0  ;;  %553 = vst.msk [vmem:[#allocation2 + $0x1a0] sm:$0xff] %vm499_vm0, %v3779_v0  ;;  %v477_v0 = vmax.f32 %v445_v54, 0.0  ;;  %v482_v26 = vmax.f32 %v450_v11, 0.0  ;;  %v452_v28 = vadd.f32 %v3929_v2, %v414_v13  ;;  %v422_v56 = vmul.f32 %v3915_v1, %v382_v43  ;;  %v3722_v43 = vld [vmem:[%s5170_s3 + $0x18] sm:$0xff]  }
  0x21   : > { %558 = vst.msk [vmem:[#allocation2 + $0x31] sm:$0xff] %vm499_vm0, %v469_v30  ;;  %559 = vst.msk [vmem:[#allocation2 + $0x39] sm:$0xff] %vm499_vm0, %v470_v31  ;;  %v453_v31 = vadd.f32 %v3929_v2, %v415_v14  ;;  %v483_v34 = vmax.f32 %v451_v27, 0.0  ;;  %v455_v36 = vadd.f32 %v3929_v2, %v417_v20  ;;  %v423_v57 = vmul.f32 %v3915_v1, %v383_v44  ;;  %v3720_v20 = vld [vmem:[%s5170_s3 + $0x8] sm:$0xff]  }
  0x22   : > { %556 = vst.msk [vmem:[#allocation2 + $0x19] sm:$0xff] %vm499_vm0, %v467_v32  ;;  %557 = vst.msk [vmem:[#allocation2 + $0x21] sm:$0xff] %vm499_vm0, %v468_v37  ;;  %v454_v32 = vadd.f32 %v3929_v2, %v416_v19  ;;  %v484_v35 = vmax.f32 %v452_v28, 0.0  ;;  %v457_v37 = vadd.f32 %v3929_v2, %v419_v21  ;;  %v460_v4 = vadd.f32 %v3929_v2, %v422_v56 }
  0x23   : > { %560 = vst.msk [vmem:[#allocation2 + $0x49] sm:$0xff] %vm499_vm0, %v471_v38  ;;  %561 = vst.msk [vmem:[#allocation2 + $0x51] sm:$0xff] %vm499_vm0, %v472_v39  ;;  %v380_v38 = vld [vmem:[%s3924_s17 + $0xb8] sm:$0xff]  ;;  %v381_v39 = vld [vmem:[%s3924_s17 + $0xc0] sm:$0xff]  ;;  %v485_v41 = vmax.f32 %v453_v31, 0.0  ;;  %v461_v5 = vadd.f32 %v3929_v2, %v423_v57  ;;  %v3781_v14 = vmov 0  }
  0x24   : > { %562 = vst.msk [vmem:[#allocation2 + $0x61] sm:$0xff] %vm499_vm0, %v473_v46  ;;  %563 = vst.msk [vmem:[#allocation2 + $0x69] sm:$0xff] %vm499_vm0, %v474_v51  ;;  %v486_v42 = vmax.f32 %v454_v32, 0.0  ;;  %v487_v46 = vmax.f32 %v455_v36, 0.0  ;;  %v489_v47 = vmax.f32 %v457_v37, 0.0  ;;  %v420_v52 = vmul.f32 %v3915_v1, %v380_v38  ;;  %2155 = vmatprep.subr.bf16.mxu0 %v3781_v14  ;;  %3129 = vmatprep.subr.bf16.mxu1 %v3781_v14  ;;  %v653_v36 = vld [vmem:[#allocation2 + $0xa] sm:$0xff] }
  0x25   : > { %564 = vst.msk [vmem:[#allocation2 + $0x79] sm:$0xff] %vm499_vm0, %v475_v62  ;;  %565 = vst.msk [vmem:[#allocation2 + $0x81] sm:$0xff] %vm499_vm0, %v476_v63  ;;  %v421_v55 = vmul.f32 %v3915_v1, %v381_v39  ;;  %v424_v62 = vmul.f32 %v3915_v1, %v384_v48  ;;  %v3719_v63 = vld [vmem:[%s5170_s3] sm:$0xff]   ;;  %v492_v13 = vmax.f32 %v460_v4, 0.0 }
  0x26   : > { %566 = vst.msk [vmem:[#allocation2 + $0x91] sm:$0xff] %vm499_vm0, %v477_v0  ;;  %567 = vst.msk [vmem:[#allocation2 + $0x99] sm:$0xff] %vm499_vm0, %v478_v7  ;;  %v458_v61 = vadd.f32 %v3929_v2, %v420_v52  ;;  %2156 = vmatpush1.bf16.msra.mxu0 %v3719_v63  ;;  %3138 = vmatpush1.bf16.msra.mxu1 %v3719_v63 }
  0x27   : > { %568 = vst.msk [vmem:[#allocation2 + $0xa9] sm:$0xff] %vm499_vm0, %v479_v8  ;;  %569 = vst.msk [vmem:[#allocation2 + $0xb1] sm:$0xff] %vm499_vm0, %v480_v9  ;;  %v459_v3 = vadd.f32 %v3929_v2, %v421_v55  ;;  %v462_v8 = vadd.f32 %v3929_v2, %v424_v62  ;;  %v385_v9 = vld [vmem:[%s3924_s17 + $0xe0] sm:$0xff]  ;;  %2157 = vmatprep.subr.bf16.mxu0 %v3781_v14  ;;  %3130 = vmatprep.subr.bf16.mxu1 %v3781_v14 }
  0x28   : > { %v624_v15 = vld [vmem:[#allocation2 + $0x31] sm:$0xff]  ;;  %v625_v16 = vld [vmem:[#allocation2 + $0x39] sm:$0xff]  ;;  %570 = vst.msk [vmem:[#allocation2 + $0xc1] sm:$0xff] %vm499_vm0, %v481_v18  ;;  %571 = vst.msk [vmem:[#allocation2 + $0xc9] sm:$0xff] %vm499_vm0, %v482_v26  ;;  %v490_v7 = vmax.f32 %v458_v61, 0.0  ;;  %v493_v18 = vmax.f32 %v461_v5, 0.0 }
  0x29   : > { %v622_v17 = vld [vmem:[#allocation2 + $0x19] sm:$0xff]  ;;  %v4006_v22 = vpack.i.bf16 %v625_v16, %v624_v15  ;;  %v623_v23 = vld [vmem:[#allocation2 + $0x21] sm:$0xff]  ;;  %572 = vst.msk [vmem:[#allocation2 + $0xd9] sm:$0xff] %vm499_vm0, %v483_v34  ;;  %573 = vst.msk [vmem:[#allocation2 + $0xe1] sm:$0xff] %vm499_vm0, %v484_v35  ;;  %v491_v12 = vmax.f32 %v459_v3, 0.0  ;;  %v494_v19 = vmax.f32 %v462_v8, 0.0 }
  0x2a   : > { %v626_v24 = vld [vmem:[#allocation2 + $0x49] sm:$0xff]  ;;  %v627_v25 = vld [vmem:[#allocation2 + $0x51] sm:$0xff]  ;;  %v4010_v29 = vpack.i.bf16 %v623_v23, %v622_v17  ;;  %574 = vst.msk [vmem:[#allocation2 + $0xf1] sm:$0xff] %vm499_vm0, %v485_v41  ;;  %575 = vst.msk [vmem:[#allocation2 + $0xf9] sm:$0xff] %vm499_vm0, %v486_v42  ;;  %2158 = vmatpush1.bf16.msra.mxu0 %v3720_v20  ;;  %3139 = vmatpush1.bf16.msra.mxu1 %v3720_v20 }
  0x2b   : > { %v4012_v30 = vpack.i.bf16 %v627_v25, %v626_v24  ;;  %3175 = vrot.lane.b32.xlu1 %v4006_v22, %s3780_s20  ;;  %v628_v33 = vld [vmem:[#allocation2 + $0x61] sm:$0xff]  ;;  %v629_v40 = vld [vmem:[#allocation2 + $0x69] sm:$0xff]  ;;  %576 = vst.msk [vmem:[#allocation2 + $0x109] sm:$0xff] %vm499_vm0, %v487_v46  ;;  %578 = vst.msk [vmem:[#allocation2 + $0x121] sm:$0xff] %vm499_vm0, %v489_v47  ;;  %v425_v24 = vmul.f32 %v3915_v1, %v385_v9  ;;  %v426_v25 = vmul.f32 %v3915_v1, %v386_v10 }
  0x2c   : > { %3170 = vrot.lane.b32.xlu0 %v4010_v29, %s3780_s20  ;;  %v4028_v45 = vpack.i.bf16 %v629_v40, %v628_v33  ;;  %v630_v49 = vld [vmem:[#allocation2 + $0x79] sm:$0xff]  ;;  %v631_v50 = vld [vmem:[#allocation2 + $0x81] sm:$0xff]  ;;  %579 = vst.msk [vmem:[#allocation2 + $0x129] sm:$0xff] %vm499_vm0, %v490_v7  ;;  %580 = vst.msk [vmem:[#allocation2 + $0x139] sm:$0xff] %vm499_vm0, %v491_v12  ;;  %2159 = vmatprep.subr.bf16.mxu0 %v3781_v14 }
  0x2d   : > { %v632_v51 = vld [vmem:[#allocation2 + $0x91] sm:$0xff]  ;;  %v4038_v53 = vpack.i.bf16 %v631_v50, %v630_v49  ;;  %v633_v54 = vld [vmem:[#allocation2 + $0x99] sm:$0xff]  ;;  %581 = vst.msk [vmem:[#allocation2 + $0x141] sm:$0xff] %vm499_vm0, %v492_v13  ;;  %582 = vst.msk [vmem:[#allocation2 + $0x151] sm:$0xff] %vm499_vm0, %v493_v18  ;;  %v463_v27 = vadd.f32 %v3929_v2, %v425_v24  ;;  %v464_v28 = vadd.f32 %v3929_v2, %v426_v25  ;;  %3131 = vmatprep.subr.bf16.mxu1 %v3781_v14 }
  0x2e   : > { %v4047_v58 = vpack.i.bf16 %v633_v54, %v632_v51  ;;  %v634_v59 = vld [vmem:[#allocation2 + $0xa9] sm:$0xff]  ;;  %v635_v60 = vld [vmem:[#allocation2 + $0xb1] sm:$0xff]  ;;  %583 = vst.msk [vmem:[#allocation2 + $0x159] sm:$0xff] %vm499_vm0, %v494_v19  ;;  %v4099_v42 = vld [vmem:[#allocation2 + $0x20] sm:$0xff] }
  0x2f   : > { %3180 = vrot.lane.b32.xlu1 %v4012_v30, %s3780_s20  ;;  %v636_v0 = vld [vmem:[#allocation2 + $0xc1] sm:$0xff]  ;;  %v637_v6 = vld [vmem:[#allocation2 + $0xc9] sm:$0xff]  ;;  %v4062_v11 = vpack.i.bf16 %v635_v60, %v634_v59  ;;  %v495_v37 = vmax.f32 %v463_v27, 0.0  ;;  %v496_v38 = vmax.f32 %v464_v28, 0.0  ;;  %v4097_v41 = vld [vmem:[#allocation2 + $0x18] sm:$0xff] }
  0x30   : > { %3185 = vrot.lane.b32.xlu0 %v4028_v45, %s3780_s20  ;;  %v4067_v15 = vpack.i.bf16 %v637_v6, %v636_v0  ;;  %v638_v16 = vld [vmem:[#allocation2 + $0xd9] sm:$0xff]  ;;  %v639_v17 = vld [vmem:[#allocation2 + $0xe1] sm:$0xff]  ;;  %v3721_v34 = vld [vmem:[%s5170_s3 + $0x10] sm:$0xff]   ;;  %v3229_v44 = vpack.i.bf16 %v4099_v42, %v4097_v41 }
  0x31   : > { %v640_v21 = vld [vmem:[#allocation2 + $0xf1] sm:$0xff]  ;;  %v641_v23 = vld [vmem:[#allocation2 + $0xf9] sm:$0xff]  ;;  %v3209_v26 = vpack.i.bf16 %v639_v17, %v638_v16  ;;  %v652_v35 = vld [vmem:[#allocation2 + $0x2] sm:$0xff]  ;;  %584 = vst.msk [vmem:[#allocation2 + $0x169] sm:$0xff] %vm499_vm0, %v495_v37  ;;  %2160 = vmatpush1.bf16.msra.mxu0 %v3721_v34  ;;  %3140 = vmatpush1.bf16.msra.mxu1 %v3721_v34 }
  0x32   : > { %v3214_v31 = vpack.i.bf16 %v641_v23, %v640_v21  ;;  %v642_v32 = vld [vmem:[#allocation2 + $0x109] sm:$0xff]  ;;  %v644_v33 = vld [vmem:[#allocation2 + $0x121] sm:$0xff]  ;;  %585 = vst.msk [vmem:[#allocation2 + $0x171] sm:$0xff] %vm499_vm0, %v496_v38  ;;  %v3219_v40 = vpack.i.bf16 %v653_v36, %v652_v35  ;;  %2161 = vmatprep.subr.bf16.mxu0 %v3781_v14  ;;  %3132 = vmatprep.subr.bf16.mxu1 %v3781_v14  ;;  %v750_v49 = vld [vmem:[#allocation2 + $0x32] sm:$0xff] }
  0x33   : > { %3190 = vrot.lane.b32.xlu1 %v4038_v53, %s3780_s20  ;;  %v3224_v39 = vpack.i.bf16 %v644_v33, %v642_v32  ;;  %v748_v46 = vld [vmem:[#allocation2 + $0x1a] sm:$0xff]  ;;  %v749_v47 = vld [vmem:[#allocation2 + $0x22] sm:$0xff]  ;;  %v4108_v48 = vld [vmem:[#allocation2 + $0x30] sm:$0xff] }
  0x34   : > { %3195 = vrot.lane.b32.xlu0 %v4047_v58, %s3780_s20  ;;  %v751_v50 = vld [vmem:[#allocation2 + $0x3a] sm:$0xff]  ;;  %v387_v54 = vld [vmem:[%s3924_s17 + $0xf0] sm:$0xff]  ;;  %v3239_v57 = vpack.i.bf16 %v749_v47, %v748_v46  ;;  %v3724_v59 = vld [vmem:[%s5170_s3 + $0x28] sm:$0xff]  }
  0x35   : > { %2162 = vmatpush1.bf16.msra.mxu0 %v3722_v43  ;;  %v3723_v51 = vld [vmem:[%s5170_s3 + $0x20] sm:$0xff]   ;;  %v4115_v52 = vld [vmem:[#allocation2 + $0x38] sm:$0xff]  ;;  %v2004_v55 = vpack.c.bf16 %v751_v50, %v750_v49  ;;  %v427_v56 = vmul.f32 %v3915_v1, %v387_v54  ;;  %3141 = vmatpush1.bf16.msra.mxu1 %v3722_v43  ;;  %v3725_v3 = vld [vmem:[%s5170_s3 + $0x30] sm:$0xff]   ;;  %v3269_v12 = vpack.i.bf16 %v751_v50, %v750_v49 }
  0x36   : > { %2163 = vmatprep.subr.bf16.mxu0 %v3781_v14  ;;  %v3244_v60 = vpack.i.bf16 %v4115_v52, %v4108_v48  ;;  %v388_v61 = vld [vmem:[%s3924_s17 + $0xf8] sm:$0xff]  ;;  %3133 = vmatprep.subr.bf16.mxu1 %v3781_v14  ;;  %v4148_v5 = vld [vmem:[#allocation2 + $0x4a] sm:$0xff]  ;;  %v3727_v16 = vld [vmem:[%s5170_s3 + $0x40] sm:$0xff]  }
  0x37   : > { %3200 = vrot.lane.b32.xlu1 %v4062_v11, %s3780_s20  ;;  %3038 = vmatprep.mubr.msk.bf16.mxu0 %vm499_vm0, %v2004_v55  ;;  %v465_v62 = vadd.f32 %v3929_v2, %v427_v56  ;;  %v428_v63 = vmul.f32 %v3915_v1, %v388_v61  ;;  %v4150_v6 = vld [vmem:[#allocation2 + $0x52] sm:$0xff]  ;;  %v4155_v8 = vld [vmem:[#allocation2 + $0x48] sm:$0xff]  ;;  %v772_v43 = vld [vmem:[#allocation2 + $0x13a] sm:$0xff] }
  0x38   : > { %3205 = vrot.lane.b32.xlu0 %v4067_v15, %s3780_s20  ;;  %v3726_v7 = vld [vmem:[%s5170_s3 + $0x38] sm:$0xff]   ;;  %v4157_v9 = vld [vmem:[#allocation2 + $0x50] sm:$0xff]  ;;  %v2006_v10 = vpack.c.bf16 %v4150_v6, %v4148_v5  ;;  %v4180_v17 = vld [vmem:[#allocation2 + $0x68] sm:$0xff]  ;;  %v3299_v18 = vpack.i.bf16 %v4150_v6, %v4148_v5 }
  0x39   : > { %2164 = vmatpush1.bf16.msra.mxu0 %v3723_v51  ;;  %v497_v0 = vmax.f32 %v465_v62, 0.0  ;;  %3142 = vmatpush1.bf16.msra.mxu1 %v3723_v51  ;;  %v3274_v13 = vpack.i.bf16 %v4157_v9, %v4155_v8  ;;  %v378_v19 = vld [vmem:[%s3924_s17 + $0xa8] sm:$0xff]  ;;  %v4198_v25 = vld [vmem:[#allocation2 + $0x78] sm:$0xff]  ;;  %v789_v49 = vld [vmem:[#allocation2 + $0x90] sm:$0xff] }
  0x3a   : > { %2165 = vmatprep.subr.bf16.mxu0 %v3781_v14  ;;  %3134 = vmatprep.subr.bf16.mxu1 %v3781_v14  ;;  %v418_v20 = vmul.f32 %v3915_v1, %v378_v19  ;;  %v755_v24 = vld [vmem:[#allocation2 + $0x6a] sm:$0xff]  ;;  %v646_v28 = vld [vmem:[#allocation2 + $0x139] sm:$0xff]  ;;  %v676_v32 = vld [vmem:[#allocation2 + $0x122] sm:$0xff] }
  0x3b   : > { %3210 = vrot.lane.b32.xlu1 %v3209_v26, %s3780_s20  ;;  %586 = vst.msk [vmem:[#allocation2 + $0x181] sm:$0xff] %vm499_vm0, %v497_v0  ;;  %v4200_v26 = vld [vmem:[#allocation2 + $0x80] sm:$0xff]  ;;  %v645_v27 = vld [vmem:[#allocation2 + $0x129] sm:$0xff]  ;;  %v708_v35 = vld [vmem:[#allocation2 + $0x138] sm:$0xff] }
  0x3c   : > { %3215 = vrot.lane.b32.xlu0 %v3214_v31, %s3780_s20  ;;  %v456_v21 = vadd.f32 %v3929_v2, %v418_v20  ;;  %v3344_v31 = vpack.i.bf16 %v646_v28, %v645_v27  ;;  %v677_v33 = vld [vmem:[#allocation2 + $0x12a] sm:$0xff]  ;;  %v741_v37 = vld [vmem:[#allocation2 + $0x141] sm:$0xff]  ;;  %v790_v50 = vld [vmem:[#allocation2 + $0x98] sm:$0xff] }
  0x3d   : > { %2166 = vmatpush1.bf16.msra.mxu0 %v3724_v59  ;;  %3143 = vmatpush1.bf16.msra.mxu1 %v3724_v59  ;;  %v3354_v34 = vpack.i.bf16 %v677_v33, %v676_v32  ;;  %v3374_v38 = vpack.i.bf16 %v741_v37, %v646_v28  ;;  %v805_v51 = vld [vmem:[#allocation2 + $0x150] sm:$0xff]  ;;  %v806_v54 = vld [vmem:[#allocation2 + $0x158] sm:$0xff]  ;;  %v3389_v59 = vpack.i.bf16 %v790_v50, %v789_v49 }
  0x3e   : > { %2167 = vmatprep.subr.bf16.mxu0 %v3781_v14  ;;  %3135 = vmatprep.subr.bf16.mxu1 %v3781_v14  ;;  %v488_v23 = vmax.f32 %v456_v21, 0.0  ;;  %v869_v55 = vld [vmem:[#allocation2 + $0x152] sm:$0xff]  ;;  %v870_v56 = vld [vmem:[#allocation2 + $0x15a] sm:$0xff] }
  0x3f   : > { %3225 = vrot.lane.b32.xlu1 %v3224_v39, %s3780_s20  ;;  %v756_v39 = vld [vmem:[#allocation2 + $0x7a] sm:$0xff]  ;;  %v758_v0 = vld [vmem:[#allocation2 + $0x92] sm:$0xff] }
  0x40   : > { %3220 = vrot.lane.b32.xlu0 %v3219_v40, %s3782_s29  ;;  %577 = vst.msk [vmem:[#allocation2 + $0x111] sm:$0xff] %vm499_vm0, %v488_v23  ;;  %v757_v40 = vld [vmem:[#allocation2 + $0x82] sm:$0xff]  ;;  %v838_v61 = vld [vmem:[#allocation2 + $0x159] sm:$0xff]  ;;  %v808_v20 = vld [vmem:[#allocation2 + $0x170] sm:$0xff] }
  0x41   : > { %2168 = vmatpush1.bf16.msra.mxu0 %v3725_v3  ;;  %3144 = vmatpush1.bf16.msra.mxu1 %v3725_v3  ;;  %v3379_v46 = vpack.i.bf16 %v757_v40, %v756_v39  ;;  %v4238_v23 = vld [vmem:[#allocation2 + $0x171] sm:$0xff] }
  0x42   : > { %2169 = vmatprep.subr.bf16.mxu0 %v3781_v14  ;;  %3136 = vmatprep.subr.bf16.mxu1 %v3781_v14 }
  0x43   : > { %3230 = vrot.lane.b32.xlu1 %v3229_v44, %s3783_s13  ;;  %v773_v44 = vld [vmem:[#allocation2 + $0x142] sm:$0xff] }
  0x44   : > { %3235 = vrot.lane.b32.xlu0 %v4010_v29, %s3784_s18  ;;  %v466_v29 = vadd.f32 %v3929_v2, %v428_v63  ;;  %v3334_v2 = vpack.i.bf16 %v4200_v26, %v4198_v25  ;;  %v3384_v47 = vpack.i.bf16 %v773_v44, %v772_v43 }
  0x45   : > { %2170 = vmatpush1.bf16.msra.mxu0 %v3726_v7  ;;  %3145 = vmatpush1.bf16.msra.mxu1 %v3726_v7  ;;  %v775_v7 = vld [vmem:[#allocation2 + $0x15a] sm:$0xff] }
  0x46   : > { %v498_v4 = vmax.f32 %v466_v29, 0.0  ;;  %2171 = vmatprep.subr.bf16.mxu0 %v3781_v14  ;;  %3137 = vmatprep.subr.bf16.mxu1 %v3781_v14  ;;  %v759_v29 = vld [vmem:[#allocation2 + $0x9a] sm:$0xff] }
  0x47   : > { %3240 = vrot.lane.b32.xlu1 %v3239_v57, %s3785_s19  ;;  %v3444_v3 = vpack.i.bf16 %v759_v29, %v758_v0 }
  0x48   : > { %3245 = vrot.lane.b32.xlu0 %v3244_v60, %s3786_s21  ;;  %587 = vst.msk [vmem:[#allocation2 + $0x189] sm:$0xff] %vm499_vm0, %v498_v4  ;;  %v774_v4 = vld [vmem:[#allocation2 + $0x152] sm:$0xff] }
  0x49   : > { %2172 = vmatpush1.bf16.msra.mxu0 %v3727_v16  ;;  %3146 = vmatpush1.bf16.msra.mxu1 %v3727_v16  ;;  %v3449_v16 = vpack.i.bf16 %v775_v7, %v774_v4 }
  0x4b   : > { %3250 = vrot.lane.b32.xlu1 %v4006_v22, %s3787_s24 }
  0x4c   : > { %3255 = vrot.lane.b32.xlu0 %v3239_v57, %s3782_s29  ;;  %v2028_v57 = vpack.c.bf16 %v870_v56, %v869_v55  ;;  %v589_v56 = vld [vmem:[#allocation2 + $0x8] sm:$0xff] }
  0x4e   : > { %3050 = vmatprep.mubr.msk.bf16.mxu1 %vm499_vm0, %v2028_v57  ;;  %v588_v57 = vld [vmem:[#allocation2] sm:$0xff] }
  0x4f   : > { %3260 = vrot.lane.b32.xlu1 %v3244_v60, %s3783_s13  ;;  %v3394_v60 = vpack.i.bf16 %v806_v54, %v805_v51  ;;  %v604_v51 = vld [vmem:[#allocation2 + $0xc0] sm:$0xff]  ;;  %v605_v54 = vld [vmem:[#allocation2 + $0xc8] sm:$0xff] }
  0x50   : > { %3265 = vrot.lane.b32.xlu0 %v4006_v22, %s3784_s18  ;;  %v4178_v22 = vld [vmem:[#allocation2 + $0x60] sm:$0xff] }
  0x51   : > { %v3304_v14 = vpack.i.bf16 %v4180_v17, %v4178_v22 }
  0x53   : > { %3270 = vrot.lane.b32.xlu1 %v3269_v12, %s3785_s19 }
  0x54   : > { %3275 = vrot.lane.b32.xlu0 %v3274_v13, %s3786_s21 }
  0x57   : > { %3280 = vrot.lane.b32.xlu1 %v4012_v30, %s3787_s24 }
  0x58   : > { %3285 = vrot.lane.b32.xlu0 %v3269_v12, %s3782_s29  ;;  %v791_v12 = vld [vmem:[#allocation2 + $0xa8] sm:$0xff] }
  0x5b   : > { %3290 = vrot.lane.b32.xlu1 %v3274_v13, %s3783_s13  ;;  %v792_v13 = vld [vmem:[#allocation2 + $0xb0] sm:$0xff] }
  0x5c   : > { %3295 = vrot.lane.b32.xlu0 %v4012_v30, %s3784_s18  ;;  %v754_v30 = vld [vmem:[#allocation2 + $0x62] sm:$0xff]  ;;  %v3454_v19 = vpack.i.bf16 %v792_v13, %v791_v12 }
  0x5d   : > { %v3329_v1 = vpack.i.bf16 %v755_v24, %v754_v30 }
  0x5f   : > { %3300 = vrot.lane.b32.xlu1 %v3299_v18, %s3785_s19 }
  0x60   : > { %3305 = vrot.lane.b32.xlu0 %v3304_v14, %s3786_s21 }
  0x63   : > { %3310 = vrot.lane.b32.xlu1 %v4028_v45, %s3787_s24 }
  0x64   : > { %3315 = vrot.lane.b32.xlu0 %v3299_v18, %s3782_s29 }
  0x67   : > { %3320 = vrot.lane.b32.xlu1 %v3304_v14, %s3783_s13  ;;  %v807_v14 = vld [vmem:[#allocation2 + $0x168] sm:$0xff] }
  0x68   : > { %3325 = vrot.lane.b32.xlu0 %v4028_v45, %s3784_s18  ;;  %v709_v45 = vld [vmem:[#allocation2 + $0x140] sm:$0xff]  ;;  %v3459_v21 = vpack.i.bf16 %v808_v20, %v807_v14 }
  0x69   : > { %v3364_v36 = vpack.i.bf16 %v709_v45, %v708_v35  ;;  %v760_v35 = vld [vmem:[#allocation2 + $0xaa] sm:$0xff]  ;;  %v761_v45 = vld [vmem:[#allocation2 + $0xb2] sm:$0xff] }
  0x6a   : > { %v4272_v40 = vpack.i.bf16 %v761_v45, %v760_v35 }
  0x6b   : > { %3330 = vrot.lane.b32.xlu1 %v3329_v1, %s3785_s19 }
  0x6c   : > { %3335 = vrot.lane.b32.xlu0 %v3334_v2, %s3786_s21 }
  0x6f   : > { %3340 = vrot.lane.b32.xlu1 %v4038_v53, %s3787_s24 }
  0x70   : > { %3345 = vrot.lane.b32.xlu0 %v3344_v31, %s3780_s20 }
  0x73   : > { %3350 = vrot.lane.b32.xlu1 %v3329_v1, %s3782_s29 }
  0x74   : > { %3355 = vrot.lane.b32.xlu0 %v3354_v34, %s3782_s29 }
  0x77   : > { %3360 = vrot.lane.b32.xlu1 %v3334_v2, %s3783_s13 }
  0x78   : > { %3365 = vrot.lane.b32.xlu0 %v3364_v36, %s3783_s13 }
  0x7b   : > { %3370 = vrot.lane.b32.xlu1 %v4038_v53, %s3784_s18  ;;  %v837_v53 = vld [vmem:[#allocation2 + $0x151] sm:$0xff] }
  0x7c   : > { %3375 = vrot.lane.b32.xlu0 %v3374_v38, %s3784_s18  ;;  %v3404_v62 = vpack.i.bf16 %v838_v61, %v837_v53  ;;  %v3409_v63 = vpack.i.bf16 %v837_v53, %v741_v37  ;;  %v776_v37 = vld [vmem:[#allocation2 + $0x16a] sm:$0xff]  ;;  %v777_v38 = vld [vmem:[#allocation2 + $0x172] sm:$0xff] }
  0x7d   : > { %v4275_v43 = vpack.i.bf16 %v777_v38, %v776_v37 }
  0x7f   : > { %3380 = vrot.lane.b32.xlu1 %v3379_v46, %s3785_s19 }
  0x80   : > { %3385 = vrot.lane.b32.xlu0 %v3384_v47, %s3785_s19 }
  0x83   : > { %3390 = vrot.lane.b32.xlu1 %v3389_v59, %s3786_s21  ;;  %v3166_v18 = vpop.permute.xlu0 %3165 }
  0x84   : > { %3395 = vrot.lane.b32.xlu0 %v3394_v60, %s3786_s21  ;;  %v3168_v49 = vunpack.i.h.bf16 %v3166_v18  ;;  %v3167_v50 = vunpack.i.l.bf16 %v3166_v18 }
  0x86   : > { %v1774_v0 = vsel %vm499_vm0, %v589_v56, %v3168_v49  ;;  %v1773_v29 = vsel %vm499_vm0, %v588_v57, %v3167_v50 }
  0x87   : > { %3400 = vrot.lane.b32.xlu1 %v4047_v58, %s3787_s24 }
  0x88   : > { %3405 = vrot.lane.b32.xlu0 %v3404_v62, %s3787_s24 }
  0x8b   : > { %3410 = vrot.lane.b32.xlu1 %v3409_v63, %s3780_s20  ;;  %v842_v63 = vld [vmem:[#allocation2 + $0x189] sm:$0xff] }
  0x8c   : > { %3415 = vrot.lane.b32.xlu0 %v3379_v46, %s3782_s29  ;;  %v809_v46 = vld [vmem:[#allocation2 + $0x180] sm:$0xff] }
  0x8f   : > { %3420 = vrot.lane.b32.xlu1 %v3384_v47, %s3782_s29  ;;  %v810_v47 = vld [vmem:[#allocation2 + $0x188] sm:$0xff] }
  0x90   : > { %3425 = vrot.lane.b32.xlu0 %v3389_v59, %s3783_s13  ;;  %v4285_v53 = vpack.i.bf16 %v810_v47, %v809_v46 }
  0x93   : > { %3430 = vrot.lane.b32.xlu1 %v3394_v60, %s3783_s13 }
  0x94   : > { %3435 = vrot.lane.b32.xlu0 %v4047_v58, %s3784_s18  ;;  %v839_v58 = vld [vmem:[#allocation2 + $0x169] sm:$0xff] }
  0x95   : > { %v3469_v1 = vpack.i.bf16 %v4238_v23, %v839_v58  ;;  %v3474_v2 = vpack.i.bf16 %v839_v58, %v838_v61 }
  0x97   : > { %3440 = vrot.lane.b32.xlu1 %v3404_v62, %s3784_s18  ;;  %v841_v62 = vld [vmem:[#allocation2 + $0x181] sm:$0xff] }
  0x98   : > { %3445 = vrot.lane.b32.xlu0 %v3444_v3, %s3785_s19  ;;  %v4297_v20 = vpack.i.bf16 %v842_v63, %v841_v62 }
  0x9b   : > { %3450 = vrot.lane.b32.xlu1 %v3449_v16, %s3785_s19 }
  0x9c   : > { %3455 = vrot.lane.b32.xlu0 %v3454_v19, %s3786_s21 }
  0x9d   : > { %v4240_v30 = vpop.permute.xlu1 %3175 }
  0x9e   : > { %v4242_v24 = vpop.permute.xlu0 %3170 }
  0x9f   : > { %3460 = vrot.lane.b32.xlu1 %v3459_v21, %s3786_s21  ;;  %v3173_v50 = vunpack.i.h.bf16 %v4242_v24 }
  0xa0   : > { %3465 = vrot.lane.b32.xlu0 %v4062_v11, %s3787_s24 }
  0xa1   : > { %v4248_v27 = vpop.permute.xlu1 %3180 }
  0xa2   : > { %v4250_v28 = vpop.permute.xlu0 %3185 }
  0xa3   : > { %3470 = vrot.lane.b32.xlu1 %v3469_v1, %s3787_s24 }
  0xa4   : > { %3475 = vrot.lane.b32.xlu0 %v3474_v2, %s3780_s20 }
  0xa5   : > { %v4254_v31 = vpop.permute.xlu1 %3190 }
  0xa6   : > { %v4256_v32 = vpop.permute.xlu0 %3195 }
  0xa7   : > { %3480 = vrot.lane.b32.xlu1 %v3444_v3, %s3782_s29 }
  0xa8   : > { %3485 = vrot.lane.b32.xlu0 %v3449_v16, %s3782_s29 }
  0xa9   : > { %v4260_v33 = vpop.permute.xlu1 %3200 }
  0xaa   : > { %v4262_v34 = vpop.permute.xlu0 %3205 }
  0xab   : > { %3490 = vrot.lane.b32.xlu1 %v3454_v19, %s3783_s13 }
  0xac   : > { %3495 = vrot.lane.b32.xlu0 %v3459_v21, %s3783_s13 }
  0xad   : > { %v4266_v36 = vpop.permute.xlu1 %3210 }
  0xae   : > { %v4268_v39 = vpop.permute.xlu0 %3215 }
  0xaf   : > { %3500 = vrot.lane.b32.xlu1 %v4062_v11, %s3784_s18  ;;  %v4281_v11 = vpack.i.bf16 %v605_v54, %v604_v51  ;;  %v3172_v51 = vunpack.i.l.bf16 %v4242_v24 }
  0xb0   : > { %3505 = vrot.lane.b32.xlu0 %v3469_v1, %s3784_s18 }
  0xb1   : > { %v4277_v44 = vpop.permute.xlu1 %3225 }
  0xb2   : > { %v3221_v55 = vpop.permute.xlu0 %3220 }
  0xb3   : > { %v3223_v59 = vunpack.i.h.bf16 %v3221_v55  ;;  %v3222_v60 = vunpack.i.l.bf16 %v3221_v55  ;;  %3510 = vrot.lane.b32.xlu1 %v4272_v40, %s3785_s19 }
  0xb4   : > { %3515 = vrot.lane.b32.xlu0 %v4275_v43, %s3785_s19 }
  0xb5   : > { %v3231_v61 = vpop.permute.xlu1 %3230  ;;  %v1807_v12 = vsel %vm1805_vm2, %v1774_v0, %v3223_v59  ;;  %v1806_v13 = vsel %vm1805_vm2, %v1773_v29, %v3222_v60  ;;  %v730_v0 = vld [vmem:[#allocation2 + $0xc1] sm:$0xff]  ;;  %v731_v29 = vld [vmem:[#allocation2 + $0xc9] sm:$0xff] }
  0xb6   : > { %v3233_v3 = vunpack.i.h.bf16 %v3231_v61  ;;  %v3232_v4 = vunpack.i.l.bf16 %v3231_v61  ;;  %v3236_v7 = vpop.permute.xlu0 %3235 }
  0xb7   : > { %v3238_v16 = vunpack.i.h.bf16 %v3236_v7  ;;  %v3237_v18 = vunpack.i.l.bf16 %v3236_v7  ;;  %3520 = vrot.lane.b32.xlu1 %v4281_v11, %s3786_s21 }
  0xb8   : > { %v1839_v19 = vsel %vm1838_vm3, %v1806_v13, %v3232_v4  ;;  %v1840_v14 = vsel %vm1838_vm3, %v1807_v12, %v3233_v3  ;;  %3525 = vrot.lane.b32.xlu0 %v4285_v53, %s3786_s21  ;;  %v1775_v3 = vsel %vm499_vm0, %v4097_v41, %v3172_v51  ;;  %v1776_v4 = vsel %vm499_vm0, %v4099_v42, %v3173_v50  ;;  %v850_v51 = vld [vmem:[#allocation2 + $0x6a] sm:$0xff] }
  0xb9   : > { %v3241_v21 = vpop.permute.xlu1 %3240  ;;  %v1872_v35 = vsel %vm1871_vm4, %v1839_v19, %v3237_v18  ;;  %v1873_v45 = vsel %vm1871_vm4, %v1840_v14, %v3238_v16  ;;  %v3559_v42 = vpack.i.bf16 %v731_v29, %v730_v0 }
  0xba   : > { %v3243_v58 = vunpack.i.h.bf16 %v3241_v21  ;;  %v3242_v1 = vunpack.i.l.bf16 %v3241_v21  ;;  %v3246_v2 = vpop.permute.xlu0 %3245  ;;  %v4333_v21 = vld [vmem:[#allocation2 + $0xc2] sm:$0xff] }
  0xbb   : > { %v3248_v37 = vunpack.i.h.bf16 %v3246_v2  ;;  %v3247_v38 = vunpack.i.l.bf16 %v3246_v2  ;;  %3530 = vrot.lane.b32.xlu1 %v4067_v15, %s3787_s24 }
  0xbc   : > { %v1905_v46 = vsel %vm1904_vm5, %v1872_v35, %v3242_v1  ;;  %v1906_v47 = vsel %vm1904_vm5, %v1873_v45, %v3243_v58  ;;  %3535 = vrot.lane.b32.xlu0 %v4297_v20, %s3787_s24  ;;  %v4335_v58 = vld [vmem:[#allocation2 + $0xca] sm:$0xff]  ;;  %v4337_v35 = vld [vmem:[#allocation2 + $0x182] sm:$0xff] }
  0xbd   : > { %v3251_v49 = vpop.permute.xlu1 %3250  ;;  %v1938_v57 = vsel %vm1937_vm6, %v1905_v46, %v3247_v38  ;;  %v1939_v15 = vsel %vm1937_vm6, %v1906_v47, %v3248_v37  ;;  %v4339_v45 = vld [vmem:[#allocation2 + $0x18a] sm:$0xff]  ;;  %v4350_v46 = vpack.i.bf16 %v4335_v58, %v4333_v21  ;;  %v4355_v47 = vld [vmem:[%s5173_s6] sm:$0xff]  }
  0xbe   : > { %v3253_v54 = vunpack.i.h.bf16 %v3251_v49  ;;  %v3252_v55 = vunpack.i.l.bf16 %v3251_v49  ;;  %v3256_v56 = vpop.permute.xlu0 %3255  ;;  %v3574_v50 = vpack.i.bf16 %v4339_v45, %v4337_v35  ;;  %3095 = vmatprep.subr.bf16.mxu1 %v4355_v47 }
  0xbf   : > { %v3258_v59 = vunpack.i.h.bf16 %v3256_v56  ;;  %v3257_v60 = vunpack.i.l.bf16 %v3256_v56  ;;  %971 = vrot.lane.b32.xlu1 %v4238_v23, %s3780_s20 }
  0xc0   : > { %3540 = vrot.lane.b32.xlu0 %v4272_v40, %s3782_s29  ;;  %v1971_v61 = vsel %vm1970_vm7, %v1938_v57, %v3252_v55  ;;  %v1972_v62 = vsel %vm1970_vm7, %v1939_v15, %v3253_v54  ;;  %v3178_v54 = vunpack.i.h.bf16 %v4240_v30  ;;  %v3177_v55 = vunpack.i.l.bf16 %v4240_v30 }
  0xc1   : > { %v3261_v24 = vpop.permute.xlu1 %3260  ;;  %v2003_v63 = vpack.c.bf16 %v1972_v62, %v1971_v61  ;;  %v1808_v13 = vsel %vm1805_vm2, %v1775_v3, %v3257_v60  ;;  %v1809_v40 = vsel %vm1805_vm2, %v1776_v4, %v3258_v59  ;;  %v811_v59 = vld [vmem:[#allocation2 + $0x198] sm:$0xff]  ;;  %v812_v60 = vld [vmem:[#allocation2 + $0x1a0] sm:$0xff] }
  0xc2   : > { %v3263_v7 = vunpack.i.h.bf16 %v3261_v24  ;;  %v3262_v12 = vunpack.i.l.bf16 %v3261_v24  ;;  %v3266_v23 = vpop.permute.xlu0 %3265  ;;  %v606_v61 = vld [vmem:[#allocation2 + $0xd8] sm:$0xff]  ;;  %v4362_v62 = vld [vmem:[#allocation2 + $0xe0] sm:$0xff] }
  0xc3   : > { %v3268_v16 = vunpack.i.h.bf16 %v3266_v23  ;;  %v3267_v18 = vunpack.i.l.bf16 %v3266_v23  ;;  %3545 = vrot.lane.b32.xlu1 %v4275_v43, %s3782_s29  ;;  %2188 = vmatmul.mubr.bf16.vlgmr.msra.gmra.mrb[0].mxu0 %v2003_v63  ;;  %v4371_v30 = vpack.i.bf16 %v4362_v62, %v606_v61  ;;  %v3183_v61 = vunpack.i.h.bf16 %v4248_v27 }
  0xc4   : > { %v1841_v19 = vsel %vm1838_vm3, %v1808_v13, %v3262_v12  ;;  %v1842_v41 = vsel %vm1838_vm3, %v1809_v40, %v3263_v7  ;;  %3550 = vrot.lane.b32.xlu0 %v4281_v11, %s3783_s13  ;;  %3039 = vmatprep.mubr.msk.bf16.mxu0 %vm499_vm0, %v2006_v10  ;;  %v3584_v13 = vpack.i.bf16 %v812_v60, %v811_v59  ;;  %v827_v40 = vld [vmem:[#allocation2 + $0xd9] sm:$0xff]  ;;  %v852_v60 = vld [vmem:[#allocation2 + $0x82] sm:$0xff] }
  0xc5   : > { %v3271_v14 = vpop.permute.xlu1 %3270  ;;  %v1874_v11 = vsel %vm1871_vm4, %v1841_v19, %v3267_v18  ;;  %v1875_v37 = vsel %vm1871_vm4, %v1842_v41, %v3268_v16  ;;  %v828_v16 = vld [vmem:[#allocation2 + $0xe1] sm:$0xff]  ;;  %v1777_v18 = vsel %vm499_vm0, %v4108_v48, %v3177_v55 }
  0xc6   : > { %v3273_v43 = vunpack.i.h.bf16 %v3271_v14  ;;  %v3272_v1 = vunpack.i.l.bf16 %v3271_v14  ;;  %v3276_v2 = vpop.permute.xlu0 %3275  ;;  %v851_v59 = vld [vmem:[#allocation2 + $0x7a] sm:$0xff] }
  0xc7   : > { %v3278_v38 = vunpack.i.h.bf16 %v3276_v2  ;;  %v3277_v5 = vunpack.i.l.bf16 %v3276_v2  ;;  %3555 = vrot.lane.b32.xlu1 %v4285_v53, %s3783_s13  ;;  %v849_v53 = vld [vmem:[#allocation2 + $0x62] sm:$0xff] }
  0xc8   : > { %v1907_v6 = vsel %vm1904_vm5, %v1874_v11, %v3272_v1  ;;  %v1908_v10 = vsel %vm1904_vm5, %v1875_v37, %v3273_v43  ;;  %3560 = vrot.lane.b32.xlu0 %v3559_v42, %s3784_s18  ;;  %v2008_v7 = vpack.c.bf16 %v850_v51, %v849_v53  ;;  %v843_v11 = vld [vmem:[#allocation2 + $0x199] sm:$0xff]  ;;  %v844_v37 = vld [vmem:[#allocation2 + $0x1a1] sm:$0xff] }
  0xc9   : > { %v3281_v49 = vpop.permute.xlu1 %3280  ;;  %v1940_v24 = vsel %vm1937_vm6, %v1907_v6, %v3277_v5  ;;  %v1941_v63 = vsel %vm1937_vm6, %v1908_v10, %v3278_v38  ;;  %v3594_v53 = vpack.i.bf16 %v844_v37, %v843_v11 }
  0xca   : > { %v3283_v56 = vunpack.i.h.bf16 %v3281_v49  ;;  %v3282_v57 = vunpack.i.l.bf16 %v3281_v49  ;;  %v3286_v15 = vpop.permute.xlu0 %3285 }
  0xcb   : > { %v3288_v0 = vunpack.i.h.bf16 %v3286_v15  ;;  %v3287_v29 = vunpack.i.l.bf16 %v3286_v15  ;;  %3565 = vrot.lane.b32.xlu1 %v4297_v20, %s3784_s18  ;;  %v1778_v20 = vsel %vm499_vm0, %v4115_v52, %v3178_v54  ;;  %v3589_v52 = vpack.i.bf16 %v828_v16, %v827_v40 }
  0xcc   : > { %3570 = vrot.lane.b32.xlu0 %v4350_v46, %s3785_s19  ;;  %v1973_v3 = vsel %vm1970_vm7, %v1940_v24, %v3282_v57  ;;  %v1974_v4 = vsel %vm1970_vm7, %v1941_v63, %v3283_v56  ;;  %v3182_v24 = vunpack.i.l.bf16 %v4248_v27  ;;  %v2010_v16 = vpack.c.bf16 %v852_v60, %v851_v59  ;;  %v853_v60 = vld [vmem:[#allocation2 + $0x92] sm:$0xff] }
  0xcd   : > { %v3291_v12 = vpop.permute.xlu1 %3290  ;;  %v2005_v23 = vpack.c.bf16 %v1974_v4, %v1973_v3  ;;  %v1811_v14 = vsel %vm1805_vm2, %v1778_v20, %v3288_v0  ;;  %v1810_v43 = vsel %vm1805_vm2, %v1777_v18, %v3287_v29  ;;  %v4395_v3 = vld [vmem:[#allocation2 + $0xda] sm:$0xff]  ;;  %v4397_v4 = vld [vmem:[#allocation2 + $0xe2] sm:$0xff] }
  0xce   : > { %v3293_v19 = vunpack.i.h.bf16 %v3291_v12  ;;  %v3292_v41 = vunpack.i.l.bf16 %v3291_v12  ;;  %v3296_v42 = vpop.permute.xlu0 %3295 }
  0xcf   : > { %v3298_v1 = vunpack.i.h.bf16 %v3296_v42  ;;  %v3297_v2 = vunpack.i.l.bf16 %v3296_v42  ;;  %3575 = vrot.lane.b32.xlu1 %v3574_v50, %s3785_s19  ;;  %2196 = vmatmul.mubr.bf16.gmra.mrb[4].mxu0 %v2005_v23  ;;  %v1779_v42 = vsel %vm499_vm0, %v4155_v8, %v3182_v24 }
  0xd0   : > { %v1843_v38 = vsel %vm1838_vm3, %v1810_v43, %v3292_v41  ;;  %v1844_v48 = vsel %vm1838_vm3, %v1811_v14, %v3293_v19  ;;  %3580 = vrot.lane.b32.xlu0 %v4371_v30, %s3786_s21  ;;  %3040 = vmatprep.mubr.msk.bf16.mxu0 %vm499_vm0, %v2008_v7  ;;  %v3614_v19 = vpack.i.bf16 %v4397_v4, %v4395_v3  ;;  %v608_v14 = vld [vmem:[#allocation2 + $0xf0] sm:$0xff] }
  0xd1   : > { %v3301_v5 = vpop.permute.xlu1 %3300  ;;  %v1876_v50 = vsel %vm1871_vm4, %v1843_v38, %v3297_v2  ;;  %v1877_v51 = vsel %vm1871_vm4, %v1844_v48, %v3298_v1  ;;  %v1780_v41 = vsel %vm499_vm0, %v4157_v9, %v3183_v61  ;;  %v4412_v2 = vld [vmem:[#allocation2 + $0xf8] sm:$0xff] }
  0xd2   : > { %v3303_v6 = vunpack.i.h.bf16 %v3301_v5  ;;  %v3302_v10 = vunpack.i.l.bf16 %v3301_v5  ;;  %v3306_v49 = vpop.permute.xlu0 %3305  ;;  %v829_v9 = vld [vmem:[#allocation2 + $0xf1] sm:$0xff]  ;;  %v830_v5 = vld [vmem:[#allocation2 + $0xf9] sm:$0xff] }
  0xd3   : > { %v3308_v54 = vunpack.i.h.bf16 %v3306_v49  ;;  %v3307_v55 = vunpack.i.l.bf16 %v3306_v49  ;;  %3585 = vrot.lane.b32.xlu1 %v3584_v13, %s3786_s21  ;;  %v854_v61 = vld [vmem:[#allocation2 + $0x9a] sm:$0xff] }
  0xd4   : > { %v1909_v56 = vsel %vm1904_vm5, %v1876_v50, %v3302_v10  ;;  %v1910_v57 = vsel %vm1904_vm5, %v1877_v51, %v3303_v6  ;;  %3590 = vrot.lane.b32.xlu0 %v3589_v52, %s3787_s24  ;;  %v3619_v10 = vpack.i.bf16 %v4412_v2, %v608_v14 }
  0xd5   : > { %v3311_v15 = vpop.permute.xlu1 %3310  ;;  %v1942_v7 = vsel %vm1937_vm6, %v1909_v56, %v3307_v55  ;;  %v1943_v12 = vsel %vm1937_vm6, %v1910_v57, %v3308_v54  ;;  %v3624_v54 = vpack.i.bf16 %v830_v5, %v829_v9  ;;  %v4453_v5 = vld [vmem:[#allocation2 + $0x10a] sm:$0xff] }
  0xd6   : > { %v3313_v63 = vunpack.i.h.bf16 %v3311_v15  ;;  %v3312_v0 = vunpack.i.l.bf16 %v3311_v15  ;;  %v3316_v29 = vpop.permute.xlu0 %3315 }
  0xd7   : > { %v3318_v23 = vunpack.i.h.bf16 %v3316_v29  ;;  %v3317_v13 = vunpack.i.l.bf16 %v3316_v29  ;;  %3595 = vrot.lane.b32.xlu1 %v3594_v53, %s3787_s24 }
  0xd8   : > { %3600 = vrot.lane.b32.xlu0 %v4350_v46, %s3782_s29  ;;  %v1975_v27 = vsel %vm1970_vm7, %v1942_v7, %v3312_v0  ;;  %v1976_v40 = vsel %vm1970_vm7, %v1943_v12, %v3313_v63 }
  0xd9   : > { %v3321_v18 = vpop.permute.xlu1 %3320  ;;  %v2007_v20 = vpack.c.bf16 %v1976_v40, %v1975_v27  ;;  %v1813_v11 = vsel %vm1805_vm2, %v1780_v41, %v3318_v23  ;;  %v1812_v37 = vsel %vm1805_vm2, %v1779_v42, %v3317_v13  ;;  %v4437_v13 = vld [vmem:[#allocation2 + $0xf2] sm:$0xff]  ;;  %v4439_v27 = vld [vmem:[#allocation2 + $0xfa] sm:$0xff]  ;;  %v2012_v40 = vpack.c.bf16 %v854_v61, %v853_v60  ;;  %v610_v42 = vld [vmem:[#allocation2 + $0x108] sm:$0xff] }
  0xda   : > { %v3323_v43 = vunpack.i.h.bf16 %v3321_v18  ;;  %v3322_v1 = vunpack.i.l.bf16 %v3321_v18  ;;  %v3326_v46 = vpop.permute.xlu0 %3325 }
  0xdb   : > { %v3328_v38 = vunpack.i.h.bf16 %v3326_v46  ;;  %v3327_v48 = vunpack.i.l.bf16 %v3326_v46  ;;  %3605 = vrot.lane.b32.xlu1 %v4371_v30, %s3783_s13  ;;  %2204 = vmatmul.mubr.bf16.gmra.mrb[8].mxu0 %v2007_v20  ;;  %v800_v20 = vld [vmem:[#allocation2 + $0x110] sm:$0xff] }
  0xdc   : > { %v1845_v8 = vsel %vm1838_vm3, %v1812_v37, %v3322_v1  ;;  %v1846_v6 = vsel %vm1838_vm3, %v1813_v11, %v3323_v43  ;;  %3610 = vrot.lane.b32.xlu0 %v3589_v52, %s3784_s18  ;;  %3041 = vmatprep.mubr.msk.bf16.mxu0 %vm499_vm0, %v2010_v16  ;;  %v3649_v14 = vpack.i.bf16 %v800_v20, %v610_v42  ;;  %v831_v43 = vld [vmem:[#allocation2 + $0x109] sm:$0xff]  ;;  %v4445_v1 = vld [vmem:[#allocation2 + $0x111] sm:$0xff] }
  0xdd   : > { %v3331_v49 = vpop.permute.xlu1 %3330  ;;  %v1878_v30 = vsel %vm1871_vm4, %v1845_v8, %v3327_v48  ;;  %v1879_v55 = vsel %vm1871_vm4, %v1846_v6, %v3328_v38  ;;  %v3654_v37 = vpack.i.bf16 %v4445_v1, %v831_v43  ;;  %v3188_v38 = vunpack.i.h.bf16 %v4250_v28  ;;  %v4455_v8 = vld [vmem:[#allocation2 + $0x112] sm:$0xff]  ;;  %v833_v6 = vld [vmem:[#allocation2 + $0x121] sm:$0xff] }
  0xde   : > { %v3333_v53 = vunpack.i.h.bf16 %v3331_v49  ;;  %v3332_v50 = vunpack.i.l.bf16 %v3331_v49  ;;  %v3336_v51 = vpop.permute.xlu0 %3335  ;;  %v3187_v48 = vunpack.i.l.bf16 %v4250_v28 }
  0xdf   : > { %v3338_v56 = vunpack.i.h.bf16 %v3336_v51  ;;  %v3337_v57 = vunpack.i.l.bf16 %v3336_v51  ;;  %3615 = vrot.lane.b32.xlu1 %v3614_v19, %s3785_s19  ;;  %v4459_v51 = vld [vmem:[#allocation2 + $0xaa] sm:$0xff]  ;;  %v1782_v60 = vsel %vm499_vm0, %v4180_v17, %v3188_v38 }
  0xe0   : > { %v1911_v15 = vsel %vm1904_vm5, %v1878_v30, %v3332_v50  ;;  %v1912_v52 = vsel %vm1904_vm5, %v1879_v55, %v3333_v53  ;;  %3620 = vrot.lane.b32.xlu0 %v3619_v10, %s3786_s21  ;;  %v834_v50 = vld [vmem:[#allocation2 + $0x129] sm:$0xff]  ;;  %v612_v30 = vld [vmem:[#allocation2 + $0x120] sm:$0xff]  ;;  %v1781_v61 = vsel %vm499_vm0, %v4178_v22, %v3187_v48 }
  0xe1   : > { %v3341_v59 = vpop.permute.xlu1 %3340  ;;  %v1944_v29 = vsel %vm1937_vm6, %v1911_v15, %v3337_v57  ;;  %v1945_v7 = vsel %vm1937_vm6, %v1912_v52, %v3338_v56  ;;  %v613_v55 = vld [vmem:[#allocation2 + $0x128] sm:$0xff]  ;;  %v4467_v52 = vpack.i.bf16 %v4455_v8, %v4453_v5 }
  0xe2   : > { %v3343_v24 = vunpack.i.h.bf16 %v3341_v59  ;;  %v3342_v63 = vunpack.i.l.bf16 %v3341_v59  ;;  %v4429_v0 = vpop.permute.xlu0 %3345  ;;  %v4469_v59 = vpack.i.bf16 %v613_v55, %v612_v30 }
  0xe3   : > { %3625 = vrot.lane.b32.xlu1 %v3624_v54, %s3787_s24  ;;  %v3347_v49 = vunpack.i.l.bf16 %v4429_v0 }
  0xe4   : > { %3630 = vrot.lane.b32.xlu0 %v3614_v19, %s3782_s29  ;;  %v1977_v12 = vsel %vm1970_vm7, %v1944_v29, %v3342_v63  ;;  %v1978_v23 = vsel %vm1970_vm7, %v1945_v7, %v3343_v24  ;;  %v3644_v19 = vpack.i.bf16 %v4439_v27, %v4437_v13  ;;  %v4475_v63 = vpack.i.bf16 %v834_v50, %v833_v6 }
  0xe5   : > { %v3351_v16 = vpop.permute.xlu1 %3350  ;;  %v2009_v18 = vpack.c.bf16 %v1978_v23, %v1977_v12  ;;  %v1798_v12 = vsel %vm499_vm0, %v613_v55, %v3347_v49 }
  0xe6   : > { %v3356_v41 = vpop.permute.xlu0 %3355  ;;  %v3353_v56 = vunpack.i.h.bf16 %v3351_v16  ;;  %v3352_v28 = vunpack.i.l.bf16 %v3351_v16 }
  0xe7   : > { %3635 = vrot.lane.b32.xlu1 %v3619_v10, %s3783_s13  ;;  %2212 = vmatmul.mubr.bf16.gmra.mrb[12].mxu0 %v2009_v18  ;;  %v3228_v10 = vunpack.i.h.bf16 %v4277_v44  ;;  %v3358_v57 = vunpack.i.h.bf16 %v3356_v41  ;;  %v3357_v15 = vunpack.i.l.bf16 %v3356_v41 }
  0xe8   : > { %3640 = vrot.lane.b32.xlu0 %v3624_v54, %s3784_s18  ;;  %3042 = vmatprep.mubr.msk.bf16.mxu0 %vm499_vm0, %v2012_v40  ;;  %v4461_v54 = vld [vmem:[#allocation2 + $0xb2] sm:$0xff]  ;;  %v1814_v18 = vsel %vm1805_vm2, %v1781_v61, %v3352_v28  ;;  %v1815_v17 = vsel %vm1805_vm2, %v1782_v60, %v3353_v56 }
  0xe9   : > { %v3361_v46 = vpop.permute.xlu1 %3360  ;;  %v2014_v29 = vpack.c.bf16 %v4461_v54, %v4459_v51  ;;  %v1797_v7 = vsel %vm499_vm0, %v612_v30, %v3228_v10  ;;  %v1831_v42 = vsel %vm1805_vm2, %v1798_v12, %v3358_v57  ;;  %v3193_v51 = vunpack.i.h.bf16 %v4254_v31 }
  0xea   : > { %v3366_v11 = vpop.permute.xlu0 %3365  ;;  %v3363_v23 = vunpack.i.h.bf16 %v3361_v46  ;;  %v3362_v40 = vunpack.i.l.bf16 %v3361_v46  ;;  %v1830_v22 = vsel %vm1805_vm2, %v1797_v7, %v3357_v15  ;;  %v3192_v54 = vunpack.i.l.bf16 %v4254_v31 }
  0xeb   : > { %3645 = vrot.lane.b32.xlu1 %v3644_v19, %s3785_s19  ;;  %v3368_v20 = vunpack.i.h.bf16 %v3366_v11  ;;  %v3367_v41 = vunpack.i.l.bf16 %v3366_v11 }
  0xec   : > { %3650 = vrot.lane.b32.xlu0 %v3649_v14, %s3786_s21  ;;  %v1847_v49 = vsel %vm1838_vm3, %v1814_v18, %v3362_v40  ;;  %v1848_v50 = vsel %vm1838_vm3, %v1815_v17, %v3363_v23  ;;  %v1783_v31 = vsel %vm499_vm0, %v4198_v25, %v3192_v54 }
  0xed   : > { %v3371_v9 = vpop.permute.xlu1 %3370  ;;  %v1863_v55 = vsel %vm1838_vm3, %v1830_v22, %v3367_v41  ;;  %v1864_v56 = vsel %vm1838_vm3, %v1831_v42, %v3368_v20  ;;  %v871_v20 = vld [vmem:[#allocation2 + $0x16a] sm:$0xff]  ;;  %v872_v41 = vld [vmem:[#allocation2 + $0x172] sm:$0xff] }
  0xee   : > { %v3376_v53 = vpop.permute.xlu0 %3375  ;;  %v3372_v43 = vunpack.i.l.bf16 %v3371_v9 }
  0xef   : > { %3655 = vrot.lane.b32.xlu1 %v3654_v37, %s3787_s24  ;;  %v3378_v38 = vunpack.i.h.bf16 %v3376_v53  ;;  %v3377_v48 = vunpack.i.l.bf16 %v3376_v53 }
  0xf0   : > { %3660 = vrot.lane.b32.xlu0 %v3644_v19, %s3782_s29  ;;  %v3373_v19 = vunpack.i.h.bf16 %v3371_v9 }
  0xf1   : > { %v3381_v24 = vpop.permute.xlu1 %3380  ;;  %v1896_v60 = vsel %vm1871_vm4, %v1863_v55, %v3377_v48  ;;  %v1897_v61 = vsel %vm1871_vm4, %v1864_v56, %v3378_v38  ;;  %v2030_v55 = vpack.c.bf16 %v872_v41, %v871_v20  ;;  %v1784_v20 = vsel %vm499_vm0, %v4200_v26, %v3193_v51 }
  0xf2   : > { %v3386_v16 = vpop.permute.xlu0 %3385  ;;  %v3383_v46 = vunpack.i.h.bf16 %v3381_v24  ;;  %v3382_v6 = vunpack.i.l.bf16 %v3381_v24  ;;  %v1881_v53 = vsel %vm1871_vm4, %v1848_v50, %v3373_v19  ;;  %v2016_v41 = vpack.c.bf16 %v4335_v58, %v4333_v21 }
  0xf3   : > { %3665 = vrot.lane.b32.xlu1 %v3649_v14, %s3783_s13  ;;  %v3388_v11 = vunpack.i.h.bf16 %v3386_v16  ;;  %v3387_v30 = vunpack.i.l.bf16 %v3386_v16 }
  0xf4   : > { %3670 = vrot.lane.b32.xlu0 %v3654_v37, %s3784_s18  ;;  %v1880_v37 = vsel %vm1871_vm4, %v1847_v49, %v3372_v43  ;;  %v1914_v7 = vsel %vm1904_vm5, %v1881_v53, %v3383_v46  ;;  %v836_v53 = vld [vmem:[#allocation2 + $0x141] sm:$0xff] }
  0xf5   : > { %v3391_v10 = vpop.permute.xlu1 %3390  ;;  %v1913_v24 = vsel %vm1904_vm5, %v1880_v37, %v3382_v6  ;;  %v1929_v23 = vsel %vm1904_vm5, %v1896_v60, %v3387_v30  ;;  %v1930_v40 = vsel %vm1904_vm5, %v1897_v61, %v3388_v11  ;;  %v4517_v30 = vld [vmem:[#allocation2 + $0x122] sm:$0xff]  ;;  %v835_v37 = vld [vmem:[#allocation2 + $0x139] sm:$0xff] }
  0xf6   : > { %v3396_v14 = vpop.permute.xlu0 %3395  ;;  %v3393_v28 = vunpack.i.h.bf16 %v3391_v10  ;;  %v3392_v9 = vunpack.i.l.bf16 %v3391_v10  ;;  %v3714_v60 = vpack.i.bf16 %v836_v53, %v835_v37 }
  0xf7   : > { %3675 = vrot.lane.b32.xlu1 %v4467_v52, %s3785_s19  ;;  %v3398_v57 = vunpack.i.h.bf16 %v3396_v14  ;;  %v3397_v15 = vunpack.i.l.bf16 %v3396_v14  ;;  %v4519_v14 = vld [vmem:[#allocation2 + $0x12a] sm:$0xff] }
  0xf8   : > { %3680 = vrot.lane.b32.xlu0 %v4469_v59, %s3786_s21  ;;  %v1946_v22 = vsel %vm1937_vm6, %v1913_v24, %v3392_v9  ;;  %v1947_v42 = vsel %vm1937_vm6, %v1914_v7, %v3393_v28 }
  0xf9   : > { %v3401_v12 = vpop.permute.xlu1 %3400  ;;  %v1962_v38 = vsel %vm1937_vm6, %v1929_v23, %v3397_v15  ;;  %v1963_v48 = vsel %vm1937_vm6, %v1930_v40, %v3398_v57  ;;  %v614_v57 = vld [vmem:[#allocation2 + $0x138] sm:$0xff] }
  0xfa   : > { %v3403_v16 = vunpack.i.h.bf16 %v3401_v12  ;;  %v3402_v18 = vunpack.i.l.bf16 %v3401_v12  ;;  %v3406_v17 = vpop.permute.xlu0 %3405 }
  0xfb   : > { %v3408_v19 = vunpack.i.h.bf16 %v3406_v17  ;;  %v3407_v43 = vunpack.i.l.bf16 %v3406_v17  ;;  %3685 = vrot.lane.b32.xlu1 %v4475_v63, %s3787_s24 }
  0xfc   : > { %955 = vrot.lane.b32.xlu0 %v4445_v1, %s3780_s20  ;;  %v1979_v46 = vsel %vm1970_vm7, %v1946_v22, %v3402_v18  ;;  %v1980_v6 = vsel %vm1970_vm7, %v1947_v42, %v3403_v16  ;;  %v3704_v1 = vpack.i.bf16 %v4519_v14, %v4517_v30 }
  0xfd   : > { %v4513_v10 = vpop.permute.xlu1 %3410  ;;  %v2011_v49 = vpack.c.bf16 %v1980_v6, %v1979_v46  ;;  %v1995_v50 = vsel %vm1970_vm7, %v1962_v38, %v3407_v43  ;;  %v1996_v11 = vsel %vm1970_vm7, %v1963_v48, %v3408_v19 }
  0xfe   : > { %v3416_v56 = vpop.permute.xlu0 %3415  ;;  %v2027_v28 = vpack.c.bf16 %v1996_v11, %v1995_v50 }
  0xff   : > { %3690 = vrot.lane.b32.xlu1 %v4467_v52, %s3782_s29  ;;  %2220 = vmatmul.mubr.bf16.gmra.mrb[16].mxu0 %v2011_v49  ;;  %v615_v52 = vld [vmem:[#allocation2 + $0x140] sm:$0xff]  ;;  %v3418_v7 = vunpack.i.h.bf16 %v3416_v56  ;;  %v3417_v12 = vunpack.i.l.bf16 %v3416_v56 }
 0x100   : > { %2284 = vmatmul.mubr.bf16.vlgmr.msra.gmra.mrb[0].mxu1 %v2027_v28  ;;  %3695 = vrot.lane.b32.xlu0 %v4469_v59, %s3783_s13  ;;  %v3709_v59 = vpack.i.bf16 %v615_v52, %v614_v57 }
 0x101   : > { %v3421_v9 = vpop.permute.xlu1 %3420  ;;  %3043 = vmatprep.mubr.msk.bf16.mxu0 %vm499_vm0, %v2014_v29  ;;  %3051 = vmatprep.mubr.msk.bf16.mxu1 %vm499_vm0, %v2030_v55  ;;  %v3348_v29 = vunpack.i.h.bf16 %v4429_v0  ;;  %v1817_v42 = vsel %vm1805_vm2, %v1784_v20, %v3418_v7  ;;  %v1816_v48 = vsel %vm1805_vm2, %v1783_v31, %v3417_v12 }
 0x102   : > { %v3426_v15 = vpop.permute.xlu0 %3425  ;;  %3096 = vmatpush3.bf16.msra.mxu1 %v4355_v47  ;;  %v3412_v47 = vunpack.i.l.bf16 %v4513_v10  ;;  %v3423_v40 = vunpack.i.h.bf16 %v3421_v9  ;;  %v3422_v16 = vunpack.i.l.bf16 %v3421_v9 }
 0x103   : > { %3700 = vrot.lane.b32.xlu1 %v4475_v63, %s3784_s18  ;;  %v3428_v18 = vunpack.i.h.bf16 %v3426_v15  ;;  %v3427_v17 = vunpack.i.l.bf16 %v3426_v15  ;;  %v1799_v0 = vsel %vm499_vm0, %v614_v57, %v3348_v29  ;;  %s4911_s18 = scalar_lea.vmem %s5174_s7, %s3918_s14  ;;  %s3026_s14 = sshll.u32 %s5179_s10, 1 }
 0x104   : > { %3705 = vrot.lane.b32.xlu0 %v3704_v1, %s3785_s19  ;;  %v1800_v22 = vsel %vm499_vm0, %v615_v52, %v3412_v47  ;;  %v1832_v25 = vsel %vm1805_vm2, %v1799_v0, %v3422_v16  ;;  %s355_s25 = scalar_lea.vmem %s5176_s9, %s3026_s14 }
 0x105   : > { %v3431_v61 = vpop.permute.xlu1 %3430  ;;  %v1833_v50 = vsel %vm1805_vm2, %v1800_v22, %v3423_v40  ;;  %v1849_v11 = vsel %vm1838_vm3, %v1816_v48, %v3427_v17  ;;  %v1850_v21 = vsel %vm1838_vm3, %v1817_v42, %v3428_v18 }
 0x106   : > { %v3436_v24 = vpop.permute.xlu0 %3435  ;;  %v3432_v46 = vunpack.i.l.bf16 %v3431_v61  ;;  %v3433_v58 = vunpack.i.h.bf16 %v3431_v61 }
 0x107   : > { %3710 = vrot.lane.b32.xlu1 %v3709_v59, %s3786_s21  ;;  %v3438_v19 = vunpack.i.h.bf16 %v3436_v24  ;;  %v3437_v43 = vunpack.i.l.bf16 %v3436_v24 }
 0x108   : > { %3715 = vrot.lane.b32.xlu0 %v3714_v60, %s3787_s24  ;;  %v1865_v52 = vsel %vm1838_vm3, %v1832_v25, %v3432_v46  ;;  %v1866_v47 = vsel %vm1838_vm3, %v1833_v50, %v3433_v58  ;;  %v2032_v46 = vpack.c.bf16 %v4339_v45, %v4337_v35  ;;  %v616_v45 = vld [vmem:[#allocation2 + $0x150] sm:$0xff] }
 0x109   : > { %v3441_v63 = vpop.permute.xlu1 %3440  ;;  %v1882_v1 = vsel %vm1871_vm4, %v1849_v11, %v3437_v43  ;;  %v1883_v9 = vsel %vm1871_vm4, %v1850_v21, %v3438_v19  ;;  %v3198_v11 = vunpack.i.h.bf16 %v4256_v32  ;;  %v3197_v21 = vunpack.i.l.bf16 %v4256_v32 }
 0x10a   : > { %v3446_v23 = vpop.permute.xlu0 %3445  ;;  %v3442_v55 = vunpack.i.l.bf16 %v3441_v63  ;;  %v3443_v37 = vunpack.i.h.bf16 %v3441_v63  ;;  %v2018_v32 = vpack.c.bf16 %v4397_v4, %v4395_v3  ;;  %v3202_v3 = vunpack.i.l.bf16 %v4260_v33 }
 0x10b   : > { %v3448_v6 = vunpack.i.h.bf16 %v3446_v23  ;;  %v3447_v26 = vunpack.i.l.bf16 %v3446_v23  ;;  %v3208_v4 = vunpack.i.h.bf16 %v4262_v34 }
 0x10c   : > { %v1898_v7 = vsel %vm1871_vm4, %v1865_v52, %v3442_v55  ;;  %v1899_v23 = vsel %vm1871_vm4, %v1866_v47, %v3443_v37  ;;  %v3413_v55 = vunpack.i.h.bf16 %v4513_v10  ;;  %v3730_v52 = vld [vmem:[#allocation2 + $0x90] sm:$0xff] }
 0x10d   : > { %v3451_v38 = vpop.permute.xlu1 %3450  ;;  %v1915_v15 = vsel %vm1904_vm5, %v1882_v1, %v3447_v26  ;;  %v1916_v59 = vsel %vm1904_vm5, %v1883_v9, %v3448_v6 }
 0x10e   : > { %v3456_v49 = vpop.permute.xlu0 %3455  ;;  %v3452_v53 = vunpack.i.l.bf16 %v3451_v38  ;;  %v3453_v60 = vunpack.i.h.bf16 %v3451_v38  ;;  %v1801_v10 = vsel %vm499_vm0, %v616_v45, %v3413_v55 }
 0x10f   : > { %v3458_v56 = vunpack.i.h.bf16 %v3456_v49  ;;  %v3457_v28 = vunpack.i.l.bf16 %v3456_v49 }
 0x110   : > { %v1931_v40 = vsel %vm1904_vm5, %v1898_v7, %v3452_v53  ;;  %v1932_v20 = vsel %vm1904_vm5, %v1899_v23, %v3453_v60  ;;  %v3729_v53 = vld [vmem:[#allocation2 + $0x98] sm:$0xff] }
 0x111   : > { %v3461_v57 = vpop.permute.xlu1 %3460  ;;  %v1948_v63 = vsel %vm1937_vm6, %v1915_v15, %v3457_v28  ;;  %v1949_v12 = vsel %vm1937_vm6, %v1916_v59, %v3458_v56  ;;  %v617_v28 = vld [vmem:[#allocation2 + $0x158] sm:$0xff]  ;;  %v1785_v15 = vsel %vm499_vm0, %v3730_v52, %v3197_v21 }
 0x112   : > { %v3466_v24 = vpop.permute.xlu0 %3465  ;;  %v3463_v51 = vunpack.i.h.bf16 %v3461_v57  ;;  %v3462_v61 = vunpack.i.l.bf16 %v3461_v57  ;;  %v1786_v57 = vsel %vm499_vm0, %v3729_v53, %v3198_v11  ;;  %v876_v53 = vld [vmem:[#allocation2 + $0x1a2] sm:$0xff] }
 0x113   : > { %v3468_v54 = vunpack.i.h.bf16 %v3466_v24  ;;  %v3467_v29 = vunpack.i.l.bf16 %v3466_v24 }
 0x114   : > { %v1964_v19 = vsel %vm1937_vm6, %v1931_v40, %v3462_v61  ;;  %v1965_v43 = vsel %vm1937_vm6, %v1932_v20, %v3463_v51 }
 0x115   : > { %v3471_v16 = vpop.permute.xlu1 %3470  ;;  %v1981_v18 = vsel %vm1970_vm7, %v1948_v63, %v3467_v29  ;;  %v1982_v17 = vsel %vm1970_vm7, %v1949_v12, %v3468_v54 }
 0x116   : > { %v3473_v31 = vunpack.i.h.bf16 %v3471_v16  ;;  %v3472_v0 = vunpack.i.l.bf16 %v3471_v16  ;;  %v4570_v22 = vpop.permute.xlu0 %3475  ;;  %v2013_v42 = vpack.c.bf16 %v1982_v17, %v1981_v18 }
 0x117   : > { %v3477_v56 = vunpack.i.l.bf16 %v4570_v22 }
 0x118   : > { %2228 = vmatmul.mubr.bf16.gmra.mrb[20].mxu0 %v2013_v42  ;;  %v1997_v38 = vsel %vm1970_vm7, %v1964_v19, %v3472_v0  ;;  %v1998_v48 = vsel %vm1970_vm7, %v1965_v43, %v3473_v31 }
 0x119   : > { %v3481_v6 = vpop.permute.xlu1 %3480  ;;  %v2029_v26 = vpack.c.bf16 %v1998_v48, %v1997_v38  ;;  %3044 = vmatprep.mubr.msk.bf16.mxu0 %vm499_vm0, %v2016_v41  ;;  %v1802_v60 = vsel %vm499_vm0, %v617_v28, %v3477_v56 }
 0x11a   : > { %v3486_v49 = vpop.permute.xlu0 %3485  ;;  %v3483_v1 = vunpack.i.h.bf16 %v3481_v6  ;;  %v3482_v41 = vunpack.i.l.bf16 %v3481_v6 }
 0x11b   : > { %2292 = vmatmul.mubr.bf16.gmra.mrb[4].mxu1 %v2029_v26  ;;  %v3488_v9 = vunpack.i.h.bf16 %v3486_v49  ;;  %v3487_v37 = vunpack.i.l.bf16 %v3486_v49 }
 0x11c   : > { %3052 = vmatprep.mubr.msk.bf16.mxu1 %vm499_vm0, %v2032_v46  ;;  %v1818_v54 = vsel %vm1805_vm2, %v1785_v15, %v3482_v41  ;;  %v1819_v29 = vsel %vm1805_vm2, %v1786_v57, %v3483_v1 }
 0x11d   : > { %v3491_v25 = vpop.permute.xlu1 %3490  ;;  %v1834_v63 = vsel %vm1805_vm2, %v1801_v10, %v3487_v37  ;;  %v1835_v12 = vsel %vm1805_vm2, %v1802_v60, %v3488_v9  ;;  %v875_v37 = vld [vmem:[#allocation2 + $0x19a] sm:$0xff] }
 0x11e   : > { %v3496_v50 = vpop.permute.xlu0 %3495  ;;  %v3493_v24 = vunpack.i.h.bf16 %v3491_v25  ;;  %v3492_v51 = vunpack.i.l.bf16 %v3491_v25  ;;  %v4611_v10 = vld [vmem:[%s5171_s4] ss:$0 sm:$0xff] }
 0x11f   : > { %v3498_v47 = vunpack.i.h.bf16 %v3496_v50  ;;  %v3497_v7 = vunpack.i.l.bf16 %v3496_v50 }
 0x120   : > { %v1851_v0 = vsel %vm1838_vm3, %v1818_v54, %v3492_v51  ;;  %v1852_v42 = vsel %vm1838_vm3, %v1819_v29, %v3493_v24 }
 0x121   : > { %v3501_v58 = vpop.permute.xlu1 %3500  ;;  %v1867_v48 = vsel %vm1838_vm3, %v1834_v63, %v3497_v7  ;;  %v1868_v46 = vsel %vm1838_vm3, %v1835_v12, %v3498_v47  ;;  %v2034_v63 = vpack.c.bf16 %v876_v53, %v875_v37  ;;  %v3739_v37 = vld [vmem:[%s3924_s17 + $0x20] sm:$0xff] }
 0x122   : > { %v3506_v35 = vpop.permute.xlu0 %3505  ;;  %v3503_v23 = vunpack.i.h.bf16 %v3501_v58  ;;  %v3502_v40 = vunpack.i.l.bf16 %v3501_v58  ;;  %v2532_v53 = vmul.f32 %v3739_v37, %v4611_v10 }
 0x123   : > { %v3508_v16 = vunpack.i.h.bf16 %v3506_v35  ;;  %v3507_v18 = vunpack.i.l.bf16 %v3506_v35 }
 0x124   : > { %v1884_v49 = vsel %vm1871_vm4, %v1851_v0, %v3502_v40  ;;  %v1885_v25 = vsel %vm1871_vm4, %v1852_v42, %v3503_v23  ;;  %v3731_v40 = vld [vmem:[%s3924_s17] sm:$0xff] }
 0x125   : > { %v3511_v59 = vpop.permute.xlu1 %3510  ;;  %v1900_v21 = vsel %vm1871_vm4, %v1867_v48, %v3507_v18  ;;  %v1901_v58 = vsel %vm1871_vm4, %v1868_v46, %v3508_v16  ;;  %v2528_v16 = vmul.f32 %v3731_v40, %v4611_v10  ;;  %v3732_v18 = vld [vmem:[%s3924_s17 + $0x8] sm:$0xff]  ;;  %v3203_v48 = vunpack.i.h.bf16 %v4260_v33 }
 0x126   : > { %v3516_v61 = vpop.permute.xlu0 %3515  ;;  %v3513_v17 = vunpack.i.h.bf16 %v3511_v59  ;;  %v3512_v20 = vunpack.i.l.bf16 %v3511_v59  ;;  %v3213_v46 = vunpack.i.h.bf16 %v4266_v36 }
 0x127   : > { %v3518_v19 = vunpack.i.h.bf16 %v3516_v61  ;;  %v3517_v43 = vunpack.i.l.bf16 %v3516_v61 }
 0x128   : > { %v1917_v55 = vsel %vm1904_vm5, %v1884_v49, %v3512_v20  ;;  %v1918_v56 = vsel %vm1904_vm5, %v1885_v25, %v3513_v17  ;;  %v2529_v17 = vmul.f32 %v3732_v18, %v4611_v10  ;;  %v4630_v20 = vld [vmem:[%s5172_s5] ss:$0 sm:$0xff]  ;;  %v3740_v18 = vld [vmem:[%s3924_s17 + $0x28] sm:$0xff] }
 0x129   : > { %v3521_v31 = vpop.permute.xlu1 %3520  ;;  %v1933_v45 = vsel %vm1904_vm5, %v1900_v21, %v3517_v43  ;;  %v1934_v28 = vsel %vm1904_vm5, %v1901_v58, %v3518_v19  ;;  %v2567_v42 = vadd.f32 %v4630_v20, %v2528_v16  ;;  %v3733_v43 = vld [vmem:[%s3924_s17 + $0x10] sm:$0xff] }
 0x12a   : > { %v3526_v38 = vpop.permute.xlu0 %3525  ;;  %v3523_v6 = vunpack.i.h.bf16 %v3521_v31  ;;  %v3522_v26 = vunpack.i.l.bf16 %v3521_v31  ;;  %v2568_v19 = vadd.f32 %v4630_v20, %v2529_v17  ;;  %v3735_v58 = vld [vmem:[#allocation2 + $0xb0] sm:$0xff]  ;;  %v4693_v17 = vadd.f32 %v4630_v20, %v2532_v53 }
 0x12b   : > { %v3528_v50 = vunpack.i.h.bf16 %v3526_v38  ;;  %v3527_v11 = vunpack.i.l.bf16 %v3526_v38  ;;  %v2530_v38 = vmul.f32 %v3733_v43, %v4611_v10  ;;  %v2599_v49 = vmax.f32 %v2567_v42, 0.0  ;;  %v3741_v42 = vld [vmem:[%s3924_s17 + $0x30] sm:$0xff] }
 0x12c   : > { %v1950_v57 = vsel %vm1937_vm6, %v1917_v55, %v3522_v26  ;;  %v1951_v52 = vsel %vm1937_vm6, %v1918_v56, %v3523_v6  ;;  %v2600_v25 = vmax.f32 %v2568_v19, 0.0  ;;  %v1788_v33 = vsel %vm499_vm0, %v3735_v58, %v3203_v48  ;;  %v3736_v55 = vld [vmem:[#allocation2 + $0xa8] sm:$0xff] }
 0x12d   : > { %v3531_v35 = vpop.permute.xlu1 %3530  ;;  %v1966_v60 = vsel %vm1937_vm6, %v1933_v45, %v3527_v11  ;;  %v1967_v24 = vsel %vm1937_vm6, %v1934_v28, %v3528_v50  ;;  %v3734_v50 = vld [vmem:[%s3924_s17 + $0x18] sm:$0xff]  ;;  %v4655_v21 = vadd.f32 %v4630_v20, %v2530_v38  ;;  %v3737_v56 = vld [vmem:[#allocation2 + $0xc8] sm:$0xff]  ;;  %v3738_v45 = vld [vmem:[#allocation2 + $0xc0] sm:$0xff]  ;;  %v4697_v19 = vmul.f32 %v3741_v42, %v4611_v10 }
 0x12e   : > { %v3533_v1 = vunpack.i.h.bf16 %v3531_v35  ;;  %v3532_v41 = vunpack.i.l.bf16 %v3531_v35  ;;  %v3536_v9 = vpop.permute.xlu0 %3535  ;;  %v2531_v11 = vmul.f32 %v3734_v50, %v4611_v10  ;;  %v4660_v35 = vsel %vm499_vm0, %v3737_v56, %v3208_v4 }
 0x12f   : > { %v3538_v15 = vunpack.i.h.bf16 %v3536_v9  ;;  %v3537_v59 = vunpack.i.l.bf16 %v3536_v9  ;;  %v3478_v9 = vunpack.i.h.bf16 %v4570_v22 }
 0x130   : > { %v1983_v51 = vsel %vm1970_vm7, %v1950_v57, %v3532_v41  ;;  %v1984_v61 = vsel %vm1970_vm7, %v1951_v52, %v3533_v1  ;;  %v3212_v1 = vunpack.i.l.bf16 %v4266_v36  ;;  %v3218_v41 = vunpack.i.h.bf16 %v4268_v39 }
 0x131   : > { %v4617_v54 = vpop.permute.xlu1 %971  ;;  %v2015_v29 = vpack.c.bf16 %v1984_v61, %v1983_v51  ;;  %v1999_v47 = vsel %vm1970_vm7, %v1966_v60, %v3537_v59  ;;  %v2000_v7 = vsel %vm1970_vm7, %v1967_v24, %v3538_v15  ;;  %v4672_v57 = vsel %vm499_vm0, %v4362_v62, %v3213_v46  ;;  %v618_v15 = vld [vmem:[#allocation2 + $0x168] sm:$0xff]  ;;  %v619_v51 = vld [vmem:[#allocation2 + $0x170] sm:$0xff] }
 0x132   : > { %v4621_v12 = vpop.permute.xlu0 %3540  ;;  %v2031_v23 = vpack.c.bf16 %v2000_v7, %v1999_v47  ;;  %v3217_v52 = vunpack.i.l.bf16 %v4268_v39  ;;  %v2020_v24 = vpack.c.bf16 %v4439_v27, %v4437_v13  ;;  %v4682_v62 = vadd.f32 %v4630_v20, %v2531_v11 }
 0x133   : > { %2236 = vmatmul.mubr.bf16.gmra.mrb[24].mxu0 %v2015_v29  ;;  %v3543_v59 = vunpack.i.h.bf16 %v4621_v12  ;;  %v3542_v22 = vunpack.i.l.bf16 %v4621_v12  ;;  %v4679_v29 = vpack.c.bf16 %v2600_v25, %v2599_v49  ;;  %v2601_v47 = vmax.f32 %v4655_v21, 0.0 }
 0x134   : > { %2300 = vmatmul.mubr.bf16.gmra.mrb[8].mxu1 %v2031_v23  ;;  %3045 = vmatprep.mubr.msk.bf16.mxu0 %vm499_vm0, %v2018_v32  ;;  %v3207_v32 = vunpack.i.l.bf16 %v4262_v34  ;;  %v1787_v34 = vsel %vm499_vm0, %v3736_v55, %v3202_v3  ;;  %v1803_v16 = vsel %vm499_vm0, %v618_v15, %v3478_v9  ;;  %v2533_v12 = vmul.f32 %v3740_v18, %v4611_v10 }
 0x135   : > { %v4636_v31 = vpop.permute.xlu1 %3545  ;;  %3053 = vmatprep.mubr.msk.bf16.mxu1 %vm499_vm0, %v2034_v63  ;;  %v1804_v43 = vsel %vm499_vm0, %v619_v51, %v4617_v54  ;;  %v1820_v3 = vsel %vm1805_vm2, %v1787_v34, %v3542_v22 }
 0x136   : > { %v4639_v0 = vpop.permute.xlu0 %3550  ;;  %v4663_v28 = vsel %vm499_vm0, %v3738_v45, %v3207_v32  ;;  %v3548_v7 = vunpack.i.h.bf16 %v4636_v31  ;;  %v3547_v63 = vunpack.i.l.bf16 %v4636_v31  ;;  %v1821_v31 = vsel %vm1805_vm2, %v1788_v33, %v3543_v59 }
 0x137   : > { %v3553_v23 = vunpack.i.h.bf16 %v4639_v0  ;;  %v3552_v40 = vunpack.i.l.bf16 %v4639_v0 }
 0x138   : > { %v1837_v25 = vsel %vm1805_vm2, %v1804_v43, %v3548_v7  ;;  %v1836_v50 = vsel %vm1805_vm2, %v1803_v16, %v3547_v63 }
 0x139   : > { %v4650_v6 = vpop.permute.xlu1 %3555  ;;  %v1853_v11 = vsel %vm1838_vm3, %v1820_v3, %v3552_v40  ;;  %v1854_v54 = vsel %vm1838_vm3, %v1821_v31, %v3553_v23 }
 0x13a   : > { %v3561_v26 = vpop.permute.xlu0 %3560  ;;  %v3557_v4 = vunpack.i.l.bf16 %v4650_v6  ;;  %v3558_v58 = vunpack.i.h.bf16 %v4650_v6 }
 0x13b   : > { %v3563_v38 = vunpack.i.h.bf16 %v3561_v26  ;;  %v3562_v48 = vunpack.i.l.bf16 %v3561_v26 }
 0x13c   : > { %v1869_v53 = vsel %vm1838_vm3, %v1836_v50, %v3557_v4  ;;  %v1870_v23 = vsel %vm1838_vm3, %v1837_v25, %v3558_v58  ;;  %v2572_v58 = vadd.f32 %v4630_v20, %v2533_v12 }
 0x13d   : > { %v3566_v60 = vpop.permute.xlu1 %3565  ;;  %v1886_v34 = vsel %vm1871_vm4, %v1853_v11, %v3562_v48  ;;  %v1887_v56 = vsel %vm1871_vm4, %v1854_v54, %v3563_v38 }
 0x13e   : > { %v3571_v61 = vpop.permute.xlu0 %3570  ;;  %v3567_v33 = vunpack.i.l.bf16 %v3566_v60  ;;  %v3568_v45 = vunpack.i.h.bf16 %v3566_v60 }
 0x13f   : > { %v3573_v32 = vunpack.i.h.bf16 %v3571_v61  ;;  %v3572_v46 = vunpack.i.l.bf16 %v3571_v61 }
 0x140   : > { %v1902_v40 = vsel %vm1871_vm4, %v1869_v53, %v3567_v33  ;;  %v1903_v18 = vsel %vm1871_vm4, %v1870_v23, %v3568_v45  ;;  %v3742_v33 = vld [vmem:[%s3924_s17 + $0x38] sm:$0xff]  ;;  %v2603_v45 = vmax.f32 %v4693_v17, 0.0 }
 0x141   : > { %v3576_v0 = vpop.permute.xlu1 %3575  ;;  %v1919_v15 = vsel %vm1904_vm5, %v1886_v34, %v3572_v46  ;;  %v1920_v59 = vsel %vm1904_vm5, %v1887_v56, %v3573_v32  ;;  %v2602_v56 = vmax.f32 %v4682_v62, 0.0 }
 0x142   : > { %v3581_v49 = vpop.permute.xlu0 %3580  ;;  %v3577_v9 = vunpack.i.l.bf16 %v3576_v0  ;;  %v3578_v51 = vunpack.i.h.bf16 %v3576_v0 }
 0x143   : > { %v3583_v26 = vunpack.i.h.bf16 %v3581_v49  ;;  %v3582_v55 = vunpack.i.l.bf16 %v3581_v49  ;;  %v2632_v23 = vpack.c.bf16 %v2602_v56, %v2601_v47 }
 0x144   : > { %v1935_v42 = vsel %vm1904_vm5, %v1902_v40, %v3577_v9  ;;  %v1936_v48 = vsel %vm1904_vm5, %v1903_v18, %v3578_v51  ;;  %v3743_v9 = vld [vmem:[%s3924_s17 + $0x40] sm:$0xff]  ;;  %v3744_v51 = vld [vmem:[%s3924_s17 + $0x48] sm:$0xff] }
 0x145   : > { %v3586_v37 = vpop.permute.xlu1 %3585  ;;  %v1952_v60 = vsel %vm1937_vm6, %v1919_v15, %v3582_v55  ;;  %v1953_v16 = vsel %vm1937_vm6, %v1920_v59, %v3583_v26  ;;  %v2535_v26 = vmul.f32 %v3742_v33, %v4611_v10  ;;  %v2573_v59 = vadd.f32 %v4630_v20, %v4697_v19 }
 0x146   : > { %v3591_v22 = vpop.permute.xlu0 %3590  ;;  %v3588_v61 = vunpack.i.h.bf16 %v3586_v37  ;;  %v3587_v6 = vunpack.i.l.bf16 %v3586_v37  ;;  %v2536_v37 = vmul.f32 %v3743_v9, %v4611_v10  ;;  %v2604_v19 = vmax.f32 %v2572_v58, 0.0 }
 0x147   : > { %v3593_v7 = vunpack.i.h.bf16 %v3591_v22  ;;  %v3592_v63 = vunpack.i.l.bf16 %v3591_v22  ;;  %v2537_v22 = vmul.f32 %v3744_v51, %v4611_v10  ;;  %v2605_v36 = vmax.f32 %v2573_v59, 0.0  ;;  %v3750_v59 = vld [vmem:[%s3924_s17 + $0x70] sm:$0xff] }
 0x148   : > { %v1968_v46 = vsel %vm1937_vm6, %v1935_v42, %v3587_v6  ;;  %v1969_v49 = vsel %vm1937_vm6, %v1936_v48, %v3588_v61  ;;  %v2574_v6 = vadd.f32 %v4630_v20, %v2535_v26  ;;  %v2022_v48 = vpack.c.bf16 %v4455_v8, %v4453_v5 }
 0x149   : > { %v3596_v43 = vpop.permute.xlu1 %3595  ;;  %v1985_v31 = vsel %vm1970_vm7, %v1952_v60, %v3592_v63  ;;  %v1986_v38 = vsel %vm1970_vm7, %v1953_v16, %v3593_v7  ;;  %v3745_v7 = vld [vmem:[#allocation2 + $0xd8] sm:$0xff]  ;;  %v2542_v51 = vmul.f32 %v3750_v59, %v4611_v10 }
 0x14a   : > { %v3598_v0 = vunpack.i.h.bf16 %v3596_v43  ;;  %v3597_v3 = vunpack.i.l.bf16 %v3596_v43  ;;  %v3601_v4 = vpop.permute.xlu0 %3600  ;;  %v2017_v32 = vpack.c.bf16 %v1986_v38, %v1985_v31  ;;  %v2633_v43 = vpack.c.bf16 %v2604_v19, %v2603_v45  ;;  %v3749_v45 = vld [vmem:[%s3924_s17 + $0x68] sm:$0xff]  ;;  %v3756_v59 = vld [vmem:[%s3924_s17 + $0x98] sm:$0xff] }
 0x14b   : > { %v3603_v25 = vunpack.i.h.bf16 %v3601_v4  ;;  %v3602_v50 = vunpack.i.l.bf16 %v3601_v4  ;;  %v2606_v31 = vmax.f32 %v2574_v6, 0.0  ;;  %v2541_v9 = vmul.f32 %v3749_v45, %v4611_v10 }
 0x14c   : > { %2244 = vmatmul.mubr.bf16.gmra.mrb[28].mxu0 %v2017_v32  ;;  %v2001_v11 = vsel %vm1970_vm7, %v1968_v46, %v3597_v3  ;;  %v2002_v54 = vsel %vm1970_vm7, %v1969_v49, %v3598_v0  ;;  %v3746_v3 = vld [vmem:[%s3924_s17 + $0x50] sm:$0xff]  ;;  %v3747_v32 = vld [vmem:[%s3924_s17 + $0x58] sm:$0xff] }
 0x14d   : > { %v3606_v55 = vpop.permute.xlu1 %3605  ;;  %v2033_v34 = vpack.c.bf16 %v2002_v54, %v2001_v11  ;;  %3046 = vmatprep.mubr.msk.bf16.mxu0 %vm499_vm0, %v2020_v24  ;;  %v1822_v13 = vsel %vm1805_vm2, %v4663_v28, %v3602_v50  ;;  %v1823_v27 = vsel %vm1805_vm2, %v4660_v35, %v3603_v25  ;;  %v1791_v28 = vsel %vm499_vm0, %v3745_v7, %v3212_v1  ;;  %v3748_v54 = vld [vmem:[%s3924_s17 + $0x60] sm:$0xff] }
 0x14e   : > { %v3608_v53 = vunpack.i.h.bf16 %v3606_v55  ;;  %v3607_v15 = vunpack.i.l.bf16 %v3606_v55  ;;  %v3611_v12 = vpop.permute.xlu0 %3610  ;;  %v4758_v35 = vsel %vm499_vm0, %v4412_v2, %v3218_v41  ;;  %v2576_v1 = vadd.f32 %v4630_v20, %v2537_v22 }
 0x14f   : > { %v3613_v24 = vunpack.i.h.bf16 %v3611_v12  ;;  %v3612_v62 = vunpack.i.l.bf16 %v3611_v12  ;;  %2308 = vmatmul.mubr.bf16.gmra.mrb[12].mxu1 %v2033_v34  ;;  %v2538_v4 = vmul.f32 %v3746_v3, %v4611_v10  ;;  %v2539_v46 = vmul.f32 %v3747_v32, %v4611_v10 }
 0x150   : > { %v1855_v17 = vsel %vm1838_vm3, %v1822_v13, %v3607_v15  ;;  %v1856_v61 = vsel %vm1838_vm3, %v1823_v27, %v3608_v53  ;;  %3097 = vmatprep.mubr.msk.bf16.mxu1 %vm499_vm0, %v4679_v29  ;;  %v2575_v29 = vadd.f32 %v4630_v20, %v2536_v37  ;;  %v2608_v11 = vmax.f32 %v2576_v1, 0.0 }
 0x151   : > { %v3616_v63 = vpop.permute.xlu1 %3615  ;;  %v1888_v18 = vsel %vm1871_vm4, %v1855_v17, %v3612_v62  ;;  %v1889_v42 = vsel %vm1871_vm4, %v1856_v61, %v3613_v24  ;;  %v2540_v58 = vmul.f32 %v3748_v54, %v4611_v10  ;;  %v2634_v56 = vpack.c.bf16 %v2606_v31, %v2605_v36  ;;  %v3752_v36 = vld [vmem:[%s3924_s17 + $0x80] sm:$0xff] }
 0x152   : > { %v3618_v40 = vunpack.i.h.bf16 %v3616_v63  ;;  %v3617_v60 = vunpack.i.l.bf16 %v3616_v63  ;;  %v3621_v16 = vpop.permute.xlu0 %3620  ;;  %v2607_v0 = vmax.f32 %v2575_v29, 0.0  ;;  %v2577_v15 = vadd.f32 %v4630_v20, %v2538_v4  ;;  %v3751_v29 = vld [vmem:[%s3924_s17 + $0x78] sm:$0xff] }
 0x153   : > { %v3623_v2 = vunpack.i.h.bf16 %v3621_v16  ;;  %v3622_v41 = vunpack.i.l.bf16 %v3621_v16  ;;  %v2578_v12 = vadd.f32 %v4630_v20, %v2539_v46  ;;  %v2579_v62 = vadd.f32 %v4630_v20, %v2540_v58  ;;  %v3754_v46 = vld [vmem:[#allocation2 + $0xf0] sm:$0xff] }
 0x154   : > { %v1921_v21 = vsel %vm1904_vm5, %v1888_v18, %v3617_v60  ;;  %v1922_v47 = vsel %vm1904_vm5, %v1889_v42, %v3618_v40  ;;  %v2635_v24 = vpack.c.bf16 %v2608_v11, %v2607_v0  ;;  %v2543_v40 = vmul.f32 %v3751_v29, %v4611_v10  ;;  %v3758_v29 = vld [vmem:[%s3924_s17 + $0xa8] sm:$0xff] }
 0x155   : > { %v3626_v38 = vpop.permute.xlu1 %3625  ;;  %v1954_v33 = vsel %vm1937_vm6, %v1921_v21, %v3622_v41  ;;  %v1955_v5 = vsel %vm1937_vm6, %v1922_v47, %v3623_v2  ;;  %v2609_v16 = vmax.f32 %v2577_v15, 0.0  ;;  %v2544_v1 = vmul.f32 %v3752_v36, %v4611_v10  ;;  %v3753_v21 = vld [vmem:[%s3924_s17 + $0x88] sm:$0xff]  ;;  %v3755_v15 = vld [vmem:[%s3924_s17 + $0x90] sm:$0xff] }
 0x156   : > { %v3628_v49 = vunpack.i.h.bf16 %v3626_v38  ;;  %v3627_v25 = vunpack.i.l.bf16 %v3626_v38  ;;  %v3631_v50 = vpop.permute.xlu0 %3630  ;;  %v2611_v41 = vmax.f32 %v2579_v62, 0.0  ;;  %v2545_v47 = vmul.f32 %v3753_v21, %v4611_v10  ;;  %v3757_v62 = vld [vmem:[%s3924_s17 + $0xa0] sm:$0xff] }
 0x157   : > { %v3633_v8 = vunpack.i.h.bf16 %v3631_v50  ;;  %v3632_v26 = vunpack.i.l.bf16 %v3631_v50  ;;  %3098 = vmatmul.mubr.msk.bf16.vlgmr.msra.gmra.mrb[16].mxu1 %vm499_vm0, %v2632_v23  ;;  %v2580_v23 = vadd.f32 %v4630_v20, %v2541_v9  ;;  %v2582_v32 = vadd.f32 %v4630_v20, %v2543_v40 }
 0x158   : > { %v1987_v55 = vsel %vm1970_vm7, %v1954_v33, %v3627_v25  ;;  %v1988_v34 = vsel %vm1970_vm7, %v1955_v5, %v3628_v49  ;;  %3101 = vmatprep.mubr.msk.bf16.mxu1 %vm499_vm0, %v2633_v43  ;;  %v1793_v49 = vsel %vm499_vm0, %v3754_v46, %v3217_v52  ;;  %v2024_v50 = vpack.c.bf16 %v4519_v14, %v4517_v30 }
 0x159   : > { %v3636_v37 = vpop.permute.xlu1 %3635  ;;  %v2019_v53 = vpack.c.bf16 %v1988_v34, %v1987_v55  ;;  %v1825_v17 = vsel %vm1805_vm2, %v4672_v57, %v3633_v8  ;;  %v1824_v61 = vsel %vm1805_vm2, %v1791_v28, %v3632_v26  ;;  %v2610_v57 = vmax.f32 %v2578_v12, 0.0 }
 0x15a   : > { %v3638_v22 = vunpack.i.h.bf16 %v3636_v37  ;;  %v3637_v13 = vunpack.i.l.bf16 %v3636_v37  ;;  %v3641_v27 = vpop.permute.xlu0 %3640  ;;  %v4799_v28 = vadd.f32 %v4630_v20, %v2542_v51  ;;  %v2612_v4 = vmax.f32 %v2580_v23, 0.0 }
 0x15b   : > { %v3643_v19 = vunpack.i.h.bf16 %v3641_v27  ;;  %v3642_v6 = vunpack.i.l.bf16 %v3641_v27  ;;  %2252 = vmatmul.mubr.bf16.gmra.mrb[32].mxu0 %v2019_v53  ;;  %v2636_v11 = vpack.c.bf16 %v2610_v57, %v2609_v16  ;;  %v2583_v54 = vadd.f32 %v4630_v20, %v2544_v1 }
 0x15c   : > { %v1857_v7 = vsel %vm1838_vm3, %v1824_v61, %v3637_v13  ;;  %v1858_v63 = vsel %vm1838_vm3, %v1825_v17, %v3638_v22  ;;  %3047 = vmatprep.mubr.msk.bf16.mxu0 %vm499_vm0, %v2022_v48  ;;  %v2613_v8 = vmax.f32 %v4799_v28, 0.0  ;;  %v2584_v26 = vadd.f32 %v4630_v20, %v2545_v47  ;;  %v867_v47 = vld [vmem:[#allocation2 + $0x13a] sm:$0xff] }
 0x15d   : > { %v3646_v60 = vpop.permute.xlu1 %3645  ;;  %v1890_v43 = vsel %vm1871_vm4, %v1857_v7, %v3642_v6  ;;  %v1891_v31 = vsel %vm1871_vm4, %v1858_v63, %v3643_v19  ;;  %v2614_v45 = vmax.f32 %v2582_v32, 0.0  ;;  %v2615_v53 = vmax.f32 %v2583_v54, 0.0  ;;  %v3759_v32 = vld [vmem:[%s3924_s17 + $0xb0] sm:$0xff] }
 0x15e   : > { %v3648_v18 = vunpack.i.h.bf16 %v3646_v60  ;;  %v3647_v42 = vunpack.i.l.bf16 %v3646_v60  ;;  %v3651_v2 = vpop.permute.xlu0 %3650  ;;  %v2546_v12 = vmul.f32 %v3755_v15, %v4611_v10  ;;  %v2547_v51 = vmul.f32 %v3756_v59, %v4611_v10 }
 0x15f   : > { %v3653_v38 = vunpack.i.h.bf16 %v3651_v2  ;;  %v3652_v48 = vunpack.i.l.bf16 %v3651_v2  ;;  %3102 = vmatmul.mubr.msk.bf16.gmra.mrb[20].mxu1 %vm499_vm0, %v2634_v56  ;;  %v2637_v56 = vpack.c.bf16 %v2612_v4, %v2611_v41  ;;  %v2548_v17 = vmul.f32 %v3757_v62, %v4611_v10 }
 0x160   : > { %v1923_v0 = vsel %vm1904_vm5, %v1890_v43, %v3647_v42  ;;  %v1924_v3 = vsel %vm1904_vm5, %v1891_v31, %v3648_v18  ;;  %3105 = vmatprep.mubr.msk.bf16.mxu1 %vm499_vm0, %v2635_v24  ;;  %v2616_v24 = vmax.f32 %v2584_v26, 0.0  ;;  %v2549_v40 = vmul.f32 %v3758_v29, %v4611_v10  ;;  %v868_v43 = vld [vmem:[#allocation2 + $0x142] sm:$0xff] }
 0x161   : > { %v3656_v25 = vpop.permute.xlu1 %3655  ;;  %v1956_v39 = vsel %vm1937_vm6, %v1923_v0, %v3652_v48  ;;  %v1957_v52 = vsel %vm1937_vm6, %v1924_v3, %v3653_v38  ;;  %v2638_v16 = vpack.c.bf16 %v2614_v45, %v2613_v8  ;;  %v2586_v18 = vadd.f32 %v4630_v20, %v2547_v51  ;;  %v3762_v8 = vld [vmem:[%s3924_s17 + $0xc8] sm:$0xff] }
 0x162   : > { %v3658_v58 = vunpack.i.h.bf16 %v3656_v25  ;;  %v3657_v33 = vunpack.i.l.bf16 %v3656_v25  ;;  %v3661_v5 = vpop.permute.xlu0 %3660  ;;  %v2639_v1 = vpack.c.bf16 %v2616_v24, %v2615_v53  ;;  %v2587_v48 = vadd.f32 %v4630_v20, %v2548_v17  ;;  %v3764_v24 = vld [vmem:[#allocation2 + $0x110] sm:$0xff] }
 0x163   : > { %v3663_v55 = vunpack.i.h.bf16 %v3661_v5  ;;  %v3662_v34 = vunpack.i.l.bf16 %v3661_v5  ;;  %v2588_v0 = vadd.f32 %v4630_v20, %v2549_v40  ;;  %v3227_v3 = vunpack.i.l.bf16 %v4277_v44 }
 0x164   : > { %v1989_v30 = vsel %vm1970_vm7, %v1956_v39, %v3657_v33  ;;  %v1990_v14 = vsel %vm1970_vm7, %v1957_v52, %v3658_v58  ;;  %v2550_v46 = vmul.f32 %v3759_v32, %v4611_v10  ;;  %v2026_v5 = vpack.c.bf16 %v868_v43, %v867_v47 }
 0x165   : > { %v3666_v9 = vpop.permute.xlu1 %3665  ;;  %v2021_v37 = vpack.c.bf16 %v1990_v14, %v1989_v30  ;;  %v1826_v61 = vsel %vm1805_vm2, %v1793_v49, %v3662_v34  ;;  %v1827_v19 = vsel %vm1805_vm2, %v4758_v35, %v3663_v55  ;;  %v2585_v35 = vadd.f32 %v4630_v20, %v2546_v12  ;;  %v3760_v49 = vld [vmem:[%s3924_s17 + $0xb8] sm:$0xff]  ;;  %v3763_v12 = vld [vmem:[#allocation2 + $0x108] sm:$0xff] }
 0x166   : > { %v3668_v22 = vunpack.i.h.bf16 %v3666_v9  ;;  %v3667_v13 = vunpack.i.l.bf16 %v3666_v9  ;;  %v3671_v27 = vpop.permute.xlu0 %3670  ;;  %v2551_v25 = vmul.f32 %v3760_v49, %v4611_v10  ;;  %v2553_v26 = vmul.f32 %v3762_v8, %v4611_v10 }
 0x167   : > { %v3673_v6 = vunpack.i.h.bf16 %v3671_v27  ;;  %v3672_v7 = vunpack.i.l.bf16 %v3671_v27  ;;  %2260 = vmatmul.mubr.bf16.gmra.mrb[36].mxu0 %v2021_v37  ;;  %3106 = vmatmul.mubr.msk.bf16.gmra.mrb[24].mxu1 %vm499_vm0, %v2636_v11  ;;  %v2617_v52 = vmax.f32 %v2585_v35, 0.0  ;;  %v2618_v55 = vmax.f32 %v2586_v18, 0.0  ;;  %v3766_v18 = vld [vmem:[%s3924_s17 + $0xd8] sm:$0xff] }
 0x168   : > { %v1859_v63 = vsel %vm1838_vm3, %v1826_v61, %v3667_v13  ;;  %v1860_v23 = vsel %vm1838_vm3, %v1827_v19, %v3668_v22  ;;  %3048 = vmatprep.mubr.msk.bf16.mxu0 %vm499_vm0, %v2024_v50  ;;  %3109 = vmatprep.mubr.msk.bf16.mxu1 %vm499_vm0, %v2637_v56  ;;  %v3761_v50 = vld [vmem:[%s3924_s17 + $0xc0] sm:$0xff]  ;;  %v2619_v14 = vmax.f32 %v2587_v48, 0.0  ;;  %v2620_v56 = vmax.f32 %v2588_v0, 0.0  ;;  %v3768_v0 = vld [vmem:[%s3924_s17 + $0xe8] sm:$0xff] }
 0x169   : > { %v3676_v60 = vpop.permute.xlu1 %3675  ;;  %v1892_v42 = vsel %vm1871_vm4, %v1859_v63, %v3672_v7  ;;  %v1893_v2 = vsel %vm1871_vm4, %v1860_v23, %v3673_v6  ;;  %v2552_v11 = vmul.f32 %v3761_v50, %v4611_v10  ;;  %v2589_v37 = vadd.f32 %v4630_v20, %v2550_v46 }
 0x16a   : > { %v3678_v57 = vunpack.i.h.bf16 %v3676_v60  ;;  %v3677_v28 = vunpack.i.l.bf16 %v3676_v60  ;;  %v3681_v36 = vpop.permute.xlu0 %3680  ;;  %v2590_v53 = vadd.f32 %v4630_v20, %v2551_v25  ;;  %v1795_v59 = vsel %vm499_vm0, %v3763_v12, %v3227_v3 }
 0x16b   : > { %v3683_v41 = vunpack.i.h.bf16 %v3681_v36  ;;  %v3682_v21 = vunpack.i.l.bf16 %v3681_v36  ;;  %v2591_v15 = vadd.f32 %v4630_v20, %v2552_v11  ;;  %v2592_v27 = vadd.f32 %v4630_v20, %v2553_v26 }
 0x16c   : > { %v1925_v31 = vsel %vm1904_vm5, %v1892_v42, %v3677_v28  ;;  %v1926_v38 = vsel %vm1904_vm5, %v1893_v2, %v3678_v57  ;;  %v2640_v19 = vpack.c.bf16 %v2618_v55, %v2617_v52  ;;  %v2641_v63 = vpack.c.bf16 %v2620_v56, %v2619_v14 }
 0x16d   : > { %v3686_v4 = vpop.permute.xlu1 %3685  ;;  %v1958_v39 = vsel %vm1937_vm6, %v1925_v31, %v3682_v21  ;;  %v1959_v44 = vsel %vm1937_vm6, %v1926_v38, %v3683_v41  ;;  %v2621_v29 = vmax.f32 %v2589_v37, 0.0  ;;  %v2622_v40 = vmax.f32 %v2590_v53, 0.0  ;;  %v3767_v38 = vld [vmem:[%s3924_s17 + $0xe0] sm:$0xff]  ;;  %v3770_v37 = vld [vmem:[%s3924_s17 + $0xf8] sm:$0xff] }
 0x16e   : > { %v3688_v54 = vunpack.i.h.bf16 %v3686_v4  ;;  %v3687_v58 = vunpack.i.l.bf16 %v3686_v4  ;;  %v956_v33 = vpop.permute.xlu0 %955  ;;  %v2623_v60 = vmax.f32 %v2591_v15, 0.0  ;;  %v2555_v42 = vmul.f32 %v3766_v18, %v4611_v10 }
 0x16f   : > { %3110 = vmatmul.mubr.msk.bf16.gmra.mrb[28].mxu1 %vm499_vm0, %v2638_v16  ;;  %v1796_v62 = vsel %vm499_vm0, %v3764_v24, %v956_v33  ;;  %v3765_v16 = vld [vmem:[%s3924_s17 + $0xd0] sm:$0xff]  ;;  %v2556_v48 = vmul.f32 %v3767_v38, %v4611_v10  ;;  %v2557_v3 = vmul.f32 %v3768_v0, %v4611_v10  ;;  %v2642_v32 = vpack.c.bf16 %v2622_v40, %v2621_v29 }
 0x170   : > { %v1991_v34 = vsel %vm1970_vm7, %v1958_v39, %v3687_v58  ;;  %v1992_v30 = vsel %vm1970_vm7, %v1959_v44, %v3688_v54  ;;  %3113 = vmatprep.mubr.msk.bf16.mxu1 %vm499_vm0, %v2639_v1  ;;  %v2554_v35 = vmul.f32 %v3765_v16, %v4611_v10  ;;  %v2624_v1 = vmax.f32 %v2592_v27, 0.0 }
 0x171   : > { %v3691_v45 = vpop.permute.xlu1 %3690  ;;  %v2023_v9 = vpack.c.bf16 %v1992_v30, %v1991_v34  ;;  %v2594_v54 = vadd.f32 %v4630_v20, %v2555_v42  ;;  %v2595_v44 = vadd.f32 %v4630_v20, %v2556_v48  ;;  %v2596_v52 = vadd.f32 %v4630_v20, %v2557_v3 }
 0x172   : > { %v3693_v51 = vunpack.i.h.bf16 %v3691_v45  ;;  %v3692_v22 = vunpack.i.l.bf16 %v3691_v45  ;;  %v3696_v13 = vpop.permute.xlu0 %3695  ;;  %v2593_v46 = vadd.f32 %v4630_v20, %v2554_v35  ;;  %v2643_v11 = vpack.c.bf16 %v2624_v1, %v2623_v60  ;;  %v3769_v45 = vld [vmem:[%s3924_s17 + $0xf0] sm:$0xff] }
 0x173   : > { %v3698_v17 = vunpack.i.h.bf16 %v3696_v13  ;;  %v3697_v61 = vunpack.i.l.bf16 %v3696_v13  ;;  %2268 = vmatmul.mubr.bf16.gmra.mrb[40].mxu0 %v2023_v9  ;;  %v2626_v56 = vmax.f32 %v2594_v54, 0.0  ;;  %v2558_v9 = vmul.f32 %v3769_v45, %v4611_v10 }
 0x174   : > { %v1828_v6 = vsel %vm1805_vm2, %v1795_v59, %v3692_v22  ;;  %v1829_v7 = vsel %vm1805_vm2, %v1796_v62, %v3693_v51  ;;  %3049 = vmatprep.mubr.msk.bf16.mxu0 %vm499_vm0, %v2026_v5  ;;  %v2625_v14 = vmax.f32 %v2593_v46, 0.0  ;;  %v2559_v53 = vmul.f32 %v3770_v37, %v4611_v10 }
 0x175   : > { %v3701_v23 = vpop.permute.xlu1 %3700  ;;  %v1862_v2 = vsel %vm1838_vm3, %v1829_v7, %v3698_v17  ;;  %v1861_v41 = vsel %vm1838_vm3, %v1828_v6, %v3697_v61  ;;  %v2627_v15 = vmax.f32 %v2595_v44, 0.0  ;;  %v2628_v12 = vmax.f32 %v2596_v52, 0.0 }
 0x176   : > { %v3703_v57 = vunpack.i.h.bf16 %v3701_v23  ;;  %v3702_v28 = vunpack.i.l.bf16 %v3701_v23  ;;  %v3706_v36 = vpop.permute.xlu0 %3705  ;;  %v2644_v59 = vpack.c.bf16 %v2626_v56, %v2625_v14  ;;  %v2597_v51 = vadd.f32 %v4630_v20, %v2558_v9 }
 0x177   : > { %v3708_v21 = vunpack.i.h.bf16 %v3706_v36  ;;  %v3707_v47 = vunpack.i.l.bf16 %v3706_v36  ;;  %3114 = vmatmul.mubr.msk.bf16.gmra.mrb[32].mxu1 %vm499_vm0, %v2640_v19  ;;  %v2598_v22 = vadd.f32 %v4630_v20, %v2559_v53  ;;  %v2645_v13 = vpack.c.bf16 %v2628_v12, %v2627_v15 }
 0x178   : > { %v1894_v43 = vsel %vm1871_vm4, %v1861_v41, %v3702_v28  ;;  %v1895_v31 = vsel %vm1871_vm4, %v1862_v2, %v3703_v57  ;;  %3117 = vmatprep.mubr.msk.bf16.mxu1 %vm499_vm0, %v2641_v63  ;;  %v2629_v27 = vmax.f32 %v2597_v51, 0.0 }
 0x179   : > { %v3711_v4 = vpop.permute.xlu1 %3710  ;;  %v1927_v58 = vsel %vm1904_vm5, %v1894_v43, %v3707_v47  ;;  %v1928_v33 = vsel %vm1904_vm5, %v1895_v31, %v3708_v21  ;;  %v2630_v24 = vmax.f32 %v2598_v22, 0.0 }
 0x17a   : > { %v3713_v49 = vunpack.i.h.bf16 %v3711_v4  ;;  %v3712_v25 = vunpack.i.l.bf16 %v3711_v4  ;;  %v3716_v50 = vpop.permute.xlu0 %3715 }
 0x17b   : > { %v3718_v5 = vunpack.i.h.bf16 %v3716_v50  ;;  %v3717_v8 = vunpack.i.l.bf16 %v3716_v50  ;;  %v2646_v62 = vpack.c.bf16 %v2630_v24, %v2629_v27 }
 0x17c   : > { %v1960_v26 = vsel %vm1937_vm6, %v1927_v58, %v3712_v25  ;;  %v1961_v39 = vsel %vm1937_vm6, %v1928_v33, %v3713_v49 }
 0x17d   : > { %v1993_v55 = vsel %vm1970_vm7, %v1960_v26, %v3717_v8  ;;  %v1994_v34 = vsel %vm1970_vm7, %v1961_v39, %v3718_v5 }
 0x17e   : > { %v2025_v30 = vpack.c.bf16 %v1994_v34, %v1993_v55 }
 0x17f   : > { %3118 = vmatmul.mubr.msk.bf16.gmra.mrb[36].mxu1 %vm499_vm0, %v2642_v32 }
 0x180   : > { %2276 = vmatmul.mubr.bf16.gmra.mrb[44].mxu0 %v2025_v30  ;;  %3121 = vmatprep.mubr.msk.bf16.mxu1 %vm499_vm0, %v2643_v11 }
 0x187   : > { %3122 = vmatmul.mubr.msk.bf16.gmra.mrb[40].mxu1 %vm499_vm0, %v2644_v59 }
 0x188   : > { %3125 = vmatprep.mubr.msk.bf16.mxu1 %vm499_vm0, %v2645_v13 }
 0x18f   : > { %3126 = vmatmul.mubr.msk.bf16.gmra.mrb[44].mxu1 %vm499_vm0, %v2646_v62 }
 0x196   : > { %v2189_v10 = vpop.f32.mrb[0].mxu0 }
 0x197   : > { %2316 = vst.msk [vmem:[%s4911_s18] sm:$0xff] %vm499_vm0, %v2189_v10  ;;  %v2417_v20 = vmul.f32 %v2189_v10, %v2189_v10  ;;  %v2191_v17 = vpop.f32.mrb[1].mxu0  ;;  %v2348_v19 = vsel %vm499_vm0, %v2189_v10, 0.0 }
 0x198   : > { %v2192_v61 = vpop.f32.mrb[2].mxu0 }
 0x199   : > { %2317 = vst.msk [vmem:[%s4911_s18 + $0x8] sm:$0xff] %vm499_vm0, %v2192_v61  ;;  %v2349_v6 = vsel %vm499_vm0, %v2192_v61, 0.0  ;;  %v2418_v7 = vmul.f32 %v2192_v61, %v2192_v61  ;;  %v2194_v63 = vpop.f32.mrb[3].mxu0  ;;  %v2449_v29 = vsel %vm499_vm0, %v2417_v20, 0.0 }
 0x19a   : > { %v2350_v23 = vadd.f32 %v2349_v6, %v2348_v19 }
 0x19b   : > { %v2450_v40 = vsel %vm499_vm0, %v2418_v7, 0.0 }
 0x19c   : > { %v2451_v60 = vadd.f32 %v2450_v40, %v2449_v29 }
 0x1a2   : > { %v2197_v16 = vpop.f32.mrb[4].mxu0 }
 0x1a3   : > { %2318 = vst.msk [vmem:[%s4911_s18 + $0x10] sm:$0xff] %vm499_vm0, %v2197_v16  ;;  %v2351_v35 = vsel %vm499_vm0, %v2197_v16, 0.0  ;;  %v2419_v57 = vmul.f32 %v2197_v16, %v2197_v16  ;;  %v2199_v28 = vpop.f32.mrb[5].mxu0 }
 0x1a4   : > { %v2352_v36 = vadd.f32 %v2351_v35, %v2350_v23  ;;  %v2200_v1 = vpop.f32.mrb[6].mxu0 }
 0x1a5   : > { %v2452_v18 = vsel %vm499_vm0, %v2419_v57, 0.0  ;;  %2319 = vst.msk [vmem:[%s4911_s18 + $0x18] sm:$0xff] %vm499_vm0, %v2200_v1  ;;  %v2353_v42 = vsel %vm499_vm0, %v2200_v1, 0.0  ;;  %v2420_v2 = vmul.f32 %v2200_v1, %v2200_v1  ;;  %v2202_v41 = vpop.f32.mrb[7].mxu0 }
 0x1a6   : > { %v2453_v21 = vadd.f32 %v2452_v18, %v2451_v60  ;;  %v2354_v47 = vadd.f32 %v2353_v42, %v2352_v36 }
 0x1a7   : > { %v2454_v43 = vsel %vm499_vm0, %v2420_v2, 0.0 }
 0x1a8   : > { %v2455_v31 = vadd.f32 %v2454_v43, %v2453_v21 }
 0x1ae   : > { %v2205_v38 = vpop.f32.mrb[8].mxu0 }
 0x1af   : > { %2320 = vst.msk [vmem:[%s4911_s18 + $0x20] sm:$0xff] %vm499_vm0, %v2205_v38  ;;  %v2355_v48 = vsel %vm499_vm0, %v2205_v38, 0.0  ;;  %v2421_v0 = vmul.f32 %v2205_v38, %v2205_v38  ;;  %v2207_v3 = vpop.f32.mrb[9].mxu0 }
 0x1b0   : > { %v2356_v4 = vadd.f32 %v2355_v48, %v2354_v47  ;;  %v2208_v32 = vpop.f32.mrb[10].mxu0 }
 0x1b1   : > { %v2456_v46 = vsel %vm499_vm0, %v2421_v0, 0.0  ;;  %2321 = vst.msk [vmem:[%s4911_s18 + $0x28] sm:$0xff] %vm499_vm0, %v2208_v32  ;;  %v2357_v49 = vsel %vm499_vm0, %v2208_v32, 0.0  ;;  %v2422_v25 = vmul.f32 %v2208_v32, %v2208_v32  ;;  %v2210_v50 = vpop.f32.mrb[11].mxu0 }
 0x1b2   : > { %v2457_v11 = vadd.f32 %v2456_v46, %v2455_v31  ;;  %v2358_v54 = vadd.f32 %v2357_v49, %v2356_v4 }
 0x1b3   : > { %v2458_v58 = vsel %vm499_vm0, %v2422_v25, 0.0 }
 0x1b4   : > { %v2459_v33 = vadd.f32 %v2458_v58, %v2457_v11 }
 0x1ba   : > { %v2213_v5 = vpop.f32.mrb[12].mxu0 }
 0x1bb   : > { %2322 = vst.msk [vmem:[%s4911_s18 + $0x30] sm:$0xff] %vm499_vm0, %v2213_v5  ;;  %v2359_v8 = vsel %vm499_vm0, %v2213_v5, 0.0  ;;  %v2423_v26 = vmul.f32 %v2213_v5, %v2213_v5  ;;  %v2215_v39 = vpop.f32.mrb[13].mxu0 }
 0x1bc   : > { %v2360_v44 = vadd.f32 %v2359_v8, %v2358_v54  ;;  %v2216_v52 = vpop.f32.mrb[14].mxu0 }
 0x1bd   : > { %v2460_v55 = vsel %vm499_vm0, %v2423_v26, 0.0  ;;  %2323 = vst.msk [vmem:[%s4911_s18 + $0x38] sm:$0xff] %vm499_vm0, %v2216_v52  ;;  %v2361_v34 = vsel %vm499_vm0, %v2216_v52, 0.0  ;;  %v2424_v30 = vmul.f32 %v2216_v52, %v2216_v52  ;;  %v2218_v14 = vpop.f32.mrb[15].mxu0 }
 0x1be   : > { %v2461_v56 = vadd.f32 %v2460_v55, %v2459_v33  ;;  %v2362_v45 = vadd.f32 %v2361_v34, %v2360_v44 }
 0x1bf   : > { %v2462_v9 = vsel %vm499_vm0, %v2424_v30, 0.0 }
 0x1c0   : > { %v2463_v37 = vadd.f32 %v2462_v9, %v2461_v56 }
 0x1d2   : > { %v2221_v53 = vpop.f32.mrb[16].mxu0 }
 0x1d3   : > { %2324 = vst.msk [vmem:[%s4911_s18 + $0x40] sm:$0xff] %vm499_vm0, %v2221_v53  ;;  %v2363_v15 = vsel %vm499_vm0, %v2221_v53, 0.0  ;;  %v2425_v12 = vmul.f32 %v2221_v53, %v2221_v53  ;;  %v4948_v59 = vpop.f32.mrb[0].mxu1  ;;  %v2223_v51 = vpop.f32.mrb[17].mxu0 }
 0x1d4   : > { %v2364_v22 = vadd.f32 %v2363_v15, %v2362_v45  ;;  %2340 = vst.msk [vmem:[%s4911_s18 + $0xc0] sm:$0xff] %vm499_vm0, %v4948_v59  ;;  %v2287_v13 = vpop.f32.mrb[1].mxu1  ;;  %v2224_v27 = vpop.f32.mrb[18].mxu0 }
 0x1d5   : > { %v2464_v24 = vsel %vm499_vm0, %v2425_v12, 0.0  ;;  %2325 = vst.msk [vmem:[%s4911_s18 + $0x48] sm:$0xff] %vm499_vm0, %v2224_v27  ;;  %v2365_v62 = vsel %vm499_vm0, %v2224_v27, 0.0  ;;  %v2426_v10 = vmul.f32 %v2224_v27, %v2224_v27  ;;  %v4957_v20 = vpop.f32.mrb[2].mxu1  ;;  %v2226_v17 = vpop.f32.mrb[19].mxu0 }
 0x1d6   : > { %v2465_v61 = vadd.f32 %v2464_v24, %v2463_v37  ;;  %v2366_v19 = vadd.f32 %v2365_v62, %v2364_v22  ;;  %2341 = vst.msk [vmem:[%s4911_s18 + $0xc8] sm:$0xff] %vm499_vm0, %v4957_v20  ;;  %v2290_v6 = vpop.f32.mrb[3].mxu1 }
 0x1d7   : > { %v2466_v7 = vsel %vm499_vm0, %v2426_v10, 0.0 }
 0x1d8   : > { %v2467_v63 = vadd.f32 %v2466_v7, %v2465_v61 }
 0x1eb   : > { %v2229_v23 = vpop.f32.mrb[20].mxu0 }
 0x1ec   : > { %2326 = vst.msk [vmem:[%s4911_s18 + $0x50] sm:$0xff] %vm499_vm0, %v2229_v23  ;;  %v2367_v29 = vsel %vm499_vm0, %v2229_v23, 0.0  ;;  %v2427_v40 = vmul.f32 %v2229_v23, %v2229_v23  ;;  %v2231_v60 = vpop.f32.mrb[21].mxu0 }
 0x1ed   : > { %v2368_v16 = vadd.f32 %v2367_v29, %v2366_v19  ;;  %v2232_v35 = vpop.f32.mrb[22].mxu0 }
 0x1ee   : > { %v2468_v57 = vsel %vm499_vm0, %v2427_v40, 0.0  ;;  %2327 = vst.msk [vmem:[%s4911_s18 + $0x58] sm:$0xff] %vm499_vm0, %v2232_v35  ;;  %v2369_v28 = vsel %vm499_vm0, %v2232_v35, 0.0  ;;  %v2428_v36 = vmul.f32 %v2232_v35, %v2232_v35  ;;  %v2234_v1 = vpop.f32.mrb[23].mxu0  ;;  %v4970_v18 = vpop.f32.mrb[4].mxu1 }
 0x1ef   : > { %v2469_v42 = vadd.f32 %v2468_v57, %v2467_v63  ;;  %v2370_v2 = vadd.f32 %v2369_v28, %v2368_v16  ;;  %2342 = vst.msk [vmem:[%s4911_s18 + $0xd0] sm:$0xff] %vm499_vm0, %v4970_v18  ;;  %v2295_v41 = vpop.f32.mrb[5].mxu1 }
 0x1f0   : > { %v2470_v21 = vsel %vm499_vm0, %v2428_v36, 0.0  ;;  %v4976_v47 = vpop.f32.mrb[6].mxu1 }
 0x1f1   : > { %v2471_v43 = vadd.f32 %v2470_v21, %v2469_v42  ;;  %2343 = vst.msk [vmem:[%s4911_s18 + $0xd8] sm:$0xff] %vm499_vm0, %v4976_v47  ;;  %v2298_v31 = vpop.f32.mrb[7].mxu1 }
 0x206   : > { %v2237_v38 = vpop.f32.mrb[24].mxu0 }
 0x207   : > { %2328 = vst.msk [vmem:[%s4911_s18 + $0x60] sm:$0xff] %vm499_vm0, %v2237_v38  ;;  %v2371_v48 = vsel %vm499_vm0, %v2237_v38, 0.0  ;;  %v2429_v0 = vmul.f32 %v2237_v38, %v2237_v38  ;;  %v4984_v3 = vpop.f32.mrb[8].mxu1  ;;  %v2239_v4 = vpop.f32.mrb[25].mxu0 }
 0x208   : > { %v2372_v32 = vadd.f32 %v2371_v48, %v2370_v2  ;;  %2344 = vst.msk [vmem:[%s4911_s18 + $0xe0] sm:$0xff] %vm499_vm0, %v4984_v3  ;;  %v2303_v46 = vpop.f32.mrb[9].mxu1  ;;  %v2240_v49 = vpop.f32.mrb[26].mxu0 }
 0x209   : > { %v2472_v25 = vsel %vm499_vm0, %v2429_v0, 0.0  ;;  %2329 = vst.msk [vmem:[%s4911_s18 + $0x68] sm:$0xff] %vm499_vm0, %v2240_v49  ;;  %v2373_v50 = vsel %vm499_vm0, %v2240_v49, 0.0  ;;  %v2430_v11 = vmul.f32 %v2240_v49, %v2240_v49  ;;  %v4993_v54 = vpop.f32.mrb[10].mxu1  ;;  %v2242_v58 = vpop.f32.mrb[27].mxu0 }
 0x20a   : > { %v2473_v33 = vadd.f32 %v2472_v25, %v2471_v43  ;;  %v2374_v5 = vadd.f32 %v2373_v50, %v2372_v32  ;;  %2345 = vst.msk [vmem:[%s4911_s18 + $0xe8] sm:$0xff] %vm499_vm0, %v4993_v54  ;;  %v2306_v8 = vpop.f32.mrb[11].mxu1 }
 0x20b   : > { %v2474_v26 = vsel %vm499_vm0, %v2430_v11, 0.0 }
 0x20c   : > { %v2475_v39 = vadd.f32 %v2474_v26, %v2473_v33 }
 0x21f   : > { %v2245_v44 = vpop.f32.mrb[28].mxu0 }
 0x220   : > { %2330 = vst.msk [vmem:[%s4911_s18 + $0x70] sm:$0xff] %vm499_vm0, %v2245_v44  ;;  %v2375_v52 = vsel %vm499_vm0, %v2245_v44, 0.0  ;;  %v2431_v55 = vmul.f32 %v2245_v44, %v2245_v44  ;;  %v2247_v34 = vpop.f32.mrb[29].mxu0 }
 0x221   : > { %v2376_v30 = vadd.f32 %v2375_v52, %v2374_v5  ;;  %v2248_v14 = vpop.f32.mrb[30].mxu0 }
 0x222   : > { %v2476_v56 = vsel %vm499_vm0, %v2431_v55, 0.0  ;;  %2331 = vst.msk [vmem:[%s4911_s18 + $0x78] sm:$0xff] %vm499_vm0, %v2248_v14  ;;  %v2377_v45 = vsel %vm499_vm0, %v2248_v14, 0.0  ;;  %v2432_v9 = vmul.f32 %v2248_v14, %v2248_v14  ;;  %v2250_v37 = vpop.f32.mrb[31].mxu0  ;;  %v5006_v53 = vpop.f32.mrb[12].mxu1 }
 0x223   : > { %v2477_v15 = vadd.f32 %v2476_v56, %v2475_v39  ;;  %v2378_v12 = vadd.f32 %v2377_v45, %v2376_v30  ;;  %2346 = vst.msk [vmem:[%s4911_s18 + $0xf0] sm:$0xff] %vm499_vm0, %v5006_v53  ;;  %v2311_v51 = vpop.f32.mrb[13].mxu1 }
 0x224   : > { %v2478_v22 = vsel %vm499_vm0, %v2432_v9, 0.0  ;;  %v5012_v13 = vpop.f32.mrb[14].mxu1 }
 0x225   : > { %v2479_v27 = vadd.f32 %v2478_v22, %v2477_v15  ;;  %2347 = vst.msk [vmem:[%s4911_s18 + $0xf8] sm:$0xff] %vm499_vm0, %v5012_v13  ;;  %v2314_v24 = vpop.f32.mrb[15].mxu1 }
 0x22a   : > { %v3099_v62 = vpop.f32.mrb[16].mxu1 }
 0x22b   : > { %2866 = vst.msk [vmem:[%s5021_s22 + $0x10] sm:$0xff] %vm1805_vm2, %v3099_v62  ;;  %v2737_v10 = vpop.f32.mrb[17].mxu1 }
 0x22c   : > { %2864 = vst.msk [vmem:[%s5021_s22] sm:$0xff] %vm1805_vm2, %v2737_v10  ;;  %v3100_v17 = vpop.f32.mrb[18].mxu1 }
 0x22d   : > { %2867 = vst.msk [vmem:[%s5021_s22 + $0x18] sm:$0xff] %vm1805_vm2, %v3100_v17  ;;  %v2740_v61 = vpop.f32.mrb[19].mxu1 }
 0x22e   : > { %v2253_v19 = vpop.f32.mrb[32].mxu0  ;;  %2865 = vst.msk [vmem:[%s5021_s22 + $0x8] sm:$0xff] %vm1805_vm2, %v2740_v61 }
 0x22f   : > { %2332 = vst.msk [vmem:[%s4911_s18 + $0x80] sm:$0xff] %vm499_vm0, %v2253_v19  ;;  %v2379_v6 = vsel %vm499_vm0, %v2253_v19, 0.0  ;;  %v2433_v7 = vmul.f32 %v2253_v19, %v2253_v19  ;;  %v2255_v63 = vpop.f32.mrb[33].mxu0 }
 0x230   : > { %v2380_v23 = vadd.f32 %v2379_v6, %v2378_v12  ;;  %v2256_v29 = vpop.f32.mrb[34].mxu0 }
 0x231   : > { %v2480_v40 = vsel %vm499_vm0, %v2433_v7, 0.0  ;;  %2333 = vst.msk [vmem:[%s4911_s18 + $0x88] sm:$0xff] %vm499_vm0, %v2256_v29  ;;  %v2381_v60 = vsel %vm499_vm0, %v2256_v29, 0.0  ;;  %v2434_v16 = vmul.f32 %v2256_v29, %v2256_v29  ;;  %v2258_v35 = vpop.f32.mrb[35].mxu0 }
 0x232   : > { %v2481_v57 = vadd.f32 %v2480_v40, %v2479_v27  ;;  %v2382_v28 = vadd.f32 %v2381_v60, %v2380_v23  ;;  %v3103_v36 = vpop.f32.mrb[20].mxu1 }
 0x233   : > { %v2482_v1 = vsel %vm499_vm0, %v2434_v16, 0.0  ;;  %2870 = vst.msk [vmem:[%s5021_s22 + $0x30] sm:$0xff] %vm1805_vm2, %v3103_v36  ;;  %v2753_v42 = vpop.f32.mrb[21].mxu1  ;;  %v2441_v36 = vmul.f32 %v4948_v59, %v4948_v59 }
 0x234   : > { %v2483_v2 = vadd.f32 %v2482_v1, %v2481_v57  ;;  %2868 = vst.msk [vmem:[%s5021_s22 + $0x20] sm:$0xff] %vm1805_vm2, %v2753_v42  ;;  %v3104_v41 = vpop.f32.mrb[22].mxu1 }
 0x235   : > { %2871 = vst.msk [vmem:[%s5021_s22 + $0x38] sm:$0xff] %vm1805_vm2, %v3104_v41  ;;  %v2756_v21 = vpop.f32.mrb[23].mxu1 }
 0x236   : > { %2869 = vst.msk [vmem:[%s5021_s22 + $0x28] sm:$0xff] %vm1805_vm2, %v2756_v21 }
 0x23a   : > { %v2261_v43 = vpop.f32.mrb[36].mxu0  ;;  %v3107_v31 = vpop.f32.mrb[24].mxu1 }
 0x23b   : > { %2334 = vst.msk [vmem:[%s4911_s18 + $0x90] sm:$0xff] %vm499_vm0, %v2261_v43  ;;  %v2383_v38 = vsel %vm499_vm0, %v2261_v43, 0.0  ;;  %v2435_v48 = vmul.f32 %v2261_v43, %v2261_v43  ;;  %v2263_v0 = vpop.f32.mrb[37].mxu0  ;;  %v2769_v4 = vpop.f32.mrb[25].mxu1 }
 0x23c   : > { %2874 = vst.msk [vmem:[%s5021_s22 + $0x50] sm:$0xff] %vm1805_vm2, %v3107_v31  ;;  %v2384_v32 = vadd.f32 %v2383_v38, %v2382_v28  ;;  %v2264_v46 = vpop.f32.mrb[38].mxu0  ;;  %2872 = vst.msk [vmem:[%s5021_s22 + $0x40] sm:$0xff] %vm1805_vm2, %v2769_v4  ;;  %v3108_v49 = vpop.f32.mrb[26].mxu1  ;;  %v2395_v31 = vsel %vm499_vm0, %v4948_v59, 0.0  ;;  %v2442_v38 = vmul.f32 %v4957_v20, %v4957_v20 }
 0x23d   : > { %v2484_v25 = vsel %vm499_vm0, %v2435_v48, 0.0  ;;  %2335 = vst.msk [vmem:[%s4911_s18 + $0x98] sm:$0xff] %vm499_vm0, %v2264_v46  ;;  %v2385_v50 = vsel %vm499_vm0, %v2264_v46, 0.0  ;;  %v2436_v11 = vmul.f32 %v2264_v46, %v2264_v46  ;;  %v2266_v58 = vpop.f32.mrb[39].mxu0  ;;  %v2772_v33 = vpop.f32.mrb[27].mxu1  ;;  %v2397_v46 = vsel %vm499_vm0, %v4957_v20, 0.0 }
 0x23e   : > { %2875 = vst.msk [vmem:[%s5021_s22 + $0x58] sm:$0xff] %vm1805_vm2, %v3108_v49  ;;  %v2485_v5 = vadd.f32 %v2484_v25, %v2483_v2  ;;  %v2386_v8 = vadd.f32 %v2385_v50, %v2384_v32  ;;  %2873 = vst.msk [vmem:[%s5021_s22 + $0x48] sm:$0xff] %vm1805_vm2, %v2772_v33  ;;  %v2496_v32 = vsel %vm499_vm0, %v2441_v36, 0.0  ;;  %v2443_v49 = vmul.f32 %v4970_v18, %v4970_v18 }
 0x23f   : > { %v2486_v26 = vsel %vm499_vm0, %v2436_v11, 0.0  ;;  %v2498_v58 = vsel %vm499_vm0, %v2442_v38, 0.0  ;;  %v2399_v33 = vsel %vm499_vm0, %v4970_v18, 0.0  ;;  %v2445_v18 = vmul.f32 %v4984_v3, %v4984_v3 }
 0x240   : > { %v2487_v39 = vadd.f32 %v2486_v26, %v2485_v5  ;;  %v2444_v5 = vmul.f32 %v4976_v47, %v4976_v47 }
 0x242   : > { %v3111_v44 = vpop.f32.mrb[28].mxu1 }
 0x243   : > { %2878 = vst.msk [vmem:[%s5021_s22 + $0x70] sm:$0xff] %vm1805_vm2, %v3111_v44  ;;  %v2785_v52 = vpop.f32.mrb[29].mxu1  ;;  %v2500_v44 = vsel %vm499_vm0, %v2443_v49, 0.0 }
 0x244   : > { %2876 = vst.msk [vmem:[%s5021_s22 + $0x60] sm:$0xff] %vm1805_vm2, %v2785_v52  ;;  %v3112_v55 = vpop.f32.mrb[30].mxu1  ;;  %v2401_v52 = vsel %vm499_vm0, %v4976_v47, 0.0  ;;  %v2504_v47 = vsel %vm499_vm0, %v2445_v18, 0.0 }
 0x245   : > { %2879 = vst.msk [vmem:[%s5021_s22 + $0x78] sm:$0xff] %vm1805_vm2, %v3112_v55  ;;  %v2788_v34 = vpop.f32.mrb[31].mxu1 }
 0x246   : > { %v2269_v30 = vpop.f32.mrb[40].mxu0  ;;  %2877 = vst.msk [vmem:[%s5021_s22 + $0x68] sm:$0xff] %vm1805_vm2, %v2788_v34 }
 0x247   : > { %2336 = vst.msk [vmem:[%s4911_s18 + $0xa0] sm:$0xff] %vm499_vm0, %v2269_v30  ;;  %v2387_v14 = vsel %vm499_vm0, %v2269_v30, 0.0  ;;  %v2437_v56 = vmul.f32 %v2269_v30, %v2269_v30  ;;  %v2271_v45 = vpop.f32.mrb[41].mxu0  ;;  %v2502_v30 = vsel %vm499_vm0, %v2444_v5, 0.0 }
 0x248   : > { %v2388_v9 = vadd.f32 %v2387_v14, %v2386_v8  ;;  %v2272_v37 = vpop.f32.mrb[42].mxu0  ;;  %v2403_v14 = vsel %vm499_vm0, %v4984_v3, 0.0 }
 0x249   : > { %v2488_v15 = vsel %vm499_vm0, %v2437_v56, 0.0  ;;  %2337 = vst.msk [vmem:[%s4911_s18 + $0xa8] sm:$0xff] %vm499_vm0, %v2272_v37  ;;  %v2389_v12 = vsel %vm499_vm0, %v2272_v37, 0.0  ;;  %v2438_v51 = vmul.f32 %v2272_v37, %v2272_v37  ;;  %v2274_v22 = vpop.f32.mrb[43].mxu0  ;;  %v2446_v56 = vmul.f32 %v4993_v54, %v4993_v54 }
 0x24a   : > { %v2489_v27 = vadd.f32 %v2488_v15, %v2487_v39  ;;  %v2390_v24 = vadd.f32 %v2389_v12, %v2388_v9  ;;  %v3115_v62 = vpop.f32.mrb[32].mxu1  ;;  %v2405_v37 = vsel %vm499_vm0, %v4993_v54, 0.0  ;;  %v2447_v15 = vmul.f32 %v5006_v53, %v5006_v53 }
 0x24b   : > { %v2490_v10 = vsel %vm499_vm0, %v2438_v51, 0.0  ;;  %2882 = vst.msk [vmem:[%s5021_s22 + $0x90] sm:$0xff] %vm1805_vm2, %v3115_v62  ;;  %v2801_v17 = vpop.f32.mrb[33].mxu1  ;;  %v2448_v62 = vmul.f32 %v5012_v13, %v5012_v13 }
 0x24c   : > { %v2491_v61 = vadd.f32 %v2490_v10, %v2489_v27  ;;  %2880 = vst.msk [vmem:[%s5021_s22 + $0x80] sm:$0xff] %vm1805_vm2, %v2801_v17  ;;  %v3116_v19 = vpop.f32.mrb[34].mxu1  ;;  %v2506_v27 = vsel %vm499_vm0, %v2446_v56, 0.0 }
 0x24d   : > { %2883 = vst.msk [vmem:[%s5021_s22 + $0x98] sm:$0xff] %vm1805_vm2, %v3116_v19  ;;  %v2804_v6 = vpop.f32.mrb[35].mxu1  ;;  %v2508_v19 = vsel %vm499_vm0, %v2447_v15, 0.0 }
 0x24e   : > { %2881 = vst.msk [vmem:[%s5021_s22 + $0x88] sm:$0xff] %vm1805_vm2, %v2804_v6  ;;  %v2409_v6 = vsel %vm499_vm0, %v5012_v13, 0.0 }
 0x252   : > { %v3119_v7 = vpop.f32.mrb[36].mxu1 }
 0x253   : > { %v2277_v63 = vpop.f32.mrb[44].mxu0  ;;  %2886 = vst.msk [vmem:[%s5021_s22 + $0xb0] sm:$0xff] %vm1805_vm2, %v3119_v7  ;;  %v2817_v23 = vpop.f32.mrb[37].mxu1 }
 0x254   : > { %2338 = vst.msk [vmem:[%s4911_s18 + $0xb0] sm:$0xff] %vm499_vm0, %v2277_v63  ;;  %v2391_v29 = vsel %vm499_vm0, %v2277_v63, 0.0  ;;  %v2439_v40 = vmul.f32 %v2277_v63, %v2277_v63  ;;  %v2279_v60 = vpop.f32.mrb[45].mxu0  ;;  %v3120_v16 = vpop.f32.mrb[38].mxu1  ;;  %v2510_v63 = vsel %vm499_vm0, %v2448_v62, 0.0 }
 0x255   : > { %2884 = vst.msk [vmem:[%s5021_s22 + $0xa0] sm:$0xff] %vm1805_vm2, %v2817_v23  ;;  %v2392_v35 = vadd.f32 %v2391_v29, %v2390_v24  ;;  %v2280_v57 = vpop.f32.mrb[46].mxu0  ;;  %2887 = vst.msk [vmem:[%s5021_s22 + $0xb8] sm:$0xff] %vm1805_vm2, %v3120_v16  ;;  %v2820_v28 = vpop.f32.mrb[39].mxu1  ;;  %v2407_v24 = vsel %vm499_vm0, %v5006_v53, 0.0 }
 0x256   : > { %v2492_v1 = vsel %vm499_vm0, %v2439_v40, 0.0  ;;  %2339 = vst.msk [vmem:[%s4911_s18 + $0xb8] sm:$0xff] %vm499_vm0, %v2280_v57  ;;  %v2393_v42 = vsel %vm499_vm0, %v2280_v57, 0.0  ;;  %v2440_v2 = vmul.f32 %v2280_v57, %v2280_v57  ;;  %v2282_v41 = vpop.f32.mrb[47].mxu0 }
 0x257   : > { %2885 = vst.msk [vmem:[%s5021_s22 + $0xa8] sm:$0xff] %vm1805_vm2, %v2820_v28  ;;  %v2493_v21 = vadd.f32 %v2492_v1, %v2491_v61  ;;  %v2394_v43 = vadd.f32 %v2393_v42, %v2392_v35 }
 0x258   : > { %v2494_v48 = vsel %vm499_vm0, %v2440_v2, 0.0 }
 0x259   : > { %v2396_v0 = vadd.f32 %v2395_v31, %v2394_v43  ;;  %v2495_v4 = vadd.f32 %v2494_v48, %v2493_v21 }
 0x25a   : > { %v3123_v25 = vpop.f32.mrb[40].mxu1 }
 0x25b   : > { %v2398_v50 = vadd.f32 %v2397_v46, %v2396_v0  ;;  %v2497_v59 = vadd.f32 %v2496_v32, %v2495_v4  ;;  %2890 = vst.msk [vmem:[%s5021_s22 + $0xd0] sm:$0xff] %vm1805_vm2, %v3123_v25  ;;  %v2833_v11 = vpop.f32.mrb[41].mxu1 }
 0x25c   : > { %2888 = vst.msk [vmem:[%s5021_s22 + $0xc0] sm:$0xff] %vm1805_vm2, %v2833_v11  ;;  %v3124_v20 = vpop.f32.mrb[42].mxu1 }
 0x25d   : > { %v2400_v8 = vadd.f32 %v2399_v33, %v2398_v50  ;;  %v2499_v26 = vadd.f32 %v2498_v58, %v2497_v59  ;;  %2891 = vst.msk [vmem:[%s5021_s22 + $0xd8] sm:$0xff] %vm1805_vm2, %v3124_v20  ;;  %v2836_v39 = vpop.f32.mrb[43].mxu1 }
 0x25e   : > { %2889 = vst.msk [vmem:[%s5021_s22 + $0xc8] sm:$0xff] %vm1805_vm2, %v2836_v39 }
 0x25f   : > { %v2402_v55 = vadd.f32 %v2401_v52, %v2400_v8  ;;  %v2501_v34 = vadd.f32 %v2500_v44, %v2499_v26 }
 0x261   : > { %v2404_v45 = vadd.f32 %v2403_v14, %v2402_v55  ;;  %v2503_v9 = vadd.f32 %v2502_v30, %v2501_v34 }
 0x262   : > { %v3127_v12 = vpop.f32.mrb[44].mxu1 }
 0x263   : > { %v2406_v51 = vadd.f32 %v2405_v37, %v2404_v45  ;;  %v2505_v22 = vadd.f32 %v2504_v47, %v2503_v9  ;;  %2894 = vst.msk [vmem:[%s5021_s22 + $0xf0] sm:$0xff] %vm1805_vm2, %v3127_v12  ;;  %v2849_v3 = vpop.f32.mrb[45].mxu1 }
 0x264   : > { %2892 = vst.msk [vmem:[%s5021_s22 + $0xe0] sm:$0xff] %vm1805_vm2, %v2849_v3  ;;  %v3128_v54 = vpop.f32.mrb[46].mxu1 }
 0x265   : > { %v2408_v10 = vadd.f32 %v2407_v24, %v2406_v51  ;;  %v2507_v17 = vadd.f32 %v2506_v27, %v2505_v22  ;;  %2895 = vst.msk [vmem:[%s5021_s22 + $0xf8] sm:$0xff] %vm1805_vm2, %v3128_v54  ;;  %v2852_v61 = vpop.f32.mrb[47].mxu1 }
 0x266   : > { %2893 = vst.msk [vmem:[%s5021_s22 + $0xe8] sm:$0xff] %vm1805_vm2, %v2852_v61 }
 0x267   : > { %v2410_v53 = vadd.f32 %v2409_v6, %v2408_v10  ;;  %v2509_v7 = vadd.f32 %v2508_v19, %v2507_v17 }
 0x269   : > { %v2411_v23 = vrot.slane %v2410_v53, 4  ;;  %v2511_v29 = vadd.f32 %v2510_v63, %v2509_v7 }
 0x26b   : > { %v2412_v40 = vadd.f32 %v2411_v23, %v2410_v53  ;;  %v2512_v60 = vrot.slane %v2511_v29, 4 }
 0x26d   : > { %v2413_v16 = vrot.slane %v2412_v40, 2  ;;  %v2513_v35 = vadd.f32 %v2512_v60, %v2511_v29 }
 0x26f   : > { %v2414_v57 = vadd.f32 %v2413_v16, %v2412_v40  ;;  %v2514_v28 = vrot.slane %v2513_v35, 2 }
 0x271   : > { %v2415_v36 = vrot.slane %v2414_v57, 1  ;;  %v2515_v1 = vadd.f32 %v2514_v28, %v2513_v35 }
 0x273   : > { %v2516_v42 = vrot.slane %v2515_v1, 1  ;;  %v2416_v13 = vadd.f32 %v2415_v36, %v2414_v57 }
 0x275   : > { %v2517_v2 = vadd.f32 %v2516_v42, %v2515_v1 }
 0x277   : > { %v2519_v41 = vsel %vm2518_vm8, %v2416_v13, %v2517_v2 }
 0x278   : > { %2520 = vst.msk [vmem:[%s355_s25] sm:$0x3] %vm502_vm1, %v2519_v41 }
 0x279 PF: > { %s20_s30 = sadd.s32 1, %s3777_s30  }
 0x27a   : > { %p17_p4 = scmp.ge.s32.totalorder %s20_s30, 4  }
 0x27c   :  { %19 = sbr.rel (!%p17_p4) target bundleno = 1 (0x1), region = 104 }

// kernel: conv_block_forward.5
= control target key start
LH: loop header
LB: loop body
LE: loop exit
PB: predicated region body
PF: predicated region fallthrough
CT: control target
= control target key end

     0   :  { %11 = vsyncpa [#allocation4], 0  ;;  %s5681_s0 = inlined_call_operand.vmem [shape: f32[2,16,16,8], index: 0, kind: input, shape index: {}]   ;;  %s5682_s1 = inlined_call_operand.vmem [shape: f32[1,8], index: 1, kind: input, shape index: {}]   ;;  %s5683_s2 = inlined_call_operand.vmem [shape: f32[1,8], index: 2, kind: input, shape index: {}]   ;;  %s5684_s3 = inlined_call_operand.vmem [shape: bf16[72,8], index: 3, kind: input, shape index: {}]   ;;  %s5685_s4 = inlined_call_operand.vmem [shape: f32[2,16,16,16], index: 4, kind: input, shape index: {}]   ;;  %s5686_s5 = inlined_call_operand.vmem [shape: f32[2,16,16,32], index: 5, kind: input, shape index: {}]   ;;  %s5687_s6 = inlined_call_operand.hbm [shape: f32[2,16,16,32], index: 6, kind: output, shape index: {}]  }
   0x1   :  { %13 = vsyncpa [#allocation4 + $0x1], 0  ;;  %s3879_s21 = smov 0   ;;  %s3881_s22 = smov 0  }
   0x2   :  { %s3883_s23 = smov 0   ;;  %s3885_s24 = smov 0  }
   0x3 LB: > { %s3900_s25 = sadd.s32 4294967295, %s3831_s24   ;;  %s2944_s26 = sadd.s32 4294967294, %s3831_s24   ;;  %s3831_s24 = sphi %s3885_s24, %s5827_s24   ;;  %s3827_s23 = sphi %s3883_s23, %s5826_s23   ;;  %s3823_s22 = sphi %s3881_s22, %s5825_s22   ;;  %s3819_s21 = sphi %s3879_s21, %s5824_s21  }
   0x4   : > { %s3904_s27 = sadd.s32 1, %s3831_s24   ;;  %s167_s28 = sadd.s32 1, %s3827_s23 }
   0x5   : > { %s164_s29 = ssub.s32 %s3831_s24, %s3904_s27  ;;  %p177_p0 = scmp.ne.s32.totalorder %s3827_s23, %s3823_s22 }
   0x6   : > { %p165_p1 = scmp.eq.s32.totalorder %s164_s29, 0  ;;  %p178_p2 = scmp.eq.s32.totalorder %s3900_s25, 1 }
   0x7   : > { %p183_p3 = scmp.ne.s32.totalorder %s3823_s22, %s3819_s21  ;;  %p184_p4 = scmp.eq.s32.totalorder %s2944_s26, 1 }
   0x8   : > { %s3915_s30 = scalar_select %p165_p1, %s3827_s23, %s167_s28  }
   0x9   : > { %p3917_p5 = por %p178_p2, %p177_p0  ;;  %p3921_p6 = por %p184_p4, %p183_p3 }
   0xa   : > { %p2947_p7 = scmp.ge.s32.totalorder %s3831_s24, 1  ;;  %p235_p8 = scmp.lt.s32.totalorder %s3831_s24, 3 }
   0xc   : > { %p236_p9 = pnand %p2947_p7, %p235_p8 }
   0xe   : > { %239 = sbr.rel (%p236_p9) target bundleno = 787 (0x313), region = 44 }
  0x15   : > { %vm433_vm0 = vcmask 64512   ;;  %vm436_vm1 = vcmask 58368   ;;  %p275_p10 = scmp.lt.s32.totalorder %s3900_s25, 1  ;;  %v3833_v0 = vmov 0.0   ;;  %v3988_v1 = vld [vmem:[%s5682_s1] ss:$0 sm:$0xff] }
  0x16   : > { %434 = vst.msk [vmem:[#allocation2] sm:$0xff] %vm433_vm0, %v3833_v0  ;;  %435 = vst.msk [vmem:[#allocation2 + $0x8] sm:$0xff] %vm433_vm0, %v3833_v0  ;;  %v3995_v2 = vld [vmem:[%s5683_s2] ss:$0 sm:$0xff]  ;;  %s3834_s18 = smov 8   ;;  %s3835_s19 = smov 16  }
  0x17   : > { %437 = vst.msk [vmem:[#allocation2 + $0x10] sm:$0x3] %vm436_vm1, %v3833_v0  ;;  %440 = vst.msk [vmem:[#allocation2 + $0x28] sm:$0x3] %vm436_vm1, %v3833_v0  ;;  %s276_s9 = scalar_select %p275_p10, %s3900_s25, 1  ;;  %vm2199_vm2 = vcmask 1043456  }
  0x18   : > { %438 = vst.msk [vmem:[#allocation2 + $0x18] sm:$0xff] %vm433_vm0, %v3833_v0  ;;  %439 = vst.msk [vmem:[#allocation2 + $0x20] sm:$0xff] %vm433_vm0, %v3833_v0  ;;  %s3836_s20 = smov 24   ;;  %s3837_s26 = smov 32   ;;  %vm1867_vm3 = vcmask 130048   ;;  %vm1900_vm4 = vcmask 195584  }
  0x19   : > { %441 = vst.msk [vmem:[#allocation2 + $0x30] sm:$0xff] %vm433_vm0, %v3833_v0  ;;  %442 = vst.msk [vmem:[#allocation2 + $0x38] sm:$0xff] %vm433_vm0, %v3833_v0  ;;  %s3990_s12 = sshll.u32 %s276_s9, 8  ;;  %s3838_s28 = smov 40   ;;  %vm1933_vm5 = vcmask 261120   ;;  %vm1966_vm6 = vcmask 326656  }
  0x1a   : > { %443 = vst.msk [vmem:[#allocation2 + $0x40] sm:$0x3] %vm436_vm1, %v3833_v0  ;;  %446 = vst.msk [vmem:[#allocation2 + $0x58] sm:$0x3] %vm436_vm1, %v3833_v0  ;;  %s4001_s17 = scalar_lea.vmem %s5681_s0, %s3990_s12  ;;  %s3839_s15 = smov 48   ;;  %vm1999_vm7 = vcmask 392192  }
  0x1b   : > { %444 = vst.msk [vmem:[#allocation2 + $0x48] sm:$0xff] %vm433_vm0, %v3833_v0  ;;  %445 = vst.msk [vmem:[#allocation2 + $0x50] sm:$0xff] %vm433_vm0, %v3833_v0  ;;  %v293_v3 = vld [vmem:[%s4001_s17 + $0x10] sm:$0xff]  ;;  %v294_v4 = vld [vmem:[%s4001_s17 + $0x18] sm:$0xff]  ;;  %s3840_s10 = smov 56   ;;  %s3841_s11 = smov 64  }
  0x1c   : > { %447 = vst.msk [vmem:[#allocation2 + $0x60] sm:$0xff] %vm433_vm0, %v3833_v0  ;;  %448 = vst.msk [vmem:[#allocation2 + $0x68] sm:$0xff] %vm433_vm0, %v3833_v0  ;;  %v291_v5 = vld [vmem:[%s4001_s17] sm:$0xff]  ;;  %v333_v6 = vmul.f32 %v3988_v1, %v293_v3  ;;  %v334_v7 = vmul.f32 %v3988_v1, %v294_v4  ;;  %v292_v8 = vld [vmem:[%s4001_s17 + $0x8] sm:$0xff]  ;;  %vm2032_vm8 = vcmask 457728   ;;  %vm2065_vm9 = vcmask 523264   ;;  %s5418_s16 = scalar_lea.vmem %s5686_s5, %s3990_s12 }
  0x1d   : > { %449 = vst.msk [vmem:[#allocation2 + $0x70] sm:$0x3] %vm436_vm1, %v3833_v0  ;;  %452 = vst.msk [vmem:[#allocation2 + $0x88] sm:$0x3] %vm436_vm1, %v3833_v0  ;;  %v331_v9 = vmul.f32 %v3988_v1, %v291_v5  ;;  %v295_v10 = vld [vmem:[%s4001_s17 + $0x20] sm:$0xff]  ;;  %v296_v11 = vld [vmem:[%s4001_s17 + $0x28] sm:$0xff]  ;;  %v332_v14 = vmul.f32 %v3988_v1, %v292_v8 }
  0x1e   : > { %450 = vst.msk [vmem:[#allocation2 + $0x78] sm:$0xff] %vm433_vm0, %v3833_v0  ;;  %451 = vst.msk [vmem:[#allocation2 + $0x80] sm:$0xff] %vm433_vm0, %v3833_v0  ;;  %v554_v12 = vld [vmem:[#allocation2 + $0x1] sm:$0xff]  ;;  %v555_v13 = vld [vmem:[#allocation2 + $0x9] sm:$0xff]  ;;  %v335_v15 = vmul.f32 %v3988_v1, %v295_v10  ;;  %v336_v16 = vmul.f32 %v3988_v1, %v296_v11  ;;  %v371_v19 = vadd.f32 %v3995_v2, %v333_v6  ;;  %vm2150_vm10 = vcmask 588800   ;;  %s272_s13 = sand.u32 1, %s3823_s22  }
  0x1f   : > { %453 = vst.msk [vmem:[#allocation2 + $0x90] sm:$0xff] %vm433_vm0, %v3833_v0  ;;  %454 = vst.msk [vmem:[#allocation2 + $0x98] sm:$0xff] %vm433_vm0, %v3833_v0  ;;  %v297_v17 = vld [vmem:[%s4001_s17 + $0x30] sm:$0xff]  ;;  %v3111_v18 = vpack.i.bf16 %v555_v13, %v554_v12  ;;  %v372_v20 = vadd.f32 %v3995_v2, %v334_v7  ;;  %v369_v21 = vadd.f32 %v3995_v2, %v331_v9  ;;  %v298_v22 = vld [vmem:[%s4001_s17 + $0x38] sm:$0xff] }
  0x20   : > { %455 = vst.msk [vmem:[#allocation2 + $0xa0] sm:$0x3] %vm436_vm1, %v3833_v0  ;;  %458 = vst.msk [vmem:[#allocation2 + $0xb8] sm:$0x3] %vm436_vm1, %v3833_v0  ;;  %v370_v23 = vadd.f32 %v3995_v2, %v332_v14  ;;  %v373_v24 = vadd.f32 %v3995_v2, %v335_v15  ;;  %v374_v25 = vadd.f32 %v3995_v2, %v336_v16  ;;  %v299_v27 = vld [vmem:[%s4001_s17 + $0x40] sm:$0xff]  ;;  %v300_v28 = vld [vmem:[%s4001_s17 + $0x48] sm:$0xff] }
  0x21   : > { %456 = vst.msk [vmem:[#allocation2 + $0xa8] sm:$0xff] %vm433_vm0, %v3833_v0  ;;  %457 = vst.msk [vmem:[#allocation2 + $0xb0] sm:$0xff] %vm433_vm0, %v3833_v0  ;;  %v337_v26 = vmul.f32 %v3988_v1, %v297_v17  ;;  %v301_v29 = vld [vmem:[%s4001_s17 + $0x50] sm:$0xff]  ;;  %3112 = vrot.lane.b32.xlu0 %v3111_v18, %s3834_s18  ;;  %v403_v30 = vmax.f32 %v371_v19, 0.0  ;;  %v404_v31 = vmax.f32 %v372_v20, 0.0  ;;  %v401_v32 = vmax.f32 %v369_v21, 0.0 }
  0x22   : > { %459 = vst.msk [vmem:[#allocation2 + $0xc0] sm:$0xff] %vm433_vm0, %v3833_v0  ;;  %460 = vst.msk [vmem:[#allocation2 + $0xc8] sm:$0xff] %vm433_vm0, %v3833_v0  ;;  %v338_v33 = vmul.f32 %v3988_v1, %v298_v22  ;;  %v302_v34 = vld [vmem:[%s4001_s17 + $0x58] sm:$0xff]  ;;  %v303_v35 = vld [vmem:[%s4001_s17 + $0x60] sm:$0xff]  ;;  %v402_v37 = vmax.f32 %v370_v23, 0.0  ;;  %v405_v38 = vmax.f32 %v373_v24, 0.0  ;;  %v339_v42 = vmul.f32 %v3988_v1, %v299_v27 }
  0x23   : > { %461 = vst.msk [vmem:[#allocation2 + $0xd0] sm:$0x3] %vm436_vm1, %v3833_v0  ;;  %464 = vst.msk [vmem:[#allocation2 + $0xe8] sm:$0x3] %vm436_vm1, %v3833_v0  ;;  %v304_v36 = vld [vmem:[%s4001_s17 + $0x68] sm:$0xff]  ;;  %v406_v39 = vmax.f32 %v374_v25, 0.0  ;;  %v375_v40 = vadd.f32 %v3995_v2, %v337_v26  ;;  %v340_v43 = vmul.f32 %v3988_v1, %v300_v28  ;;  %v341_v44 = vmul.f32 %v3988_v1, %v301_v29 }
  0x24   : > { %462 = vst.msk [vmem:[#allocation2 + $0xd8] sm:$0xff] %vm433_vm0, %v3833_v0  ;;  %463 = vst.msk [vmem:[#allocation2 + $0xe0] sm:$0xff] %vm433_vm0, %v3833_v0  ;;  %v376_v41 = vadd.f32 %v3995_v2, %v338_v33  ;;  %v305_v45 = vld [vmem:[%s4001_s17 + $0x70] sm:$0xff]  ;;  %v342_v47 = vmul.f32 %v3988_v1, %v302_v34  ;;  %v343_v48 = vmul.f32 %v3988_v1, %v303_v35  ;;  %v306_v50 = vld [vmem:[%s4001_s17 + $0x78] sm:$0xff] }
  0x25   : > { %465 = vst.msk [vmem:[#allocation2 + $0xf0] sm:$0xff] %vm433_vm0, %v3833_v0  ;;  %466 = vst.msk [vmem:[#allocation2 + $0xf8] sm:$0xff] %vm433_vm0, %v3833_v0  ;;  %v407_v46 = vmax.f32 %v375_v40, 0.0  ;;  %v344_v49 = vmul.f32 %v3988_v1, %v304_v36  ;;  %v377_v52 = vadd.f32 %v3995_v2, %v339_v42  ;;  %v378_v53 = vadd.f32 %v3995_v2, %v340_v43  ;;  %v307_v59 = vld [vmem:[%s4001_s17 + $0x80] sm:$0xff]  ;;  %v308_v60 = vld [vmem:[%s4001_s17 + $0x88] sm:$0xff] }
  0x26   : > { %467 = vst.msk [vmem:[#allocation2 + $0x100] sm:$0x3] %vm436_vm1, %v3833_v0  ;;  %470 = vst.msk [vmem:[#allocation2 + $0x118] sm:$0x3] %vm436_vm1, %v3833_v0  ;;  %v408_v51 = vmax.f32 %v376_v41, 0.0  ;;  %v379_v54 = vadd.f32 %v3995_v2, %v341_v44  ;;  %v380_v55 = vadd.f32 %v3995_v2, %v342_v47  ;;  %v381_v56 = vadd.f32 %v3995_v2, %v343_v48  ;;  %v309_v61 = vld [vmem:[%s4001_s17 + $0x90] sm:$0xff] }
  0x27   : > { %468 = vst.msk [vmem:[#allocation2 + $0x108] sm:$0xff] %vm433_vm0, %v3833_v0  ;;  %469 = vst.msk [vmem:[#allocation2 + $0x110] sm:$0xff] %vm433_vm0, %v3833_v0  ;;  %v382_v57 = vadd.f32 %v3995_v2, %v344_v49  ;;  %v345_v58 = vmul.f32 %v3988_v1, %v305_v45  ;;  %v409_v62 = vmax.f32 %v377_v52, 0.0  ;;  %v410_v63 = vmax.f32 %v378_v53, 0.0  ;;  %v310_v4 = vld [vmem:[%s4001_s17 + $0x98] sm:$0xff]  ;;  %v311_v5 = vld [vmem:[%s4001_s17 + $0xa0] sm:$0xff] }
  0x28   : > { %471 = vst.msk [vmem:[#allocation2 + $0x120] sm:$0xff] %vm433_vm0, %v3833_v0  ;;  %472 = vst.msk [vmem:[#allocation2 + $0x128] sm:$0xff] %vm433_vm0, %v3833_v0  ;;  %v346_v3 = vmul.f32 %v3988_v1, %v306_v50  ;;  %v312_v6 = vld [vmem:[%s4001_s17 + $0xa8] sm:$0xff]  ;;  %v412_v7 = vmax.f32 %v380_v55, 0.0  ;;  %v413_v8 = vmax.f32 %v381_v56, 0.0  ;;  %v347_v12 = vmul.f32 %v3988_v1, %v307_v59  ;;  %v313_v15 = vld [vmem:[%s4001_s17 + $0xb0] sm:$0xff] }
  0x29   : > { %473 = vst.msk [vmem:[#allocation2 + $0x130] sm:$0x3] %vm436_vm1, %v3833_v0  ;;  %476 = vst.msk [vmem:[#allocation2 + $0x148] sm:$0x3] %vm436_vm1, %v3833_v0  ;;  %v414_v9 = vmax.f32 %v382_v57, 0.0  ;;  %v383_v10 = vadd.f32 %v3995_v2, %v345_v58  ;;  %v348_v13 = vmul.f32 %v3988_v1, %v308_v60  ;;  %v349_v14 = vmul.f32 %v3988_v1, %v309_v61  ;;  %v314_v16 = vld [vmem:[%s4001_s17 + $0xb8] sm:$0xff] }
  0x2a   : > { %474 = vst.msk [vmem:[#allocation2 + $0x138] sm:$0xff] %vm433_vm0, %v3833_v0  ;;  %475 = vst.msk [vmem:[#allocation2 + $0x140] sm:$0xff] %vm433_vm0, %v3833_v0  ;;  %v384_v11 = vadd.f32 %v3995_v2, %v346_v3  ;;  %v350_v21 = vmul.f32 %v3988_v1, %v310_v4  ;;  %v351_v22 = vmul.f32 %v3988_v1, %v311_v5  ;;  %v315_v35 = vld [vmem:[%s4001_s17 + $0xc0] sm:$0xff]  ;;  %v316_v41 = vld [vmem:[%s4001_s17 + $0xc8] sm:$0xff] }
  0x2b   : > { %477 = vst.msk [vmem:[#allocation2 + $0x150] sm:$0xff] %vm433_vm0, %v3833_v0  ;;  %478 = vst.msk [vmem:[#allocation2 + $0x158] sm:$0xff] %vm433_vm0, %v3833_v0  ;;  %v415_v20 = vmax.f32 %v383_v10, 0.0  ;;  %v352_v23 = vmul.f32 %v3988_v1, %v312_v6  ;;  %v385_v29 = vadd.f32 %v3995_v2, %v347_v12  ;;  %v387_v33 = vadd.f32 %v3995_v2, %v349_v14  ;;  %v317_v42 = vld [vmem:[%s4001_s17 + $0xd0] sm:$0xff]  ;;  %v318_v48 = vld [vmem:[%s4001_s17 + $0xd8] sm:$0xff] }
  0x2c   : > { %479 = vst.msk [vmem:[#allocation2 + $0x160] sm:$0x3] %vm436_vm1, %v3833_v0  ;;  %482 = vst.msk [vmem:[#allocation2 + $0x178] sm:$0x3] %vm436_vm1, %v3833_v0  ;;  %v416_v28 = vmax.f32 %v384_v11, 0.0  ;;  %v388_v34 = vadd.f32 %v3995_v2, %v350_v21  ;;  %v354_v47 = vmul.f32 %v3988_v1, %v314_v16  ;;  %v319_v49 = vld [vmem:[%s4001_s17 + $0xe0] sm:$0xff]  ;;  %v355_v53 = vmul.f32 %v3988_v1, %v315_v35 }
  0x2d   : > { %480 = vst.msk [vmem:[#allocation2 + $0x168] sm:$0xff] %vm433_vm0, %v3833_v0  ;;  %481 = vst.msk [vmem:[#allocation2 + $0x170] sm:$0xff] %vm433_vm0, %v3833_v0  ;;  %v390_v40 = vadd.f32 %v3995_v2, %v352_v23  ;;  %v419_v44 = vmax.f32 %v387_v33, 0.0  ;;  %v356_v59 = vmul.f32 %v3988_v1, %v316_v41  ;;  %v357_v60 = vmul.f32 %v3988_v1, %v317_v42  ;;  %v320_v3 = vld [vmem:[%s4001_s17 + $0xe8] sm:$0xff]  ;;  %v322_v33 = vld [vmem:[%s4001_s17 + $0xf8] sm:$0xff] }
  0x2e   : > { %483 = vst.msk [vmem:[#allocation2 + $0x180] sm:$0xff] %vm433_vm0, %v3833_v0  ;;  %484 = vst.msk [vmem:[#allocation2 + $0x188] sm:$0xff] %vm433_vm0, %v3833_v0  ;;  %v420_v45 = vmax.f32 %v388_v34, 0.0  ;;  %v392_v58 = vadd.f32 %v3995_v2, %v354_v47  ;;  %v359_v4 = vmul.f32 %v3988_v1, %v319_v49  ;;  %v360_v16 = vmul.f32 %v3988_v1, %v320_v3 }
  0x2f   : > { %485 = vst.msk [vmem:[#allocation2 + $0x190] sm:$0x3] %vm436_vm1, %v3833_v0  ;;  %488 = vst.msk [vmem:[#allocation2 + $0x1a8] sm:$0x3] %vm436_vm1, %v3833_v0  ;;  %v422_v52 = vmax.f32 %v390_v40, 0.0  ;;  %v394_v11 = vadd.f32 %v3995_v2, %v356_v59 }
  0x30   : > { %486 = vst.msk [vmem:[#allocation2 + $0x198] sm:$0xff] %vm433_vm0, %v3833_v0  ;;  %487 = vst.msk [vmem:[#allocation2 + $0x1a0] sm:$0xff] %vm433_vm0, %v3833_v0  ;;  %v411_v0 = vmax.f32 %v379_v54, 0.0 }
  0x31   : > { %492 = vst.msk [vmem:[#allocation2 + $0x31] sm:$0xff] %vm433_vm0, %v403_v30  ;;  %493 = vst.msk [vmem:[#allocation2 + $0x39] sm:$0xff] %vm433_vm0, %v404_v31  ;;  %v386_v30 = vadd.f32 %v3995_v2, %v348_v13  ;;  %v395_v13 = vadd.f32 %v3995_v2, %v357_v60 }
  0x32   : > { %490 = vst.msk [vmem:[#allocation2 + $0x19] sm:$0xff] %vm433_vm0, %v401_v32  ;;  %491 = vst.msk [vmem:[#allocation2 + $0x21] sm:$0xff] %vm433_vm0, %v402_v37  ;;  %v417_v37 = vmax.f32 %v385_v29, 0.0 }
  0x33   : > { %494 = vst.msk [vmem:[#allocation2 + $0x49] sm:$0xff] %vm433_vm0, %v405_v38  ;;  %495 = vst.msk [vmem:[#allocation2 + $0x51] sm:$0xff] %vm433_vm0, %v406_v39  ;;  %v418_v38 = vmax.f32 %v386_v30, 0.0  ;;  %v389_v39 = vadd.f32 %v3995_v2, %v351_v22 }
  0x34   : > { %496 = vst.msk [vmem:[#allocation2 + $0x61] sm:$0xff] %vm433_vm0, %v407_v46  ;;  %497 = vst.msk [vmem:[#allocation2 + $0x69] sm:$0xff] %vm433_vm0, %v408_v51  ;;  %v353_v46 = vmul.f32 %v3988_v1, %v313_v15 }
  0x35   : > { %498 = vst.msk [vmem:[#allocation2 + $0x79] sm:$0xff] %vm433_vm0, %v409_v62  ;;  %499 = vst.msk [vmem:[#allocation2 + $0x81] sm:$0xff] %vm433_vm0, %v410_v63  ;;  %v421_v51 = vmax.f32 %v389_v39, 0.0  ;;  %v393_v63 = vadd.f32 %v3995_v2, %v355_v53 }
  0x36   : > { %500 = vst.msk [vmem:[#allocation2 + $0x91] sm:$0xff] %vm433_vm0, %v411_v0  ;;  %501 = vst.msk [vmem:[#allocation2 + $0x99] sm:$0xff] %vm433_vm0, %v412_v7  ;;  %v391_v57 = vadd.f32 %v3995_v2, %v353_v46  ;;  %v358_v0 = vmul.f32 %v3988_v1, %v318_v48  ;;  %v362_v46 = vmul.f32 %v3988_v1, %v322_v33 }
  0x37   : > { %502 = vst.msk [vmem:[#allocation2 + $0xa9] sm:$0xff] %vm433_vm0, %v413_v8  ;;  %503 = vst.msk [vmem:[#allocation2 + $0xb1] sm:$0xff] %vm433_vm0, %v414_v9  ;;  %v424_v9 = vmax.f32 %v392_v58, 0.0  ;;  %v425_v12 = vmax.f32 %v393_v63, 0.0 }
  0x38   : > { %v558_v17 = vld [vmem:[#allocation2 + $0x31] sm:$0xff]  ;;  %v559_v18 = vld [vmem:[#allocation2 + $0x39] sm:$0xff]  ;;  %504 = vst.msk [vmem:[#allocation2 + $0xc1] sm:$0xff] %vm433_vm0, %v415_v20  ;;  %505 = vst.msk [vmem:[#allocation2 + $0xc9] sm:$0xff] %vm433_vm0, %v416_v28  ;;  %v423_v8 = vmax.f32 %v391_v57, 0.0  ;;  %v396_v14 = vadd.f32 %v3995_v2, %v358_v0  ;;  %v427_v20 = vmax.f32 %v395_v13, 0.0 }
  0x39   : > { %v556_v19 = vld [vmem:[#allocation2 + $0x19] sm:$0xff]  ;;  %v4080_v24 = vpack.i.bf16 %v559_v18, %v558_v17  ;;  %v557_v25 = vld [vmem:[#allocation2 + $0x21] sm:$0xff]  ;;  %506 = vst.msk [vmem:[#allocation2 + $0xd9] sm:$0xff] %vm433_vm0, %v417_v37  ;;  %507 = vst.msk [vmem:[#allocation2 + $0xe1] sm:$0xff] %vm433_vm0, %v418_v38  ;;  %v397_v17 = vadd.f32 %v3995_v2, %v359_v4 }
  0x3a   : > { %v560_v26 = vld [vmem:[#allocation2 + $0x49] sm:$0xff]  ;;  %v561_v27 = vld [vmem:[#allocation2 + $0x51] sm:$0xff]  ;;  %v4084_v31 = vpack.i.bf16 %v557_v25, %v556_v19  ;;  %508 = vst.msk [vmem:[#allocation2 + $0xf1] sm:$0xff] %vm433_vm0, %v419_v44  ;;  %509 = vst.msk [vmem:[#allocation2 + $0xf9] sm:$0xff] %vm433_vm0, %v420_v45  ;;  %v426_v19 = vmax.f32 %v394_v11, 0.0  ;;  %v428_v21 = vmax.f32 %v396_v14, 0.0 }
  0x3b   : > { %v4086_v32 = vpack.i.bf16 %v561_v27, %v560_v26  ;;  %3122 = vrot.lane.b32.xlu1 %v4080_v24, %s3834_s18  ;;  %v562_v36 = vld [vmem:[#allocation2 + $0x61] sm:$0xff]  ;;  %v563_v43 = vld [vmem:[#allocation2 + $0x69] sm:$0xff]  ;;  %510 = vst.msk [vmem:[#allocation2 + $0x109] sm:$0xff] %vm433_vm0, %v421_v51  ;;  %511 = vst.msk [vmem:[#allocation2 + $0x111] sm:$0xff] %vm433_vm0, %v422_v52  ;;  %v398_v26 = vadd.f32 %v3995_v2, %v360_v16  ;;  %v429_v27 = vmax.f32 %v397_v17, 0.0 }
  0x3c   : > { %3117 = vrot.lane.b32.xlu0 %v4084_v31, %s3834_s18  ;;  %v4105_v50 = vpack.i.bf16 %v563_v43, %v562_v36  ;;  %v564_v54 = vld [vmem:[#allocation2 + $0x79] sm:$0xff]  ;;  %v565_v55 = vld [vmem:[#allocation2 + $0x81] sm:$0xff]  ;;  %512 = vst.msk [vmem:[#allocation2 + $0x121] sm:$0xff] %vm433_vm0, %v423_v8  ;;  %513 = vst.msk [vmem:[#allocation2 + $0x129] sm:$0xff] %vm433_vm0, %v424_v9 }
  0x3d   : > { %v566_v56 = vld [vmem:[#allocation2 + $0x91] sm:$0xff]  ;;  %v4118_v61 = vpack.i.bf16 %v565_v55, %v564_v54  ;;  %v567_v62 = vld [vmem:[#allocation2 + $0x99] sm:$0xff]  ;;  %514 = vst.msk [vmem:[#allocation2 + $0x139] sm:$0xff] %vm433_vm0, %v425_v12  ;;  %515 = vst.msk [vmem:[#allocation2 + $0x141] sm:$0xff] %vm433_vm0, %v426_v19  ;;  %v430_v34 = vmax.f32 %v398_v26, 0.0  ;;  %v400_v54 = vadd.f32 %v3995_v2, %v362_v46 }
  0x3e   : > { %v4128_v5 = vpack.i.bf16 %v567_v62, %v566_v56  ;;  %v568_v6 = vld [vmem:[#allocation2 + $0xa9] sm:$0xff]  ;;  %v569_v7 = vld [vmem:[#allocation2 + $0xb1] sm:$0xff]  ;;  %516 = vst.msk [vmem:[#allocation2 + $0x151] sm:$0xff] %vm433_vm0, %v427_v20  ;;  %517 = vst.msk [vmem:[#allocation2 + $0x159] sm:$0xff] %vm433_vm0, %v428_v21 }
  0x3f   : > { %3127 = vrot.lane.b32.xlu1 %v4086_v32, %s3834_s18  ;;  %v570_v10 = vld [vmem:[#allocation2 + $0xc1] sm:$0xff]  ;;  %v571_v15 = vld [vmem:[#allocation2 + $0xc9] sm:$0xff]  ;;  %v4139_v18 = vpack.i.bf16 %v569_v7, %v568_v6  ;;  %518 = vst.msk [vmem:[#allocation2 + $0x169] sm:$0xff] %vm433_vm0, %v429_v27  ;;  %519 = vst.msk [vmem:[#allocation2 + $0x171] sm:$0xff] %vm433_vm0, %v430_v34  ;;  %v432_v59 = vmax.f32 %v400_v54, 0.0 }
  0x40   : > { %3132 = vrot.lane.b32.xlu0 %v4105_v50, %s3834_s18  ;;  %v4144_v22 = vpack.i.bf16 %v571_v15, %v570_v10  ;;  %v572_v23 = vld [vmem:[#allocation2 + $0xd9] sm:$0xff]  ;;  %v573_v25 = vld [vmem:[#allocation2 + $0xe1] sm:$0xff]  ;;  %v321_v28 = vld [vmem:[%s4001_s17 + $0xf0] sm:$0xff] }
  0x41   : > { %v574_v29 = vld [vmem:[#allocation2 + $0xf1] sm:$0xff]  ;;  %v575_v30 = vld [vmem:[#allocation2 + $0xf9] sm:$0xff]  ;;  %v4159_v37 = vpack.i.bf16 %v573_v25, %v572_v23  ;;  %v4161_v40 = vld [vmem:[#allocation2 + $0xe2] sm:$0xff]  ;;  %v361_v45 = vmul.f32 %v3988_v1, %v321_v28  ;;  %521 = vst.msk [vmem:[#allocation2 + $0x189] sm:$0xff] %vm433_vm0, %v432_v59 }
  0x42   : > { %v4153_v35 = vld [vmem:[#allocation2 + $0x7a] sm:$0xff]  ;;  %v576_v38 = vld [vmem:[#allocation2 + $0x109] sm:$0xff]  ;;  %v577_v39 = vld [vmem:[#allocation2 + $0x111] sm:$0xff]  ;;  %v4165_v41 = vpack.i.bf16 %v575_v30, %v574_v29 }
  0x43   : > { %3137 = vrot.lane.b32.xlu1 %v4118_v61, %s3834_s18  ;;  %v4155_v36 = vld [vmem:[#allocation2 + $0xda] sm:$0xff]  ;;  %v4168_v42 = vld [vmem:[#allocation2 + $0xf2] sm:$0xff]  ;;  %v4172_v44 = vld [vmem:[#allocation2 + $0x10a] sm:$0xff]  ;;  %v399_v53 = vadd.f32 %v3995_v2, %v361_v45  ;;  %v4186_v55 = vpack.i.bf16 %v577_v39, %v576_v38 }
  0x44   : > { %3142 = vrot.lane.b32.xlu0 %v4128_v5, %s3834_s18  ;;  %v4170_v43 = vld [vmem:[#allocation2 + $0xfa] sm:$0xff]  ;;  %v579_v48 = vld [vmem:[#allocation2 + $0x129] sm:$0xff]  ;;  %v590_v11 = vld [vmem:[#allocation2 + $0x32] sm:$0xff]  ;;  %v3236_v54 = vpack.i.bf16 %v4161_v40, %v4155_v36 }
  0x45   : > { %v578_v47 = vld [vmem:[#allocation2 + $0x121] sm:$0xff]  ;;  %v580_v56 = vld [vmem:[#allocation2 + $0x139] sm:$0xff]  ;;  %v431_v58 = vmax.f32 %v399_v53, 0.0  ;;  %v582_v60 = vld [vmem:[#allocation2 + $0x151] sm:$0xff] }
  0x46   : > { %v4190_v1 = vpack.i.bf16 %v579_v48, %v578_v47  ;;  %v581_v57 = vld [vmem:[#allocation2 + $0x141] sm:$0xff]  ;;  %v583_v62 = vld [vmem:[#allocation2 + $0x159] sm:$0xff]  ;;  %v584_v0 = vld [vmem:[#allocation2 + $0x169] sm:$0xff] }
  0x47   : > { %3147 = vrot.lane.b32.xlu1 %v4139_v18, %s3834_s18  ;;  %520 = vst.msk [vmem:[#allocation2 + $0x181] sm:$0xff] %vm433_vm0, %v431_v58  ;;  %v4196_v2 = vpack.i.bf16 %v581_v57, %v580_v56  ;;  %v4200_v63 = vpack.i.bf16 %v583_v62, %v582_v60  ;;  %v585_v3 = vld [vmem:[#allocation2 + $0x171] sm:$0xff]  ;;  %v586_v4 = vld [vmem:[#allocation2 + $0x2] sm:$0xff]  ;;  %v588_v9 = vld [vmem:[#allocation2 + $0x1a] sm:$0xff]  ;;  %v4249_v56 = vpack.i.bf16 %v4170_v43, %v4168_v42 }
  0x48   : > { %3152 = vrot.lane.b32.xlu0 %v4144_v22, %s3834_s18  ;;  %v587_v6 = vld [vmem:[#allocation2 + $0xa] sm:$0xff]  ;;  %v4204_v7 = vpack.i.bf16 %v585_v3, %v584_v0  ;;  %v589_v10 = vld [vmem:[#allocation2 + $0x22] sm:$0xff]  ;;  %v591_v12 = vld [vmem:[#allocation2 + $0x3a] sm:$0xff] }
  0x49   : > { %v3191_v8 = vpack.i.bf16 %v587_v6, %v586_v4  ;;  %v4210_v13 = vpack.i.bf16 %v589_v10, %v588_v9  ;;  %v4213_v14 = vpack.i.bf16 %v591_v12, %v590_v11  ;;  %v592_v15 = vld [vmem:[#allocation2 + $0x4a] sm:$0xff]  ;;  %v593_v16 = vld [vmem:[#allocation2 + $0x52] sm:$0xff]  ;;  %v594_v17 = vld [vmem:[#allocation2 + $0x62] sm:$0xff] }
  0x4a   : > { %v595_v19 = vld [vmem:[#allocation2 + $0x6a] sm:$0xff]  ;;  %v4217_v20 = vpack.i.bf16 %v593_v16, %v592_v15  ;;  %v4223_v23 = vld [vmem:[#allocation2 + $0x82] sm:$0xff]  ;;  %v598_v25 = vld [vmem:[#allocation2 + $0x92] sm:$0xff] }
  0x4b   : > { %3157 = vrot.lane.b32.xlu1 %v4159_v37, %s3834_s18  ;;  %v4221_v21 = vpack.i.bf16 %v595_v19, %v594_v17  ;;  %v599_v26 = vld [vmem:[#allocation2 + $0x9a] sm:$0xff]  ;;  %v4225_v27 = vld [vmem:[#allocation2 + $0x112] sm:$0xff]  ;;  %v4227_v28 = vld [vmem:[#allocation2 + $0x122] sm:$0xff]  ;;  %v3216_v34 = vpack.i.bf16 %v4223_v23, %v4153_v35 }
  0x4c   : > { %3162 = vrot.lane.b32.xlu0 %v4165_v41, %s3834_s18  ;;  %v4229_v29 = vld [vmem:[#allocation2 + $0x12a] sm:$0xff]  ;;  %v3221_v38 = vpack.i.bf16 %v599_v26, %v598_v25  ;;  %v601_v45 = vld [vmem:[#allocation2 + $0xb2] sm:$0xff]  ;;  %v602_v46 = vld [vmem:[#allocation2 + $0xc2] sm:$0xff]  ;;  %v4254_v57 = vpack.i.bf16 %v4225_v27, %v4172_v44 }
  0x4d   : > { %v600_v39 = vld [vmem:[#allocation2 + $0xaa] sm:$0xff]  ;;  %v4260_v58 = vpack.i.bf16 %v4229_v29, %v4227_v28  ;;  %v612_v59 = vld [vmem:[#allocation2 + $0x13a] sm:$0xff]  ;;  %v613_v60 = vld [vmem:[#allocation2 + $0x142] sm:$0xff] }
  0x4e   : > { %v603_v47 = vld [vmem:[#allocation2 + $0xca] sm:$0xff]  ;;  %v3226_v48 = vpack.i.bf16 %v601_v45, %v600_v39  ;;  %v614_v62 = vld [vmem:[#allocation2 + $0x152] sm:$0xff]  ;;  %v615_v0 = vld [vmem:[#allocation2 + $0x15a] sm:$0xff]  ;;  %v3256_v3 = vpack.i.bf16 %v613_v60, %v612_v59 }
  0x4f   : > { %3167 = vrot.lane.b32.xlu1 %v4186_v55, %s3834_s18  ;;  %v3231_v53 = vpack.i.bf16 %v603_v47, %v602_v46  ;;  %v3261_v4 = vpack.i.bf16 %v615_v0, %v614_v62  ;;  %v616_v6 = vld [vmem:[#allocation2 + $0x16a] sm:$0xff]  ;;  %v4266_v9 = vld [vmem:[#allocation2 + $0x18] sm:$0xff]  ;;  %v4268_v10 = vld [vmem:[#allocation2 + $0x20] sm:$0xff] }
  0x50   : > { %3172 = vrot.lane.b32.xlu0 %v4190_v1, %s3834_s18  ;;  %v3271_v12 = vpack.i.bf16 %v4268_v10, %v4266_v9  ;;  %v4274_v15 = vld [vmem:[#allocation2 + $0x30] sm:$0xff]  ;;  %v4276_v16 = vld [vmem:[#allocation2 + $0x38] sm:$0xff]  ;;  %v4278_v17 = vld [vmem:[#allocation2 + $0x48] sm:$0xff] }
  0x51   : > { %v4280_v19 = vld [vmem:[#allocation2 + $0x50] sm:$0xff]  ;;  %v4285_v25 = vpack.i.bf16 %v4276_v16, %v4274_v15  ;;  %v4296_v39 = vld [vmem:[#allocation2 + $0x78] sm:$0xff]  ;;  %v4298_v45 = vld [vmem:[#allocation2 + $0x80] sm:$0xff] }
  0x52   : > { %v4290_v26 = vpack.i.bf16 %v4280_v19, %v4278_v17  ;;  %v4310_v47 = vpack.i.bf16 %v4298_v45, %v4296_v39  ;;  %v631_v59 = vld [vmem:[#allocation2 + $0xb0] sm:$0xff]  ;;  %v4316_v0 = vld [vmem:[#allocation2 + $0xc0] sm:$0xff]  ;;  %v641_v33 = vld [vmem:[#allocation2 + $0x128] sm:$0xff] }
  0x53   : > { %3177 = vrot.lane.b32.xlu1 %v4196_v2, %s3834_s18  ;;  %v642_v30 = vld [vmem:[#allocation2 + $0x138] sm:$0xff]  ;;  %v643_v52 = vld [vmem:[#allocation2 + $0x140] sm:$0xff]  ;;  %v644_v49 = vld [vmem:[#allocation2 + $0x150] sm:$0xff] }
  0x54   : > { %3182 = vrot.lane.b32.xlu0 %v4200_v63, %s3834_s18 }
  0x57   : > { %3187 = vrot.lane.b32.xlu1 %v4204_v7, %s3834_s18 }
  0x58   : > { %3192 = vrot.lane.b32.xlu0 %v3191_v8, %s3835_s19  ;;  %v617_v8 = vld [vmem:[#allocation2 + $0x172] sm:$0xff] }
  0x59   : > { %v3266_v11 = vpack.i.bf16 %v617_v8, %v616_v6  ;;  %v4322_v6 = vld [vmem:[#allocation2 + $0xe0] sm:$0xff] }
  0x5b   : > { %3197 = vrot.lane.b32.xlu1 %v4210_v13, %s3835_s19 }
  0x5c   : > { %3202 = vrot.lane.b32.xlu0 %v4213_v14, %s3835_s19 }
  0x5f   : > { %3207 = vrot.lane.b32.xlu1 %v4217_v20, %s3835_s19 }
  0x60   : > { %3212 = vrot.lane.b32.xlu0 %v4221_v21, %s3835_s19 }
  0x63   : > { %3217 = vrot.lane.b32.xlu1 %v3216_v34, %s3835_s19  ;;  %v4292_v34 = vld [vmem:[#allocation2 + $0x60] sm:$0xff] }
  0x64   : > { %3222 = vrot.lane.b32.xlu0 %v3221_v38, %s3835_s19  ;;  %v4294_v38 = vld [vmem:[#allocation2 + $0x68] sm:$0xff] }
  0x65   : > { %v4304_v46 = vpack.i.bf16 %v4294_v38, %v4292_v34 }
  0x67   : > { %3227 = vrot.lane.b32.xlu1 %v3226_v48, %s3835_s19  ;;  %v628_v48 = vld [vmem:[#allocation2 + $0x90] sm:$0xff] }
  0x68   : > { %3232 = vrot.lane.b32.xlu0 %v3231_v53, %s3835_s19  ;;  %v629_v53 = vld [vmem:[#allocation2 + $0x98] sm:$0xff] }
  0x69   : > { %v3296_v60 = vpack.i.bf16 %v629_v53, %v628_v48  ;;  %v4332_v48 = vld [vmem:[#allocation2 + $0xf8] sm:$0xff]  ;;  %v638_v53 = vld [vmem:[#allocation2 + $0x108] sm:$0xff] }
  0x6a   : > { %5731 = vst [vmem:[#allocation7_spill] sm:$0xff] %v4332_v48 }
  0x6b   : > { %3237 = vrot.lane.b32.xlu1 %v3236_v54, %s3835_s19  ;;  %v630_v54 = vld [vmem:[#allocation2 + $0xa8] sm:$0xff] }
  0x6c   : > { %3242 = vrot.lane.b32.xlu0 %v4249_v56, %s3835_s19  ;;  %v3301_v62 = vpack.i.bf16 %v631_v59, %v630_v54  ;;  %v4334_v54 = vld [vmem:[#allocation2 + $0x110] sm:$0xff] }
  0x6d   : > { %5732 = vst [vmem:[#allocation8_spill] sm:$0xff] %v4334_v54 }
  0x6f   : > { %3247 = vrot.lane.b32.xlu1 %v4254_v57, %s3835_s19 }
  0x70   : > { %3252 = vrot.lane.b32.xlu0 %v4260_v58, %s3835_s19 }
  0x73   : > { %3257 = vrot.lane.b32.xlu1 %v3256_v3, %s3835_s19  ;;  %v4318_v3 = vld [vmem:[#allocation2 + $0xc8] sm:$0xff] }
  0x74   : > { %3262 = vrot.lane.b32.xlu0 %v3261_v4, %s3835_s19  ;;  %v4320_v4 = vld [vmem:[#allocation2 + $0xd8] sm:$0xff]  ;;  %v3306_v8 = vpack.i.bf16 %v4318_v3, %v4316_v0 }
  0x77   : > { %3267 = vrot.lane.b32.xlu1 %v3266_v11, %s3835_s19  ;;  %v3311_v11 = vpack.i.bf16 %v4322_v6, %v4320_v4 }
  0x78   : > { %3272 = vrot.lane.b32.xlu0 %v3271_v12, %s3836_s20  ;;  %v4330_v12 = vld [vmem:[#allocation2 + $0xf0] sm:$0xff] }
  0x79   : > { %5730 = vst [vmem:[#allocation6_spill] sm:$0xff] %v4330_v12  ;;  %v4339_v59 = vpack.i.bf16 %v4332_v48, %v4330_v12  ;;  %v645_v12 = vld [vmem:[#allocation2 + $0x158] sm:$0xff]  ;;  %v647_v48 = vld [vmem:[#allocation2 + $0x170] sm:$0xff] }
  0x7b   : > { %3277 = vrot.lane.b32.xlu1 %v4285_v25, %s3836_s20 }
  0x7c   : > { %3282 = vrot.lane.b32.xlu0 %v4290_v26, %s3836_s20 }
  0x7f   : > { %3287 = vrot.lane.b32.xlu1 %v4304_v46, %s3836_s20 }
  0x80   : > { %3292 = vrot.lane.b32.xlu0 %v4310_v47, %s3836_s20 }
  0x83   : > { %3297 = vrot.lane.b32.xlu1 %v3296_v60, %s3836_s20  ;;  %v4343_v60 = vpack.i.bf16 %v4334_v54, %v638_v53  ;;  %v4355_v53 = vpack.i.bf16 %v645_v12, %v644_v49 }
  0x84   : > { %3302 = vrot.lane.b32.xlu0 %v3301_v62, %s3836_s20  ;;  %v640_v62 = vld [vmem:[#allocation2 + $0x120] sm:$0xff] }
  0x85   : > { %v4347_v51 = vpack.i.bf16 %v641_v33, %v640_v62  ;;  %v648_v33 = vld [vmem:[#allocation2 + $0x180] sm:$0xff]  ;;  %v649_v62 = vld [vmem:[#allocation2 + $0x188] sm:$0xff] }
  0x87   : > { %3307 = vrot.lane.b32.xlu1 %v3306_v8, %s3836_s20  ;;  %v4351_v8 = vpack.i.bf16 %v643_v52, %v642_v30  ;;  %v3346_v52 = vpack.i.bf16 %v649_v62, %v648_v33  ;;  %v3751_v30 = vld [vmem:[%s5684_s3] sm:$0xff]   ;;  %v3753_v62 = vld [vmem:[%s5684_s3 + $0x10] sm:$0xff]  }
  0x88   : > { %3312 = vrot.lane.b32.xlu0 %v3311_v11, %s3836_s20  ;;  %v646_v11 = vld [vmem:[#allocation2 + $0x168] sm:$0xff]  ;;  %3008 = vmatprep.subr.bf16.mxu0 %v3751_v30 }
  0x89   : > { %v4359_v54 = vpack.i.bf16 %v647_v48, %v646_v11  ;;  %3050 = vmatprep.subr.bf16.mxu1 %v3751_v30  ;;  %3009 = vmatpush3.bf16.msra.mxu0 %v3751_v30  ;;  %v3752_v11 = vld [vmem:[%s5684_s3 + $0x8] sm:$0xff]  }
  0x8a   : > { %3055 = vmatpush3.bf16.msra.mxu1 %v3751_v30  ;;  %3010 = vmatprep.subr.bf16.mxu0 %v3752_v11  ;;  %v3755_v30 = vld [vmem:[%s5684_s3 + $0x20] ss:$0 sps:$4 sm:$0xff]  }
  0x8b   : > { %3317 = vrot.lane.b32.xlu1 %v4339_v59, %s3836_s20  ;;  %3051 = vmatprep.subr.bf16.mxu1 %v3752_v11 }
  0x8c   : > { %3322 = vrot.lane.b32.xlu0 %v4343_v60, %s3836_s20 }
  0x8d   : > { %3011 = vmatpush3.bf16.msra.mxu0 %v3752_v11 }
  0x8e   : > { %3056 = vmatpush3.bf16.msra.mxu1 %v3752_v11  ;;  %3012 = vmatprep.subr.bf16.mxu0 %v3753_v62 }
  0x8f   : > { %3327 = vrot.lane.b32.xlu1 %v4347_v51, %s3836_s20  ;;  %3052 = vmatprep.subr.bf16.mxu1 %v3753_v62 }
  0x90   : > { %3332 = vrot.lane.b32.xlu0 %v4351_v8, %s3836_s20 }
  0x91   : > { %3013 = vmatpush3.bf16.msra.mxu0 %v3753_v62 }
  0x92   : > { %3057 = vmatpush3.bf16.msra.mxu1 %v3753_v62 }
  0x93   : > { %3337 = vrot.lane.b32.xlu1 %v4355_v53, %s3836_s20  ;;  %v4375_v49 = vpop.permute.xlu0 %3112 }
  0x94   : > { %3342 = vrot.lane.b32.xlu0 %v4359_v54, %s3836_s20 }
  0x97   : > { %3347 = vrot.lane.b32.xlu1 %v3346_v52, %s3836_s20  ;;  %v3754_v52 = vld [vmem:[%s5684_s3 + $0x18] sm:$0xff]  }
  0x98   : > { %3352 = vrot.lane.b32.xlu0 %v4084_v31, %s3837_s26  ;;  %3014 = vmatprep.subr.bf16.mxu0 %v3754_v52 }
  0x99   : > { %3053 = vmatprep.subr.bf16.mxu1 %v3754_v52  ;;  %3015 = vmatpush3.bf16.msra.mxu0 %v3754_v52 }
  0x9a   : > { %3058 = vmatpush3.bf16.msra.mxu1 %v3754_v52  ;;  %3060 = vmatprep.subr.msk.bf16.mxu0 %vm2199_vm2, %v3755_v30  ;;  %v752_v52 = vld [vmem:[#allocation2 + $0x69] sm:$0xff] }
  0x9b   : > { %3357 = vrot.lane.b32.xlu1 %v4080_v24, %s3837_s26  ;;  %3061 = vmatprep.subr.msk.bf16.mxu1 %vm2199_vm2, %v3755_v30 }
  0x9c   : > { %3362 = vrot.lane.b32.xlu0 %v4086_v32, %s3837_s26  ;;  %v680_v32 = vld [vmem:[#allocation2 + $0x181] sm:$0xff] }
  0x9f   : > { %3367 = vrot.lane.b32.xlu1 %v4105_v50, %s3837_s26  ;;  %v681_v50 = vld [vmem:[#allocation2 + $0x189] sm:$0xff] }
  0xa0   : > { %3372 = vrot.lane.b32.xlu0 %v4118_v61, %s3837_s26 }
  0xa3   : > { %3377 = vrot.lane.b32.xlu1 %v4128_v5, %s3837_s26 }
  0xa4   : > { %3382 = vrot.lane.b32.xlu0 %v4139_v18, %s3837_s26  ;;  %v3426_v18 = vpack.i.bf16 %v681_v50, %v680_v32  ;;  %v750_v32 = vld [vmem:[#allocation2 + $0x51] sm:$0xff] }
  0xa7   : > { %3387 = vrot.lane.b32.xlu1 %v4144_v22, %s3837_s26 }
  0xa8   : > { %3392 = vrot.lane.b32.xlu0 %v4159_v37, %s3837_s26 }
  0xab   : > { %3397 = vrot.lane.b32.xlu1 %v4165_v41, %s3837_s26 }
  0xac   : > { %3402 = vrot.lane.b32.xlu0 %v4186_v55, %s3837_s26 }
  0xad   : > { %v4379_v24 = vpop.permute.xlu1 %3122 }
  0xae   : > { %v4381_v31 = vpop.permute.xlu0 %3117 }
  0xaf   : > { %3407 = vrot.lane.b32.xlu1 %v4190_v1, %s3837_s26 }
  0xb0   : > { %3412 = vrot.lane.b32.xlu0 %v4196_v2, %s3837_s26 }
  0xb1   : > { %v4385_v61 = vpop.permute.xlu1 %3127 }
  0xb2   : > { %v4387_v5 = vpop.permute.xlu0 %3132 }
  0xb3   : > { %3417 = vrot.lane.b32.xlu1 %v4200_v63, %s3837_s26 }
  0xb4   : > { %3422 = vrot.lane.b32.xlu0 %v4204_v7, %s3837_s26 }
  0xb5   : > { %v4391_v22 = vpop.permute.xlu1 %3137 }
  0xb6   : > { %v4393_v37 = vpop.permute.xlu0 %3142 }
  0xb7   : > { %3427 = vrot.lane.b32.xlu1 %v3426_v18, %s3837_s26  ;;  %s2948_s26 = sshll.u32 %s272_s13, 8 }
  0xb8   : > { %3432 = vrot.lane.b32.xlu0 %v4210_v13, %s3838_s28  ;;  %v5734_v13 = vpack.i.bf16 %v4155_v36, %v4153_v35  ;;  %v5736_v35 = vpack.i.bf16 %v4172_v44, %v4170_v43 }
  0xb9   : > { %v4397_v1 = vpop.permute.xlu1 %3147 }
  0xba   : > { %5733 = vst [vmem:[#allocation9_spill] sm:$0xff] %v4397_v1  ;;  %v4399_v2 = vpop.permute.xlu0 %3152 }
  0xbb   : > { %3437 = vrot.lane.b32.xlu1 %v4213_v14, %s3838_s28 }
  0xbc   : > { %3442 = vrot.lane.b32.xlu0 %v4217_v20, %s3838_s28 }
  0xbd   : > { %v4405_v63 = vpop.permute.xlu1 %3157 }
  0xbe   : > { %v4407_v7 = vpop.permute.xlu0 %3162 }
  0xbf   : > { %3447 = vrot.lane.b32.xlu1 %v4221_v21, %s3838_s28  ;;  %v5735_v21 = vpack.i.bf16 %v4168_v42, %v4161_v40  ;;  %v747_v40 = vld [vmem:[#allocation2 + $0x31] sm:$0xff]  ;;  %v748_v42 = vld [vmem:[#allocation2 + $0x39] sm:$0xff] }
  0xc0   : > { %3452 = vrot.lane.b32.xlu0 %v5734_v13, %s3838_s28 }
  0xc1   : > { %v4418_v12 = vpop.permute.xlu1 %3167 }
  0xc2   : > { %v4420_v48 = vpop.permute.xlu0 %3172 }
  0xc3   : > { %3457 = vrot.lane.b32.xlu1 %v5735_v21, %s3838_s28 }
  0xc4   : > { %3462 = vrot.lane.b32.xlu0 %v5736_v35, %s3838_s28 }
  0xc5   : > { %v4433_v36 = vpop.permute.xlu1 %3177 }
  0xc6   : > { %5737 = vst [vmem:[#allocation10_spill] sm:$0xff] %v4433_v36  ;;  %v4435_v33 = vpop.permute.xlu0 %3182 }
  0xc7   : > { %5738 = vst [vmem:[#allocation11_spill] sm:$0xff] %v4435_v33  ;;  %3467 = vrot.lane.b32.xlu1 %v4285_v25, %s3839_s15  ;;  %v3486_v25 = vpack.i.bf16 %v748_v42, %v747_v40 }
  0xc8   : > { %3472 = vrot.lane.b32.xlu0 %v4339_v59, %s3839_s15  ;;  %v749_v59 = vld [vmem:[#allocation2 + $0x49] sm:$0xff] }
  0xc9   : > { %v4444_v43 = vpop.permute.xlu1 %3187 }
  0xca   : > { %5739 = vst [vmem:[#allocation12_spill] sm:$0xff] %v4444_v43  ;;  %v4446_v44 = vpop.permute.xlu0 %3192 }
  0xcb   : > { %3477 = vrot.lane.b32.xlu1 %v4290_v26, %s3839_s15  ;;  %v3496_v26 = vpack.i.bf16 %v750_v32, %v749_v59  ;;  %v754_v32 = vld [vmem:[#allocation2 + $0x81] sm:$0xff] }
  0xcc   : > { %3482 = vrot.lane.b32.xlu0 %v4343_v60, %s3839_s15  ;;  %v2201_v60 = vsel %vm2199_vm2, %v3755_v30, 0 }
  0xcd   : > { %v4455_v50 = vpop.permute.xlu1 %3197  ;;  %3017 = vmatpush3.bf16.msra.mxu0 %v2201_v60  ;;  %3059 = vmatpush3.bf16.msra.mxu1 %v2201_v60 }
  0xce   : > { %v4457_v18 = vpop.permute.xlu0 %3202 }
  0xcf   : > { %3487 = vrot.lane.b32.xlu1 %v3486_v25, %s3840_s10 }
  0xd0   : > { %3492 = vrot.lane.b32.xlu0 %v4165_v41, %s3840_s10 }
  0xd1   : > { %v4465_v13 = vpop.permute.xlu1 %3207 }
  0xd2   : > { %v4467_v11 = vpop.permute.xlu0 %3212 }
  0xd3   : > { %5740 = vst [vmem:[#allocation13_spill] sm:$0xff] %v4467_v11  ;;  %3497 = vrot.lane.b32.xlu1 %v3496_v26, %s3840_s10  ;;  %v770_v26 = vld [vmem:[#allocation2 + $0x141] sm:$0xff] }
  0xd4   : > { %3502 = vrot.lane.b32.xlu0 %v4186_v55, %s3840_s10 }
  0xd5   : > { %v4472_v21 = vpop.permute.xlu1 %3217 }
  0xd6   : > { %5741 = vst [vmem:[#allocation14_spill] sm:$0xff] %v4472_v21  ;;  %v4474_v35 = vpop.permute.xlu0 %3222 }
  0xd7   : > { %5742 = vst [vmem:[#allocation15_spill] sm:$0xff] %v4474_v35  ;;  %3507 = vrot.lane.b32.xlu1 %v4213_v14, %s3841_s11  ;;  %v5744_v14 = vpack.i.bf16 %v4227_v28, %v4225_v27  ;;  %v767_v27 = vld [vmem:[#allocation2 + $0x121] sm:$0xff]  ;;  %v768_v28 = vld [vmem:[#allocation2 + $0x129] sm:$0xff] }
  0xd8   : > { %3512 = vrot.lane.b32.xlu0 %v4249_v56, %s3841_s11  ;;  %v5745_v56 = vpack.i.bf16 %v4223_v23, %v4229_v29  ;;  %v3561_v29 = vpack.i.bf16 %v768_v28, %v767_v27  ;;  %v785_v28 = vld [vmem:[#allocation2 + $0x7a] sm:$0xff] }
  0xd9   : > { %v4480_v41 = vpop.permute.xlu1 %3227  ;;  %v709_v35 = vld [vmem:[#allocation2 + $0x15a] sm:$0xff] }
  0xda   : > { %5743 = vst [vmem:[#allocation16_spill] sm:$0xff] %v4480_v41  ;;  %v4482_v62 = vpop.permute.xlu0 %3232  ;;  %v708_v41 = vld [vmem:[#allocation2 + $0x152] sm:$0xff] }
  0xdb   : > { %3517 = vrot.lane.b32.xlu1 %v4217_v20, %s3841_s11 }
  0xdc   : > { %3522 = vrot.lane.b32.xlu0 %v4254_v57, %s3841_s11  ;;  %v751_v57 = vld [vmem:[#allocation2 + $0x61] sm:$0xff] }
  0xdd   : > { %v4488_v55 = vpop.permute.xlu1 %3237  ;;  %v3556_v23 = vpack.i.bf16 %v752_v52, %v751_v57  ;;  %v784_v57 = vld [vmem:[#allocation2 + $0x6a] sm:$0xff] }
  0xde   : > { %v4490_v40 = vpop.permute.xlu0 %3242 }
  0xdf   : > { %3527 = vrot.lane.b32.xlu1 %v5744_v14, %s3838_s28 }
  0xe0   : > { %3532 = vrot.lane.b32.xlu0 %v5745_v56, %s3838_s28 }
  0xe1   : > { %v4500_v42 = vpop.permute.xlu1 %3247 }
  0xe2   : > { %v4502_v20 = vpop.permute.xlu0 %3252 }
  0xe3   : > { %5746 = vst [vmem:[#allocation17_spill] sm:$0xff] %v4502_v20  ;;  %3537 = vrot.lane.b32.xlu1 %v4304_v46, %s3839_s15  ;;  %v753_v46 = vld [vmem:[#allocation2 + $0x79] sm:$0xff] }
  0xe4   : > { %3542 = vrot.lane.b32.xlu0 %v4347_v51, %s3839_s15  ;;  %v769_v51 = vld [vmem:[#allocation2 + $0x139] sm:$0xff]  ;;  %v3566_v14 = vpack.i.bf16 %v754_v32, %v753_v46  ;;  %v802_v46 = vld [vmem:[#allocation2 + $0x142] sm:$0xff] }
  0xe5   : > { %v4508_v25 = vpop.permute.xlu1 %3257  ;;  %v3571_v56 = vpack.i.bf16 %v770_v26, %v769_v51  ;;  %v730_v20 = vld [vmem:[#allocation2 + $0xe0] sm:$0xff] }
  0xe6   : > { %5747 = vst [vmem:[#allocation18_spill] sm:$0xff] %v4508_v25  ;;  %v4510_v59 = vpop.permute.xlu0 %3262  ;;  %v758_v25 = vld [vmem:[#allocation2 + $0xb1] sm:$0xff] }
  0xe7   : > { %5748 = vst [vmem:[#allocation19_spill] sm:$0xff] %v4510_v59  ;;  %3547 = vrot.lane.b32.xlu1 %v4310_v47, %s3839_s15  ;;  %v783_v47 = vld [vmem:[#allocation2 + $0x62] sm:$0xff] }
  0xe8   : > { %3552 = vrot.lane.b32.xlu0 %v4351_v8, %s3839_s15  ;;  %v3576_v27 = vpack.i.bf16 %v784_v57, %v783_v47  ;;  %v693_v47 = vld [vmem:[#allocation2 + $0x9a] sm:$0xff] }
  0xe9   : > { %v4516_v30 = vpop.permute.xlu1 %3267 }
  0xea   : > { %5749 = vst [vmem:[#allocation20_spill] sm:$0xff] %v4516_v30  ;;  %v4518_v60 = vpop.permute.xlu0 %3272  ;;  %v786_v30 = vld [vmem:[#allocation2 + $0x82] sm:$0xff] }
  0xeb   : > { %3557 = vrot.lane.b32.xlu1 %v3556_v23, %s3840_s10  ;;  %v801_v23 = vld [vmem:[#allocation2 + $0x13a] sm:$0xff] }
  0xec   : > { %3562 = vrot.lane.b32.xlu0 %v3561_v29, %s3840_s10  ;;  %v3586_v29 = vpack.i.bf16 %v786_v30, %v785_v28  ;;  %v3591_v51 = vpack.i.bf16 %v802_v46, %v801_v23  ;;  %v723_v30 = vld [vmem:[#allocation2 + $0x90] sm:$0xff] }
  0xed   : > { %v4522_v52 = vpop.permute.xlu1 %3277 }
  0xee   : > { %v4524_v8 = vpop.permute.xlu0 %3282 }
  0xef   : > { %5750 = vst [vmem:[#allocation21_spill] sm:$0xff] %v4524_v8  ;;  %3567 = vrot.lane.b32.xlu1 %v3566_v14, %s3840_s10  ;;  %v692_v14 = vld [vmem:[#allocation2 + $0x92] sm:$0xff] }
  0xf0   : > { %3572 = vrot.lane.b32.xlu0 %v3571_v56, %s3840_s10  ;;  %v3601_v57 = vpack.i.bf16 %v693_v47, %v692_v14 }
  0xf1   : > { %v4528_v59 = vpop.permute.xlu1 %3287 }
  0xf2   : > { %5751 = vst [vmem:[#allocation22_spill] sm:$0xff] %v4528_v59  ;;  %v4530_v32 = vpop.permute.xlu0 %3292  ;;  %v522_v59 = vld [vmem:[#allocation2] sm:$0xff] }
  0xf3   : > { %5752 = vst [vmem:[#allocation23_spill] sm:$0xff] %v4530_v32  ;;  %3577 = vrot.lane.b32.xlu1 %v3576_v27, %s3841_s11  ;;  %v724_v27 = vld [vmem:[#allocation2 + $0x98] sm:$0xff]  ;;  %v757_v32 = vld [vmem:[#allocation2 + $0xa9] sm:$0xff] }
  0xf4   : > { %3582 = vrot.lane.b32.xlu0 %v4260_v58, %s3841_s11  ;;  %v3606_v58 = vpack.i.bf16 %v709_v35, %v708_v41  ;;  %v3611_v23 = vpack.i.bf16 %v724_v27, %v723_v30  ;;  %v771_v41 = vld [vmem:[#allocation2 + $0x151] sm:$0xff]  ;;  %v772_v30 = vld [vmem:[#allocation2 + $0x159] sm:$0xff] }
  0xf5   : > { %v4535_v26 = vpop.permute.xlu1 %3297 }
  0xf6   : > { %5753 = vst [vmem:[#allocation24_spill] sm:$0xff] %v4535_v26  ;;  %v4537_v56 = vpop.permute.xlu0 %3302  ;;  %v756_v26 = vld [vmem:[#allocation2 + $0x99] sm:$0xff] }
  0xf7   : > { %5754 = vst [vmem:[#allocation25_spill] sm:$0xff] %v4537_v56  ;;  %3587 = vrot.lane.b32.xlu1 %v3586_v29, %s3841_s11  ;;  %v725_v29 = vld [vmem:[#allocation2 + $0xa8] sm:$0xff]  ;;  %v726_v56 = vld [vmem:[#allocation2 + $0xb0] sm:$0xff] }
  0xf8   : > { %3592 = vrot.lane.b32.xlu0 %v3591_v51, %s3841_s11  ;;  %v3621_v14 = vpack.i.bf16 %v726_v56, %v725_v29  ;;  %v3636_v56 = vpack.i.bf16 %v772_v30, %v771_v41  ;;  %v3641_v29 = vpack.i.bf16 %v758_v25, %v757_v32  ;;  %v805_v32 = vld [vmem:[#allocation2 + $0x16a] sm:$0xff] }
  0xf9   : > { %v4541_v43 = vpop.permute.xlu1 %3307 }
  0xfa   : > { %5755 = vst [vmem:[#allocation26_spill] sm:$0xff] %v4541_v43  ;;  %v4543_v28 = vpop.permute.xlu0 %3312  ;;  %v755_v43 = vld [vmem:[#allocation2 + $0x91] sm:$0xff] }
  0xfb   : > { %3597 = vrot.lane.b32.xlu1 %v3591_v51, %s3838_s28  ;;  %v3631_v35 = vpack.i.bf16 %v756_v26, %v755_v43 }
  0xfc   : > { %3602 = vrot.lane.b32.xlu0 %v3601_v57, %s3838_s28 }
  0xfd   : > { %v4547_v46 = vpop.permute.xlu1 %3317 }
  0xfe   : > { %v4549_v33 = vpop.permute.xlu0 %3322 }
  0xff   : > { %5756 = vst [vmem:[#allocation27_spill] sm:$0xff] %v4549_v33  ;;  %3607 = vrot.lane.b32.xlu1 %v3606_v58, %s3838_s28  ;;  %v776_v33 = vld [vmem:[#allocation2 + $0x189] sm:$0xff] }
 0x100   : > { %3612 = vrot.lane.b32.xlu0 %v3611_v23, %s3839_s15 }
 0x101   : > { %v4553_v47 = vpop.permute.xlu1 %3327 }
 0x102   : > { %5757 = vst [vmem:[#allocation28_spill] sm:$0xff] %v4553_v47  ;;  %v4555_v51 = vpop.permute.xlu0 %3332  ;;  %v775_v47 = vld [vmem:[#allocation2 + $0x181] sm:$0xff] }
 0x103   : > { %5758 = vst [vmem:[#allocation29_spill] sm:$0xff] %v4555_v51  ;;  %3617 = vrot.lane.b32.xlu1 %v4355_v53, %s3839_s15  ;;  %v773_v51 = vld [vmem:[#allocation2 + $0x169] sm:$0xff]  ;;  %v774_v53 = vld [vmem:[#allocation2 + $0x171] sm:$0xff] }
 0x104   : > { %3622 = vrot.lane.b32.xlu0 %v3621_v14, %s3839_s15  ;;  %v3646_v26 = vpack.i.bf16 %v774_v53, %v773_v51  ;;  %v697_v53 = vld [vmem:[#allocation2 + $0xca] sm:$0xff] }
 0x105   : > { %v4560_v27 = vpop.permute.xlu1 %3337 }
 0x106   : > { %5759 = vst [vmem:[#allocation30_spill] sm:$0xff] %v4560_v27  ;;  %v4562_v23 = vpop.permute.xlu0 %3342  ;;  %v790_v27 = vld [vmem:[#allocation2 + $0xb2] sm:$0xff] }
 0x107   : > { %5760 = vst [vmem:[#allocation31_spill] sm:$0xff] %v4562_v23  ;;  %3627 = vrot.lane.b32.xlu1 %v4359_v54, %s3839_s15  ;;  %v789_v23 = vld [vmem:[#allocation2 + $0xaa] sm:$0xff] }
 0x108   : > { %3632 = vrot.lane.b32.xlu0 %v3631_v35, %s3840_s10  ;;  %v3661_v25 = vpack.i.bf16 %v790_v27, %v789_v23  ;;  %v806_v35 = vld [vmem:[#allocation2 + $0x172] sm:$0xff]  ;;  %v712_v27 = vld [vmem:[#allocation2 + $0x182] sm:$0xff]  ;;  %v713_v23 = vld [vmem:[#allocation2 + $0x18a] sm:$0xff] }
 0x109   : > { %v4567_v1 = vpop.permute.xlu1 %3347  ;;  %v3666_v51 = vpack.i.bf16 %v806_v35, %v805_v32  ;;  %v728_v32 = vld [vmem:[#allocation2 + $0xc8] sm:$0xff] }
 0x10a   : > { %5761 = vst [vmem:[#allocation32_spill] sm:$0xff] %v4567_v1  ;;  %v4569_v43 = vpop.permute.xlu0 %3352 }
 0x10b   : > { %3637 = vrot.lane.b32.xlu1 %v3636_v56, %s3840_s10 }
 0x10c   : > { %3642 = vrot.lane.b32.xlu0 %v3641_v29, %s3840_s10  ;;  %v696_v29 = vld [vmem:[#allocation2 + $0xc2] sm:$0xff] }
 0x10d   : > { %v4573_v14 = vpop.permute.xlu1 %3357 }
 0x10e   : > { %v4575_v54 = vpop.permute.xlu0 %3362 }
 0x10f   : > { %5762 = vst [vmem:[#allocation33_spill] sm:$0xff] %v4575_v54  ;;  %3647 = vrot.lane.b32.xlu1 %v3646_v26, %s3840_s10 }
 0x110   : > { %3652 = vrot.lane.b32.xlu0 %v3601_v57, %s3841_s11  ;;  %v4591_v57 = vpack.i.bf16 %v697_v53, %v696_v29  ;;  %v729_v53 = vld [vmem:[#allocation2 + $0xd8] sm:$0xff] }
 0x111   : > { %v4579_v41 = vpop.permute.xlu1 %3367 }
 0x112   : > { %5763 = vst [vmem:[#allocation34_spill] sm:$0xff] %v4579_v41  ;;  %v4581_v30 = vpop.permute.xlu0 %3372 }
 0x113   : > { %5764 = vst [vmem:[#allocation35_spill] sm:$0xff] %v4581_v30  ;;  %3657 = vrot.lane.b32.xlu1 %v3606_v58, %s3841_s11  ;;  %v727_v58 = vld [vmem:[#allocation2 + $0xc0] sm:$0xff] }
 0x114   : > { %3662 = vrot.lane.b32.xlu0 %v3661_v25, %s3841_s11  ;;  %v743_v30 = vld [vmem:[#allocation2 + $0x180] sm:$0xff] }
 0x115   : > { %v4585_v56 = vpop.permute.xlu1 %3377 }
 0x116   : > { %5765 = vst [vmem:[#allocation36_spill] sm:$0xff] %v4585_v56  ;;  %v4587_v1 = vpop.permute.xlu0 %3382  ;;  %v4598_v56 = vpack.i.bf16 %v713_v23, %v712_v27  ;;  %v745_v27 = vld [vmem:[#allocation2 + $0x198] sm:$0xff]  ;;  %v746_v23 = vld [vmem:[#allocation2 + $0x1a0] sm:$0xff] }
 0x117   : > { %5766 = vst [vmem:[#allocation37_spill] sm:$0xff] %v4587_v1  ;;  %3667 = vrot.lane.b32.xlu1 %v3666_v51, %s3841_s11  ;;  %v3691_v1 = vpack.i.bf16 %v728_v32, %v727_v58  ;;  %v759_v58 = vld [vmem:[#allocation2 + $0xc1] sm:$0xff]  ;;  %v760_v32 = vld [vmem:[#allocation2 + $0xc9] sm:$0xff]  ;;  %v3706_v54 = vpack.i.bf16 %v746_v23, %v745_v27  ;;  %v3119_v27 = vunpack.i.l.bf16 %v4381_v31  ;;  %v3716_v23 = vpack.i.bf16 %v776_v33, %v775_v47 }
 0x118   : > { %3672 = vrot.lane.b32.xlu0 %v3661_v25, %s3838_s28  ;;  %v744_v25 = vld [vmem:[#allocation2 + $0x188] sm:$0xff]  ;;  %v3135_v47 = vunpack.i.h.bf16 %v4387_v5 }
 0x119   : > { %v4593_v26 = vpop.permute.xlu1 %3387 }
 0x11a   : > { %5767 = vst [vmem:[#allocation38_spill] sm:$0xff] %v4593_v26  ;;  %v4595_v35 = vpop.permute.xlu0 %3392  ;;  %v3696_v26 = vpack.i.bf16 %v744_v25, %v743_v30  ;;  %v3115_v30 = vunpack.i.h.bf16 %v4375_v49  ;;  %v761_v25 = vld [vmem:[#allocation2 + $0xd9] sm:$0xff] }
 0x11b   : > { %5768 = vst [vmem:[#allocation39_spill] sm:$0xff] %v4595_v35  ;;  %3677 = vrot.lane.b32.xlu1 %v3666_v51, %s3838_s28  ;;  %v3701_v51 = vpack.i.bf16 %v730_v20, %v729_v53  ;;  %v762_v53 = vld [vmem:[#allocation2 + $0xe1] sm:$0xff] }
 0x11c   : > { %3682 = vrot.lane.b32.xlu0 %v4591_v57, %s3838_s28  ;;  %v3721_v8 = vpack.i.bf16 %v762_v53, %v761_v25  ;;  %v794_v35 = vld [vmem:[#allocation2 + $0xe2] sm:$0xff]  ;;  %v3154_v53 = vunpack.i.l.bf16 %v4399_v2 }
 0x11d   : > { %v4602_v29 = vpop.permute.xlu1 %3397  ;;  %v810_v25 = vld [vmem:[#allocation2 + $0x1a2] sm:$0xff] }
 0x11e   : > { %5769 = vst [vmem:[#allocation40_spill] sm:$0xff] %v4602_v29  ;;  %v4604_v21 = vpop.permute.xlu0 %3402 }
 0x11f   : > { %5770 = vst [vmem:[#allocation41_spill] sm:$0xff] %v4604_v21  ;;  %3687 = vrot.lane.b32.xlu1 %v4598_v56, %s3838_s28  ;;  %v3711_v21 = vpack.i.bf16 %v760_v32, %v759_v58  ;;  %v778_v58 = vld [vmem:[#allocation2 + $0x1a1] sm:$0xff]  ;;  %v3130_v32 = vunpack.i.h.bf16 %v4385_v61  ;;  %s5317_s28 = scalar_lea.vmem %s5685_s4, %s3990_s12  ;;  %s5438_s12 = scalar_lea.vmem [#allocation3], %s2948_s26 }
 0x120   : > { %3692 = vrot.lane.b32.xlu0 %v3691_v1, %s3839_s15  ;;  %v3114_v1 = vunpack.i.l.bf16 %v4375_v49  ;;  %v777_v49 = vld [vmem:[#allocation2 + $0x199] sm:$0xff]  ;;  %s2858_s29 = sshll.u32 %s5438_s12, 4  ;;  %s5633_s29 = int_to_ptr.vmem [resolvable:$true] %s2858_s29 }
 0x121   : > { %v4609_v11 = vpop.permute.xlu1 %3407 }
 0x122   : > { %5771 = vst [vmem:[#allocation42_spill] sm:$0xff] %v4609_v11  ;;  %v4611_v41 = vpop.permute.xlu0 %3412  ;;  %v523_v11 = vld [vmem:[#allocation2 + $0x8] sm:$0xff] }
 0x123   : > { %5772 = vst [vmem:[#allocation43_spill] sm:$0xff] %v4611_v41  ;;  %3697 = vrot.lane.b32.xlu1 %v3696_v26, %s3839_s15  ;;  %v3124_v41 = vunpack.i.l.bf16 %v4379_v24  ;;  %v3125_v26 = vunpack.i.h.bf16 %v4379_v24  ;;  %v1835_v24 = vsel %vm433_vm0, %v522_v59, %v3114_v1  ;;  %v1837_v59 = vsel %vm433_vm0, %v4266_v9, %v3119_v27  ;;  %v809_v1 = vld [vmem:[#allocation2 + $0x19a] sm:$0xff] }
 0x124   : > { %3702 = vrot.lane.b32.xlu0 %v3701_v51, %s3839_s15  ;;  %v3120_v51 = vunpack.i.h.bf16 %v4381_v31  ;;  %v793_v31 = vld [vmem:[#allocation2 + $0xda] sm:$0xff]  ;;  %v3746_v27 = vpack.i.bf16 %v810_v25, %v809_v1 }
 0x125   : > { %v4617_v20 = vpop.permute.xlu1 %3417  ;;  %v4635_v33 = vsel %vm433_vm0, %v4274_v15, %v3124_v41  ;;  %v3140_v15 = vunpack.i.h.bf16 %v4391_v22  ;;  %v3741_v9 = vpack.i.bf16 %v794_v35, %v793_v31  ;;  %v3164_v35 = vunpack.i.l.bf16 %v4407_v7  ;;  %v5777_v1 = vld [vmem:[#allocation8_spill] sm:$0xff] }
 0x126   : > { %5773 = vst [vmem:[#allocation44_spill] sm:$0xff] %v4617_v20  ;;  %v4620_v36 = vpop.permute.xlu0 %3422  ;;  %v3129_v20 = vunpack.i.l.bf16 %v4385_v61  ;;  %v3134_v61 = vunpack.i.l.bf16 %v4387_v5  ;;  %v4653_v5 = vsel %vm433_vm0, %v4280_v19, %v3130_v32  ;;  %v3159_v19 = vunpack.i.l.bf16 %v4405_v63 }
 0x127   : > { %5774 = vst [vmem:[#allocation45_spill] sm:$0xff] %v4620_v36  ;;  %3707 = vrot.lane.b32.xlu1 %v3706_v54, %s3839_s15  ;;  %v1836_v36 = vsel %vm433_vm0, %v523_v11, %v3115_v30  ;;  %v4643_v11 = vsel %vm433_vm0, %v4276_v16, %v3125_v26  ;;  %v1838_v30 = vsel %vm433_vm0, %v4268_v10, %v3120_v51  ;;  %v3139_v16 = vunpack.i.l.bf16 %v4391_v22 }
 0x128   : > { %3712 = vrot.lane.b32.xlu0 %v3711_v21, %s3840_s10  ;;  %v3726_v21 = vpack.i.bf16 %v778_v58, %v777_v49  ;;  %v4657_v41 = vsel %vm433_vm0, %v4278_v17, %v3129_v20  ;;  %v3155_v10 = vunpack.i.h.bf16 %v4399_v2  ;;  %v3160_v26 = vunpack.i.h.bf16 %v4405_v63 }
 0x129   : > { %v4631_v29 = vpop.permute.xlu1 %3427  ;;  %v4669_v17 = vsel %vm433_vm0, %v4294_v38, %v3135_v47  ;;  %v4673_v22 = vsel %vm433_vm0, %v4292_v34, %v3134_v61  ;;  %v4681_v63 = vsel %vm433_vm0, %v4298_v45, %v3140_v15  ;;  %v4688_v34 = vsel %vm433_vm0, %v4296_v39, %v3139_v16  ;;  %v5775_v47 = vld [vmem:[#allocation7_spill] sm:$0xff]  ;;  %v5776_v61 = vld [vmem:[#allocation6_spill] sm:$0xff] }
 0x12a   : > { %v4639_v54 = vpop.permute.xlu0 %3432  ;;  %v3194_v49 = vunpack.i.l.bf16 %v4446_v44  ;;  %v1852_v45 = vsel %vm433_vm0, %v4318_v3, %v3155_v10  ;;  %v1851_v58 = vsel %vm433_vm0, %v4316_v0, %v3154_v53  ;;  %v1854_v32 = vsel %vm433_vm0, %v4322_v6, %v3160_v26 }
 0x12b   : > { %3717 = vrot.lane.b32.xlu1 %v3716_v23, %s3840_s10  ;;  %v3195_v23 = vunpack.i.h.bf16 %v4446_v44  ;;  %v1853_v39 = vsel %vm433_vm0, %v4320_v4, %v3159_v19  ;;  %v3200_v3 = vunpack.i.h.bf16 %v4455_v50  ;;  %v3199_v0 = vunpack.i.l.bf16 %v4455_v50 }
 0x12c   : > { %3722 = vrot.lane.b32.xlu0 %v3721_v8, %s3840_s10  ;;  %v3165_v8 = vunpack.i.h.bf16 %v4407_v7  ;;  %v3170_v7 = vunpack.i.h.bf16 %v4418_v12  ;;  %v3169_v6 = vunpack.i.l.bf16 %v4418_v12  ;;  %v3235_v15 = vunpack.i.h.bf16 %v4482_v62 }
 0x12d   : > { %v4665_v51 = vpop.permute.xlu1 %3437  ;;  %v3234_v16 = vunpack.i.l.bf16 %v4482_v62  ;;  %v1869_v10 = vsel %vm1867_vm3, %v1836_v36, %v3195_v23  ;;  %v1868_v53 = vsel %vm1867_vm3, %v1835_v24, %v3194_v49  ;;  %v3205_v26 = vunpack.i.h.bf16 %v4457_v18 }
 0x12e   : > { %v4677_v2 = vpop.permute.xlu0 %3442  ;;  %v4707_v44 = vsel %vm433_vm0, %v5775_v47, %v3165_v8  ;;  %v4725_v25 = vsel %vm433_vm0, %v5777_v1, %v3170_v7  ;;  %v3240_v62 = vunpack.i.h.bf16 %v4488_v55  ;;  %v3239_v19 = vunpack.i.l.bf16 %v4488_v55 }
 0x12f   : > { %3727 = vrot.lane.b32.xlu1 %v3726_v21, %s3840_s10  ;;  %v1870_v7 = vsel %vm1867_vm3, %v1837_v59, %v3199_v0  ;;  %v1871_v36 = vsel %vm1867_vm3, %v1838_v30, %v3200_v3  ;;  %v3204_v24 = vunpack.i.l.bf16 %v4457_v18  ;;  %v1884_v47 = vsel %vm1867_vm3, %v1851_v58, %v3234_v16  ;;  %v2397_v0 = vld [vmem:[%s4001_s17 + $0x8] sm:$0xff]  ;;  %v5779_v58 = vld [vmem:[#allocation40_spill] sm:$0xff] }
 0x130   : > { %3732 = vrot.lane.b32.xlu0 %v4591_v57, %s3841_s11  ;;  %v4711_v57 = vsel %vm433_vm0, %v5776_v61, %v3164_v35  ;;  %v2396_v35 = vld [vmem:[%s4001_s17] sm:$0xff]  ;;  %v1885_v61 = vsel %vm1867_vm3, %v1852_v45, %v3235_v15  ;;  %v3279_v3 = vunpack.i.l.bf16 %v4522_v52  ;;  %v1887_v1 = vsel %vm1867_vm3, %v1854_v32, %v3240_v62  ;;  %v2398_v15 = vld [vmem:[%s4001_s17 + $0x10] sm:$0xff] }
 0x131   : > { %v4703_v31 = vpop.permute.xlu1 %3447  ;;  %v1886_v38 = vsel %vm1867_vm3, %v1853_v39, %v3239_v19  ;;  %v3315_v50 = vunpack.i.h.bf16 %v4543_v28  ;;  %v3320_v32 = vunpack.i.h.bf16 %v4547_v46  ;;  %v3355_v39 = vunpack.i.h.bf16 %v4569_v43 }
 0x132   : > { %v4715_v21 = vpop.permute.xlu0 %3452  ;;  %v3359_v62 = vunpack.i.l.bf16 %v4573_v14  ;;  %v3399_v59 = vunpack.i.l.bf16 %v5779_v58  ;;  %v1872_v12 = vsel %vm1867_vm3, %v4635_v33, %v3204_v24  ;;  %v5784_v18 = vunpack.i.l.bf16 %v4490_v40 }
 0x133   : > { %3737 = vrot.lane.b32.xlu1 %v4598_v56, %s3841_s11  ;;  %v3274_v56 = vunpack.i.l.bf16 %v4518_v60 }
 0x134   : > { %3742 = vrot.lane.b32.xlu0 %v3741_v9, %s3841_s11  ;;  %v3275_v9 = vunpack.i.h.bf16 %v4518_v60  ;;  %v3280_v60 = vunpack.i.h.bf16 %v4522_v52  ;;  %v3314_v52 = vunpack.i.l.bf16 %v4543_v28  ;;  %v3360_v28 = vunpack.i.h.bf16 %v4573_v14 }
 0x135   : > { %v4735_v8 = vpop.permute.xlu1 %3457  ;;  %v1901_v45 = vsel %vm1900_vm4, %v1868_v53, %v3274_v56  ;;  %v3354_v53 = vunpack.i.l.bf16 %v4569_v43  ;;  %v5778_v56 = vld [vmem:[#allocation39_spill] sm:$0xff]  ;;  %v3400_v43 = vunpack.i.h.bf16 %v5779_v58  ;;  %v1918_v14 = vsel %vm1900_vm4, %v1885_v61, %v3315_v50  ;;  %v2401_v61 = vld [vmem:[%s4001_s17 + $0x28] sm:$0xff] }
 0x136   : > { %v4742_v23 = vpop.permute.xlu0 %3462  ;;  %v1902_v16 = vsel %vm1900_vm4, %v1869_v10, %v3275_v9  ;;  %v1903_v10 = vsel %vm1900_vm4, %v1870_v7, %v3279_v3  ;;  %v1904_v19 = vsel %vm1900_vm4, %v1871_v36, %v3280_v60  ;;  %v3394_v9 = vunpack.i.l.bf16 %v5778_v56  ;;  %v2400_v7 = vld [vmem:[%s4001_s17 + $0x20] sm:$0xff] }
 0x137   : > { %3747 = vrot.lane.b32.xlu1 %v3746_v27, %s3841_s11  ;;  %v3395_v20 = vunpack.i.h.bf16 %v5778_v56  ;;  %v1917_v36 = vsel %vm1900_vm4, %v1884_v47, %v3314_v52  ;;  %v3435_v3 = vunpack.i.h.bf16 %v4639_v54  ;;  %v1920_v56 = vsel %vm1900_vm4, %v1887_v1, %v3320_v32  ;;  %v2402_v32 = vld [vmem:[%s4001_s17 + $0x30] sm:$0xff] }
 0x138   : > { %2460 = vrot.lane.b32.xlu0 %v2396_v35, %s3835_s19  ;;  %v3319_v35 = vunpack.i.l.bf16 %v4547_v46  ;;  %v2399_v46 = vld [vmem:[%s4001_s17 + $0x18] sm:$0xff]  ;;  %v1934_v58 = vsel %vm1933_vm5, %v1901_v45, %v3354_v53  ;;  %v1935_v55 = vsel %vm1933_vm5, %v1902_v16, %v3355_v39  ;;  %v1936_v49 = vsel %vm1933_vm5, %v1903_v10, %v3359_v62 }
 0x139   : > { %v4759_v27 = vpop.permute.xlu1 %3467  ;;  %v1937_v50 = vsel %vm1933_vm5, %v1904_v19, %v3360_v28  ;;  %v3439_v47 = vunpack.i.l.bf16 %v4665_v51  ;;  %v1951_v1 = vsel %vm1933_vm5, %v1918_v14, %v3395_v20  ;;  %v1953_v16 = vsel %vm1933_vm5, %v1920_v56, %v3400_v43  ;;  %v2403_v43 = vld [vmem:[%s4001_s17 + $0x38] sm:$0xff] }
 0x13a   : > { %v4766_v4 = vpop.permute.xlu0 %3472  ;;  %v1919_v60 = vsel %vm1900_vm4, %v1886_v38, %v3319_v35  ;;  %v1950_v38 = vsel %vm1933_vm5, %v1917_v36, %v3394_v9  ;;  %v1968_v39 = vsel %vm1966_vm6, %v1935_v55, %v3435_v3  ;;  %v3455_v53 = vunpack.i.h.bf16 %v4715_v21 }
 0x13b   : > { %2462 = vrot.lane.b32.xlu1 %v2397_v0, %s3835_s19  ;;  %v3434_v0 = vunpack.i.l.bf16 %v4639_v54  ;;  %v3440_v54 = vunpack.i.h.bf16 %v4665_v51  ;;  %v1952_v45 = vsel %vm1933_vm5, %v1919_v60, %v3399_v59  ;;  %v3460_v51 = vunpack.i.h.bf16 %v4735_v8  ;;  %v2404_v60 = vld [vmem:[%s4001_s17 + $0x40] sm:$0xff] }
 0x13c   : > { %2464 = vrot.lane.b32.xlu0 %v2398_v15, %s3835_s19  ;;  %v3459_v62 = vunpack.i.l.bf16 %v4735_v8  ;;  %v3464_v20 = vunpack.i.l.bf16 %v4742_v23  ;;  %v3470_v59 = vunpack.i.h.bf16 %v4759_v27  ;;  %v3469_v19 = vunpack.i.l.bf16 %v4759_v27 }
 0x13d   : > { %v4783_v30 = vpop.permute.xlu1 %3477  ;;  %v1967_v52 = vsel %vm1966_vm6, %v1934_v58, %v3434_v0  ;;  %v3474_v28 = vunpack.i.l.bf16 %v4766_v4  ;;  %v1969_v55 = vsel %vm1966_vm6, %v1936_v49, %v3439_v47  ;;  %v1970_v9 = vsel %vm1966_vm6, %v1937_v50, %v3440_v54 }
 0x13e   : > { %v4790_v15 = vpop.permute.xlu0 %3482  ;;  %v3479_v8 = vunpack.i.l.bf16 %v4783_v30  ;;  %v3480_v0 = vunpack.i.h.bf16 %v4783_v30  ;;  %v1983_v49 = vsel %vm1966_vm6, %v1950_v38, %v3455_v53  ;;  %v1984_v3 = vsel %vm1966_vm6, %v1951_v1, %v3459_v62 }
 0x13f   : > { %2466 = vrot.lane.b32.xlu1 %v2399_v46, %s3835_s19  ;;  %v3475_v46 = vunpack.i.h.bf16 %v4766_v4  ;;  %v3484_v27 = vunpack.i.l.bf16 %v4790_v15  ;;  %v1985_v4 = vsel %vm1966_vm6, %v1952_v45, %v3460_v51  ;;  %v1986_v50 = vsel %vm1966_vm6, %v1953_v16, %v3464_v20  ;;  %v2406_v51 = vld [vmem:[%s4001_s17 + $0x50] sm:$0xff] }
 0x140   : > { %2468 = vrot.lane.b32.xlu0 %v2400_v7, %s3835_s19  ;;  %v2000_v30 = vsel %vm1999_vm7, %v1967_v52, %v3469_v19  ;;  %v2001_v54 = vsel %vm1999_vm7, %v1968_v39, %v3470_v59  ;;  %v2016_v47 = vsel %vm1999_vm7, %v1983_v49, %v3474_v28  ;;  %v3485_v38 = vunpack.i.h.bf16 %v4790_v15 }
 0x141   : > { %v3488_v35 = vpop.permute.xlu1 %3487  ;;  %v2017_v45 = vsel %vm1999_vm7, %v1984_v3, %v3475_v46  ;;  %v2003_v16 = vsel %vm1999_vm7, %v1970_v9, %v3480_v0  ;;  %v2018_v52 = vsel %vm1999_vm7, %v1985_v4, %v3484_v27  ;;  %v2407_v27 = vld [vmem:[%s4001_s17 + $0x58] sm:$0xff]  ;;  %v2408_v3 = vld [vmem:[%s4001_s17 + $0x60] sm:$0xff]  ;;  %v1888_v33 = vsel %vm1867_vm3, %v4711_v57, %v5784_v18 }
 0x142   : > { %v3493_v10 = vpop.permute.xlu0 %3492  ;;  %v3490_v7 = vunpack.i.h.bf16 %v3488_v35  ;;  %v3489_v36 = vunpack.i.l.bf16 %v3488_v35  ;;  %v2405_v35 = vld [vmem:[%s4001_s17 + $0x48] sm:$0xff] }
 0x143   : > { %2470 = vrot.lane.b32.xlu1 %v2401_v61, %s3835_s19  ;;  %v3494_v56 = vunpack.i.l.bf16 %v3493_v10  ;;  %v2002_v61 = vsel %vm1999_vm7, %v1969_v55, %v3479_v8  ;;  %v3495_v1 = vunpack.i.h.bf16 %v3493_v10 }
 0x144   : > { %2472 = vrot.lane.b32.xlu0 %v2402_v32, %s3835_s19  ;;  %v2033_v39 = vsel %vm2032_vm8, %v2000_v30, %v3489_v36  ;;  %v2034_v53 = vsel %vm2032_vm8, %v2001_v54, %v3490_v7  ;;  %v2019_v7 = vsel %vm1999_vm7, %v1986_v50, %v3485_v38  ;;  %v3249_v38 = vunpack.i.l.bf16 %v4500_v42 }
 0x145   : > { %v3498_v14 = vpop.permute.xlu1 %3497  ;;  %v2049_v59 = vsel %vm2032_vm8, %v2016_v47, %v3494_v56  ;;  %v2050_v0 = vsel %vm2032_vm8, %v2017_v45, %v3495_v1 }
 0x146   : > { %v3503_v58 = vpop.permute.xlu0 %3502  ;;  %v3499_v62 = vunpack.i.l.bf16 %v3498_v14  ;;  %v3500_v19 = vunpack.i.h.bf16 %v3498_v14 }
 0x147   : > { %2474 = vrot.lane.b32.xlu1 %v2403_v43, %s3835_s19  ;;  %v3504_v28 = vunpack.i.l.bf16 %v3503_v58  ;;  %v3505_v46 = vunpack.i.h.bf16 %v3503_v58 }
 0x148   : > { %2476 = vrot.lane.b32.xlu0 %v2404_v60, %s3835_s19  ;;  %v2035_v4 = vsel %vm2032_vm8, %v2002_v61, %v3499_v62  ;;  %v2036_v47 = vsel %vm2032_vm8, %v2003_v16, %v3500_v19  ;;  %v2409_v16 = vld [vmem:[%s4001_s17 + $0x68] sm:$0xff]  ;;  %v5781_v19 = vld [vmem:[#allocation10_spill] sm:$0xff] }
 0x149   : > { %v3508_v32 = vpop.permute.xlu1 %3507  ;;  %v2051_v1 = vsel %vm2032_vm8, %v2018_v52, %v3504_v28  ;;  %v2052_v61 = vsel %vm2032_vm8, %v2019_v7, %v3505_v46  ;;  %v5780_v52 = vld [vmem:[#allocation21_spill] sm:$0xff]  ;;  %v3180_v28 = vunpack.i.h.bf16 %v5781_v19 }
 0x14a   : > { %v3510_v20 = vunpack.i.h.bf16 %v3508_v32  ;;  %v3509_v15 = vunpack.i.l.bf16 %v3508_v32  ;;  %v3513_v10 = vpop.permute.xlu0 %3512 }
 0x14b   : > { %v3515_v55 = vunpack.i.h.bf16 %v3513_v10  ;;  %v3514_v9 = vunpack.i.l.bf16 %v3513_v10  ;;  %2478 = vrot.lane.b32.xlu1 %v2405_v35, %s3835_s19  ;;  %v3756_v10 = vld [vmem:[#allocation2 + $0x108] sm:$0xff] }
 0x14c   : > { %v2066_v8 = vsel %vm2065_vm9, %v2033_v39, %v3509_v15  ;;  %v2067_v43 = vsel %vm2065_vm9, %v2034_v53, %v3510_v20  ;;  %2480 = vrot.lane.b32.xlu0 %v2406_v51, %s3835_s19  ;;  %v3284_v39 = vunpack.i.l.bf16 %v5780_v52  ;;  %v2410_v15 = vld [vmem:[%s4001_s17 + $0x70] sm:$0xff] }
 0x14d   : > { %v3518_v36 = vpop.permute.xlu1 %3517  ;;  %v2098_v14 = vpack.c.bf16 %v2067_v43, %v2066_v8  ;;  %v2082_v60 = vsel %vm2065_vm9, %v2049_v59, %v3514_v9  ;;  %v2083_v49 = vsel %vm2065_vm9, %v2050_v0, %v3515_v55  ;;  %v1857_v59 = vsel %vm433_vm0, %v3756_v10, %v3169_v6 }
 0x14e   : > { %v3520_v56 = vunpack.i.h.bf16 %v3518_v36  ;;  %v3519_v58 = vunpack.i.l.bf16 %v3518_v36  ;;  %v3523_v30 = vpop.permute.xlu0 %3522  ;;  %v2106_v54 = vpack.c.bf16 %v2083_v49, %v2082_v60  ;;  %v3285_v55 = vunpack.i.h.bf16 %v5780_v52  ;;  %v2413_v52 = vld [vmem:[%s4001_s17 + $0x88] sm:$0xff] }
 0x14f   : > { %v3525_v45 = vunpack.i.h.bf16 %v3523_v30  ;;  %v3524_v50 = vunpack.i.l.bf16 %v3523_v30  ;;  %3018 = vmatprep.mubr.msk.bf16.mxu0 %vm2150_vm10, %v2098_v14  ;;  %2482 = vrot.lane.b32.xlu1 %v2407_v27, %s3835_s19  ;;  %v3179_v8 = vunpack.i.l.bf16 %v5781_v19  ;;  %v1873_v43 = vsel %vm1867_vm3, %v4643_v11, %v3205_v26  ;;  %v5785_v26 = vld [vmem:[#allocation22_spill] sm:$0xff] }
 0x150   : > { %v2068_v35 = vsel %vm2065_vm9, %v2035_v4, %v3519_v58  ;;  %v2069_v32 = vsel %vm2065_vm9, %v2036_v47, %v3520_v56  ;;  %3034 = vmatprep.mubr.msk.bf16.mxu1 %vm2150_vm10, %v2106_v54  ;;  %2484 = vrot.lane.b32.xlu0 %v2408_v3, %s3835_s19  ;;  %v5782_v6 = vunpack.i.h.bf16 %v4465_v13  ;;  %v5783_v27 = vunpack.i.l.bf16 %v4465_v13  ;;  %v2412_v3 = vld [vmem:[%s4001_s17 + $0x80] sm:$0xff]  ;;  %v5788_v56 = vld [vmem:[#allocation27_spill] sm:$0xff]  ;;  %v5790_v54 = vld [vmem:[#allocation33_spill] sm:$0xff] }
 0x151   : > { %v2084_v53 = vsel %vm2065_vm9, %v2051_v1, %v3524_v50  ;;  %v2085_v51 = vsel %vm2065_vm9, %v2052_v61, %v3525_v45  ;;  %v4870_v62 = vpop.permute.xlu1 %3527  ;;  %v2099_v20 = vpack.c.bf16 %v2069_v32, %v2068_v35  ;;  %v3290_v24 = vunpack.i.h.bf16 %v5785_v26  ;;  %v5791_v45 = vld [vmem:[#allocation34_spill] sm:$0xff]  ;;  %v5792_v32 = vld [vmem:[#allocation41_spill] sm:$0xff] }
 0x152   : > { %v4878_v9 = vpop.permute.xlu0 %3532  ;;  %v2107_v46 = vpack.c.bf16 %v2085_v51, %v2084_v53  ;;  %v1875_v0 = vsel %vm1867_vm3, %v4653_v5, %v5782_v6  ;;  %v1874_v11 = vsel %vm1867_vm3, %v4657_v41, %v5783_v27  ;;  %v3289_v7 = vunpack.i.l.bf16 %v5785_v26  ;;  %v2411_v5 = vld [vmem:[%s4001_s17 + $0x78] sm:$0xff]  ;;  %v5793_v53 = vld [vmem:[#allocation42_spill] sm:$0xff] }
 0x153   : > { %3019 = vmatmul.mubr.msk.bf16.vlgmr.msra.gmra.mrb[0].mxu0 %vm2150_vm10, %v2099_v20  ;;  %2486 = vrot.lane.b32.xlu1 %v2409_v16, %s3835_s19  ;;  %v5786_v36 = vunpack.i.h.bf16 %v4490_v40  ;;  %v5787_v41 = vunpack.i.h.bf16 %v4500_v42  ;;  %v1890_v57 = vsel %vm1867_vm3, %v1857_v59, %v3249_v38  ;;  %v1905_v60 = vsel %vm1900_vm4, %v1872_v12, %v3284_v39  ;;  %v2414_v59 = vld [vmem:[%s4001_s17 + $0x90] sm:$0xff] }
 0x154   : > { %3035 = vmatmul.mubr.msk.bf16.vlgmr.msra.gmra.mrb[0].mxu1 %vm2150_vm10, %v2107_v46  ;;  %2488 = vrot.lane.b32.xlu0 %v2410_v15, %s3835_s19  ;;  %v1906_v4 = vsel %vm1900_vm4, %v1873_v43, %v3285_v55  ;;  %v3325_v40 = vunpack.i.h.bf16 %v5788_v56  ;;  %v3324_v58 = vunpack.i.l.bf16 %v5788_v56  ;;  %v3365_v47 = vunpack.i.h.bf16 %v5790_v54 }
 0x155   : > { %v1889_v13 = vsel %vm1867_vm3, %v4707_v44, %v5786_v36  ;;  %v1891_v14 = vsel %vm1867_vm3, %v4725_v25, %v5787_v41  ;;  %v4918_v49 = vpop.permute.xlu1 %3537  ;;  %v5789_v44 = vld [vmem:[#allocation28_spill] sm:$0xff]  ;;  %v3364_v1 = vunpack.i.l.bf16 %v5790_v54  ;;  %v3369_v50 = vunpack.i.l.bf16 %v5791_v45 }
 0x156   : > { %v3329_v30 = vunpack.i.l.bf16 %v5789_v44  ;;  %v4925_v42 = vpop.permute.xlu0 %3542  ;;  %v3330_v25 = vunpack.i.h.bf16 %v5789_v44  ;;  %v1907_v38 = vsel %vm1900_vm4, %v1874_v11, %v3289_v7  ;;  %v1908_v61 = vsel %vm1900_vm4, %v1875_v0, %v3290_v24  ;;  %v2415_v7 = vld [vmem:[%s4001_s17 + $0x98] sm:$0xff] }
 0x157   : > { %2490 = vrot.lane.b32.xlu1 %v2411_v5, %s3835_s19  ;;  %v3370_v35 = vunpack.i.h.bf16 %v5791_v45  ;;  %v3404_v16 = vunpack.i.l.bf16 %v5792_v32  ;;  %v3405_v39 = vunpack.i.h.bf16 %v5792_v32  ;;  %v3410_v51 = vunpack.i.h.bf16 %v5793_v53 }
 0x158   : > { %2492 = vrot.lane.b32.xlu0 %v2412_v3, %s3835_s19  ;;  %v3409_v20 = vunpack.i.l.bf16 %v5793_v53  ;;  %v3444_v15 = vunpack.i.l.bf16 %v4677_v2  ;;  %v1921_v55 = vsel %vm1900_vm4, %v1888_v33, %v3324_v58  ;;  %v1922_v46 = vsel %vm1900_vm4, %v1889_v13, %v3325_v40 }
 0x159   : > { %v4942_v10 = vpop.permute.xlu1 %3547  ;;  %v1923_v43 = vsel %vm1900_vm4, %v1890_v57, %v3329_v30  ;;  %v3445_v12 = vunpack.i.h.bf16 %v4677_v2  ;;  %v1924_v0 = vsel %vm1900_vm4, %v1891_v14, %v3330_v25  ;;  %v1938_v27 = vsel %vm1933_vm5, %v1905_v60, %v3364_v1  ;;  %v2416_v57 = vld [vmem:[%s4001_s17 + $0xa0] sm:$0xff] }
 0x15a   : > { %v4949_v6 = vpop.permute.xlu0 %3552  ;;  %v1939_v11 = vsel %vm1933_vm5, %v1906_v4, %v3365_v47  ;;  %v1940_v18 = vsel %vm1933_vm5, %v1907_v38, %v3369_v50  ;;  %v1941_v33 = vsel %vm1933_vm5, %v1908_v61, %v3370_v35  ;;  %v1954_v26 = vsel %vm1933_vm5, %v1921_v55, %v3404_v16  ;;  %v2417_v47 = vld [vmem:[%s4001_s17 + $0xa8] sm:$0xff]  ;;  %v2418_v61 = vld [vmem:[%s4001_s17 + $0xb0] sm:$0xff] }
 0x15b   : > { %2494 = vrot.lane.b32.xlu1 %v2413_v52, %s3835_s19  ;;  %v3450_v24 = vunpack.i.h.bf16 %v4703_v31  ;;  %v3449_v2 = vunpack.i.l.bf16 %v4703_v31  ;;  %v1955_v5 = vsel %vm1933_vm5, %v1922_v46, %v3405_v39  ;;  %v1956_v36 = vsel %vm1933_vm5, %v1923_v43, %v3409_v20  ;;  %v2419_v46 = vld [vmem:[%s4001_s17 + $0xb8] sm:$0xff] }
 0x15c   : > { %2496 = vrot.lane.b32.xlu0 %v2414_v59, %s3835_s19  ;;  %v1957_v13 = vsel %vm1933_vm5, %v1924_v0, %v3410_v51  ;;  %v1971_v41 = vsel %vm1966_vm6, %v1938_v27, %v3444_v15  ;;  %v1972_v60 = vsel %vm1966_vm6, %v1939_v11, %v3445_v12  ;;  %v3465_v3 = vunpack.i.h.bf16 %v4742_v23 }
 0x15d   : > { %v3558_v14 = vpop.permute.xlu1 %3557  ;;  %v3530_v31 = vunpack.i.h.bf16 %v4870_v62  ;;  %v3529_v4 = vunpack.i.l.bf16 %v4870_v62  ;;  %v3534_v40 = vunpack.i.l.bf16 %v4878_v9  ;;  %v3540_v58 = vunpack.i.h.bf16 %v4918_v49 }
 0x15e   : > { %v3563_v56 = vpop.permute.xlu0 %3562  ;;  %v3539_v44 = vunpack.i.l.bf16 %v4918_v49  ;;  %v3544_v30 = vunpack.i.l.bf16 %v4925_v42  ;;  %v1973_v25 = vsel %vm1966_vm6, %v1940_v18, %v3449_v2  ;;  %v1974_v23 = vsel %vm1966_vm6, %v1941_v33, %v3450_v24  ;;  %v2420_v18 = vld [vmem:[%s4001_s17 + $0xc0] sm:$0xff] }
 0x15f   : > { %2498 = vrot.lane.b32.xlu1 %v2415_v7, %s3835_s19  ;;  %v3545_v54 = vunpack.i.h.bf16 %v4925_v42  ;;  %v3549_v62 = vunpack.i.l.bf16 %v4942_v10  ;;  %v3550_v1 = vunpack.i.h.bf16 %v4942_v10  ;;  %v3554_v45 = vunpack.i.l.bf16 %v4949_v6 }
 0x160   : > { %2500 = vrot.lane.b32.xlu0 %v2416_v57, %s3835_s19  ;;  %v3560_v49 = vunpack.i.h.bf16 %v3558_v14  ;;  %v3559_v50 = vunpack.i.l.bf16 %v3558_v14  ;;  %v1987_v35 = vsel %vm1966_vm6, %v1954_v26, %v3465_v3  ;;  %v1988_v32 = vsel %vm1966_vm6, %v1955_v5, %v3529_v4  ;;  %v2421_v3 = vld [vmem:[%s4001_s17 + $0xc8] sm:$0xff] }
 0x161   : > { %v3568_v38 = vpop.permute.xlu1 %3567  ;;  %v1989_v42 = vsel %vm1966_vm6, %v1956_v36, %v3530_v31  ;;  %v3564_v16 = vunpack.i.l.bf16 %v3563_v56  ;;  %v1990_v39 = vsel %vm1966_vm6, %v1957_v13, %v3534_v40  ;;  %v2004_v53 = vsel %vm1999_vm7, %v1971_v41, %v3539_v44  ;;  %v2422_v44 = vld [vmem:[%s4001_s17 + $0xd0] sm:$0xff] }
 0x162   : > { %v3573_v52 = vpop.permute.xlu0 %3572  ;;  %v2005_v51 = vsel %vm1999_vm7, %v1972_v60, %v3540_v58  ;;  %v2020_v20 = vsel %vm1999_vm7, %v1987_v35, %v3544_v30  ;;  %v2021_v15 = vsel %vm1999_vm7, %v1988_v32, %v3545_v54  ;;  %v2006_v10 = vsel %vm1999_vm7, %v1973_v25, %v3549_v62 }
 0x163   : > { %2502 = vrot.lane.b32.xlu1 %v2417_v47, %s3835_s19  ;;  %v3555_v59 = vunpack.i.h.bf16 %v4949_v6  ;;  %v3565_v55 = vunpack.i.h.bf16 %v3563_v56  ;;  %v2007_v43 = vsel %vm1999_vm7, %v1974_v23, %v3550_v1  ;;  %v2022_v12 = vsel %vm1999_vm7, %v1989_v42, %v3554_v45  ;;  %v2423_v42 = vld [vmem:[%s4001_s17 + $0xd8] sm:$0xff] }
 0x164   : > { %2504 = vrot.lane.b32.xlu0 %v2418_v61, %s3835_s19  ;;  %v2037_v0 = vsel %vm2032_vm8, %v2004_v53, %v3559_v50  ;;  %v2038_v27 = vsel %vm2032_vm8, %v2005_v51, %v3560_v49  ;;  %v2053_v33 = vsel %vm2032_vm8, %v2020_v20, %v3564_v16  ;;  %v3569_v26 = vunpack.i.l.bf16 %v3568_v38  ;;  %v5794_v50 = vld [vmem:[#allocation13_spill] sm:$0xff]  ;;  %v2424_v20 = vld [vmem:[%s4001_s17 + $0xe0] sm:$0xff] }
 0x165   : > { %v3578_v11 = vpop.permute.xlu1 %3577  ;;  %v3570_v7 = vunpack.i.h.bf16 %v3568_v38  ;;  %v3574_v5 = vunpack.i.l.bf16 %v3573_v52  ;;  %v2054_v41 = vsel %vm2032_vm8, %v2021_v15, %v3565_v55  ;;  %v3575_v14 = vunpack.i.h.bf16 %v3573_v52  ;;  %v5795_v15 = vld [vmem:[#allocation14_spill] sm:$0xff]  ;;  %v5796_v55 = vld [vmem:[#allocation17_spill] sm:$0xff] }
 0x166   : > { %v3580_v24 = vunpack.i.h.bf16 %v3578_v11  ;;  %v3579_v6 = vunpack.i.l.bf16 %v3578_v11  ;;  %v3583_v2 = vpop.permute.xlu0 %3582  ;;  %v2023_v31 = vsel %vm1999_vm7, %v1990_v39, %v3555_v59  ;;  %v2039_v30 = vsel %vm2032_vm8, %v2006_v10, %v3569_v26  ;;  %v3758_v26 = vld [vmem:[#allocation2 + $0x128] sm:$0xff] }
 0x167   : > { %v3585_v36 = vunpack.i.h.bf16 %v3583_v2  ;;  %v3584_v13 = vunpack.i.l.bf16 %v3583_v2  ;;  %2506 = vrot.lane.b32.xlu1 %v2419_v46, %s3835_s19  ;;  %v2040_v47 = vsel %vm2032_vm8, %v2007_v43, %v3570_v7  ;;  %v2055_v1 = vsel %vm2032_vm8, %v2022_v12, %v3574_v5  ;;  %v3759_v7 = vld [vmem:[#allocation2 + $0x120] sm:$0xff] }
 0x168   : > { %v2070_v57 = vsel %vm2065_vm9, %v2037_v0, %v3579_v6  ;;  %v2071_v60 = vsel %vm2065_vm9, %v2038_v27, %v3580_v24  ;;  %2508 = vrot.lane.b32.xlu0 %v2420_v18, %s3835_s19  ;;  %v3215_v38 = vunpack.i.h.bf16 %v5794_v50  ;;  %v2056_v61 = vsel %vm2032_vm8, %v2023_v31, %v3575_v14  ;;  %v3757_v0 = vld [vmem:[#allocation2 + $0x98] sm:$0xff]  ;;  %v5798_v18 = vld [vmem:[#allocation9_spill] sm:$0xff]  ;;  %v5801_v14 = vld [vmem:[#allocation18_spill] sm:$0xff] }
 0x169   : > { %v2086_v4 = vsel %vm2065_vm9, %v2053_v33, %v3584_v13  ;;  %v2087_v56 = vsel %vm2065_vm9, %v2054_v41, %v3585_v36  ;;  %v3588_v40 = vpop.permute.xlu1 %3587  ;;  %v2100_v58 = vpack.c.bf16 %v2071_v60, %v2070_v57  ;;  %v3214_v16 = vunpack.i.l.bf16 %v5794_v50  ;;  %v3760_v13 = vld [vmem:[#allocation2 + $0x140] sm:$0xff]  ;;  %v3761_v31 = vld [vmem:[#allocation2 + $0x138] sm:$0xff] }
 0x16a   : > { %v2108_v25 = vpack.c.bf16 %v2087_v56, %v2086_v4  ;;  %v3590_v23 = vunpack.i.h.bf16 %v3588_v40  ;;  %v3589_v54 = vunpack.i.l.bf16 %v3588_v40  ;;  %v3593_v62 = vpop.permute.xlu0 %3592  ;;  %v3220_v10 = vunpack.i.h.bf16 %v5795_v15  ;;  %v5802_v56 = vld [vmem:[#allocation23_spill] sm:$0xff] }
 0x16b   : > { %v3595_v45 = vunpack.i.h.bf16 %v3593_v62  ;;  %v3594_v49 = vunpack.i.l.bf16 %v3593_v62  ;;  %3022 = vmatprep.mubr.msk.bf16.mxu0 %vm2150_vm10, %v2100_v58  ;;  %2510 = vrot.lane.b32.xlu1 %v2421_v3, %s3835_s19  ;;  %v3219_v59 = vunpack.i.l.bf16 %v5795_v15  ;;  %v3254_v46 = vunpack.i.l.bf16 %v5796_v55  ;;  %v2425_v3 = vld [vmem:[%s4001_s17 + $0xe8] sm:$0xff] }
 0x16c   : > { %v2072_v35 = vsel %vm2065_vm9, %v2039_v30, %v3589_v54  ;;  %v2073_v32 = vsel %vm2065_vm9, %v2040_v47, %v3590_v23  ;;  %3038 = vmatprep.mubr.msk.bf16.mxu1 %vm2150_vm10, %v2108_v25  ;;  %2512 = vrot.lane.b32.xlu0 %v2422_v44, %s3835_s19  ;;  %v5797_v27 = vunpack.i.h.bf16 %v4393_v37  ;;  %v3150_v33 = vunpack.i.h.bf16 %v5798_v18  ;;  %v2426_v44 = vld [vmem:[%s4001_s17 + $0xf0] sm:$0xff]  ;;  %v5803_v23 = vld [vmem:[#allocation24_spill] sm:$0xff]  ;;  %v5804_v47 = vld [vmem:[#allocation29_spill] sm:$0xff] }
 0x16d   : > { %v2101_v52 = vpack.c.bf16 %v2073_v32, %v2072_v35  ;;  %v2088_v39 = vsel %vm2065_vm9, %v2055_v1, %v3594_v49  ;;  %v2089_v53 = vsel %vm2065_vm9, %v2056_v61, %v3595_v45  ;;  %v5029_v51 = vpop.permute.xlu1 %3597  ;;  %v5799_v24 = vunpack.i.h.bf16 %v4420_v48  ;;  %v5805_v49 = vld [vmem:[#allocation30_spill] sm:$0xff]  ;;  %v5806_v32 = vld [vmem:[#allocation35_spill] sm:$0xff] }
 0x16e   : > { %v2109_v43 = vpack.c.bf16 %v2089_v53, %v2088_v39  ;;  %v5035_v12 = vpop.permute.xlu0 %3602  ;;  %v5040_v11 = vsel %vm433_vm0, %v3757_v0, %v5797_v27  ;;  %v3255_v2 = vunpack.i.h.bf16 %v5796_v55  ;;  %v5800_v5 = vunpack.i.l.bf16 %v4420_v48  ;;  %v5807_v53 = vld [vmem:[#allocation36_spill] sm:$0xff] }
 0x16f   : > { %v1860_v6 = vsel %vm433_vm0, %v3758_v26, %v5799_v24  ;;  %3023 = vmatmul.mubr.msk.bf16.gmra.mrb[4].mxu0 %vm2150_vm10, %v2101_v52  ;;  %2514 = vrot.lane.b32.xlu1 %v2423_v42, %s3835_s19  ;;  %v1862_v41 = vsel %vm433_vm0, %v3760_v13, %v3180_v28  ;;  %v3260_v57 = vunpack.i.h.bf16 %v5801_v14  ;;  %v3259_v60 = vunpack.i.l.bf16 %v5801_v14 }
 0x170   : > { %v1859_v36 = vsel %vm433_vm0, %v3759_v7, %v5800_v5  ;;  %3039 = vmatmul.mubr.msk.bf16.gmra.mrb[4].mxu1 %vm2150_vm10, %v2109_v43  ;;  %2516 = vrot.lane.b32.xlu0 %v2424_v20, %s3835_s19  ;;  %v1861_v48 = vsel %vm433_vm0, %v3761_v31, %v3179_v8  ;;  %v1876_v4 = vsel %vm1867_vm3, %v4673_v22, %v3214_v16  ;;  %v3294_v40 = vunpack.i.l.bf16 %v5802_v56 }
 0x171   : > { %v1877_v28 = vsel %vm1867_vm3, %v4669_v17, %v3215_v38  ;;  %v5068_v58 = vpop.permute.xlu1 %3607  ;;  %v1879_v30 = vsel %vm1867_vm3, %v4681_v63, %v3220_v10  ;;  %v1878_v19 = vsel %vm1867_vm3, %v4688_v34, %v3219_v59  ;;  %v1892_v8 = vsel %vm1867_vm3, %v1859_v36, %v3254_v46  ;;  %v2427_v38 = vld [vmem:[%s4001_s17 + $0xf8] sm:$0xff]  ;;  %s3769_s17 = scalar_lea.vmem %s5633_s29, 4096 }
 0x172   : > { %v3295_v25 = vunpack.i.h.bf16 %v5802_v56  ;;  %v5077_v22 = vpop.permute.xlu0 %3612  ;;  %v1893_v17 = vsel %vm1867_vm3, %v1860_v6, %v3255_v2  ;;  %v3300_v54 = vunpack.i.h.bf16 %v5803_v23  ;;  %v3299_v62 = vunpack.i.l.bf16 %v5803_v23  ;;  %v5808_v10 = vld [vmem:[#allocation43_spill] sm:$0xff]  ;;  %v5809_v6 = vld [vmem:[#allocation44_spill] sm:$0xff]  ;;  %p3770_p11 = scmp.ne.s32.totalorder %s5633_s29, %s3769_s17 }
 0x173   : > { %v3334_v1 = vunpack.i.l.bf16 %v5804_v47  ;;  %2518 = vrot.lane.b32.xlu1 %v2425_v3, %s3835_s19  ;;  %v1895_v63 = vsel %vm1867_vm3, %v1862_v41, %v3260_v57  ;;  %v1894_v34 = vsel %vm1867_vm3, %v1861_v48, %v3259_v60  ;;  %v3335_v45 = vunpack.i.h.bf16 %v5804_v47 }
 0x174   : > { %v3339_v50 = vunpack.i.l.bf16 %v5805_v49  ;;  %2520 = vrot.lane.b32.xlu0 %v2426_v44, %s3835_s19  ;;  %v1909_v61 = vsel %vm1900_vm4, %v1876_v4, %v3294_v40  ;;  %v3340_v35 = vunpack.i.h.bf16 %v5805_v49  ;;  %v3375_v42 = vunpack.i.h.bf16 %v5806_v32  ;;  %p3771_p12 = pnand %p3770_p11, %p3917_p5 }
 0x175   : > { %v3374_v16 = vunpack.i.l.bf16 %v5806_v32  ;;  %v3618_v52 = vpop.permute.xlu1 %3617  ;;  %v1910_v39 = vsel %vm1900_vm4, %v1877_v28, %v3295_v25  ;;  %v3380_v20 = vunpack.i.h.bf16 %v5807_v53  ;;  %v3379_v15 = vunpack.i.l.bf16 %v5807_v53 }
 0x176   : > { %v3414_v59 = vunpack.i.l.bf16 %v5808_v10  ;;  %v3623_v55 = vpop.permute.xlu0 %3622  ;;  %v1911_v46 = vsel %vm1900_vm4, %v1878_v19, %v3299_v62  ;;  %v1912_v43 = vsel %vm1900_vm4, %v1879_v30, %v3300_v54  ;;  %v1925_v0 = vsel %vm1900_vm4, %v1892_v8, %v3334_v1  ;;  %p3772_p13 = pneg %p3771_p12 }
 0x177   : > { %v3415_v27 = vunpack.i.h.bf16 %v5808_v10  ;;  %2522 = vrot.lane.b32.xlu1 %v2427_v38, %s3835_s19  ;;  %v1926_v26 = vsel %vm1900_vm4, %v1893_v17, %v3335_v45  ;;  %v1927_v24 = vsel %vm1900_vm4, %v1894_v34, %v3339_v50  ;;  %v3420_v2 = vunpack.i.h.bf16 %v5809_v6  ;;  %s3842_s19 = smov [#allocation3]  }
 0x178   : > { %v3419_v7 = vunpack.i.l.bf16 %v5809_v6  ;;  %v1928_v5 = vsel %vm1900_vm4, %v1895_v63, %v3340_v35  ;;  %v1942_v36 = vsel %vm1933_vm5, %v1909_v61, %v3374_v16  ;;  %v1943_v13 = vsel %vm1933_vm5, %v1910_v39, %v3375_v42 }
 0x179   : > { %v3454_v41 = vunpack.i.l.bf16 %v4715_v21  ;;  %v5111_v14 = vpop.permute.xlu1 %3627  ;;  %v1944_v57 = vsel %vm1933_vm5, %v1911_v46, %v3379_v15  ;;  %v1945_v60 = vsel %vm1933_vm5, %v1912_v43, %v3380_v20  ;;  %v1958_v3 = vsel %vm1933_vm5, %v1925_v0, %v3414_v59 }
 0x17a   : > { %v3535_v31 = vunpack.i.h.bf16 %v4878_v9  ;;  %v3633_v48 = vpop.permute.xlu0 %3632  ;;  %v1959_v4 = vsel %vm1933_vm5, %v1926_v26, %v3415_v27  ;;  %v3600_v28 = vunpack.i.h.bf16 %v5029_v51  ;;  %v3599_v56 = vunpack.i.l.bf16 %v5029_v51 }
 0x17b   : > { %v3605_v40 = vunpack.i.h.bf16 %v5035_v12  ;;  %v1960_v21 = vsel %vm1933_vm5, %v1927_v24, %v3419_v7  ;;  %v1961_v44 = vsel %vm1933_vm5, %v1928_v5, %v3420_v2  ;;  %v3604_v30 = vunpack.i.l.bf16 %v5035_v12 }
 0x17c   : > { %v3609_v19 = vunpack.i.l.bf16 %v5068_v58  ;;  %v1975_v8 = vsel %vm1966_vm6, %v1942_v36, %v3454_v41  ;;  %v3610_v9 = vunpack.i.h.bf16 %v5068_v58  ;;  %v3615_v25 = vunpack.i.h.bf16 %v5077_v22 }
 0x17d   : > { %v3614_v17 = vunpack.i.l.bf16 %v5077_v22  ;;  %v3638_v23 = vpop.permute.xlu1 %3637  ;;  %v1976_v51 = vsel %vm1966_vm6, %v1943_v13, %v3535_v31  ;;  %v3620_v54 = vunpack.i.h.bf16 %v3618_v52  ;;  %v3619_v62 = vunpack.i.l.bf16 %v3618_v52 }
 0x17e   : > { %v3624_v47 = vunpack.i.l.bf16 %v3623_v55  ;;  %v3643_v1 = vpop.permute.xlu0 %3642  ;;  %v1991_v63 = vsel %vm1966_vm6, %v1958_v3, %v3599_v56  ;;  %v1992_v12 = vsel %vm1966_vm6, %v1959_v4, %v3600_v28  ;;  %v1978_v34 = vsel %vm1966_vm6, %v1945_v60, %v3605_v40 }
 0x17f   : > { %v3625_v45 = vunpack.i.h.bf16 %v3623_v55  ;;  %v1977_v58 = vsel %vm1966_vm6, %v1944_v57, %v3604_v30  ;;  %v1993_v49 = vsel %vm1966_vm6, %v1960_v21, %v3609_v19  ;;  %v3635_v50 = vunpack.i.h.bf16 %v3633_v48 }
 0x180   : > { %v3634_v22 = vunpack.i.l.bf16 %v3633_v48  ;;  %v1994_v38 = vsel %vm1966_vm6, %v1961_v44, %v3610_v9  ;;  %v2008_v61 = vsel %vm1999_vm7, %v1975_v8, %v3614_v17  ;;  %v2009_v35 = vsel %vm1999_vm7, %v1976_v51, %v3615_v25 }
 0x181   : > { %v3639_v32 = vunpack.i.l.bf16 %v3638_v23  ;;  %v3648_v42 = vpop.permute.xlu1 %3647  ;;  %v2024_v16 = vsel %vm1999_vm7, %v1991_v63, %v3619_v62  ;;  %v2025_v52 = vsel %vm1999_vm7, %v1992_v12, %v3620_v54  ;;  %v2010_v39 = vsel %vm1999_vm7, %v1977_v58, %v3624_v47  ;;  %v5810_v54 = vld [vmem:[#allocation11_spill] sm:$0xff]  ;;  %v5811_v12 = vld [vmem:[#allocation12_spill] sm:$0xff] }
 0x182   : > { %v3640_v53 = vunpack.i.h.bf16 %v3638_v23  ;;  %v3653_v20 = vpop.permute.xlu0 %3652  ;;  %v2011_v15 = vsel %vm1999_vm7, %v1978_v34, %v3625_v45  ;;  %v3630_v10 = vunpack.i.h.bf16 %v5111_v14  ;;  %v2041_v46 = vsel %vm2032_vm8, %v2008_v61, %v3634_v22 }
 0x183   : > { %v3655_v59 = vunpack.i.h.bf16 %v3653_v20  ;;  %v3654_v55 = vunpack.i.l.bf16 %v3653_v20  ;;  %v2042_v43 = vsel %vm2032_vm8, %v2009_v35, %v3635_v50  ;;  %v3645_v0 = vunpack.i.h.bf16 %v3643_v1  ;;  %v5812_v50 = vld [vmem:[#allocation15_spill] sm:$0xff] }
 0x184   : > { %v3644_v27 = vunpack.i.l.bf16 %v3643_v1  ;;  %v3629_v26 = vunpack.i.l.bf16 %v5111_v14  ;;  %v2057_v24 = vsel %vm2032_vm8, %v2024_v16, %v3639_v32  ;;  %v2058_v5 = vsel %vm2032_vm8, %v2025_v52, %v3640_v53  ;;  %v3762_v32 = vld [vmem:[#allocation2 + $0x90] sm:$0xff]  ;;  %v5814_v52 = vld [vmem:[#allocation16_spill] sm:$0xff]  ;;  %v5815_v20 = vld [vmem:[#allocation19_spill] sm:$0xff] }
 0x185   : > { %v2074_v6 = vsel %vm2065_vm9, %v2041_v46, %v3654_v55  ;;  %v2075_v2 = vsel %vm2065_vm9, %v2042_v43, %v3655_v59  ;;  %v3658_v7 = vpop.permute.xlu1 %3657  ;;  %v3650_v60 = vunpack.i.h.bf16 %v3648_v42  ;;  %v3649_v3 = vunpack.i.l.bf16 %v3648_v42  ;;  %v3763_v59 = vld [vmem:[#allocation2 + $0xb0] sm:$0xff]  ;;  %v3764_v46 = vld [vmem:[#allocation2 + $0xa8] sm:$0xff] }
 0x186   : > { %v2102_v36 = vpack.c.bf16 %v2075_v2, %v2074_v6  ;;  %v3660_v13 = vunpack.i.h.bf16 %v3658_v7  ;;  %v3659_v41 = vunpack.i.l.bf16 %v3658_v7  ;;  %v3663_v57 = vpop.permute.xlu0 %3662  ;;  %v2043_v4 = vsel %vm2032_vm8, %v2010_v39, %v3644_v27  ;;  %v3767_v6 = vld [vmem:[#allocation2 + $0x170] sm:$0xff]  ;;  %v5816_v7 = vld [vmem:[#allocation20_spill] sm:$0xff] }
 0x187   : > { %v3665_v31 = vunpack.i.h.bf16 %v3663_v57  ;;  %v3664_v48 = vunpack.i.l.bf16 %v3663_v57  ;;  %v2044_v14 = vsel %vm2032_vm8, %v2011_v15, %v3645_v0  ;;  %v2026_v40 = vsel %vm1999_vm7, %v1993_v49, %v3629_v26  ;;  %v3765_v0 = vld [vmem:[#allocation2 + $0x158] sm:$0xff]  ;;  %v3766_v26 = vld [vmem:[#allocation2 + $0x150] sm:$0xff]  ;;  %v5817_v57 = vld [vmem:[#allocation25_spill] sm:$0xff] }
 0x188   : > { %v2090_v28 = vsel %vm2065_vm9, %v2057_v24, %v3659_v41  ;;  %v2091_v56 = vsel %vm2065_vm9, %v2058_v5, %v3660_v13  ;;  %3026 = vmatprep.mubr.msk.bf16.mxu0 %vm2150_vm10, %v2102_v36  ;;  %v2027_v8 = vsel %vm1999_vm7, %v1994_v38, %v3630_v10  ;;  %v3149_v51 = vunpack.i.l.bf16 %v5798_v18  ;;  %v3768_v5 = vld [vmem:[#allocation2 + $0x168] sm:$0xff] }
 0x189   : > { %v2110_v21 = vpack.c.bf16 %v2091_v56, %v2090_v28  ;;  %v2076_v44 = vsel %vm2065_vm9, %v2043_v4, %v3664_v48  ;;  %v2077_v30 = vsel %vm2065_vm9, %v2044_v14, %v3665_v31  ;;  %v3668_v19 = vpop.permute.xlu1 %3667  ;;  %v3185_v62 = vunpack.i.h.bf16 %v5810_v54 }
 0x18a   : > { %v2103_v9 = vpack.c.bf16 %v2077_v30, %v2076_v44  ;;  %v3670_v25 = vunpack.i.h.bf16 %v3668_v19  ;;  %v3669_v17 = vunpack.i.l.bf16 %v3668_v19  ;;  %v5159_v23 = vpop.permute.xlu0 %3672  ;;  %v2059_v47 = vsel %vm2032_vm8, %v2026_v40, %v3649_v3  ;;  %v5818_v40 = vld [vmem:[#allocation26_spill] sm:$0xff]  ;;  %v5819_v44 = vld [vmem:[#allocation31_spill] sm:$0xff] }
 0x18b   : > { %v2060_v1 = vsel %vm2032_vm8, %v2027_v8, %v3650_v60  ;;  %3042 = vmatprep.mubr.msk.bf16.mxu1 %vm2150_vm10, %v2110_v21  ;;  %v3184_v63 = vunpack.i.l.bf16 %v5810_v54  ;;  %v3190_v34 = vunpack.i.h.bf16 %v5811_v12  ;;  %v3189_v49 = vunpack.i.l.bf16 %v5811_v12 }
 0x18c   : > { %v2092_v45 = vsel %vm2065_vm9, %v2059_v47, %v3669_v17  ;;  %v2093_v58 = vsel %vm2065_vm9, %v2060_v1, %v3670_v25  ;;  %3027 = vmatmul.mubr.msk.bf16.gmra.mrb[8].mxu0 %vm2150_vm10, %v2103_v9  ;;  %v3225_v22 = vunpack.i.h.bf16 %v5812_v50  ;;  %v3224_v38 = vunpack.i.l.bf16 %v5812_v50  ;;  %v5820_v25 = vld [vmem:[#allocation32_spill] sm:$0xff] }
 0x18d   : > { %v2111_v61 = vpack.c.bf16 %v2093_v58, %v2092_v45  ;;  %v5174_v35 = vpop.permute.xlu1 %3677  ;;  %v5813_v42 = vunpack.i.l.bf16 %v4393_v37  ;;  %v3230_v39 = vunpack.i.h.bf16 %v5814_v52  ;;  %v3229_v53 = vunpack.i.l.bf16 %v5814_v52 }
 0x18e   : > { %v3264_v15 = vunpack.i.l.bf16 %v5815_v20  ;;  %v5182_v10 = vpop.permute.xlu0 %3682  ;;  %v1850_v55 = vsel %vm433_vm0, %v3763_v59, %v3150_v33  ;;  %v1849_v43 = vsel %vm433_vm0, %v3764_v46, %v3149_v51  ;;  %v1864_v37 = vsel %vm433_vm0, %v3765_v0, %v3185_v62  ;;  %v5821_v62 = vld [vmem:[#allocation37_spill] sm:$0xff] }
 0x18f   : > { %v1847_v16 = vsel %vm433_vm0, %v3762_v32, %v5813_v42  ;;  %v3265_v27 = vunpack.i.h.bf16 %v5815_v20  ;;  %3043 = vmatmul.mubr.msk.bf16.gmra.mrb[8].mxu1 %vm2150_vm10, %v2111_v61  ;;  %v1863_v24 = vsel %vm433_vm0, %v3766_v26, %v3184_v63  ;;  %v1866_v2 = vsel %vm433_vm0, %v3767_v6, %v3190_v34  ;;  %v5822_v34 = vld [vmem:[#allocation38_spill] sm:$0xff] }
 0x190   : > { %v3270_v18 = vunpack.i.h.bf16 %v5816_v7  ;;  %v3269_v33 = vunpack.i.l.bf16 %v5816_v7  ;;  %v1865_v36 = vsel %vm433_vm0, %v3768_v5, %v3189_v49  ;;  %v1880_v13 = vsel %vm1867_vm3, %v1847_v16, %v3224_v38  ;;  %v5823_v49 = vld [vmem:[#allocation45_spill] sm:$0xff] }
 0x191   : > { %v1881_v41 = vsel %vm1867_vm3, %v5040_v11, %v3225_v22  ;;  %v3304_v60 = vunpack.i.l.bf16 %v5817_v57  ;;  %v5200_v3 = vpop.permute.xlu1 %3687  ;;  %v1883_v31 = vsel %vm1867_vm3, %v1850_v55, %v3230_v39  ;;  %v1882_v48 = vsel %vm1867_vm3, %v1849_v43, %v3229_v53 }
 0x192   : > { %v1896_v4 = vsel %vm1867_vm3, %v1863_v24, %v3264_v15  ;;  %v3305_v14 = vunpack.i.h.bf16 %v5817_v57  ;;  %v5206_v28 = vpop.permute.xlu0 %3692  ;;  %v1897_v56 = vsel %vm1867_vm3, %v1864_v37, %v3265_v27  ;;  %v3310_v21 = vunpack.i.h.bf16 %v5818_v40 }
 0x193   : > { %v3309_v11 = vunpack.i.l.bf16 %v5818_v40  ;;  %v3344_v30 = vunpack.i.l.bf16 %v5819_v44  ;;  %v1899_v19 = vsel %vm1867_vm3, %v1866_v2, %v3270_v18  ;;  %v1898_v8 = vsel %vm1867_vm3, %v1865_v36, %v3269_v33 }
 0x194   : > { %v3345_v9 = vunpack.i.h.bf16 %v5819_v44  ;;  %v3349_v17 = vunpack.i.l.bf16 %v5820_v25  ;;  %v1913_v51 = vsel %vm1900_vm4, %v1880_v13, %v3304_v60  ;;  %v3350_v54 = vunpack.i.h.bf16 %v5820_v25 }
 0x195   : > { %v3385_v47 = vunpack.i.h.bf16 %v5821_v62  ;;  %v3384_v1 = vunpack.i.l.bf16 %v5821_v62  ;;  %v3698_v63 = vpop.permute.xlu1 %3697  ;;  %v1914_v12 = vsel %vm1900_vm4, %v1881_v41, %v3305_v14  ;;  %v3390_v45 = vunpack.i.h.bf16 %v5822_v34 }
 0x196   : > { %v3389_v58 = vunpack.i.l.bf16 %v5822_v34  ;;  %v3424_v50 = vunpack.i.l.bf16 %v5823_v49  ;;  %v3703_v22 = vpop.permute.xlu0 %3702  ;;  %v1915_v38 = vsel %vm1900_vm4, %v1882_v48, %v3309_v11  ;;  %v1916_v61 = vsel %vm1900_vm4, %v1883_v31, %v3310_v21 }
 0x197   : > { %v1929_v32 = vsel %vm1900_vm4, %v1896_v4, %v3344_v30  ;;  %v3425_v42 = vunpack.i.h.bf16 %v5823_v49  ;;  %v1930_v16 = vsel %vm1900_vm4, %v1897_v56, %v3345_v9  ;;  %v1931_v52 = vsel %vm1900_vm4, %v1898_v8, %v3349_v17 }
 0x198   : > { %v3430_v39 = vunpack.i.h.bf16 %v4631_v29  ;;  %v3429_v53 = vunpack.i.l.bf16 %v4631_v29  ;;  %v1932_v20 = vsel %vm1900_vm4, %v1899_v19, %v3350_v54  ;;  %v1946_v15 = vsel %vm1933_vm5, %v1913_v51, %v3384_v1 }
 0x199   : > { %v1947_v59 = vsel %vm1933_vm5, %v1914_v12, %v3385_v47  ;;  %v3674_v55 = vunpack.i.l.bf16 %v5159_v23  ;;  %v5236_v46 = vpop.permute.xlu1 %3707  ;;  %v1948_v43 = vsel %vm1933_vm5, %v1915_v38, %v3389_v58  ;;  %v1949_v0 = vsel %vm1933_vm5, %v1916_v61, %v3390_v45 }
 0x19a   : > { %v1962_v37 = vsel %vm1933_vm5, %v1929_v32, %v3424_v50  ;;  %v3675_v27 = vunpack.i.h.bf16 %v5159_v23  ;;  %v3713_v26 = vpop.permute.xlu0 %3712  ;;  %v1963_v29 = vsel %vm1933_vm5, %v1930_v16, %v3425_v42  ;;  %v3680_v24 = vunpack.i.h.bf16 %v5174_v35 }
 0x19b   : > { %v3679_v6 = vunpack.i.l.bf16 %v5174_v35  ;;  %v3685_v2 = vunpack.i.h.bf16 %v5182_v10  ;;  %v1964_v7 = vsel %vm1933_vm5, %v1931_v52, %v3429_v53  ;;  %v1965_v18 = vsel %vm1933_vm5, %v1932_v20, %v3430_v39 }
 0x19c   : > { %v3684_v33 = vunpack.i.l.bf16 %v5182_v10  ;;  %v3689_v5 = vunpack.i.l.bf16 %v5200_v3  ;;  %v1979_v36 = vsel %vm1966_vm6, %v1946_v15, %v3674_v55  ;;  %v3690_v23 = vunpack.i.h.bf16 %v5200_v3 }
 0x19d   : > { %v3695_v13 = vunpack.i.h.bf16 %v5206_v28  ;;  %v3694_v41 = vunpack.i.l.bf16 %v5206_v28  ;;  %v3718_v57 = vpop.permute.xlu1 %3717  ;;  %v1980_v35 = vsel %vm1966_vm6, %v1947_v59, %v3675_v27  ;;  %v3700_v60 = vunpack.i.h.bf16 %v3698_v63 }
 0x19e   : > { %v3699_v31 = vunpack.i.l.bf16 %v3698_v63  ;;  %v3704_v48 = vunpack.i.l.bf16 %v3703_v22  ;;  %v3723_v4 = vpop.permute.xlu0 %3722  ;;  %v1995_v14 = vsel %vm1966_vm6, %v1962_v37, %v3679_v6  ;;  %v1996_v10 = vsel %vm1966_vm6, %v1963_v29, %v3680_v24 }
 0x19f   : > { %v1982_v56 = vsel %vm1966_vm6, %v1949_v0, %v3685_v2  ;;  %v3705_v40 = vunpack.i.h.bf16 %v3703_v22  ;;  %v1981_v3 = vsel %vm1966_vm6, %v1948_v43, %v3684_v33  ;;  %v1997_v21 = vsel %vm1966_vm6, %v1964_v7, %v3689_v5 }
 0x1a0   : > { %v3715_v11 = vunpack.i.h.bf16 %v3713_v26  ;;  %v3714_v28 = vunpack.i.l.bf16 %v3713_v26  ;;  %v1998_v44 = vsel %vm1966_vm6, %v1965_v18, %v3690_v23  ;;  %v2012_v30 = vsel %vm1999_vm7, %v1979_v36, %v3694_v41 }
 0x1a1   : > { %v2013_v19 = vsel %vm1999_vm7, %v1980_v35, %v3695_v13  ;;  %v3719_v8 = vunpack.i.l.bf16 %v3718_v57  ;;  %v3728_v9 = vpop.permute.xlu1 %3727  ;;  %v2028_v25 = vsel %vm1999_vm7, %v1995_v14, %v3699_v31  ;;  %v2029_v17 = vsel %vm1999_vm7, %v1996_v10, %v3700_v60 }
 0x1a2   : > { %v2014_v51 = vsel %vm1999_vm7, %v1981_v3, %v3704_v48  ;;  %v3720_v54 = vunpack.i.h.bf16 %v3718_v57  ;;  %v3733_v62 = vpop.permute.xlu0 %3732  ;;  %v2015_v47 = vsel %vm1999_vm7, %v1982_v56, %v3705_v40  ;;  %v3710_v1 = vunpack.i.h.bf16 %v5236_v46 }
 0x1a3   : > { %v3735_v63 = vunpack.i.h.bf16 %v3733_v62  ;;  %v3734_v12 = vunpack.i.l.bf16 %v3733_v62  ;;  %v2045_v34 = vsel %vm2032_vm8, %v2012_v30, %v3714_v28  ;;  %v2046_v45 = vsel %vm2032_vm8, %v2013_v19, %v3715_v11  ;;  %v2376_v11 = vld [vmem:[%s5317_s28 + $0x60] sm:$0xff] }
 0x1a4   : > { %v3725_v58 = vunpack.i.h.bf16 %v3723_v4  ;;  %v3724_v49 = vunpack.i.l.bf16 %v3723_v4  ;;  %v3709_v50 = vunpack.i.l.bf16 %v5236_v46  ;;  %v2061_v22 = vsel %vm2032_vm8, %v2028_v25, %v3719_v8  ;;  %v2378_v8 = vld [vmem:[%s5317_s28 + $0x70] sm:$0xff] }
 0x1a5   : > { %v2078_v38 = vsel %vm2065_vm9, %v2045_v34, %v3734_v12  ;;  %v2079_v61 = vsel %vm2065_vm9, %v2046_v45, %v3735_v63  ;;  %v3738_v32 = vpop.permute.xlu1 %3737  ;;  %v2062_v42 = vsel %vm2032_vm8, %v2029_v17, %v3720_v54  ;;  %v3730_v20 = vunpack.i.h.bf16 %v3728_v9  ;;  %v2379_v17 = vld [vmem:[%s5317_s28 + $0x78] sm:$0xff] }
 0x1a6   : > { %v2104_v16 = vpack.c.bf16 %v2079_v61, %v2078_v38  ;;  %v3740_v52 = vunpack.i.h.bf16 %v3738_v32  ;;  %v3739_v39 = vunpack.i.l.bf16 %v3738_v32  ;;  %v3743_v53 = vpop.permute.xlu0 %3742  ;;  %v3729_v15 = vunpack.i.l.bf16 %v3728_v9  ;;  %v2389_v61 = vld [vmem:[%s5317_s28 + $0xc8] sm:$0xff] }
 0x1a7   : > { %v3745_v59 = vunpack.i.h.bf16 %v3743_v53  ;;  %v3744_v55 = vunpack.i.l.bf16 %v3743_v53  ;;  %v2047_v43 = vsel %vm2032_vm8, %v2014_v51, %v3724_v49  ;;  %v2048_v46 = vsel %vm2032_vm8, %v2015_v47, %v3725_v58  ;;  %v2391_v53 = vld [vmem:[%s5317_s28 + $0xd8] sm:$0xff] }
 0x1a8   : > { %v2094_v0 = vsel %vm2065_vm9, %v2061_v22, %v3739_v39  ;;  %v2095_v37 = vsel %vm2065_vm9, %v2062_v42, %v3740_v52  ;;  %3030 = vmatprep.mubr.msk.bf16.mxu0 %vm2150_vm10, %v2104_v16  ;;  %v2030_v27 = vsel %vm1999_vm7, %v1997_v21, %v3709_v50  ;;  %v2031_v2 = vsel %vm1999_vm7, %v1998_v44, %v3710_v1  ;;  %v2377_v44 = vld [vmem:[%s5317_s28 + $0x68] sm:$0xff]  ;;  %v2388_v50 = vld [vmem:[%s5317_s28 + $0xc0] sm:$0xff]  ;;  %v2390_v16 = vld [vmem:[%s5317_s28 + $0xd0] sm:$0xff] }
 0x1a9   : > { %v2112_v26 = vpack.c.bf16 %v2095_v37, %v2094_v0  ;;  %v2080_v29 = vsel %vm2065_vm9, %v2047_v43, %v3744_v55  ;;  %v2081_v24 = vsel %vm2065_vm9, %v2048_v46, %v3745_v59  ;;  %v3748_v6 = vpop.permute.xlu1 %3747  ;;  %v2063_v5 = vsel %vm2032_vm8, %v2030_v27, %v3729_v15  ;;  %v2392_v15 = vld [vmem:[%s5317_s28 + $0xe0] sm:$0xff]  ;;  %v2393_v43 = vld [vmem:[%s5317_s28 + $0xe8] sm:$0xff] }
 0x1aa   : > { %v2105_v7 = vpack.c.bf16 %v2081_v24, %v2080_v29  ;;  %v3750_v18 = vunpack.i.h.bf16 %v3748_v6  ;;  %v3749_v33 = vunpack.i.l.bf16 %v3748_v6  ;;  %v2064_v36 = vsel %vm2032_vm8, %v2031_v2, %v3730_v20  ;;  %v5291_v57 = vpop.permute.xlu0 %2460 }
 0x1ab   : > { %3046 = vmatprep.mubr.msk.bf16.mxu1 %vm2150_vm10, %v2112_v26 }
 0x1ac   : > { %v2096_v23 = vsel %vm2065_vm9, %v2063_v5, %v3749_v33  ;;  %v2097_v13 = vsel %vm2065_vm9, %v2064_v36, %v3750_v18  ;;  %3031 = vmatmul.mubr.msk.bf16.gmra.mrb[12].mxu0 %vm2150_vm10, %v2105_v7 }
 0x1ad   : > { %v2113_v41 = vpack.c.bf16 %v2097_v13, %v2096_v23  ;;  %v5293_v35 = vpop.permute.xlu1 %2462 }
 0x1ae   : > { %v5295_v60 = vpop.permute.xlu0 %2464 }
 0x1af   : > { %3047 = vmatmul.mubr.msk.bf16.gmra.mrb[12].mxu1 %vm2150_vm10, %v2113_v41 }
 0x1b1   : > { %v5297_v31 = vpop.permute.xlu1 %2466 }
 0x1b2   : > { %v5299_v48 = vpop.permute.xlu0 %2468 }
 0x1b5   : > { %v5301_v4 = vpop.permute.xlu1 %2470 }
 0x1b6   : > { %v5303_v14 = vpop.permute.xlu0 %2472 }
 0x1b9   : > { %v5305_v10 = vpop.permute.xlu1 %2474 }
 0x1ba   : > { %v5307_v56 = vpop.permute.xlu0 %2476 }
 0x1bd   : > { %v5309_v40 = vpop.permute.xlu1 %2478 }
 0x1be   : > { %v5311_v3 = vpop.permute.xlu0 %2480 }
 0x1c1   : > { %v5319_v21 = vpop.permute.xlu1 %2482 }
 0x1c2   : > { %v2485_v28 = vpop.permute.xlu0 %2484 }
 0x1c3   : > { %v5324_v30 = vsel %vm1867_vm3, %v2376_v11, %v2485_v28 }
 0x1c5   : > { %v2487_v19 = vpop.permute.xlu1 %2486 }
 0x1c6   : > { %v5328_v9 = vsel %vm1867_vm3, %v2377_v44, %v2487_v19  ;;  %v2489_v25 = vpop.permute.xlu0 %2488 }
 0x1c7   : > { %v5332_v51 = vsel %vm1867_vm3, %v2378_v8, %v2489_v25 }
 0x1c9   : > { %v2491_v54 = vpop.permute.xlu1 %2490 }
 0x1ca   : > { %v5335_v62 = vsel %vm1867_vm3, %v2379_v17, %v2491_v54  ;;  %v5337_v47 = vpop.permute.xlu0 %2492 }
 0x1cd   : > { %v5339_v1 = vpop.permute.xlu1 %2494 }
 0x1ce   : > { %v5341_v63 = vpop.permute.xlu0 %2496 }
 0x1d1   : > { %v5343_v12 = vpop.permute.xlu1 %2498 }
 0x1d2   : > { %v5345_v34 = vpop.permute.xlu0 %2500 }
 0x1d5   : > { %v5347_v45 = vpop.permute.xlu1 %2502 }
 0x1d6   : > { %v5349_v58 = vpop.permute.xlu0 %2504 }
 0x1d9   : > { %v5351_v49 = vpop.permute.xlu1 %2506 }
 0x1da   : > { %v2509_v22 = vpop.permute.xlu0 %2508 }
 0x1db   : > { %v5355_v38 = vsel %vm1867_vm3, %v2388_v50, %v2509_v22 }
 0x1dd   : > { %v2511_v32 = vpop.permute.xlu1 %2510 }
 0x1de   : > { %v5359_v42 = vsel %vm1867_vm3, %v2389_v61, %v2511_v32  ;;  %v2513_v52 = vpop.permute.xlu0 %2512 }
 0x1df   : > { %v5363_v39 = vsel %vm1867_vm3, %v2390_v16, %v2513_v52 }
 0x1e1   : > { %v2515_v20 = vpop.permute.xlu1 %2514 }
 0x1e2   : > { %v5368_v59 = vsel %vm1867_vm3, %v2391_v53, %v2515_v20  ;;  %v2517_v55 = vpop.permute.xlu0 %2516 }
 0x1e3   : > { %v5372_v46 = vsel %vm1867_vm3, %v2392_v15, %v2517_v55 }
 0x1e5   : > { %v2519_v0 = vpop.permute.xlu1 %2518 }
 0x1e6   : > { %v5375_v37 = vsel %vm1867_vm3, %v2393_v43, %v2519_v0  ;;  %v5409_v43 = vpop.permute.xlu0 %2520 }
 0x1e9   : > { %v5412_v0 = vpop.permute.xlu1 %2522 }
 0x226   : > { %v3020_v27 = vpop.f32.mrb[0].mxu0 }
 0x227   : > { %v3036_v26 = vpop.f32.mrb[0].mxu1  ;;  %2592 = vrot.lane.b32.xlu0 %v3020_v27, %s3836_s20  ;;  %v2237_v29 = vpop.f32.mrb[1].mxu0  ;;  %v2366_v27 = vld [vmem:[%s5317_s28 + $0x10] sm:$0xff] }
 0x228   : > { %v2301_v24 = vpop.f32.mrb[1].mxu1  ;;  %v3021_v6 = vpop.f32.mrb[2].mxu0 }
 0x229   : > { %v3037_v2 = vpop.f32.mrb[2].mxu1  ;;  %2594 = vrot.lane.b32.xlu1 %v3021_v6, %s3836_s20  ;;  %v2240_v7 = vpop.f32.mrb[3].mxu0 }
 0x22a   : > { %v2304_v18 = vpop.f32.mrb[3].mxu1 }
 0x22b   : > { %2588 = vrot.lane.b32.xlu0 %v2237_v29, %s3836_s20  ;;  %v2750_v29 = vld [vmem:[%s5418_s16 + $0x10] sm:$0xff] }
 0x22d   : > { %2590 = vrot.lane.b32.xlu1 %v2240_v7, %s3836_s20 }
 0x22f   : > { %2624 = vrot.lane.b32.xlu0 %v3036_v26, %s3836_s20  ;;  %v2367_v26 = vld [vmem:[%s5317_s28 + $0x18] sm:$0xff] }
 0x231   : > { %2626 = vrot.lane.b32.xlu1 %v3037_v2, %s3836_s20  ;;  %v2364_v2 = vld [vmem:[%s5317_s28] sm:$0xff] }
 0x233   : > { %2620 = vrot.lane.b32.xlu0 %v2301_v24, %s3836_s20  ;;  %v2686_v24 = vsel %vm1867_vm3, %v2366_v27, %v5295_v60  ;;  %v2684_v60 = vsel %vm1867_vm3, %v2364_v2, %v5291_v57  ;;  %v2764_v27 = vld [vmem:[%s5418_s16 + $0x80] sm:$0xff] }
 0x235   : > { %2622 = vrot.lane.b32.xlu1 %v2304_v18, %s3836_s20  ;;  %v2751_v18 = vld [vmem:[%s5418_s16 + $0x18] sm:$0xff] }
 0x242   : > { %v3024_v33 = vpop.f32.mrb[4].mxu0 }
 0x243   : > { %v3040_v5 = vpop.f32.mrb[4].mxu1  ;;  %2600 = vrot.lane.b32.xlu0 %v3024_v33, %s3836_s20  ;;  %v2253_v36 = vpop.f32.mrb[5].mxu0  ;;  %v2687_v33 = vsel %vm1867_vm3, %v2367_v26, %v5297_v31 }
 0x244   : > { %v2317_v23 = vpop.f32.mrb[5].mxu1  ;;  %v3025_v13 = vpop.f32.mrb[6].mxu0 }
 0x245   : > { %v3041_v41 = vpop.f32.mrb[6].mxu1  ;;  %2602 = vrot.lane.b32.xlu1 %v3025_v13, %s3836_s20  ;;  %v2256_v11 = vpop.f32.mrb[7].mxu0  ;;  %v2382_v13 = vld [vmem:[%s5317_s28 + $0x90] sm:$0xff] }
 0x246   : > { %v2320_v28 = vpop.f32.mrb[7].mxu1  ;;  %v2702_v57 = vsel %vm1867_vm3, %v2382_v13, %v5341_v63 }
 0x247   : > { %2596 = vrot.lane.b32.xlu0 %v2253_v36, %s3836_s20 }
 0x249   : > { %2598 = vrot.lane.b32.xlu1 %v2256_v11, %s3836_s20  ;;  %v2748_v11 = vld [vmem:[%s5418_s16] sm:$0xff] }
 0x24b   : > { %2632 = vrot.lane.b32.xlu0 %v3040_v5, %s3836_s20 }
 0x24d   : > { %2634 = vrot.lane.b32.xlu1 %v3041_v41, %s3836_s20 }
 0x24f   : > { %2628 = vrot.lane.b32.xlu0 %v2317_v23, %s3836_s20  ;;  %v2365_v23 = vld [vmem:[%s5317_s28 + $0x8] sm:$0xff] }
 0x251   : > { %2630 = vrot.lane.b32.xlu1 %v2320_v28, %s3836_s20 }
 0x25f   : > { %v3028_v44 = vpop.f32.mrb[8].mxu0 }
 0x260   : > { %2608 = vrot.lane.b32.xlu0 %v3028_v44, %s3836_s20  ;;  %v2269_v19 = vpop.f32.mrb[9].mxu0  ;;  %v2383_v44 = vld [vmem:[%s5317_s28 + $0x98] sm:$0xff] }
 0x261   : > { %v3029_v8 = vpop.f32.mrb[10].mxu0 }
 0x262   : > { %2610 = vrot.lane.b32.xlu1 %v3029_v8, %s3836_s20  ;;  %v2272_v25 = vpop.f32.mrb[11].mxu0  ;;  %v3044_v17 = vpop.f32.mrb[8].mxu1  ;;  %v2749_v8 = vld [vmem:[%s5418_s16 + $0x8] sm:$0xff] }
 0x263   : > { %v2333_v54 = vpop.f32.mrb[9].mxu1 }
 0x264   : > { %2604 = vrot.lane.b32.xlu0 %v2269_v19, %s3836_s20  ;;  %v3045_v50 = vpop.f32.mrb[10].mxu1 }
 0x265   : > { %v2336_v22 = vpop.f32.mrb[11].mxu1 }
 0x266   : > { %2606 = vrot.lane.b32.xlu1 %v2272_v25, %s3836_s20  ;;  %v2685_v25 = vsel %vm1867_vm3, %v2365_v23, %v5293_v35  ;;  %v2754_v23 = vld [vmem:[%s5418_s16 + $0x30] sm:$0xff] }
 0x268   : > { %2640 = vrot.lane.b32.xlu0 %v3044_v17, %s3836_s20 }
 0x26a   : > { %2642 = vrot.lane.b32.xlu1 %v3045_v50, %s3836_s20  ;;  %v2380_v50 = vld [vmem:[%s5317_s28 + $0x80] sm:$0xff] }
 0x26c   : > { %2636 = vrot.lane.b32.xlu0 %v2333_v54, %s3836_s20 }
 0x26e   : > { %2638 = vrot.lane.b32.xlu1 %v2336_v22, %s3836_s20 }
 0x27f   : > { %v3032_v61 = vpop.f32.mrb[12].mxu0 }
 0x280   : > { %2616 = vrot.lane.b32.xlu0 %v3032_v61, %s3836_s20  ;;  %v2285_v32 = vpop.f32.mrb[13].mxu0  ;;  %v2766_v61 = vld [vmem:[%s5418_s16 + $0x90] sm:$0xff] }
 0x281   : > { %v3033_v16 = vpop.f32.mrb[14].mxu0 }
 0x282   : > { %2618 = vrot.lane.b32.xlu1 %v3033_v16, %s3836_s20  ;;  %v2288_v52 = vpop.f32.mrb[15].mxu0  ;;  %v3048_v53 = vpop.f32.mrb[12].mxu1 }
 0x283   : > { %v2349_v20 = vpop.f32.mrb[13].mxu1 }
 0x284   : > { %2612 = vrot.lane.b32.xlu0 %v2285_v32, %s3836_s20  ;;  %v3049_v15 = vpop.f32.mrb[14].mxu1  ;;  %v2703_v32 = vsel %vm1867_vm3, %v2383_v44, %v5343_v12 }
 0x285   : > { %v2352_v55 = vpop.f32.mrb[15].mxu1 }
 0x286   : > { %2614 = vrot.lane.b32.xlu1 %v2288_v52, %s3836_s20  ;;  %v2767_v52 = vld [vmem:[%s5418_s16 + $0x98] sm:$0xff] }
 0x288   : > { %2644 = vrot.lane.b32.xlu0 %v2349_v20, %s3836_s20 }
 0x28a   : > { %2646 = vrot.lane.b32.xlu1 %v2352_v55, %s3836_s20  ;;  %v2381_v55 = vld [vmem:[%s5317_s28 + $0x88] sm:$0xff] }
 0x28c   : > { %2648 = vrot.lane.b32.xlu0 %v3048_v53, %s3836_s20  ;;  %v2700_v53 = vsel %vm1867_vm3, %v2380_v50, %v5337_v47  ;;  %v2753_v50 = vld [vmem:[%s5418_s16 + $0x28] sm:$0xff] }
 0x28e   : > { %2650 = vrot.lane.b32.xlu1 %v3049_v15, %s3836_s20  ;;  %s2986_s20 = sshll.u32 %s3900_s25, 12  ;;  %s5639_s25 = scalar_lea.sflag [#allocation4], %s272_s13 }
 0x28f   : > { %s5629_s11 = scalar_lea.hbm %s5687_s6, %s2986_s20 }
 0x299   : > { %v2593_v6 = vpop.permute.xlu0 %2592 }
 0x29a   : > { %v2718_v7 = vsel %vm1900_vm4, %v2686_v24, %v2593_v6  ;;  %v2765_v24 = vld [vmem:[%s5418_s16 + $0x88] sm:$0xff]  ;;  %v2701_v6 = vsel %vm1867_vm3, %v2381_v55, %v5339_v1 }
 0x29b   : > { %v2782_v5 = vadd.f32 %v2750_v29, %v2718_v7  ;;  %v2595_v36 = vpop.permute.xlu1 %2594 }
 0x29c   : > { %v2719_v41 = vsel %vm1900_vm4, %v2687_v33, %v2595_v36  ;;  %v2371_v36 = vld [vmem:[%s5317_s28 + $0x38] sm:$0xff] }
 0x29d   : > { %2814 = vst.msk [vmem:[%s5438_s12 + $0x10] sm:$0xff] %vm1933_vm5, %v2782_v5  ;;  %v2783_v31 = vadd.f32 %v2751_v18, %v2719_v41  ;;  %v2589_v28 = vpop.permute.xlu0 %2588  ;;  %v2370_v5 = vld [vmem:[%s5317_s28 + $0x30] sm:$0xff]  ;;  %v2368_v41 = vld [vmem:[%s5317_s28 + $0x20] sm:$0xff] }
 0x29e   : > { %v2716_v19 = vsel %vm1900_vm4, %v2684_v60, %v2589_v28  ;;  %v2690_v1 = vsel %vm1867_vm3, %v2370_v5, %v5303_v14  ;;  %v2755_v60 = vld [vmem:[%s5418_s16 + $0x38] sm:$0xff]  ;;  %v2688_v14 = vsel %vm1867_vm3, %v2368_v41, %v5299_v48  ;;  %v2372_v41 = vld [vmem:[%s5317_s28 + $0x40] sm:$0xff] }
 0x29f   : > { %2815 = vst.msk [vmem:[%s5438_s12 + $0x18] sm:$0xff] %vm1933_vm5, %v2783_v31  ;;  %v2780_v17 = vadd.f32 %v2748_v11, %v2716_v19  ;;  %v2591_v54 = vpop.permute.xlu1 %2590  ;;  %v2691_v31 = vsel %vm1867_vm3, %v2371_v36, %v5305_v10  ;;  %v2369_v19 = vld [vmem:[%s5317_s28 + $0x28] sm:$0xff]  ;;  %v2387_v48 = vld [vmem:[%s5317_s28 + $0xb8] sm:$0xff]  ;;  %v2374_v36 = vld [vmem:[%s5317_s28 + $0x50] sm:$0xff] }
 0x2a0   : > { %v2717_v22 = vsel %vm1900_vm4, %v2685_v25, %v2591_v54  ;;  %v2752_v25 = vld [vmem:[%s5418_s16 + $0x20] sm:$0xff]  ;;  %v2386_v54 = vld [vmem:[%s5317_s28 + $0xb0] sm:$0xff]  ;;  %v2707_v55 = vsel %vm1867_vm3, %v2387_v48, %v5351_v49 }
 0x2a1   : > { %2812 = vst.msk [vmem:[%s5438_s12] sm:$0xff] %vm1933_vm5, %v2780_v17  ;;  %v2781_v35 = vadd.f32 %v2749_v8, %v2717_v22  ;;  %v2625_v16 = vpop.permute.xlu0 %2624  ;;  %v2689_v22 = vsel %vm1867_vm3, %v2369_v19, %v5301_v4  ;;  %v2384_v4 = vld [vmem:[%s5317_s28 + $0xa0] sm:$0xff]  ;;  %v2373_v19 = vld [vmem:[%s5317_s28 + $0x48] sm:$0xff] }
 0x2a2   : > { %v2734_v63 = vsel %vm1900_vm4, %v2702_v57, %v2625_v16  ;;  %v2770_v16 = vld [vmem:[%s5418_s16 + $0xb0] sm:$0xff] }
 0x2a3   : > { %2813 = vst.msk [vmem:[%s5438_s12 + $0x8] sm:$0xff] %vm1933_vm5, %v2781_v35  ;;  %v2798_v20 = vadd.f32 %v2766_v61, %v2734_v63  ;;  %v2627_v15 = vpop.permute.xlu1 %2626  ;;  %v2706_v63 = vsel %vm1867_vm3, %v2386_v54, %v5349_v58  ;;  %v2693_v54 = vsel %vm1867_vm3, %v2373_v19, %v5309_v40 }
 0x2a4   : > { %v2735_v12 = vsel %vm1900_vm4, %v2703_v32, %v2627_v15  ;;  %v2771_v15 = vld [vmem:[%s5418_s16 + $0xb8] sm:$0xff] }
 0x2a5   : > { %2830 = vst.msk [vmem:[%s5438_s12 + $0x90] sm:$0xff] %vm1933_vm5, %v2798_v20  ;;  %v2799_v26 = vadd.f32 %v2767_v52, %v2735_v12  ;;  %v2621_v29 = vpop.permute.xlu0 %2620 }
 0x2a6   : > { %v2732_v47 = vsel %vm1900_vm4, %v2700_v53, %v2621_v29  ;;  %v2768_v29 = vld [vmem:[%s5418_s16 + $0xa0] sm:$0xff] }
 0x2a7   : > { %2831 = vst.msk [vmem:[%s5438_s12 + $0x98] sm:$0xff] %vm1933_vm5, %v2799_v26  ;;  %v2796_v2 = vadd.f32 %v2764_v27, %v2732_v47  ;;  %v2623_v7 = vpop.permute.xlu1 %2622  ;;  %v2385_v26 = vld [vmem:[%s5317_s28 + $0xa8] sm:$0xff]  ;;  %v2704_v47 = vsel %vm1867_vm3, %v2384_v4, %v5345_v34 }
 0x2a8   : > { %v2733_v18 = vsel %vm1900_vm4, %v2701_v6, %v2623_v7  ;;  %v2705_v7 = vsel %vm1867_vm3, %v2385_v26, %v5347_v45  ;;  %v2694_v45 = vsel %vm1867_vm3, %v2374_v36, %v5311_v3  ;;  %v2692_v3 = vsel %vm1867_vm3, %v2372_v41, %v5307_v56  ;;  %v2394_v36 = vld [vmem:[%s5317_s28 + $0xf0] sm:$0xff] }
 0x2a9   : > { %2828 = vst.msk [vmem:[%s5438_s12 + $0x80] sm:$0xff] %vm1933_vm5, %v2796_v2  ;;  %v2797_v33 = vadd.f32 %v2765_v24, %v2733_v18  ;;  %v2769_v2 = vld [vmem:[%s5418_s16 + $0xa8] sm:$0xff]  ;;  %v2778_v41 = vld [vmem:[%s5418_s16 + $0xf0] sm:$0xff] }
 0x2ab   : > { %2829 = vst.msk [vmem:[%s5438_s12 + $0x88] sm:$0xff] %vm1933_vm5, %v2797_v33 }
 0x2b5   : > { %v2601_v13 = vpop.permute.xlu0 %2600 }
 0x2b6   : > { %v2722_v11 = vsel %vm1900_vm4, %v2690_v1, %v2601_v13  ;;  %v2758_v1 = vld [vmem:[%s5418_s16 + $0x50] sm:$0xff] }
 0x2b7   : > { %v2786_v28 = vadd.f32 %v2754_v23, %v2722_v11  ;;  %v2603_v44 = vpop.permute.xlu1 %2602  ;;  %v2375_v23 = vld [vmem:[%s5317_s28 + $0x58] sm:$0xff] }
 0x2b8   : > { %v2723_v8 = vsel %vm1900_vm4, %v2691_v31, %v2603_v44  ;;  %v2695_v31 = vsel %vm1867_vm3, %v2375_v23, %v5319_v21  ;;  %v2757_v21 = vld [vmem:[%s5418_s16 + $0x48] sm:$0xff] }
 0x2b9   : > { %2818 = vst.msk [vmem:[%s5438_s12 + $0x30] sm:$0xff] %vm1933_vm5, %v2786_v28  ;;  %v2787_v57 = vadd.f32 %v2755_v60, %v2723_v8  ;;  %v2597_v17 = vpop.permute.xlu0 %2596  ;;  %v2759_v60 = vld [vmem:[%s5418_s16 + $0x58] sm:$0xff]  ;;  %v2777_v23 = vld [vmem:[%s5418_s16 + $0xe8] sm:$0xff] }
 0x2ba   : > { %v2720_v10 = vsel %vm1900_vm4, %v2688_v14, %v2597_v17 }
 0x2bb   : > { %2819 = vst.msk [vmem:[%s5438_s12 + $0x38] sm:$0xff] %vm1933_vm5, %v2787_v57  ;;  %v2784_v61 = vadd.f32 %v2752_v25, %v2720_v10  ;;  %v2599_v32 = vpop.permute.xlu1 %2598  ;;  %v2756_v25 = vld [vmem:[%s5418_s16 + $0x40] sm:$0xff] }
 0x2bc   : > { %v2721_v35 = vsel %vm1900_vm4, %v2689_v22, %v2599_v32  ;;  %v2774_v22 = vld [vmem:[%s5418_s16 + $0xd0] sm:$0xff] }
 0x2bd   : > { %2816 = vst.msk [vmem:[%s5438_s12 + $0x20] sm:$0xff] %vm1933_vm5, %v2784_v61  ;;  %v2785_v52 = vadd.f32 %v2753_v50, %v2721_v35  ;;  %v2633_v53 = vpop.permute.xlu0 %2632  ;;  %v2775_v35 = vld [vmem:[%s5418_s16 + $0xd8] sm:$0xff] }
 0x2be   : > { %v2738_v20 = vsel %vm1900_vm4, %v2706_v63, %v2633_v53 }
 0x2bf   : > { %2817 = vst.msk [vmem:[%s5438_s12 + $0x28] sm:$0xff] %vm1933_vm5, %v2785_v52  ;;  %v2802_v12 = vadd.f32 %v2770_v16, %v2738_v20  ;;  %v2635_v27 = vpop.permute.xlu1 %2634  ;;  %v2772_v52 = vld [vmem:[%s5418_s16 + $0xc0] sm:$0xff]  ;;  %v2773_v20 = vld [vmem:[%s5418_s16 + $0xc8] sm:$0xff] }
 0x2c0   : > { %v2739_v58 = vsel %vm1900_vm4, %v2707_v55, %v2635_v27  ;;  %v2762_v27 = vld [vmem:[%s5418_s16 + $0x70] sm:$0xff] }
 0x2c1   : > { %2834 = vst.msk [vmem:[%s5438_s12 + $0xb0] sm:$0xff] %vm1933_vm5, %v2802_v12  ;;  %v2803_v24 = vadd.f32 %v2771_v15, %v2739_v58  ;;  %v2629_v49 = vpop.permute.xlu0 %2628  ;;  %v2763_v58 = vld [vmem:[%s5418_s16 + $0x78] sm:$0xff] }
 0x2c2   : > { %v2736_v6 = vsel %vm1900_vm4, %v2704_v47, %v2629_v49 }
 0x2c3   : > { %2835 = vst.msk [vmem:[%s5438_s12 + $0xb8] sm:$0xff] %vm1933_vm5, %v2803_v24  ;;  %v2800_v18 = vadd.f32 %v2768_v29, %v2736_v6  ;;  %v2631_v33 = vpop.permute.xlu1 %2630  ;;  %v2760_v24 = vld [vmem:[%s5418_s16 + $0x60] sm:$0xff] }
 0x2c4   : > { %v2737_v34 = vsel %vm1900_vm4, %v2705_v7, %v2631_v33  ;;  %v2776_v33 = vld [vmem:[%s5418_s16 + $0xe0] sm:$0xff] }
 0x2c5   : > { %2832 = vst.msk [vmem:[%s5438_s12 + $0xa0] sm:$0xff] %vm1933_vm5, %v2800_v18  ;;  %v2801_v5 = vadd.f32 %v2769_v2, %v2737_v34 }
 0x2c7   : > { %2833 = vst.msk [vmem:[%s5438_s12 + $0xa8] sm:$0xff] %vm1933_vm5, %v2801_v5 }
 0x2d2   : > { %v2609_v13 = vpop.permute.xlu0 %2608 }
 0x2d3   : > { %v2726_v11 = vsel %vm1900_vm4, %v2694_v45, %v2609_v13  ;;  %v2395_v13 = vld [vmem:[%s5317_s28 + $0xf8] sm:$0xff]  ;;  %s3773_s28 = sshll.u32 %s3842_s19, 4  ;;  %s3774_s28 = int_to_ptr.vmem [resolvable:$false] %s3773_s28 }
 0x2d4   : > { %v2790_v28 = vadd.f32 %v2758_v1, %v2726_v11  ;;  %v2611_v44 = vpop.permute.xlu1 %2610  ;;  %v2714_v11 = vsel %vm1867_vm3, %v2394_v36, %v5409_v43  ;;  %s3775_s14 = scalar_lea.vmem %s3774_s28, 8192  ;;  %p3776_p0 = scmp.lt.s32.totalorder %s5633_s29, %s3774_s28 }
 0x2d5   : > { %v2727_v8 = vsel %vm1900_vm4, %v2695_v31, %v2611_v44  ;;  %p3777_p1 = scmp.lt.s32.totalorder %s3775_s14, %s3769_s17 }
 0x2d6   : > { %2822 = vst.msk [vmem:[%s5438_s12 + $0x50] sm:$0xff] %vm1933_vm5, %v2790_v28  ;;  %v2791_v14 = vadd.f32 %v2759_v60, %v2727_v8  ;;  %v2605_v57 = vpop.permute.xlu0 %2604  ;;  %v2779_v28 = vld [vmem:[%s5418_s16 + $0xf8] sm:$0xff] }
 0x2d7   : > { %v2724_v17 = vsel %vm1900_vm4, %v2692_v3, %v2605_v57  ;;  %p3778_p2 = por %p3777_p1, %p3776_p0 }
 0x2d8   : > { %2823 = vst.msk [vmem:[%s5438_s12 + $0x58] sm:$0xff] %vm1933_vm5, %v2791_v14  ;;  %v2788_v10 = vadd.f32 %v2756_v25, %v2724_v17  ;;  %v2607_v50 = vpop.permute.xlu1 %2606 }
 0x2d9   : > { %v2725_v56 = vsel %vm1900_vm4, %v2693_v54, %v2607_v50  ;;  %p3779_p3 = pnand %p3778_p2, %p3772_p13 }
 0x2da   : > { %2820 = vst.msk [vmem:[%s5438_s12 + $0x40] sm:$0xff] %vm1933_vm5, %v2788_v10  ;;  %v2789_v61 = vadd.f32 %v2757_v21, %v2725_v56  ;;  %v2641_v32 = vpop.permute.xlu0 %2640 }
 0x2db   : > { %v2742_v48 = vsel %vm1900_vm4, %v5363_v39, %v2641_v32 }
 0x2dc   : > { %2821 = vst.msk [vmem:[%s5438_s12 + $0x48] sm:$0xff] %vm1933_vm5, %v2789_v61  ;;  %v2806_v40 = vadd.f32 %v2774_v22, %v2742_v48  ;;  %v2643_v16 = vpop.permute.xlu1 %2642 }
 0x2dd   : > { %v2743_v63 = vsel %vm1900_vm4, %v5368_v59, %v2643_v16 }
 0x2de   : > { %2838 = vst.msk [vmem:[%s5438_s12 + $0xd0] sm:$0xff] %vm1933_vm5, %v2806_v40  ;;  %v2807_v53 = vadd.f32 %v2775_v35, %v2743_v63  ;;  %v2637_v4 = vpop.permute.xlu0 %2636 }
 0x2df   : > { %v2740_v39 = vsel %vm1900_vm4, %v5355_v38, %v2637_v4 }
 0x2e0   : > { %2839 = vst.msk [vmem:[%s5438_s12 + $0xd8] sm:$0xff] %vm1933_vm5, %v2807_v53  ;;  %v2804_v15 = vadd.f32 %v2772_v52, %v2740_v39  ;;  %v2639_v55 = vpop.permute.xlu1 %2638 }
 0x2e1   : > { %v2741_v12 = vsel %vm1900_vm4, %v5359_v42, %v2639_v55 }
 0x2e2   : > { %2836 = vst.msk [vmem:[%s5438_s12 + $0xc0] sm:$0xff] %vm1933_vm5, %v2804_v15  ;;  %v2805_v59 = vadd.f32 %v2773_v20, %v2741_v12 }
 0x2e4   : > { %2837 = vst.msk [vmem:[%s5438_s12 + $0xc8] sm:$0xff] %vm1933_vm5, %v2805_v59 }
 0x2f2   : > { %v2617_v26 = vpop.permute.xlu0 %2616 }
 0x2f3   : > { %v2730_v38 = vsel %vm1900_vm4, %v5332_v51, %v2617_v26  ;;  %v2761_v51 = vld [vmem:[%s5418_s16 + $0x68] sm:$0xff] }
 0x2f4   : > { %v2794_v29 = vadd.f32 %v2762_v27, %v2730_v38  ;;  %v2619_v47 = vpop.permute.xlu1 %2618 }
 0x2f5   : > { %v2731_v42 = vsel %vm1900_vm4, %v5335_v62, %v2619_v47 }
 0x2f6   : > { %2826 = vst.msk [vmem:[%s5438_s12 + $0x70] sm:$0xff] %vm1933_vm5, %v2794_v29  ;;  %v2795_v49 = vadd.f32 %v2763_v58, %v2731_v42  ;;  %v2613_v6 = vpop.permute.xlu0 %2612 }
 0x2f7   : > { %v2728_v2 = vsel %vm1900_vm4, %v5324_v30, %v2613_v6 }
 0x2f8   : > { %2827 = vst.msk [vmem:[%s5438_s12 + $0x78] sm:$0xff] %vm1933_vm5, %v2795_v49  ;;  %v2792_v7 = vadd.f32 %v2760_v24, %v2728_v2  ;;  %v2615_v18 = vpop.permute.xlu1 %2614 }
 0x2f9   : > { %v2729_v62 = vsel %vm1900_vm4, %v5328_v9, %v2615_v18 }
 0x2fa   : > { %2824 = vst.msk [vmem:[%s5438_s12 + $0x60] sm:$0xff] %vm1933_vm5, %v2792_v7  ;;  %v2793_v34 = vadd.f32 %v2761_v51, %v2729_v62  ;;  %v2645_v5 = vpop.permute.xlu0 %2644 }
 0x2fb   : > { %v2744_v30 = vsel %vm1900_vm4, %v5372_v46, %v2645_v5 }
 0x2fc   : > { %2825 = vst.msk [vmem:[%s5438_s12 + $0x68] sm:$0xff] %vm1933_vm5, %v2793_v34  ;;  %v2808_v1 = vadd.f32 %v2776_v33, %v2744_v30  ;;  %v2647_v45 = vpop.permute.xlu1 %2646 }
 0x2fd   : > { %v2745_v9 = vsel %vm1900_vm4, %v5375_v37, %v2647_v45  ;;  %v2715_v37 = vsel %vm1867_vm3, %v2395_v13, %v5412_v0 }
 0x2fe   : > { %2840 = vst.msk [vmem:[%s5438_s12 + $0xe0] sm:$0xff] %vm1933_vm5, %v2808_v1  ;;  %v2809_v60 = vadd.f32 %v2777_v23, %v2745_v9  ;;  %v2649_v46 = vpop.permute.xlu0 %2648 }
 0x2ff   : > { %v2746_v31 = vsel %vm1900_vm4, %v2714_v11, %v2649_v46 }
 0x300   : > { %2841 = vst.msk [vmem:[%s5438_s12 + $0xe8] sm:$0xff] %vm1933_vm5, %v2809_v60  ;;  %v2810_v44 = vadd.f32 %v2778_v41, %v2746_v31  ;;  %v2651_v19 = vpop.permute.xlu1 %2650 }
 0x301   : > { %v2747_v43 = vsel %vm1900_vm4, %v2715_v37, %v2651_v19 }
 0x302   : > { %2842 = vst.msk [vmem:[%s5438_s12 + $0xf0] sm:$0xff] %vm1933_vm5, %v2810_v44  ;;  %v2811_v8 = vadd.f32 %v2779_v28, %v2747_v43 }
 0x304   : > { %2843 = vst.msk [vmem:[%s5438_s12 + $0xf8] sm:$0xff] %vm1933_vm5, %v2811_v8 }
 0x305   : > { %3782 = shalt.err (!%p3779_p3)
}
 0x306   : > { %s3783_s13 = scalar_lea.hbm %s5629_s11, 4096  ;;  %s3787_s26 = scalar_lea.hbm %s5687_s6, 8192 }
 0x307   : > { %p3784_p4 = scmp.ne.s32.totalorder %s5629_s11, %s3783_s13  ;;  %p3788_p9 = scmp.lt.u32.totalorder %s5629_s11, %s5687_s6 }
 0x308   : > { %p3789_p10 = scmp.lt.u32.totalorder %s3787_s26, %s3783_s13  ;;  %p3791_p12 = scmp.lt.u32.totalorder %s3783_s13, %s5629_s11 }
 0x309   : > { %p3785_p7 = pnand %p3784_p4, %p3917_p5 }
 0x30a   : > { %p3790_p11 = por %p3789_p10, %p3788_p9 }
 0x30b   : > { %p3786_p8 = pneg %p3785_p7 }
 0x30c   : > { %p3792_p13 = por %p3791_p12, %p3790_p11 }
 0x30e   : > { %p3793_p0 = pnand %p3792_p13, %p3786_p8 }
 0x310   : > { %3796 = shalt.err (!%p3793_p0)
}
 0x311   : > { %s3843_s9 = smov 128  }
 0x312   : > { %3062 = dma.vmem_to_hbm [thread:$0]  (%p3917_p5), %s5633_s29, 4096, %s5629_s11, %s5639_s25, %s3843_s9, %s3843_s9, %s3834_s18  }
 0x313 PF: > { %p3068_p1 = scmp.ge.s32.totalorder %s3831_s24, 2  ;;  %s2873_s10 = sand.u32 1, %s3819_s21  }
 0x314   : > { %s2874_s17 = scalar_lea.sflag [#allocation4], %s2873_s10 }
 0x315   : > { %p3065_p2 = pnand %p3068_p1, %p3921_p6 }
 0x317   : > { %3814 = dma.done.wait (!%p3065_p2), %s2874_s17, 4096  }
 0x318   : > { %3816 = vsyncadd (!%p3065_p2), %s2874_s17, 4294963200  ;;  %p16_p3 = scmp.ge.s32.totalorder %s3904_s27, 4   ;;  %s5824_s21 = smov %s3823_s22 }
 0x319   : > { %s5825_s22 = smov %s3827_s23  ;;  %s5826_s23 = smov %s3915_s30 }
 0x31a   : > { %s5827_s24 = smov %s3904_s27  ;;  %18 = sbr.rel (!%p16_p3) target bundleno = 3 (0x3), region = 87 }
 0x321   :  { %2879 = vsyncpa [#allocation4], 1 }
 0x322   :  { %2881 = vsyncpa [#allocation4 + $0x1], 1 }

</bundles_post_ra>
